<compile_context>
chip_gen: v6e
topology: v6e:2x2x1
jax: 0.10.0
libtpu: 0.0.40
codegen_flags: <defaults>
</compile_context>

<pallas_src>
import math
import jax
import jax.numpy as jnp
from jax.experimental import pallas as pl
from jax.experimental.pallas import tpu as pltpu

ORIENTATION = 8  # C8 group order


# ----------------------------------------------------------------------------
# Pallas kernel: one matmul + fused (bias -> ReLU -> *mul -> +add) epilogue
# ----------------------------------------------------------------------------
def _make_kernel(apply_relu, has_bias, has_mul, has_add):
    def kernel(*refs):
        it = iter(refs)
        p_ref = next(it)                       # (tile_r, Kp)   bf16
        w_ref = next(it)                       # (Kp, Np)       bf16
        b_ref = next(it) if has_bias else None  # (1, Np)        f32
        m_ref = next(it) if has_mul else None   # (tile_r, Np)   f32
        a_ref = next(it) if has_add else None   # (tile_r, Np)   f32
        o_ref = next(it)                        # (tile_r, Np)   f32

        y = jnp.dot(p_ref[...], w_ref[...], preferred_element_type=jnp.float32)
        if has_bias:
            y = y + b_ref[...]
        if apply_relu:
            y = jnp.maximum(y, 0.0)
        if has_mul:
            y = y * m_ref[...]
        if has_add:
            y = y + a_ref[...]
        o_ref[...] = y.astype(o_ref.dtype)
    return kernel


def _pick_tile(rows, target):
    """Largest multiple-of-8 divisor of `rows` that is <= target (else full rows)."""
    if rows <= target:
        return rows
    t = (target // 8) * 8
    while t >= 8:
        if rows % t == 0:
            return t
        t -= 8
    return rows


def _group_factor(cout, m):
    """How many consecutive pixel-rows to pack into the lane dim (lane-dense output)."""
    if cout >= 128 or 128 % cout != 0:
        return 1
    g = 128 // cout
    return g if m % g == 0 else 1


def fused_conv(patches, w, bias=None, mul=None, add=None, relu=False, group=1):
    """patches: (M, 9*Cin); w: (9*Cin, Cout) with BN scale pre-folded; bias: (Cout,) or None;
    mul/add: (M, Cout) or None.  Returns (M, Cout) f32.

    `group` packs `group` consecutive rows into the lane dimension via a block-diagonal
    weight, so the in-kernel output/epilogue last dim is group*Cout (lane dense for
    Cout < 128)."""
    M, K9 = patches.shape
    Cout = w.shape[1]
    assert w.shape[0] == K9
    g = int(group)
    assert g >= 1 and M % g == 0

    R = M // g
    Kp = g * K9
    Np = g * Cout

    p2 = patches.astype(jnp.bfloat16).reshape(R, Kp)
    w2 = w if g == 1 else jnp.kron(jnp.eye(g, dtype=w.dtype), w)   # block diagonal
    w2 = w2.astype(jnp.bfloat16)

    tile_target = max(64, 1024 // g)          # ~1024 pixels worth of rows per tile
    tile_r = _pick_tile(R, tile_target)
    n_blocks = R // tile_r

    has_bias = bias is not None
    has_mul = mul is not None
    has_add = add is not None

    operands = [p2, w2]
    in_specs = [
        pl.BlockSpec((tile_r, Kp), lambda i: (i, 0)),
        pl.BlockSpec((Kp, Np), lambda i: (0, 0)),
    ]
    if has_bias:
        operands.append(jnp.tile(bias.reshape(1, Cout).astype(jnp.float32), (1, g)))
        in_specs.append(pl.BlockSpec((1, Np), lambda i: (0, 0)))
    if has_mul:
        operands.append(mul.astype(jnp.float32).reshape(R, Np))
        in_specs.append(pl.BlockSpec((tile_r, Np), lambda i: (i, 0)))
    if has_add:
        operands.append(add.astype(jnp.float32).reshape(R, Np))
        in_specs.append(pl.BlockSpec((tile_r, Np), lambda i: (i, 0)))

    # VMEM budget: double-buffered patches + weight + epilogue operands + output, with headroom.
    vmem = (2 * tile_r * Kp * 2            # bf16 patch tiles
            + 2 * Kp * Np * 2              # bf16 weight
            + 2 * 8 * Np * 4               # (padded) bias
            + 2 * tile_r * Np * 4 * (1 + has_mul + has_add))
    vmem_limit = int(min(max(2 * vmem + (4 << 20), 16 << 20), 48 << 20))

    out = pl.pallas_call(
        _make_kernel(relu, has_bias, has_mul, has_add),
        out_shape=jax.ShapeDtypeStruct((R, Np), jnp.float32),
        grid_spec=pltpu.PrefetchScalarGridSpec(
            num_scalar_prefetch=0,
            grid=(n_blocks,),
            in_specs=in_specs,
            out_specs=pl.BlockSpec((tile_r, Np), lambda i: (i, 0)),
        ),
        compiler_params=pltpu.CompilerParams(
            dimension_semantics=("parallel",),
            vmem_limit_bytes=vmem_limit),
    )(*operands)

    return out.reshape(M, Cout)


# ----------------------------------------------------------------------------
# Glue: im2col with the 9 taps folded into the channel axis (bf16 to halve HBM).
# Matches PyTorch conv2d(kernel=3, padding=1, stride, dilation) output semantics.
# ----------------------------------------------------------------------------
def extract_patches(x_nhwc, stride, dilation, out_h, out_w):
    n, h, w, c = x_nhwc.shape
    xp = jnp.pad(x_nhwc, ((0, 0), (1, 1), (1, 1), (0, 0)))
    taps = []
    for ky in range(3):
        for kx in range(3):
            y0 = ky * dilation
            x0 = kx * dilation
            sl = xp[:,
                    y0: y0 + (out_h - 1) * stride + 1: stride,
                    x0: x0 + (out_w - 1) * stride + 1: stride,
                    :]
            taps.append(sl)
    p = jnp.concatenate(taps, axis=-1)            # (N, out_h, out_w, 9*C), tap-major columns
    return p.reshape(-1, 9 * c).astype(jnp.bfloat16)


# ----------------------------------------------------------------------------
# Deterministic parameter construction (BN scale folded into weights)
# ----------------------------------------------------------------------------
def make_conv_w(key, cin, cout):
    return jax.random.normal(key, (9, cin, cout), jnp.float32) / math.sqrt(9.0 * cin)


def make_bn(key, c):
    # InnerBatchNorm (eval): per-field affine, shared across the 8 orientations.
    f = c // ORIENTATION
    k1, k2, k3, k4 = jax.random.split(key, 4)
    gamma = 1.0 + 0.1 * jax.random.normal(k1, (f,), jnp.float32)
    beta = 0.1 * jax.random.normal(k2, (f,), jnp.float32)
    mean = 0.1 * jax.random.normal(k3, (f,), jnp.float32)
    var = 1.0 + 0.1 * jax.random.uniform(k4, (f,), jnp.float32)
    scale = gamma / jnp.sqrt(var + 1e-5)
    bias = beta - mean * scale
    return jnp.repeat(scale, ORIENTATION), jnp.repeat(bias, ORIENTATION)   # (C,), (C,)


def init_params(key, inplanes, laterals_len):
    C = inplanes
    keys = jax.random.split(key, 3 * laterals_len + 8)
    ki = 0
    p = {"ds_w": [], "lc_w": [], "lc_b": []}
    for _ in range(laterals_len):
        ds = make_conv_w(keys[ki], C, C); ki += 1
        p["ds_w"].append(ds.reshape(9 * C, C))                      # no BN on downsample conv
        lc = make_conv_w(keys[ki], C, C); ki += 1
        s, b = make_bn(keys[ki], C); ki += 1
        p["lc_w"].append((lc * s[None, None, :]).reshape(9 * C, C))  # BN scale folded
        p["lc_b"].append(b)
    for name, cin in (("1", C), ("2", C), ("3", C), ("4", C * (laterals_len + 1))):
        w = make_conv_w(keys[ki], cin, C); ki += 1
        s, b = make_bn(keys[ki], C); ki += 1
        p["w" + name] = (w * s[None, None, :]).reshape(9 * cin, C)
        p["b" + name] = b
    return p


# ----------------------------------------------------------------------------
# Forward pass (mirrors ReDCM_D.forward)
# ----------------------------------------------------------------------------
def redcm_d_forward(x, laterals, params):
    # x: (N, C, H, W) NCHW;  laterals[i]: (N, C, H*2^(L-i), W*2^(L-i)) NCHW.
    N, C, H, W = x.shape
    L = len(laterals)
    M = N * H * W
    g = _group_factor(C, M)

    x_nhwc = jnp.transpose(x, (0, 2, 3, 1)).astype(jnp.float32)
    x_flat = x_nhwc.reshape(M, C)

    # laterals[i] = ReLU(BN(lateral_conv(Downsample(laterals[i]))))
    lat_flats = []
    for i in range(L):
        stride = 2 ** (L - i)
        dilation = 2 ** (L - i - 1)
        lat = jnp.transpose(laterals[i], (0, 2, 3, 1))
        p = extract_patches(lat, stride, dilation, H, W)
        ds = fused_conv(p, params["ds_w"][i], group=g)                       # conv only
        p = extract_patches(ds.reshape(N, H, W, C), 1, 1, H, W)
        lf = fused_conv(p, params["lc_w"][i], bias=params["lc_b"][i],
                        relu=True, group=g)                                  # conv+BN+ReLU
        lat_flats.append(lf)

    # y = relu1(bn1(conv1(x)));  y = y * prod_i laterals[i]   (mul fused in kernel)
    mul = lat_flats[0]
    for lf in lat_flats[1:]:
        mul = mul * lf
    p = extract_patches(x_nhwc, 1, 1, H, W)
    y = fused_conv(p, params["w1"], bias=params["b1"], relu=True, mul=mul, group=g)

    # y = relu2(bn2(conv2(y)));  y = y + x   (residual add fused in kernel)
    p = extract_patches(y.reshape(N, H, W, C), 1, 1, H, W)
    y = fused_conv(p, params["w2"], bias=params["b2"], relu=True, add=x_flat, group=g)

    # y = relu3(bn3(conv3(y)))
    p = extract_patches(y.reshape(N, H, W, C), 1, 1, H, W)
    y = fused_conv(p, params["w3"], bias=params["b3"], relu=True, group=g)

    # channel concat [y, lat_0, ..., lat_{L-1}], then relu4(bn4(conv4(.)))
    y_cat = jnp.concatenate([y] + lat_flats, axis=-1).reshape(N, H, W, C * (L + 1))
    p = extract_patches(y_cat, 1, 1, H, W)
    out = fused_conv(p, params["w4"], bias=params["b4"], relu=True, group=g)

    return jnp.transpose(out.reshape(N, H, W, C), (0, 3, 1, 2))


if __name__ == "__main__":
    key = jax.random.PRNGKey(0)
    k_x, k_l0, k_l1, k_p = jax.random.split(key, 4)

    inplanes = 16            # must be a multiple of Orientation=8
    laterals_len = 2
    N, H, W = 2, 32, 32

    x = jax.random.normal(k_x, (N, inplanes, H, W), jnp.float32)
    laterals = [
        jax.random.normal(k_l0, (N, inplanes, H * 4, W * 4), jnp.float32),  # stride 4, dil 2
        jax.random.normal(k_l1, (N, inplanes, H * 2, W * 2), jnp.float32),  # stride 2, dil 1
    ]
    params = init_params(k_p, inplanes, laterals_len)

    fwd = jax.jit(redcm_d_forward)
    out = fwd(x, laterals, params)
    jax.block_until_ready(out)
    assert out.shape == (N, inplanes, H, W), out.shape
    print("KERNEL_OK")
</pallas_src>

<mosaic_0001>
module attributes {stable_mosaic.version = 11 : i64} {
  func.func @kernel(%arg0: i32, %arg1: memref<128x1152xbf16, #tpu.memory_space<vmem>>, %arg2: memref<1152x128xbf16, #tpu.memory_space<vmem>>, %arg3: memref<128x128xf32, #tpu.memory_space<vmem>>) attributes {dimension_semantics = [#tpu.dimension_semantics<parallel>], iteration_bounds = array<i64: 2>, scalar_prefetch = 0 : i64, scratch_operands = 0 : i64, tpu.core_type = #tpu.core_type<tc>, window_params = [{transform_indices = @transform_0, window_bounds = array<i64: 128, 1152>}, {pipeline_mode = #tpu.pipeline_mode<synchronous>, transform_indices = @transform_1, window_bounds = array<i64: 1152, 128>}, {transform_indices = @transform_2, window_bounds = array<i64: 128, 128>}]} {
    %c0 = arith.constant 0 : index
    %c0_0 = arith.constant 0 : index
    %0 = vector.load %arg1[%c0, %c0_0] : memref<128x1152xbf16, #tpu.memory_space<vmem>>, vector<128x1152xbf16>
    %c0_1 = arith.constant 0 : index
    %c0_2 = arith.constant 0 : index
    %1 = vector.load %arg2[%c0_1, %c0_2] : memref<1152x128xbf16, #tpu.memory_space<vmem>>, vector<1152x128xbf16>
    %cst = arith.constant dense<0.000000e+00> : vector<128x128xf32>
    %2 = tpu.matmul %0, %1, %cst {dimension_numbers = #tpu.dot_dimension_numbers<[1], [0], [0], [1], [0, 0, 1, 1], [], []>} : vector<128x1152xbf16>, vector<1152x128xbf16>, vector<128x128xf32> -> vector<128x128xf32>
    %c0_3 = arith.constant 0 : index
    %c0_4 = arith.constant 0 : index
    %3 = vector.load %arg3[%c0_3, %c0_4] : memref<128x128xf32, #tpu.memory_space<vmem>>, vector<128x128xf32>
    tpu.vector_store %arg3[%c0_3, %c0_4], %2 {strides = array<i32>} : memref<128x128xf32, #tpu.memory_space<vmem>>, vector<128x128xf32>,
    return
  }
  func.func @transform_0(%arg0: i32) -> (i32, i32) {
    %c0_i32 = arith.constant 0 : i32
    %c0_i32_0 = arith.constant 0 : i32
    return %arg0, %c0_i32 : i32, i32
  }
  func.func @transform_1(%arg0: i32) -> (i32, i32) {
    %c0_i32 = arith.constant 0 : i32
    %c0_i32_0 = arith.constant 0 : i32
    %c0_i32_1 = arith.constant 0 : i32
    return %c0_i32, %c0_i32_0 : i32, i32
  }
  func.func @transform_2(%arg0: i32) -> (i32, i32) {
    %c0_i32 = arith.constant 0 : i32
    %c0_i32_0 = arith.constant 0 : i32
    return %arg0, %c0_i32 : i32, i32
  }
}

module attributes {stable_mosaic.version = 11 : i64} {
  func.func @kernel(%arg0: i32, %arg1: memref<128x1152xbf16, #tpu.memory_space<vmem>>, %arg2: memref<1152x128xbf16, #tpu.memory_space<vmem>>, %arg3: memref<1x128xf32, #tpu.memory_space<vmem>>, %arg4: memref<128x128xf32, #tpu.memory_space<vmem>>) attributes {dimension_semantics = [#tpu.dimension_semantics<parallel>], iteration_bounds = array<i64: 2>, scalar_prefetch = 0 : i64, scratch_operands = 0 : i64, tpu.core_type = #tpu.core_type<tc>, window_params = [{transform_indices = @transform_0, window_bounds = array<i64: 128, 1152>}, {pipeline_mode = #tpu.pipeline_mode<synchronous>, transform_indices = @transform_1, window_bounds = array<i64: 1152, 128>}, {pipeline_mode = #tpu.pipeline_mode<synchronous>, transform_indices = @transform_2, window_bounds = array<i64: 1, 128>}, {transform_indices = @transform_3, window_bounds = array<i64: 128, 128>}]} {
    %c0 = arith.constant 0 : index
    %c0_0 = arith.constant 0 : index
    %0 = vector.load %arg1[%c0, %c0_0] : memref<128x1152xbf16, #tpu.memory_space<vmem>>, vector<128x1152xbf16>
    %c0_1 = arith.constant 0 : index
    %c0_2 = arith.constant 0 : index
    %1 = vector.load %arg2[%c0_1, %c0_2] : memref<1152x128xbf16, #tpu.memory_space<vmem>>, vector<1152x128xbf16>
    %cst = arith.constant dense<0.000000e+00> : vector<128x128xf32>
    %2 = tpu.matmul %0, %1, %cst {dimension_numbers = #tpu.dot_dimension_numbers<[1], [0], [0], [1], [0, 0, 1, 1], [], []>} : vector<128x1152xbf16>, vector<1152x128xbf16>, vector<128x128xf32> -> vector<128x128xf32>
    %c0_3 = arith.constant 0 : index
    %c0_4 = arith.constant 0 : index
    %3 = vector.load %arg3[%c0_3, %c0_4] : memref<1x128xf32, #tpu.memory_space<vmem>>, vector<1x128xf32>
    %4 = vector.broadcast %3 : vector<1x128xf32> to vector<128x128xf32>
    %5 = arith.addf %2, %4 : vector<128x128xf32>
    %cst_5 = arith.constant 0.000000e+00 : f32
    %6 = vector.broadcast %cst_5 : f32 to vector<128x128xf32>
    %7 = arith.maximumf %5, %6 : vector<128x128xf32>
    %c0_6 = arith.constant 0 : index
    %c0_7 = arith.constant 0 : index
    %8 = vector.load %arg4[%c0_6, %c0_7] : memref<128x128xf32, #tpu.memory_space<vmem>>, vector<128x128xf32>
    tpu.vector_store %arg4[%c0_6, %c0_7], %7 {strides = array<i32>} : memref<128x128xf32, #tpu.memory_space<vmem>>, vector<128x128xf32>,
    return
  }
  func.func @transform_0(%arg0: i32) -> (i32, i32) {
    %c0_i32 = arith.constant 0 : i32
    %c0_i32_0 = arith.constant 0 : i32
    return %arg0, %c0_i32 : i32, i32
  }
  func.func @transform_1(%arg0: i32) -> (i32, i32) {
    %c0_i32 = arith.constant 0 : i32
    %c0_i32_0 = arith.constant 0 : i32
    %c0_i32_1 = arith.constant 0 : i32
    return %c0_i32, %c0_i32_0 : i32, i32
  }
  func.func @transform_2(%arg0: i32) -> (i32, i32) {
    %c0_i32 = arith.constant 0 : i32
    %c0_i32_0 = arith.constant 0 : i32
    %c0_i32_1 = arith.constant 0 : i32
    return %c0_i32, %c0_i32_0 : i32, i32
  }
  func.func @transform_3(%arg0: i32) -> (i32, i32) {
    %c0_i32 = arith.constant 0 : i32
    %c0_i32_0 = arith.constant 0 : i32
    return %arg0, %c0_i32 : i32, i32
  }
}

module attributes {stable_mosaic.version = 11 : i64} {
  func.func @kernel(%arg0: i32, %arg1: memref<128x1152xbf16, #tpu.memory_space<vmem>>, %arg2: memref<1152x128xbf16, #tpu.memory_space<vmem>>, %arg3: memref<1x128xf32, #tpu.memory_space<vmem>>, %arg4: memref<128x128xf32, #tpu.memory_space<vmem>>, %arg5: memref<128x128xf32, #tpu.memory_space<vmem>>) attributes {dimension_semantics = [#tpu.dimension_semantics<parallel>], iteration_bounds = array<i64: 2>, scalar_prefetch = 0 : i64, scratch_operands = 0 : i64, tpu.core_type = #tpu.core_type<tc>, window_params = [{transform_indices = @transform_0, window_bounds = array<i64: 128, 1152>}, {pipeline_mode = #tpu.pipeline_mode<synchronous>, transform_indices = @transform_1, window_bounds = array<i64: 1152, 128>}, {pipeline_mode = #tpu.pipeline_mode<synchronous>, transform_indices = @transform_2, window_bounds = array<i64: 1, 128>}, {transform_indices = @transform_3, window_bounds = array<i64: 128, 128>}, {transform_indices = @transform_4, window_bounds = array<i64: 128, 128>}]} {
    %c0 = arith.constant 0 : index
    %c0_0 = arith.constant 0 : index
    %0 = vector.load %arg1[%c0, %c0_0] : memref<128x1152xbf16, #tpu.memory_space<vmem>>, vector<128x1152xbf16>
    %c0_1 = arith.constant 0 : index
    %c0_2 = arith.constant 0 : index
    %1 = vector.load %arg2[%c0_1, %c0_2] : memref<1152x128xbf16, #tpu.memory_space<vmem>>, vector<1152x128xbf16>
    %cst = arith.constant dense<0.000000e+00> : vector<128x128xf32>
    %2 = tpu.matmul %0, %1, %cst {dimension_numbers = #tpu.dot_dimension_numbers<[1], [0], [0], [1], [0, 0, 1, 1], [], []>} : vector<128x1152xbf16>, vector<1152x128xbf16>, vector<128x128xf32> -> vector<128x128xf32>
    %c0_3 = arith.constant 0 : index
    %c0_4 = arith.constant 0 : index
    %3 = vector.load %arg3[%c0_3, %c0_4] : memref<1x128xf32, #tpu.memory_space<vmem>>, vector<1x128xf32>
    %4 = vector.broadcast %3 : vector<1x128xf32> to vector<128x128xf32>
    %5 = arith.addf %2, %4 : vector<128x128xf32>
    %cst_5 = arith.constant 0.000000e+00 : f32
    %6 = vector.broadcast %cst_5 : f32 to vector<128x128xf32>
    %7 = arith.maximumf %5, %6 : vector<128x128xf32>
    %c0_6 = arith.constant 0 : index
    %c0_7 = arith.constant 0 : index
    %8 = vector.load %arg4[%c0_6, %c0_7] : memref<128x128xf32, #tpu.memory_space<vmem>>, vector<128x128xf32>
    %9 = arith.mulf %7, %8 : vector<128x128xf32>
    %c0_8 = arith.constant 0 : index
    %c0_9 = arith.constant 0 : index
    %10 = vector.load %arg5[%c0_8, %c0_9] : memref<128x128xf32, #tpu.memory_space<vmem>>, vector<128x128xf32>
    tpu.vector_store %arg5[%c0_8, %c0_9], %9 {strides = array<i32>} : memref<128x128xf32, #tpu.memory_space<vmem>>, vector<128x128xf32>,
    return
  }
  func.func @transform_0(%arg0: i32) -> (i32, i32) {
    %c0_i32 = arith.constant 0 : i32
    %c0_i32_0 = arith.constant 0 : i32
    return %arg0, %c0_i32 : i32, i32
  }
  func.func @transform_1(%arg0: i32) -> (i32, i32) {
    %c0_i32 = arith.constant 0 : i32
    %c0_i32_0 = arith.constant 0 : i32
    %c0_i32_1 = arith.constant 0 : i32
    return %c0_i32, %c0_i32_0 : i32, i32
  }
  func.func @transform_2(%arg0: i32) -> (i32, i32) {
    %c0_i32 = arith.constant 0 : i32
    %c0_i32_0 = arith.constant 0 : i32
    %c0_i32_1 = arith.constant 0 : i32
    return %c0_i32, %c0_i32_0 : i32, i32
  }
  func.func @transform_3(%arg0: i32) -> (i32, i32) {
    %c0_i32 = arith.constant 0 : i32
    %c0_i32_0 = arith.constant 0 : i32
    return %arg0, %c0_i32 : i32, i32
  }
  func.func @transform_4(%arg0: i32) -> (i32, i32) {
    %c0_i32 = arith.constant 0 : i32
    %c0_i32_0 = arith.constant 0 : i32
    return %arg0, %c0_i32 : i32, i32
  }
}

module attributes {stable_mosaic.version = 11 : i64} {
  func.func @kernel(%arg0: i32, %arg1: memref<128x1152xbf16, #tpu.memory_space<vmem>>, %arg2: memref<1152x128xbf16, #tpu.memory_space<vmem>>, %arg3: memref<1x128xf32, #tpu.memory_space<vmem>>, %arg4: memref<128x128xf32, #tpu.memory_space<vmem>>, %arg5: memref<128x128xf32, #tpu.memory_space<vmem>>) attributes {dimension_semantics = [#tpu.dimension_semantics<parallel>], iteration_bounds = array<i64: 2>, scalar_prefetch = 0 : i64, scratch_operands = 0 : i64, tpu.core_type = #tpu.core_type<tc>, window_params = [{transform_indices = @transform_0, window_bounds = array<i64: 128, 1152>}, {pipeline_mode = #tpu.pipeline_mode<synchronous>, transform_indices = @transform_1, window_bounds = array<i64: 1152, 128>}, {pipeline_mode = #tpu.pipeline_mode<synchronous>, transform_indices = @transform_2, window_bounds = array<i64: 1, 128>}, {transform_indices = @transform_3, window_bounds = array<i64: 128, 128>}, {transform_indices = @transform_4, window_bounds = array<i64: 128, 128>}]} {
    %c0 = arith.constant 0 : index
    %c0_0 = arith.constant 0 : index
    %0 = vector.load %arg1[%c0, %c0_0] : memref<128x1152xbf16, #tpu.memory_space<vmem>>, vector<128x1152xbf16>
    %c0_1 = arith.constant 0 : index
    %c0_2 = arith.constant 0 : index
    %1 = vector.load %arg2[%c0_1, %c0_2] : memref<1152x128xbf16, #tpu.memory_space<vmem>>, vector<1152x128xbf16>
    %cst = arith.constant dense<0.000000e+00> : vector<128x128xf32>
    %2 = tpu.matmul %0, %1, %cst {dimension_numbers = #tpu.dot_dimension_numbers<[1], [0], [0], [1], [0, 0, 1, 1], [], []>} : vector<128x1152xbf16>, vector<1152x128xbf16>, vector<128x128xf32> -> vector<128x128xf32>
    %c0_3 = arith.constant 0 : index
    %c0_4 = arith.constant 0 : index
    %3 = vector.load %arg3[%c0_3, %c0_4] : memref<1x128xf32, #tpu.memory_space<vmem>>, vector<1x128xf32>
    %4 = vector.broadcast %3 : vector<1x128xf32> to vector<128x128xf32>
    %5 = arith.addf %2, %4 : vector<128x128xf32>
    %cst_5 = arith.constant 0.000000e+00 : f32
    %6 = vector.broadcast %cst_5 : f32 to vector<128x128xf32>
    %7 = arith.maximumf %5, %6 : vector<128x128xf32>
    %c0_6 = arith.constant 0 : index
    %c0_7 = arith.constant 0 : index
    %8 = vector.load %arg4[%c0_6, %c0_7] : memref<128x128xf32, #tpu.memory_space<vmem>>, vector<128x128xf32>
    %9 = arith.addf %7, %8 : vector<128x128xf32>
    %c0_8 = arith.constant 0 : index
    %c0_9 = arith.constant 0 : index
    %10 = vector.load %arg5[%c0_8, %c0_9] : memref<128x128xf32, #tpu.memory_space<vmem>>, vector<128x128xf32>
    tpu.vector_store %arg5[%c0_8, %c0_9], %9 {strides = array<i32>} : memref<128x128xf32, #tpu.memory_space<vmem>>, vector<128x128xf32>,
    return
  }
  func.func @transform_0(%arg0: i32) -> (i32, i32) {
    %c0_i32 = arith.constant 0 : i32
    %c0_i32_0 = arith.constant 0 : i32
    return %arg0, %c0_i32 : i32, i32
  }
  func.func @transform_1(%arg0: i32) -> (i32, i32) {
    %c0_i32 = arith.constant 0 : i32
    %c0_i32_0 = arith.constant 0 : i32
    %c0_i32_1 = arith.constant 0 : i32
    return %c0_i32, %c0_i32_0 : i32, i32
  }
  func.func @transform_2(%arg0: i32) -> (i32, i32) {
    %c0_i32 = arith.constant 0 : i32
    %c0_i32_0 = arith.constant 0 : i32
    %c0_i32_1 = arith.constant 0 : i32
    return %c0_i32, %c0_i32_0 : i32, i32
  }
  func.func @transform_3(%arg0: i32) -> (i32, i32) {
    %c0_i32 = arith.constant 0 : i32
    %c0_i32_0 = arith.constant 0 : i32
    return %arg0, %c0_i32 : i32, i32
  }
  func.func @transform_4(%arg0: i32) -> (i32, i32) {
    %c0_i32 = arith.constant 0 : i32
    %c0_i32_0 = arith.constant 0 : i32
    return %arg0, %c0_i32 : i32, i32
  }
}

module attributes {stable_mosaic.version = 11 : i64} {
  func.func @kernel(%arg0: i32, %arg1: memref<128x3456xbf16, #tpu.memory_space<vmem>>, %arg2: memref<3456x128xbf16, #tpu.memory_space<vmem>>, %arg3: memref<1x128xf32, #tpu.memory_space<vmem>>, %arg4: memref<128x128xf32, #tpu.memory_space<vmem>>) attributes {dimension_semantics = [#tpu.dimension_semantics<parallel>], iteration_bounds = array<i64: 2>, scalar_prefetch = 0 : i64, scratch_operands = 0 : i64, tpu.core_type = #tpu.core_type<tc>, window_params = [{transform_indices = @transform_0, window_bounds = array<i64: 128, 3456>}, {pipeline_mode = #tpu.pipeline_mode<synchronous>, transform_indices = @transform_1, window_bounds = array<i64: 3456, 128>}, {pipeline_mode = #tpu.pipeline_mode<synchronous>, transform_indices = @transform_2, window_bounds = array<i64: 1, 128>}, {transform_indices = @transform_3, window_bounds = array<i64: 128, 128>}]} {
    %c0 = arith.constant 0 : index
    %c0_0 = arith.constant 0 : index
    %0 = vector.load %arg1[%c0, %c0_0] : memref<128x3456xbf16, #tpu.memory_space<vmem>>, vector<128x3456xbf16>
    %c0_1 = arith.constant 0 : index
    %c0_2 = arith.constant 0 : index
    %1 = vector.load %arg2[%c0_1, %c0_2] : memref<3456x128xbf16, #tpu.memory_space<vmem>>, vector<3456x128xbf16>
    %cst = arith.constant dense<0.000000e+00> : vector<128x128xf32>
    %2 = tpu.matmul %0, %1, %cst {dimension_numbers = #tpu.dot_dimension_numbers<[1], [0], [0], [1], [0, 0, 1, 1], [], []>} : vector<128x3456xbf16>, vector<3456x128xbf16>, vector<128x128xf32> -> vector<128x128xf32>
    %c0_3 = arith.constant 0 : index
    %c0_4 = arith.constant 0 : index
    %3 = vector.load %arg3[%c0_3, %c0_4] : memref<1x128xf32, #tpu.memory_space<vmem>>, vector<1x128xf32>
    %4 = vector.broadcast %3 : vector<1x128xf32> to vector<128x128xf32>
    %5 = arith.addf %2, %4 : vector<128x128xf32>
    %cst_5 = arith.constant 0.000000e+00 : f32
    %6 = vector.broadcast %cst_5 : f32 to vector<128x128xf32>
    %7 = arith.maximumf %5, %6 : vector<128x128xf32>
    %c0_6 = arith.constant 0 : index
    %c0_7 = arith.constant 0 : index
    %8 = vector.load %arg4[%c0_6, %c0_7] : memref<128x128xf32, #tpu.memory_space<vmem>>, vector<128x128xf32>
    tpu.vector_store %arg4[%c0_6, %c0_7], %7 {strides = array<i32>} : memref<128x128xf32, #tpu.memory_space<vmem>>, vector<128x128xf32>,
    return
  }
  func.func @transform_0(%arg0: i32) -> (i32, i32) {
    %c0_i32 = arith.constant 0 : i32
    %c0_i32_0 = arith.constant 0 : i32
    return %arg0, %c0_i32 : i32, i32
  }
  func.func @transform_1(%arg0: i32) -> (i32, i32) {
    %c0_i32 = arith.constant 0 : i32
    %c0_i32_0 = arith.constant 0 : i32
    %c0_i32_1 = arith.constant 0 : i32
    return %c0_i32, %c0_i32_0 : i32, i32
  }
  func.func @transform_2(%arg0: i32) -> (i32, i32) {
    %c0_i32 = arith.constant 0 : i32
    %c0_i32_0 = arith.constant 0 : i32
    %c0_i32_1 = arith.constant 0 : i32
    return %c0_i32, %c0_i32_0 : i32, i32
  }
  func.func @transform_3(%arg0: i32) -> (i32, i32) {
    %c0_i32 = arith.constant 0 : i32
    %c0_i32_0 = arith.constant 0 : i32
    return %arg0, %c0_i32 : i32, i32
  }
}

</mosaic_0001>

<bundles_post_ra>
// kernel: redcm_d_forward.8
= control target key start
LH: loop header
LB: loop body
LE: loop exit
PB: predicated region body
PF: predicated region fallthrough
CT: control target
= control target key end

     0   :  { %s2415_s9 = smov 0   ;;  %s2884_s0 = inlined_call_operand.vmem [shape: bf16[256,1152], index: 0, kind: input, shape index: {}]   ;;  %s2885_s1 = inlined_call_operand.vmem [shape: bf16[1152,128], index: 1, kind: input, shape index: {}]   ;;  %s2886_s2 = inlined_call_operand.vmem [shape: f32[256,128], index: 2, kind: output, shape index: {}]  }
   0x1 LB: > { %s1732_s10 = sadd.s32 4294967295, %s2398_s9   ;;  %p1736_p0 = scmp.ge.s32.totalorder %s2398_s9, 1  ;;  %s2398_s9 = sphi %s2415_s9, %s12_s9  }
   0x2   : > { %p114_p1 = scmp.lt.s32.totalorder %s2398_s9, 3 }
   0x4   : > { %p115_p2 = pnand %p1736_p0, %p114_p1 }
   0x6   : > { %118 = sbr.rel (%p115_p2) target bundleno = 384 (0x180), region = 28 }
   0xb   : > { %v2216_v0 = vld [vmem:[%s2885_s1 + $0x78] sm:$0xff]   ;;  %v2220_v4 = vld [vmem:[%s2885_s1 + $0x70] sm:$0xff]   ;;  %v2224_v8 = vld [vmem:[%s2885_s1 + $0x68] sm:$0xff]   ;;  %s1737_s15 = sshll.u32 %s1732_s10, 4 }
   0xc   : > { %v2217_v1 = vld [vmem:[%s2885_s1 + $0xf8] sm:$0xff]   ;;  %1887 = vmatprep.subr.bf16.mxu0 %v2216_v0  ;;  %v2221_v5 = vld [vmem:[%s2885_s1 + $0xf0] sm:$0xff]   ;;  %v2225_v9 = vld [vmem:[%s2885_s1 + $0xe8] sm:$0xff]   ;;  %p138_p3 = scmp.lt.s32.totalorder %s1737_s15, 31 }
   0xd   : > { %v2218_v2 = vld [vmem:[%s2885_s1 + $0x38] sm:$0xff]   ;;  %1951 = vmatprep.subr.bf16.mxu1 %v2217_v1  ;;  %v2222_v6 = vld [vmem:[%s2885_s1 + $0x30] sm:$0xff]   ;;  %v2226_v10 = vld [vmem:[%s2885_s1 + $0x28] sm:$0xff]  }
   0xe   : > { %v2219_v3 = vld [vmem:[%s2885_s1 + $0xb8] sm:$0xff]   ;;  %1888 = vmatpush3.bf16.msra.mxu0 %v2218_v2  ;;  %v2223_v7 = vld [vmem:[%s2885_s1 + $0xb0] sm:$0xff]   ;;  %v2227_v11 = vld [vmem:[%s2885_s1 + $0xa8] sm:$0xff]   ;;  %s2926_s15 = smov (!%p138_p3, %s1737_s15), 31 }
   0xf   : > { %1952 = vmatpush3.bf16.msra.mxu1 %v2219_v3  ;;  %1889 = vmatprep.subr.bf16.mxu0 %v2220_v4  ;;  %v2228_v12 = vld [vmem:[%s2885_s1 + $0x60] sm:$0xff]   ;;  %v2232_v16 = vld [vmem:[%s2885_s1 + $0x58] sm:$0xff]   ;;  %v2236_v20 = vld [vmem:[%s2885_s1 + $0x50] sm:$0xff]   ;;  %s2207_s11 = smul.u32 36, %s2926_s15 }
  0x10   : > { %1953 = vmatprep.subr.bf16.mxu1 %v2221_v5  ;;  %v2229_v13 = vld [vmem:[%s2885_s1 + $0xe0] sm:$0xff]   ;;  %v2233_v17 = vld [vmem:[%s2885_s1 + $0xd8] sm:$0xff]   ;;  %v2237_v21 = vld [vmem:[%s2885_s1 + $0xd0] sm:$0xff]  }
  0x11   : > { %v2230_v14 = vld [vmem:[%s2885_s1 + $0x20] sm:$0xff]   ;;  %v2234_v18 = vld [vmem:[%s2885_s1 + $0x18] sm:$0xff]   ;;  %v2238_v22 = vld [vmem:[%s2885_s1 + $0x10] sm:$0xff]   ;;  %s2521_s23 = scalar_lea.vmem %s2884_s0, %s2207_s11 }
  0x12   : > { %1890 = vmatpush3.bf16.msra.mxu0 %v2222_v6  ;;  %v2231_v15 = vld [vmem:[%s2885_s1 + $0xa0] sm:$0xff]   ;;  %v2235_v19 = vld [vmem:[%s2885_s1 + $0x98] sm:$0xff]   ;;  %v2239_v23 = vld [vmem:[%s2885_s1 + $0x90] sm:$0xff]  }
  0x13   : > { %1954 = vmatpush3.bf16.msra.mxu1 %v2223_v7  ;;  %1891 = vmatprep.subr.bf16.mxu0 %v2224_v8  ;;  %v2240_v24 = vld [vmem:[%s2885_s1 + $0x48] sm:$0xff]   ;;  %v2244_v28 = vld [vmem:[%s2885_s1 + $0x40] sm:$0xff]   ;;  %v2254_v36 = vld [vmem:[%s2885_s1 + $0x178] sm:$0xff]  }
  0x14   : > { %1955 = vmatprep.subr.bf16.mxu1 %v2225_v9  ;;  %v2241_v25 = vld [vmem:[%s2885_s1 + $0xc8] sm:$0xff]   ;;  %v2245_v29 = vld [vmem:[%s2885_s1 + $0xc0] sm:$0xff]   ;;  %v2255_v37 = vld [vmem:[%s2885_s1 + $0x1f8] sm:$0xff]  }
  0x15   : > { %v2242_v26 = vld [vmem:[%s2885_s1 + $0x8] sm:$0xff]   ;;  %v2246_v30 = vld [vmem:[%s2885_s1] sm:$0xff]   ;;  %v2256_v38 = vld [vmem:[%s2885_s1 + $0x138] sm:$0xff]  }
  0x16   : > { %1892 = vmatpush3.bf16.msra.mxu0 %v2226_v10  ;;  %v2243_v27 = vld [vmem:[%s2885_s1 + $0x88] sm:$0xff]   ;;  %v2247_v31 = vld [vmem:[%s2885_s1 + $0x80] sm:$0xff]   ;;  %v2257_v39 = vld [vmem:[%s2885_s1 + $0x1b8] sm:$0xff]  }
  0x17   : > { %1956 = vmatpush3.bf16.msra.mxu1 %v2227_v11  ;;  %1893 = vmatprep.subr.bf16.mxu0 %v2228_v12  ;;  %v2248_v32 = vld [vmem:[%s2521_s23] ss:$36 sps:$4 sm:$0xff]   ;;  %v2251_v34 = vld [vmem:[%s2521_s23 + $0x8] ss:$36 sps:$4 sm:$0xff]   ;;  %v2260_v41 = vld [vmem:[%s2521_s23 + $0x54] ss:$36 sps:$4 sm:$0xff]  }
  0x18   : > { %1957 = vmatprep.subr.bf16.mxu1 %v2229_v13  ;;  %v2250_v33 = vld [vmem:[%s2521_s23 + $0x4] ss:$36 sps:$4 sm:$0xff]   ;;  %v2253_v35 = vld [vmem:[%s2521_s23 + $0xc] ss:$36 sps:$4 sm:$0xff]   ;;  %v2268_v48 = vld [vmem:[%s2521_s23 + $0x94] ss:$36 sps:$4 sm:$0xff]  }
  0x19   : > { %1207 = vmatprep.mubr.bf16.mxu0 %v2250_v33  ;;  %1304 = vmatprep.mubr.bf16.mxu1 %v2253_v35  ;;  %v2258_v40 = vld [vmem:[%s2521_s23 + $0x4c] ss:$36 sps:$4 sm:$0xff]   ;;  %v2270_v49 = vld [vmem:[%s2521_s23 + $0x9c] ss:$36 sps:$4 sm:$0xff]   ;;  %v2280_v57 = vld [vmem:[%s2521_s23 + $0xe4] ss:$36 sps:$4 sm:$0xff]  }
  0x1a   : > { %1894 = vmatpush3.bf16.msra.mxu0 %v2230_v14  ;;  %v2262_v42 = vld [vmem:[%s2521_s23 + $0x48] ss:$36 sps:$4 sm:$0xff]   ;;  %v2263_v43 = vld [vmem:[%s2521_s23 + $0x50] ss:$36 sps:$4 sm:$0xff]   ;;  %v2273_v51 = vld [vmem:[%s2521_s23 + $0x98] ss:$36 sps:$4 sm:$0xff]  }
  0x1b   : > { %1958 = vmatpush3.bf16.msra.mxu1 %v2231_v15  ;;  %1895 = vmatprep.subr.bf16.mxu0 %v2232_v16  ;;  %v2264_v44 = vld [vmem:[%s2885_s1 + $0x170] sm:$0xff]   ;;  %v2274_v52 = vld [vmem:[%s2885_s1 + $0x168] sm:$0xff]   ;;  %v2278_v56 = vld [vmem:[%s2521_s23 + $0xdc] ss:$36 sps:$4 sm:$0xff]  }
  0x1c   : > { %1959 = vmatprep.subr.bf16.mxu1 %v2233_v17  ;;  %v2265_v45 = vld [vmem:[%s2885_s1 + $0x1f0] sm:$0xff]   ;;  %v2275_v53 = vld [vmem:[%s2885_s1 + $0x1e8] sm:$0xff]   ;;  %v2282_v58 = vld [vmem:[%s2521_s23 + $0xd8] ss:$36 sps:$4 sm:$0xff]  }
  0x1d   : > { %v2266_v46 = vld [vmem:[%s2885_s1 + $0x130] sm:$0xff]   ;;  %v2276_v54 = vld [vmem:[%s2885_s1 + $0x128] sm:$0xff]   ;;  %v2283_v59 = vld [vmem:[%s2521_s23 + $0xe0] ss:$36 sps:$4 sm:$0xff]  }
  0x1e   : > { %1896 = vmatpush3.bf16.msra.mxu0 %v2234_v18  ;;  %v2267_v47 = vld [vmem:[%s2885_s1 + $0x1b0] sm:$0xff]   ;;  %v2277_v55 = vld [vmem:[%s2885_s1 + $0x1a8] sm:$0xff]   ;;  %v2284_v60 = vld [vmem:[%s2885_s1 + $0x160] sm:$0xff]  }
  0x1f   : > { %1960 = vmatpush3.bf16.msra.mxu1 %v2235_v19  ;;  %1897 = vmatprep.subr.bf16.mxu0 %v2236_v20  ;;  %v2272_v50 = vld [vmem:[%s2521_s23 + $0x90] ss:$36 sps:$4 sm:$0xff]   ;;  %v2285_v61 = vld [vmem:[%s2885_s1 + $0x1e0] sm:$0xff]   ;;  %v2294_v3 = vld [vmem:[%s2885_s1 + $0x158] sm:$0xff]  }
  0x20   : > { %1961 = vmatprep.subr.bf16.mxu1 %v2237_v21  ;;  %v2286_v62 = vld [vmem:[%s2885_s1 + $0x120] sm:$0xff]   ;;  %v2290_v1 = vld [vmem:[%s2521_s23 + $0x12c] ss:$36 sps:$4 sm:$0xff]   ;;  %v2295_v5 = vld [vmem:[%s2885_s1 + $0x1d8] sm:$0xff]  }
  0x21   : > { %v2287_v63 = vld [vmem:[%s2885_s1 + $0x1a0] sm:$0xff]   ;;  %v2293_v4 = vld [vmem:[%s2521_s23 + $0x128] ss:$36 sps:$4 sm:$0xff]   ;;  %v2296_v6 = vld [vmem:[%s2885_s1 + $0x118] sm:$0xff]  }
  0x22   : > { %1898 = vmatpush3.bf16.msra.mxu0 %v2238_v22  ;;  %v2288_v0 = vld [vmem:[%s2521_s23 + $0x124] ss:$36 sps:$4 sm:$0xff]   ;;  %v2297_v7 = vld [vmem:[%s2885_s1 + $0x198] sm:$0xff]   ;;  %v2298_v8 = vld [vmem:[%s2521_s23 + $0x16c] ss:$36 sps:$4 sm:$0xff]  }
  0x23   : > { %1962 = vmatpush3.bf16.msra.mxu1 %v2239_v23  ;;  %1899 = vmatprep.subr.bf16.mxu0 %v2240_v24  ;;  %v2292_v2 = vld [vmem:[%s2521_s23 + $0x120] ss:$36 sps:$4 sm:$0xff]   ;;  %v2300_v9 = vld [vmem:[%s2521_s23 + $0x174] ss:$36 sps:$4 sm:$0xff]   ;;  %v2302_v12 = vld [vmem:[%s2521_s23 + $0x168] ss:$36 sps:$4 sm:$0xff]  }
  0x24   : > { %1963 = vmatprep.subr.bf16.mxu1 %v2241_v25  ;;  %v2304_v10 = vld [vmem:[%s2885_s1 + $0x150] sm:$0xff]   ;;  %v2310_v17 = vld [vmem:[%s2521_s23 + $0x1bc] ss:$36 sps:$4 sm:$0xff]   ;;  %v2314_v18 = vld [vmem:[%s2885_s1 + $0x148] sm:$0xff]  }
  0x25   : > { %v2305_v11 = vld [vmem:[%s2885_s1 + $0x1d0] sm:$0xff]   ;;  %v2315_v19 = vld [vmem:[%s2885_s1 + $0x1c8] sm:$0xff]   ;;  %v2313_v23 = vld [vmem:[%s2521_s23 + $0x1b8] ss:$36 sps:$4 sm:$0xff]  }
  0x26   : > { %1900 = vmatpush3.bf16.msra.mxu0 %v2242_v26  ;;  %v2306_v13 = vld [vmem:[%s2885_s1 + $0x110] sm:$0xff]   ;;  %v2316_v20 = vld [vmem:[%s2885_s1 + $0x108] sm:$0xff]   ;;  %v2318_v24 = vld [vmem:[%s2521_s23 + $0x1fc] ss:$36 sps:$4 sm:$0xff]  }
  0x27   : > { %1964 = vmatpush3.bf16.msra.mxu1 %v2243_v27  ;;  %1901 = vmatprep.subr.bf16.mxu0 %v2244_v28  ;;  %v2307_v14 = vld [vmem:[%s2885_s1 + $0x190] sm:$0xff]   ;;  %v2317_v21 = vld [vmem:[%s2885_s1 + $0x188] sm:$0xff]   ;;  %v2324_v26 = vld [vmem:[%s2885_s1 + $0x140] sm:$0xff]  }
  0x28   : > { %1965 = vmatprep.subr.bf16.mxu1 %v2245_v29  ;;  %v2303_v15 = vld [vmem:[%s2521_s23 + $0x170] ss:$36 sps:$4 sm:$0xff]   ;;  %v2320_v25 = vld [vmem:[%s2521_s23 + $0x204] ss:$36 sps:$4 sm:$0xff]  }
  0x29   : > { %v2308_v16 = vld [vmem:[%s2521_s23 + $0x1b4] ss:$36 sps:$4 sm:$0xff]   ;;  %v2325_v27 = vld [vmem:[%s2885_s1 + $0x1c0] sm:$0xff]  }
  0x2a   : > { %1902 = vmatpush3.bf16.msra.mxu0 %v2246_v30  ;;  %v2312_v22 = vld [vmem:[%s2521_s23 + $0x1b0] ss:$36 sps:$4 sm:$0xff]   ;;  %v2326_v28 = vld [vmem:[%s2885_s1 + $0x100] sm:$0xff]   ;;  %v2322_v30 = vld [vmem:[%s2521_s23 + $0x1f8] ss:$36 sps:$4 sm:$0xff]  }
  0x2b   : > { %1966 = vmatpush3.bf16.msra.mxu1 %v2247_v31  ;;  %2015 = vmatprep.subr.bf16.mxu0 %v2254_v36  ;;  %v2327_v29 = vld [vmem:[%s2885_s1 + $0x180] sm:$0xff]   ;;  %v2330_v33 = vld [vmem:[%s2521_s23 + $0x14] ss:$36 sps:$4 sm:$0xff]  }
  0x2c   : > { %2079 = vmatprep.subr.bf16.mxu1 %v2255_v37  ;;  %v2323_v31 = vld [vmem:[%s2521_s23 + $0x200] ss:$36 sps:$4 sm:$0xff]   ;;  %v2328_v35 = vld [vmem:[%s2521_s23 + $0x10] ss:$36 sps:$4 sm:$0xff]   ;;  %v2331_v36 = vld [vmem:[%s2521_s23 + $0x18] ss:$36 sps:$4 sm:$0xff]  }
  0x2d   : > { %1208 = vmatmul.mubr.bf16.vlgmr.msra.gmra.mxu0 %v2248_v32  ;;  %v2334_v32 = vld [vmem:[%s2885_s1 + $0x238] sm:$0xff]  }
  0x2e   : > { %1305 = vmatmul.mubr.bf16.vlgmr.msra.gmra.mxu1 %v2251_v34  ;;  %2016 = vmatpush3.bf16.msra.mxu0 %v2256_v38  ;;  %v2333_v34 = vld [vmem:[%s2521_s23 + $0x1c] ss:$36 sps:$4 sm:$0xff]   ;;  %v2337_v38 = vld [vmem:[%s2521_s23 + $0x64] ss:$36 sps:$4 sm:$0xff]  }
  0x2f   : > { %2080 = vmatpush3.bf16.msra.mxu1 %v2257_v39  ;;  %1215 = vmatprep.mubr.bf16.mxu0 %v2258_v40  ;;  %v2335_v37 = vld [vmem:[%s2521_s23 + $0x5c] ss:$36 sps:$4 sm:$0xff]   ;;  %v2341_v39 = vld [vmem:[%s2885_s1 + $0x230] sm:$0xff]   ;;  %v2348_v40 = vld [vmem:[%s2885_s1 + $0x228] sm:$0xff]  }
  0x30   : > { %1312 = vmatprep.mubr.bf16.mxu1 %v2260_v41  ;;  %2017 = vmatprep.subr.bf16.mxu0 %v2264_v44  ;;  %v2339_v41 = vld [vmem:[%s2521_s23 + $0x58] ss:$36 sps:$4 sm:$0xff]   ;;  %v2344_v44 = vld [vmem:[%s2521_s23 + $0xac] ss:$36 sps:$4 sm:$0xff]  }
  0x31   : > { %2081 = vmatprep.subr.bf16.mxu1 %v2265_v45  ;;  %v2355_v45 = vld [vmem:[%s2885_s1 + $0x220] sm:$0xff]  }
  0x32   : > { %2018 = vmatpush3.bf16.msra.mxu0 %v2266_v46  ;;  %v2362_v46 = vld [vmem:[%s2885_s1 + $0x218] sm:$0xff]  }
  0x33   : > { %2082 = vmatpush3.bf16.msra.mxu1 %v2267_v47  ;;  %2019 = vmatprep.subr.bf16.mxu0 %v2274_v52  ;;  %v2346_v47 = vld [vmem:[%s2521_s23 + $0xa0] ss:$36 sps:$4 sm:$0xff]   ;;  %v2353_v52 = vld [vmem:[%s2521_s23 + $0xe8] ss:$36 sps:$4 sm:$0xff]  }
  0x34   : > { %2083 = vmatprep.subr.bf16.mxu1 %v2275_v53  ;;  %v2376_v53 = vld [vmem:[%s2885_s1 + $0x208] sm:$0xff]  }
  0x35   : > { %1216 = vmatmul.mubr.bf16.gmra.mxu0 %v2262_v42  ;;  %v2340_v42 = vld [vmem:[%s2521_s23 + $0x60] ss:$36 sps:$4 sm:$0xff]  }
  0x36   : > { %1313 = vmatmul.mubr.bf16.gmra.mxu1 %v2263_v43  ;;  %1223 = vmatprep.mubr.bf16.mxu0 %v2268_v48  ;;  %v2342_v43 = vld [vmem:[%s2521_s23 + $0xa4] ss:$36 sps:$4 sm:$0xff]  }
  0x37   : > { %1320 = vmatprep.mubr.bf16.mxu1 %v2270_v49  ;;  %2020 = vmatpush3.bf16.msra.mxu0 %v2276_v54  ;;  %v2347_v48 = vld [vmem:[%s2521_s23 + $0xa8] ss:$36 sps:$4 sm:$0xff]   ;;  %v2354_v54 = vld [vmem:[%s2521_s23 + $0xf0] ss:$36 sps:$4 sm:$0xff]  }
  0x38   : > { %2084 = vmatpush3.bf16.msra.mxu1 %v2277_v55  ;;  %2021 = vmatprep.subr.bf16.mxu0 %v2284_v60  ;;  %v2349_v49 = vld [vmem:[%s2521_s23 + $0xec] ss:$36 sps:$4 sm:$0xff]   ;;  %v2356_v55 = vld [vmem:[%s2521_s23 + $0x134] ss:$36 sps:$4 sm:$0xff]   ;;  %v2363_v60 = vld [vmem:[%s2521_s23 + $0x17c] ss:$36 sps:$4 sm:$0xff]  }
  0x39   : > { %2085 = vmatprep.subr.bf16.mxu1 %v2285_v61  ;;  %v2365_v61 = vld [vmem:[%s2521_s23 + $0x184] ss:$36 sps:$4 sm:$0xff]  }
  0x3b   : > { %2022 = vmatpush3.bf16.msra.mxu0 %v2286_v62  ;;  %v2367_v62 = vld [vmem:[%s2521_s23 + $0x178] ss:$36 sps:$4 sm:$0xff]  }
  0x3c   : > { %2086 = vmatpush3.bf16.msra.mxu1 %v2287_v63  ;;  %2023 = vmatprep.subr.bf16.mxu0 %v2294_v3  ;;  %v2368_v63 = vld [vmem:[%s2521_s23 + $0x180] ss:$36 sps:$4 sm:$0xff]   ;;  %v2375_v3 = vld [vmem:[%s2521_s23 + $0x1c8] ss:$36 sps:$4 sm:$0xff]  }
  0x3d   : > { %1224 = vmatmul.mubr.bf16.gmra.mxu0 %v2272_v50  ;;  %2087 = vmatprep.subr.bf16.mxu1 %v2295_v5  ;;  %v2351_v50 = vld [vmem:[%s2521_s23 + $0xf4] ss:$36 sps:$4 sm:$0xff]  }
  0x3e   : > { %1321 = vmatmul.mubr.bf16.gmra.mxu1 %v2273_v51  ;;  %1231 = vmatprep.mubr.bf16.mxu0 %v2278_v56  ;;  %v2369_v51 = vld [vmem:[%s2885_s1 + $0x210] sm:$0xff]   ;;  %v2358_v56 = vld [vmem:[%s2521_s23 + $0x13c] ss:$36 sps:$4 sm:$0xff]  }
  0x3f   : > { %1328 = vmatprep.mubr.bf16.mxu1 %v2280_v57  ;;  %2024 = vmatpush3.bf16.msra.mxu0 %v2296_v6  ;;  %v2383_v57 = vld [vmem:[%s2885_s1 + $0x200] sm:$0xff]   ;;  %v2379_v5 = vld [vmem:[%s2521_s23 + $0x214] ss:$36 sps:$4 sm:$0xff]   ;;  %v2381_v6 = vld [vmem:[%s2521_s23 + $0x208] ss:$36 sps:$4 sm:$0xff]  }
  0x40   : > { %2088 = vmatpush3.bf16.msra.mxu1 %v2297_v7  ;;  %2025 = vmatprep.subr.bf16.mxu0 %v2304_v10  ;;  %v2382_v7 = vld [vmem:[%s2521_s23 + $0x210] ss:$36 sps:$4 sm:$0xff]   ;;  %v2386_v10 = vld [vmem:[%s2521_s23 + $0x68] ss:$36 sps:$4 sm:$0xff]  }
  0x41   : > { %2089 = vmatprep.subr.bf16.mxu1 %v2305_v11  ;;  %v2387_v11 = vld [vmem:[%s2521_s23 + $0x188] ss:$36 sps:$4 sm:$0xff]  }
  0x43   : > { %2026 = vmatpush3.bf16.msra.mxu0 %v2306_v13  ;;  %v2389_v13 = vld [vmem:[%s2521_s23 + $0x1d0] ss:$36 sps:$4 sm:$0xff]  }
  0x44   : > { %2090 = vmatpush3.bf16.msra.mxu1 %v2307_v14  ;;  %2027 = vmatprep.subr.bf16.mxu0 %v2314_v18  ;;  %v2390_v14 = vld [vmem:[%s2521_s23 + $0xf8] ss:$36 sps:$4 sm:$0xff]  }
  0x45   : > { %1232 = vmatmul.mubr.bf16.gmra.mxu0 %v2282_v58  ;;  %2091 = vmatprep.subr.bf16.mxu1 %v2315_v19  ;;  %v2360_v58 = vld [vmem:[%s2521_s23 + $0x130] ss:$36 sps:$4 sm:$0xff]  }
  0x46   : > { %1329 = vmatmul.mubr.bf16.gmra.mxu1 %v2283_v59  ;;  %1239 = vmatprep.mubr.bf16.mxu0 %v2288_v0  ;;  %v2361_v59 = vld [vmem:[%s2521_s23 + $0x138] ss:$36 sps:$4 sm:$0xff]   ;;  %v2370_v0 = vld [vmem:[%s2521_s23 + $0x1c4] ss:$36 sps:$4 sm:$0xff]  }
  0x47   : > { %1336 = vmatprep.mubr.bf16.mxu1 %v2290_v1  ;;  %2028 = vmatpush3.bf16.msra.mxu0 %v2316_v20  ;;  %v2372_v1 = vld [vmem:[%s2521_s23 + $0x1cc] ss:$36 sps:$4 sm:$0xff]  }
  0x48   : > { %2092 = vmatpush3.bf16.msra.mxu1 %v2317_v21  ;;  %2029 = vmatprep.subr.bf16.mxu0 %v2324_v26 }
  0x49   : > { %2093 = vmatprep.subr.bf16.mxu1 %v2325_v27 }
  0x4b   : > { %2030 = vmatpush3.bf16.msra.mxu0 %v2326_v28 }
  0x4c   : > { %2094 = vmatpush3.bf16.msra.mxu1 %v2327_v29  ;;  %2159 = vmatprep.subr.bf16.mxu0 %v2334_v32 }
  0x4d   : > { %1240 = vmatmul.mubr.bf16.gmra.mxu0 %v2292_v2  ;;  %2191 = vmatprep.subr.bf16.mxu1 %v2334_v32  ;;  %v2374_v2 = vld [vmem:[%s2521_s23 + $0x1c0] ss:$36 sps:$4 sm:$0xff]  }
  0x4e   : > { %1337 = vmatmul.mubr.bf16.gmra.mxu1 %v2293_v4  ;;  %1247 = vmatprep.mubr.bf16.mxu0 %v2298_v8  ;;  %v2377_v4 = vld [vmem:[%s2521_s23 + $0x20c] ss:$36 sps:$4 sm:$0xff]   ;;  %v2384_v8 = vld [vmem:[%s2521_s23 + $0x20] ss:$36 sps:$4 sm:$0xff]  }
  0x4f   : > { %1344 = vmatprep.mubr.bf16.mxu1 %v2300_v9  ;;  %v2385_v9 = vld [vmem:[%s2521_s23 + $0x140] ss:$36 sps:$4 sm:$0xff]  }
  0x55   : > { %1248 = vmatmul.mubr.bf16.gmra.mxu0 %v2302_v12  ;;  %v2388_v12 = vld [vmem:[%s2521_s23 + $0xb0] ss:$36 sps:$4 sm:$0xff]  }
  0x56   : > { %1345 = vmatmul.mubr.bf16.gmra.mxu1 %v2303_v15  ;;  %1255 = vmatprep.mubr.bf16.mxu0 %v2308_v16  ;;  %v2391_v15 = vld [vmem:[%s2521_s23 + $0x218] ss:$36 sps:$4 sm:$0xff]   ;;  %s1740_s23 = sshll.u32 %s2926_s15, 3 }
  0x57   : > { %1352 = vmatprep.mubr.bf16.mxu1 %v2310_v17  ;;  %s2832_s15 = scalar_lea.vmem %s2886_s2, %s1740_s23 }
  0x5d   : > { %1256 = vmatmul.mubr.bf16.gmra.mxu0 %v2312_v22 }
  0x5e   : > { %1353 = vmatmul.mubr.bf16.gmra.mxu1 %v2313_v23  ;;  %1263 = vmatprep.mubr.bf16.mxu0 %v2318_v24 }
  0x5f   : > { %1360 = vmatprep.mubr.bf16.mxu1 %v2320_v25 }
  0x65   : > { %1264 = vmatmul.mubr.bf16.gmra.mxu0 %v2322_v30 }
  0x66   : > { %1361 = vmatmul.mubr.bf16.gmra.mxu1 %v2323_v31  ;;  %1401 = vmatprep.mubr.bf16.mxu0 %v2330_v33 }
  0x67   : > { %1498 = vmatprep.mubr.bf16.mxu1 %v2333_v34 }
  0x6d   : > { %1402 = vmatmul.mubr.bf16.vlgmr.msra.gmra.mxu0 %v2328_v35 }
  0x6e   : > { %1499 = vmatmul.mubr.bf16.vlgmr.msra.gmra.mxu1 %v2331_v36  ;;  %2160 = vmatpush3.bf16.msra.mxu0 %v2334_v32 }
  0x6f   : > { %2199 = vmatpush3.bf16.msra.mxu1 %v2334_v32  ;;  %1409 = vmatprep.mubr.bf16.mxu0 %v2335_v37 }
  0x70   : > { %1506 = vmatprep.mubr.bf16.mxu1 %v2337_v38  ;;  %2161 = vmatprep.subr.bf16.mxu0 %v2341_v39 }
  0x71   : > { %2192 = vmatprep.subr.bf16.mxu1 %v2341_v39 }
  0x72   : > { %2162 = vmatpush3.bf16.msra.mxu0 %v2341_v39 }
  0x73   : > { %2200 = vmatpush3.bf16.msra.mxu1 %v2341_v39  ;;  %2163 = vmatprep.subr.bf16.mxu0 %v2348_v40 }
  0x74   : > { %2193 = vmatprep.subr.bf16.mxu1 %v2348_v40 }
  0x75   : > { %1410 = vmatmul.mubr.bf16.gmra.mxu0 %v2339_v41 }
  0x76   : > { %1507 = vmatmul.mubr.bf16.gmra.mxu1 %v2340_v42  ;;  %1417 = vmatprep.mubr.bf16.mxu0 %v2342_v43 }
  0x77   : > { %1514 = vmatprep.mubr.bf16.mxu1 %v2344_v44  ;;  %2164 = vmatpush3.bf16.msra.mxu0 %v2348_v40 }
  0x78   : > { %2201 = vmatpush3.bf16.msra.mxu1 %v2348_v40  ;;  %2165 = vmatprep.subr.bf16.mxu0 %v2355_v45 }
  0x79   : > { %2194 = vmatprep.subr.bf16.mxu1 %v2355_v45 }
  0x7b   : > { %2166 = vmatpush3.bf16.msra.mxu0 %v2355_v45 }
  0x7c   : > { %2202 = vmatpush3.bf16.msra.mxu1 %v2355_v45  ;;  %2167 = vmatprep.subr.bf16.mxu0 %v2362_v46 }
  0x7d   : > { %1418 = vmatmul.mubr.bf16.gmra.mxu0 %v2346_v47  ;;  %2195 = vmatprep.subr.bf16.mxu1 %v2362_v46 }
  0x7e   : > { %1515 = vmatmul.mubr.bf16.gmra.mxu1 %v2347_v48  ;;  %1425 = vmatprep.mubr.bf16.mxu0 %v2349_v49 }
  0x7f   : > { %1522 = vmatprep.mubr.bf16.mxu1 %v2351_v50  ;;  %2168 = vmatpush3.bf16.msra.mxu0 %v2362_v46 }
  0x80   : > { %2203 = vmatpush3.bf16.msra.mxu1 %v2362_v46  ;;  %2169 = vmatprep.subr.bf16.mxu0 %v2369_v51 }
  0x81   : > { %2196 = vmatprep.subr.bf16.mxu1 %v2369_v51 }
  0x83   : > { %2170 = vmatpush3.bf16.msra.mxu0 %v2369_v51 }
  0x84   : > { %2204 = vmatpush3.bf16.msra.mxu1 %v2369_v51  ;;  %2171 = vmatprep.subr.bf16.mxu0 %v2376_v53 }
  0x85   : > { %1426 = vmatmul.mubr.bf16.gmra.mxu0 %v2353_v52  ;;  %2197 = vmatprep.subr.bf16.mxu1 %v2376_v53 }
  0x86   : > { %1523 = vmatmul.mubr.bf16.gmra.mxu1 %v2354_v54  ;;  %1433 = vmatprep.mubr.bf16.mxu0 %v2356_v55 }
  0x87   : > { %1530 = vmatprep.mubr.bf16.mxu1 %v2358_v56  ;;  %2172 = vmatpush3.bf16.msra.mxu0 %v2376_v53 }
  0x88   : > { %2205 = vmatpush3.bf16.msra.mxu1 %v2376_v53  ;;  %2173 = vmatprep.subr.bf16.mxu0 %v2383_v57 }
  0x89   : > { %2198 = vmatprep.subr.bf16.mxu1 %v2383_v57 }
  0x8b   : > { %2174 = vmatpush3.bf16.msra.mxu0 %v2383_v57 }
  0x8c   : > { %2206 = vmatpush3.bf16.msra.mxu1 %v2383_v57 }
  0x8d   : > { %1434 = vmatmul.mubr.bf16.gmra.mxu0 %v2360_v58 }
  0x8e   : > { %1531 = vmatmul.mubr.bf16.gmra.mxu1 %v2361_v59  ;;  %1441 = vmatprep.mubr.bf16.mxu0 %v2363_v60 }
  0x8f   : > { %1538 = vmatprep.mubr.bf16.mxu1 %v2365_v61 }
  0x95   : > { %1442 = vmatmul.mubr.bf16.gmra.mxu0 %v2367_v62 }
  0x96   : > { %1539 = vmatmul.mubr.bf16.gmra.mxu1 %v2368_v63  ;;  %1449 = vmatprep.mubr.bf16.mxu0 %v2370_v0 }
  0x97   : > { %1546 = vmatprep.mubr.bf16.mxu1 %v2372_v1 }
  0x9d   : > { %1450 = vmatmul.mubr.bf16.gmra.mxu0 %v2374_v2 }
  0x9e   : > { %1547 = vmatmul.mubr.bf16.gmra.mxu1 %v2375_v3  ;;  %1457 = vmatprep.mubr.bf16.mxu0 %v2377_v4 }
  0x9f   : > { %1554 = vmatprep.mubr.bf16.mxu1 %v2379_v5 }
  0xa5   : > { %1458 = vmatmul.mubr.bf16.gmra.mxu0 %v2381_v6 }
  0xa6   : > { %1555 = vmatmul.mubr.bf16.gmra.mxu1 %v2382_v7  ;;  %2175 = vmatprep.mubr.bf16.mxu0 %v2384_v8 }
  0xa7   : > { %2183 = vmatprep.mubr.bf16.mxu1 %v2385_v9 }
  0xad   : > { %2176 = vmatmul.mubr.bf16.vlgmr.msra.gmra.mxu0 %v2386_v10 }
  0xae   : > { %2184 = vmatmul.mubr.bf16.vlgmr.msra.gmra.mxu1 %v2387_v11  ;;  %2179 = vmatprep.mubr.bf16.mxu0 %v2388_v12 }
  0xaf   : > { %2187 = vmatprep.mubr.bf16.mxu1 %v2389_v13 }
  0xb5   : > { %2180 = vmatmul.mubr.bf16.gmra.mxu0 %v2390_v14 }
  0xb6   : > { %2188 = vmatmul.mubr.bf16.gmra.mxu1 %v2391_v15 }
  0xed   : > { %v1903_v16 = vpop.f32.mrf.mxu0 }
  0xee   : > { %v1967_v17 = vpop.f32.mrf.mxu1 }
  0xef   : > { %v1904_v18 = vpop.f32.mrf.mxu0 }
  0xf0   : > { %v1905_v19 = vadd.f32 %v1904_v18, %v1903_v16  ;;  %v1968_v20 = vpop.f32.mrf.mxu1 }
  0xf1   : > { %v1969_v21 = vadd.f32 %v1968_v20, %v1967_v17  ;;  %v1906_v22 = vpop.f32.mrf.mxu0 }
  0xf2   : > { %v1970_v23 = vpop.f32.mrf.mxu1 }
  0xf3   : > { %v2721_v24 = vadd.f32 %v1969_v21, %v1905_v19  ;;  %v1907_v25 = vpop.f32.mrf.mxu0 }
  0xf4   : > { %v1908_v26 = vadd.f32 %v1907_v25, %v1906_v22  ;;  %v1971_v27 = vpop.f32.mrf.mxu1 }
  0xf5   : > { %v1972_v28 = vadd.f32 %v1971_v27, %v1970_v23  ;;  %v1909_v29 = vpop.f32.mrf.mxu0 }
  0xf6   : > { %v1973_v30 = vpop.f32.mrf.mxu1 }
  0xf7   : > { %v2723_v31 = vadd.f32 %v1972_v28, %v1908_v26  ;;  %v1910_v32 = vpop.f32.mrf.mxu0 }
  0xf8   : > { %v1911_v33 = vadd.f32 %v1910_v32, %v1909_v29  ;;  %v1974_v34 = vpop.f32.mrf.mxu1 }
  0xf9   : > { %v1975_v35 = vadd.f32 %v1974_v34, %v1973_v30  ;;  %v1912_v36 = vpop.f32.mrf.mxu0 }
  0xfa   : > { %v1976_v37 = vpop.f32.mrf.mxu1 }
  0xfb   : > { %v2725_v38 = vadd.f32 %v1975_v35, %v1911_v33  ;;  %v1913_v39 = vpop.f32.mrf.mxu0 }
  0xfc   : > { %v1914_v40 = vadd.f32 %v1913_v39, %v1912_v36  ;;  %v1977_v41 = vpop.f32.mrf.mxu1 }
  0xfd   : > { %v1978_v42 = vadd.f32 %v1977_v41, %v1976_v37  ;;  %v1915_v43 = vpop.f32.mrf.mxu0 }
  0xfe   : > { %v1979_v44 = vpop.f32.mrf.mxu1 }
  0xff   : > { %v2727_v45 = vadd.f32 %v1978_v42, %v1914_v40  ;;  %v1916_v46 = vpop.f32.mrf.mxu0 }
 0x100   : > { %v1917_v47 = vadd.f32 %v1916_v46, %v1915_v43  ;;  %v1980_v48 = vpop.f32.mrf.mxu1 }
 0x101   : > { %v1981_v49 = vadd.f32 %v1980_v48, %v1979_v44  ;;  %v1918_v50 = vpop.f32.mrf.mxu0 }
 0x102   : > { %v1982_v51 = vpop.f32.mrf.mxu1 }
 0x103   : > { %v2729_v52 = vadd.f32 %v1981_v49, %v1917_v47  ;;  %v1919_v53 = vpop.f32.mrf.mxu0 }
 0x104   : > { %v1920_v54 = vadd.f32 %v1919_v53, %v1918_v50  ;;  %v1983_v55 = vpop.f32.mrf.mxu1 }
 0x105   : > { %v1984_v56 = vadd.f32 %v1983_v55, %v1982_v51  ;;  %v1921_v57 = vpop.f32.mrf.mxu0 }
 0x106   : > { %v1985_v58 = vpop.f32.mrf.mxu1 }
 0x107   : > { %v2731_v59 = vadd.f32 %v1984_v56, %v1920_v54  ;;  %v1922_v60 = vpop.f32.mrf.mxu0 }
 0x108   : > { %v1923_v61 = vadd.f32 %v1922_v60, %v1921_v57  ;;  %v1986_v62 = vpop.f32.mrf.mxu1 }
 0x109   : > { %2887 = vst [vmem:[#allocation2_spill] sm:$0xff] %v2731_v59  ;;  %v1987_v63 = vadd.f32 %v1986_v62, %v1985_v58  ;;  %v1924_v0 = vpop.f32.mrf.mxu0 }
 0x10a   : > { %v1988_v1 = vpop.f32.mrf.mxu1 }
 0x10b   : > { %v2733_v2 = vadd.f32 %v1987_v63, %v1923_v61  ;;  %v1925_v3 = vpop.f32.mrf.mxu0 }
 0x10c   : > { %v1926_v4 = vadd.f32 %v1925_v3, %v1924_v0  ;;  %v1989_v5 = vpop.f32.mrf.mxu1 }
 0x10d   : > { %v1990_v6 = vadd.f32 %v1989_v5, %v1988_v1  ;;  %v1927_v7 = vpop.f32.mrf.mxu0 }
 0x10e   : > { %v1991_v8 = vpop.f32.mrf.mxu1 }
 0x10f   : > { %v2735_v9 = vadd.f32 %v1990_v6, %v1926_v4  ;;  %v1928_v10 = vpop.f32.mrf.mxu0 }
 0x110   : > { %v1929_v11 = vadd.f32 %v1928_v10, %v1927_v7  ;;  %v1992_v12 = vpop.f32.mrf.mxu1 }
 0x111   : > { %2888 = vst [vmem:[#allocation3_spill] sm:$0xff] %v2735_v9  ;;  %v1993_v13 = vadd.f32 %v1992_v12, %v1991_v8  ;;  %v1930_v14 = vpop.f32.mrf.mxu0 }
 0x112   : > { %v1994_v15 = vpop.f32.mrf.mxu1 }
 0x113   : > { %v2737_v16 = vadd.f32 %v1993_v13, %v1929_v11  ;;  %v1931_v17 = vpop.f32.mrf.mxu0 }
 0x114   : > { %v1932_v18 = vadd.f32 %v1931_v17, %v1930_v14  ;;  %v1995_v19 = vpop.f32.mrf.mxu1 }
 0x115   : > { %v1996_v20 = vadd.f32 %v1995_v19, %v1994_v15  ;;  %v1933_v21 = vpop.f32.mrf.mxu0 }
 0x116   : > { %v1997_v22 = vpop.f32.mrf.mxu1 }
 0x117   : > { %v2739_v23 = vadd.f32 %v1996_v20, %v1932_v18  ;;  %v1934_v25 = vpop.f32.mrf.mxu0 }
 0x118   : > { %v1935_v26 = vadd.f32 %v1934_v25, %v1933_v21  ;;  %v1998_v27 = vpop.f32.mrf.mxu1 }
 0x119   : > { %v1999_v28 = vadd.f32 %v1998_v27, %v1997_v22  ;;  %v1936_v29 = vpop.f32.mrf.mxu0 }
 0x11a   : > { %v2000_v30 = vpop.f32.mrf.mxu1 }
 0x11b   : > { %v2741_v32 = vadd.f32 %v1999_v28, %v1935_v26  ;;  %v1937_v33 = vpop.f32.mrf.mxu0 }
 0x11c   : > { %v1938_v34 = vadd.f32 %v1937_v33, %v1936_v29  ;;  %v2001_v35 = vpop.f32.mrf.mxu1 }
 0x11d   : > { %v2002_v36 = vadd.f32 %v2001_v35, %v2000_v30  ;;  %v1939_v37 = vpop.f32.mrf.mxu0 }
 0x11e   : > { %v2003_v39 = vpop.f32.mrf.mxu1 }
 0x11f   : > { %v2743_v40 = vadd.f32 %v2002_v36, %v1938_v34  ;;  %v1940_v41 = vpop.f32.mrf.mxu0 }
 0x120   : > { %v1941_v42 = vadd.f32 %v1940_v41, %v1939_v37  ;;  %v2004_v43 = vpop.f32.mrf.mxu1 }
 0x121   : > { %v2005_v44 = vadd.f32 %v2004_v43, %v2003_v39  ;;  %v1942_v46 = vpop.f32.mrf.mxu0 }
 0x122   : > { %v2006_v47 = vpop.f32.mrf.mxu1 }
 0x123   : > { %v2745_v48 = vadd.f32 %v2005_v44, %v1941_v42  ;;  %v1943_v49 = vpop.f32.mrf.mxu0 }
 0x124   : > { %v1944_v50 = vadd.f32 %v1943_v49, %v1942_v46  ;;  %v2007_v51 = vpop.f32.mrf.mxu1 }
 0x125   : > { %2889 = vst [vmem:[#allocation4_spill] sm:$0xff] %v2745_v48  ;;  %v2008_v53 = vadd.f32 %v2007_v51, %v2006_v47  ;;  %v1945_v54 = vpop.f32.mrf.mxu0 }
 0x126   : > { %v2009_v55 = vpop.f32.mrf.mxu1 }
 0x127   : > { %v2747_v56 = vadd.f32 %v2008_v53, %v1944_v50  ;;  %v1946_v57 = vpop.f32.mrf.mxu0 }
 0x128   : > { %v1947_v58 = vadd.f32 %v1946_v57, %v1945_v54  ;;  %v2010_v60 = vpop.f32.mrf.mxu1 }
 0x129   : > { %2890 = vst [vmem:[#allocation5_spill] sm:$0xff] %v2747_v56  ;;  %v2011_v61 = vadd.f32 %v2010_v60, %v2009_v55  ;;  %v1948_v62 = vpop.f32.mrf.mxu0 }
 0x12a   : > { %v2012_v63 = vpop.f32.mrf.mxu1 }
 0x12b   : > { %v2749_v0 = vadd.f32 %v2011_v61, %v1947_v58  ;;  %v1949_v1 = vpop.f32.mrf.mxu0 }
 0x12c   : > { %v1950_v3 = vadd.f32 %v1949_v1, %v1948_v62  ;;  %v2013_v4 = vpop.f32.mrf.mxu1 }
 0x12d   : > { %2891 = vst [vmem:[#allocation6_spill] sm:$0xff] %v2749_v0  ;;  %v2014_v5 = vadd.f32 %v2013_v4, %v2012_v63  ;;  %v2031_v6 = vpop.f32.mrf.mxu0 }
 0x12e   : > { %v2751_v7 = vpop.f32.mrf.mxu1 }
 0x12f   : > { %v2753_v8 = vadd.f32 %v2014_v5, %v1950_v3  ;;  %v2032_v10 = vpop.f32.mrf.mxu0 }
 0x130   : > { %v2755_v11 = vpop.f32.mrf.mxu1 }
 0x131   : > { %2892 = vst [vmem:[#allocation7_spill] sm:$0xff] %v2753_v8  ;;  %v2034_v12 = vpop.f32.mrf.mxu0  ;;  %v2033_v8 = vadd.f32 %v2032_v10, %v2031_v6 }
 0x132   : > { %v2757_v13 = vpop.f32.mrf.mxu1 }
 0x133   : > { %v2035_v14 = vpop.f32.mrf.mxu0 }
 0x134   : > { %v2759_v15 = vpop.f32.mrf.mxu1 }
 0x135   : > { %v2037_v17 = vpop.f32.mrf.mxu0 }
 0x136   : > { %v2761_v18 = vpop.f32.mrf.mxu1 }
 0x137   : > { %v2038_v19 = vpop.f32.mrf.mxu0 }
 0x138   : > { %v2763_v20 = vpop.f32.mrf.mxu1 }
 0x139   : > { %v2040_v21 = vpop.f32.mrf.mxu0 }
 0x13a   : > { %v2765_v22 = vpop.f32.mrf.mxu1 }
 0x13b   : > { %v2041_v25 = vpop.f32.mrf.mxu0 }
 0x13c   : > { %v2767_v26 = vpop.f32.mrf.mxu1 }
 0x13d   : > { %v2043_v27 = vpop.f32.mrf.mxu0 }
 0x13e   : > { %v2769_v28 = vpop.f32.mrf.mxu1 }
 0x13f   : > { %2893 = vst [vmem:[#allocation8_spill] sm:$0xff] %v2769_v28  ;;  %v2044_v29 = vpop.f32.mrf.mxu0  ;;  %v2039_v28 = vadd.f32 %v2038_v19, %v2037_v17 }
 0x140   : > { %v2771_v30 = vpop.f32.mrf.mxu1 }
 0x141   : > { %2894 = vst [vmem:[#allocation9_spill] sm:$0xff] %v2771_v30  ;;  %v2773_v33 = vpop.f32.mrf.mxu0  ;;  %v2036_v30 = vadd.f32 %v2035_v14, %v2034_v12  ;;  %v1412_v6 = vadd.f32 %v2039_v28, %v2725_v38  ;;  %v2097_v12 = vadd.f32 %v2755_v11, %v2751_v7  ;;  %v2100_v14 = vadd.f32 %v2759_v15, %v2757_v13 }
 0x142   : > { %2895 = vst [vmem:[#allocation10_spill] sm:$0xff] %v2773_v33  ;;  %v2775_v34 = vpop.f32.mrf.mxu1 }
 0x143   : > { %2896 = vst [vmem:[#allocation11_spill] sm:$0xff] %v2775_v34  ;;  %v2777_v35 = vpop.f32.mrf.mxu0 }
 0x144   : > { %2897 = vst [vmem:[#allocation12_spill] sm:$0xff] %v2777_v35  ;;  %v2779_v36 = vpop.f32.mrf.mxu1  ;;  %v2042_v35 = vadd.f32 %v2041_v25, %v2040_v21  ;;  %v2045_v25 = vadd.f32 %v2044_v29, %v2043_v27 }
 0x145   : > { %2898 = vst [vmem:[#allocation13_spill] sm:$0xff] %v2779_v36  ;;  %v2049_v37 = vpop.f32.mrf.mxu0 }
 0x146   : > { %v2781_v39 = vpop.f32.mrf.mxu1  ;;  %v1420_v29 = vadd.f32 %v2045_v25, %v2729_v52 }
 0x147   : > { %2899 = vst [vmem:[#allocation14_spill] sm:$0xff] %v2781_v39  ;;  %v2050_v41 = vpop.f32.mrf.mxu0 }
 0x148   : > { %v2783_v42 = vpop.f32.mrf.mxu1  ;;  %v2051_v13 = vadd.f32 %v2050_v41, %v2049_v37 }
 0x149   : > { %2900 = vst [vmem:[#allocation15_spill] sm:$0xff] %v2783_v42  ;;  %v2785_v43 = vpop.f32.mrf.mxu0 }
 0x14a   : > { %v2787_v44 = vpop.f32.mrf.mxu1 }
 0x14b   : > { %2901 = vst [vmem:[#allocation16_spill] sm:$0xff] %v2787_v44  ;;  %v2789_v46 = vpop.f32.mrf.mxu0 }
 0x14c   : > { %v2791_v47 = vpop.f32.mrf.mxu1 }
 0x14d   : > { %2902 = vst [vmem:[#allocation17_spill] sm:$0xff] %v2791_v47  ;;  %v2055_v49 = vpop.f32.mrf.mxu0 }
 0x14e   : > { %v2119_v50 = vpop.f32.mrf.mxu1 }
 0x14f   : > { %v2056_v51 = vpop.f32.mrf.mxu0 }
 0x150   : > { %v2120_v53 = vpop.f32.mrf.mxu1 }
 0x151   : > { %v2058_v54 = vpop.f32.mrf.mxu0 }
 0x152   : > { %v2793_v55 = vpop.f32.mrf.mxu1 }
 0x153   : > { %v2059_v57 = vpop.f32.mrf.mxu0 }
 0x154   : > { %v2795_v58 = vpop.f32.mrf.mxu1 }
 0x155   : > { %v2061_v60 = vpop.f32.mrf.mxu0  ;;  %v2124_v52 = vadd.f32 %v2795_v58, %v2793_v55 }
 0x156   : > { %v2125_v61 = vpop.f32.mrf.mxu1 }
 0x157   : > { %v2062_v62 = vpop.f32.mrf.mxu0 }
 0x158   : > { %v2126_v63 = vpop.f32.mrf.mxu1  ;;  %v2063_v42 = vadd.f32 %v2062_v62, %v2061_v60  ;;  %v2907_v60 = vld [vmem:[#allocation10_spill] sm:$0xff] }
 0x159   : > { %v2064_v1 = vpop.f32.mrf.mxu0  ;;  %v2127_v7 = vadd.f32 %v2126_v63, %v2125_v61  ;;  %v2909_v62 = vld [vmem:[#allocation14_spill] sm:$0xff] }
 0x15a   : > { %v2128_v3 = vpop.f32.mrf.mxu1  ;;  %v1444_v17 = vadd.f32 %v2063_v42, %v2741_v32  ;;  %v2106_v32 = vadd.f32 %v2767_v26, %v2765_v22 }
 0x15b   : > { %v2065_v4 = vpop.f32.mrf.mxu0 }
 0x15c   : > { %v2129_v5 = vpop.f32.mrf.mxu1  ;;  %v2066_v19 = vadd.f32 %v2065_v4, %v2064_v1  ;;  %v1541_v27 = vadd.f32 %v2127_v7, %v1444_v17  ;;  %v2911_v1 = vld [vmem:[#allocation4_spill] sm:$0xff] }
 0x15d   : > { %v2067_v36 = vpop.f32.mrf.mxu0  ;;  %v2130_v37 = vadd.f32 %v2129_v5, %v2128_v3  ;;  %v2913_v17 = vld [vmem:[#allocation8_spill] sm:$0xff] }
 0x15e   : > { %v2797_v34 = vpop.f32.mrf.mxu1 }
 0x15f   : > { %2903 = vst [vmem:[#allocation18_spill] sm:$0xff] %v2797_v34  ;;  %v2068_v56 = vpop.f32.mrf.mxu0  ;;  %v1404_v34 = vadd.f32 %v2033_v8, %v2721_v24  ;;  %v2103_v24 = vadd.f32 %v2763_v20, %v2761_v18  ;;  %v1415_v8 = vadd.f32 %v2042_v35, %v2727_v45  ;;  %v2121_v18 = vadd.f32 %v2120_v53, %v2119_v50 }
 0x160   : > { %v2799_v47 = vpop.f32.mrf.mxu1  ;;  %v1447_v45 = vadd.f32 %v2066_v19, %v2743_v40  ;;  %v2069_v41 = vadd.f32 %v2068_v56, %v2067_v36  ;;  %v2914_v19 = vld [vmem:[#allocation9_spill] sm:$0xff] }
 0x161   : > { %2904 = vst [vmem:[#allocation19_spill] sm:$0xff] %v2799_v47  ;;  %v2801_v44 = vpop.f32.mrf.mxu0  ;;  %v2057_v47 = vadd.f32 %v2056_v51, %v2055_v49  ;;  %v1501_v28 = vadd.f32 %v2097_v12, %v1404_v34  ;;  %v1509_v42 = vadd.f32 %v2103_v24, %v1412_v6  ;;  %v1512_v35 = vadd.f32 %v2106_v32, %v1415_v8  ;;  %v2906_v51 = vld [vmem:[#allocation6_spill] sm:$0xff]  ;;  %v2915_v24 = vld [vmem:[#allocation3_spill] sm:$0xff] }
 0x162   : > { %2905 = vst [vmem:[#allocation20_spill] sm:$0xff] %v2801_v44  ;;  %v2803_v59 = vpop.f32.mrf.mxu1  ;;  %v1407_v44 = vadd.f32 %v2036_v30, %v2723_v31  ;;  %v2060_v31 = vadd.f32 %v2059_v57, %v2058_v54  ;;  %v1544_v57 = vadd.f32 %v2130_v37, %v1447_v45  ;;  %v1452_v3 = vadd.f32 %v2069_v41, %v2911_v1  ;;  %v2920_v45 = vld [vmem:[#allocation16_spill] sm:$0xff] }
 0x163   : > { %v2805_v9 = vpop.f32.mrf.mxu0  ;;  %v1436_v38 = vadd.f32 %v2057_v47, %v2737_v16  ;;  %v2054_v47 = vadd.f32 %v2789_v46, %v2785_v43  ;;  %v2910_v43 = vld [vmem:[#allocation15_spill] sm:$0xff] }
 0x164   : > { %v2807_v48 = vpop.f32.mrf.mxu1  ;;  %v1504_v49 = vadd.f32 %v2100_v14, %v1407_v44  ;;  %v1439_v22 = vadd.f32 %v2060_v31, %v2739_v23  ;;  %v1428_v44 = vadd.f32 %v2051_v13, %v2733_v2  ;;  %v2908_v2 = vld [vmem:[#allocation12_spill] sm:$0xff]  ;;  %v2115_v46 = vadd.f32 %v2910_v43, %v2909_v62 }
 0x165   : > { %v2073_v39 = vpop.f32.mrf.mxu0  ;;  %v2048_v61 = vadd.f32 %v2908_v2, %v2907_v60  ;;  %v1431_v8 = vadd.f32 %v2054_v47, %v2915_v24 }
 0x166   : > { %v2809_v33 = vpop.f32.mrf.mxu1  ;;  %v1536_v63 = vadd.f32 %v2124_v52, %v1439_v22  ;;  %v2916_v7 = vld [vmem:[#allocation18_spill] sm:$0xff] }
 0x167   : > { %v2074_v0 = vpop.f32.mrf.mxu0 }
 0x168   : > { %v2138_v10 = vpop.f32.mrf.mxu1  ;;  %v2075_v20 = vadd.f32 %v2074_v0, %v2073_v39  ;;  %v1533_v39 = vadd.f32 %v2121_v18, %v1436_v38  ;;  %v1525_v38 = vadd.f32 %v2115_v46, %v1428_v44 }
 0x169   : > { %v2076_v21 = vpop.f32.mrf.mxu0  ;;  %v2912_v4 = vld [vmem:[#allocation20_spill] sm:$0xff]  ;;  %v2139_v6 = vadd.f32 %v2138_v10, %v2809_v33 }
 0x16a   : > { %v2822_v30 = vpop.f32.mrf.mxu1  ;;  %v1460_v53 = vadd.f32 %v2075_v20, %v2906_v51  ;;  %v2072_v5 = vadd.f32 %v2805_v9, %v2912_v4  ;;  %v2918_v9 = vld [vmem:[#allocation7_spill] sm:$0xff]  ;;  %v2921_v20 = vld [vmem:[#allocation17_spill] sm:$0xff] }
 0x16b   : > { %v2077_v11 = vpop.f32.mrf.mxu0 }
 0x16c   : > { %v2141_v15 = vpop.f32.mrf.mxu1  ;;  %v2078_v54 = vadd.f32 %v2077_v11, %v2076_v21  ;;  %v2109_v21 = vadd.f32 %v2914_v19, %v2913_v17  ;;  %v2917_v11 = vld [vmem:[#allocation19_spill] sm:$0xff]  ;;  %v1557_v13 = vadd.f32 %v2139_v6, %v1460_v53 }
 0x16d   : > { %v2177_v16 = vpop.f32.mrf.mxu0 }
 0x16e   : > { %v1606_v26 = vadd.f32 %v2177_v16, %v1509_v42  ;;  %v2185_v34 = vpop.f32.mrf.mxu1  ;;  %v1463_v32 = vadd.f32 %v2078_v54, %v2918_v9  ;;  %v2919_v42 = vld [vmem:[#allocation2_spill] sm:$0xff]  ;;  %v2118_v16 = vadd.f32 %v2921_v20, %v2920_v45  ;;  %v1517_v22 = vadd.f32 %v2109_v21, %v1420_v29 }
 0x16f   : > { %v1638_v40 = vadd.f32 %v2185_v34, %v1541_v27  ;;  %v1597_v0 = vpop.f32.mrf.mxu0  ;;  %v1423_v18 = vadd.f32 %v2048_v61, %v2919_v42  ;;  %v2136_v29 = vadd.f32 %v2807_v48, %v2803_v59 }
 0x170   : > { %1662 = vst [vmem:[%s2832_s15 + $0x10] sm:$0xff] %v1606_v26  ;;  %v1598_v23 = vadd.f32 %v1597_v0, %v1501_v28  ;;  %v1629_v50 = vpop.f32.mrf.mxu1  ;;  %v2133_v28 = vadd.f32 %v2917_v11, %v2916_v7  ;;  %v2922_v26 = vld [vmem:[#allocation5_spill] sm:$0xff]  ;;  %v2923_v0 = vld [vmem:[#allocation11_spill] sm:$0xff] }
 0x171   : > { %1670 = vst [vmem:[%s2832_s15 + $0x50] sm:$0xff] %v1638_v40  ;;  %v1630_v56 = vadd.f32 %v1629_v50, %v1533_v39  ;;  %v2178_v36 = vpop.f32.mrf.mxu0  ;;  %v1455_v34 = vadd.f32 %v2072_v5, %v2922_v26  ;;  %v2924_v39 = vld [vmem:[#allocation13_spill] sm:$0xff] }
 0x172   : > { %1660 = vst [vmem:[%s2832_s15] sm:$0xff] %v1598_v23  ;;  %v1609_v55 = vadd.f32 %v2178_v36, %v1512_v35  ;;  %v2186_v58 = vpop.f32.mrf.mxu1  ;;  %v2142_v35 = vadd.f32 %v2141_v15, %v2822_v30  ;;  %v1549_v40 = vadd.f32 %v2133_v28, %v1452_v3  ;;  %v2112_v44 = vadd.f32 %v2924_v39, %v2923_v0 }
 0x173   : > { %1668 = vst [vmem:[%s2832_s15 + $0x40] sm:$0xff] %v1630_v56  ;;  %v1641_v12 = vadd.f32 %v2186_v58, %v1544_v57  ;;  %v1600_v14 = vpop.f32.mrf.mxu0  ;;  %v1528_v23 = vadd.f32 %v2118_v16, %v1431_v8  ;;  %v1552_v57 = vadd.f32 %v2136_v29, %v1455_v34 }
 0x174   : > { %1663 = vst [vmem:[%s2832_s15 + $0x18] sm:$0xff] %v1609_v55  ;;  %v1601_v25 = vadd.f32 %v1600_v14, %v1504_v49  ;;  %v1632_v31 = vpop.f32.mrf.mxu1  ;;  %v1560_v15 = vadd.f32 %v2142_v35, %v1463_v32  ;;  %v1520_v54 = vadd.f32 %v2112_v44, %v1423_v18 }
 0x175   : > { %1671 = vst [vmem:[%s2832_s15 + $0x58] sm:$0xff] %v1641_v12  ;;  %v1633_v33 = vadd.f32 %v1632_v31, %v1536_v63  ;;  %v2181_v10 = vpop.f32.mrf.mxu0 }
 0x176   : > { %1661 = vst [vmem:[%s2832_s15 + $0x8] sm:$0xff] %v1601_v25  ;;  %v1622_v49 = vadd.f32 %v2181_v10, %v1525_v38  ;;  %v2189_v27 = vpop.f32.mrf.mxu1 }
 0x177   : > { %1669 = vst [vmem:[%s2832_s15 + $0x48] sm:$0xff] %v1633_v33  ;;  %v1654_v37 = vadd.f32 %v2189_v27, %v1557_v13  ;;  %v1613_v41 = vpop.f32.mrf.mxu0 }
 0x178   : > { %1666 = vst [vmem:[%s2832_s15 + $0x30] sm:$0xff] %v1622_v49  ;;  %v1614_v47 = vadd.f32 %v1613_v41, %v1517_v22  ;;  %v1645_v52 = vpop.f32.mrf.mxu1 }
 0x179   : > { %1674 = vst [vmem:[%s2832_s15 + $0x70] sm:$0xff] %v1654_v37  ;;  %v1646_v50 = vadd.f32 %v1645_v52, %v1549_v40  ;;  %v2182_v30 = vpop.f32.mrf.mxu0 }
 0x17a   : > { %1664 = vst [vmem:[%s2832_s15 + $0x20] sm:$0xff] %v1614_v47  ;;  %v1625_v51 = vadd.f32 %v2182_v30, %v1528_v23  ;;  %v2190_v53 = vpop.f32.mrf.mxu1 }
 0x17b   : > { %1672 = vst [vmem:[%s2832_s15 + $0x60] sm:$0xff] %v1646_v50  ;;  %v1657_v56 = vadd.f32 %v2190_v53, %v1560_v15  ;;  %v1616_v36 = vpop.f32.mrf.mxu0 }
 0x17c   : > { %1667 = vst [vmem:[%s2832_s15 + $0x38] sm:$0xff] %v1625_v51  ;;  %v1617_v60 = vadd.f32 %v1616_v36, %v1520_v54  ;;  %v1648_v2 = vpop.f32.mrf.mxu1 }
 0x17d   : > { %1675 = vst [vmem:[%s2832_s15 + $0x78] sm:$0xff] %v1657_v56  ;;  %v1649_v59 = vadd.f32 %v1648_v2, %v1552_v57 }
 0x17e   : > { %1665 = vst [vmem:[%s2832_s15 + $0x28] sm:$0xff] %v1617_v60 }
 0x17f   : > { %1673 = vst [vmem:[%s2832_s15 + $0x68] sm:$0xff] %v1649_v59 }
 0x180 PF: > { %s12_s9 = sadd.s32 1, %s2398_s9  }
 0x181   : > { %p9_p4 = scmp.ge.s32.totalorder %s12_s9, 4  }
 0x183   :  { %11 = sbr.rel (!%p9_p4) target bundleno = 1 (0x1), region = 58 }

// kernel: redcm_d_forward.9
= control target key start
LH: loop header
LB: loop body
LE: loop exit
PB: predicated region body
PF: predicated region fallthrough
CT: control target
= control target key end

     0   :  { %s2471_s12 = smov 0   ;;  %s2958_s0 = inlined_call_operand.vmem [shape: bf16[256,1152], index: 0, kind: input, shape index: {}]   ;;  %s2959_s1 = inlined_call_operand.vmem [shape: bf16[1152,128], index: 1, kind: input, shape index: {}]   ;;  %s2960_s2 = inlined_call_operand.vmem [shape: f32[1,128], index: 2, kind: input, shape index: {}]   ;;  %s2961_s3 = inlined_call_operand.vmem [shape: f32[256,128], index: 3, kind: output, shape index: {}]  }
   0x1 LB: > { %s1782_s13 = sadd.s32 4294967295, %s2449_s12   ;;  %p1786_p0 = scmp.ge.s32.totalorder %s2449_s12, 1  ;;  %s2449_s12 = sphi %s2471_s12, %s13_s12  }
   0x2   : > { %p139_p1 = scmp.lt.s32.totalorder %s2449_s12, 3 }
   0x4   : > { %p140_p2 = pnand %p1786_p0, %p139_p1 }
   0x6   : > { %143 = sbr.rel (%p140_p2) target bundleno = 386 (0x182), region = 32 }
   0xb   : > { %v2267_v0 = vld [vmem:[%s2959_s1 + $0x78] sm:$0xff]   ;;  %v2271_v4 = vld [vmem:[%s2959_s1 + $0x70] sm:$0xff]   ;;  %v2275_v8 = vld [vmem:[%s2959_s1 + $0x68] sm:$0xff]   ;;  %s1787_s19 = sshll.u32 %s1782_s13, 4 }
   0xc   : > { %v2268_v1 = vld [vmem:[%s2959_s1 + $0xf8] sm:$0xff]   ;;  %1938 = vmatprep.subr.bf16.mxu0 %v2267_v0  ;;  %v2272_v5 = vld [vmem:[%s2959_s1 + $0xf0] sm:$0xff]   ;;  %v2276_v9 = vld [vmem:[%s2959_s1 + $0xe8] sm:$0xff]   ;;  %p165_p3 = scmp.lt.s32.totalorder %s1787_s19, 31 }
   0xd   : > { %v2269_v2 = vld [vmem:[%s2959_s1 + $0x38] sm:$0xff]   ;;  %2002 = vmatprep.subr.bf16.mxu1 %v2268_v1  ;;  %v2273_v6 = vld [vmem:[%s2959_s1 + $0x30] sm:$0xff]   ;;  %v2277_v10 = vld [vmem:[%s2959_s1 + $0x28] sm:$0xff]  }
   0xe   : > { %v2270_v3 = vld [vmem:[%s2959_s1 + $0xb8] sm:$0xff]   ;;  %1939 = vmatpush3.bf16.msra.mxu0 %v2269_v2  ;;  %v2274_v7 = vld [vmem:[%s2959_s1 + $0xb0] sm:$0xff]   ;;  %v2278_v11 = vld [vmem:[%s2959_s1 + $0xa8] sm:$0xff]   ;;  %s2999_s19 = smov (!%p165_p3, %s1787_s19), 31 }
   0xf   : > { %2003 = vmatpush3.bf16.msra.mxu1 %v2270_v3  ;;  %1940 = vmatprep.subr.bf16.mxu0 %v2271_v4  ;;  %v2279_v12 = vld [vmem:[%s2959_s1 + $0x60] sm:$0xff]   ;;  %v2283_v16 = vld [vmem:[%s2959_s1 + $0x58] sm:$0xff]   ;;  %v2287_v20 = vld [vmem:[%s2959_s1 + $0x50] sm:$0xff]   ;;  %s2258_s16 = smul.u32 36, %s2999_s19 }
  0x10   : > { %2004 = vmatprep.subr.bf16.mxu1 %v2272_v5  ;;  %v2280_v13 = vld [vmem:[%s2959_s1 + $0xe0] sm:$0xff]   ;;  %v2284_v17 = vld [vmem:[%s2959_s1 + $0xd8] sm:$0xff]   ;;  %v2288_v21 = vld [vmem:[%s2959_s1 + $0xd0] sm:$0xff]  }
  0x11   : > { %v2281_v14 = vld [vmem:[%s2959_s1 + $0x20] sm:$0xff]   ;;  %v2285_v18 = vld [vmem:[%s2959_s1 + $0x18] sm:$0xff]   ;;  %v2289_v22 = vld [vmem:[%s2959_s1 + $0x10] sm:$0xff]   ;;  %s2577_s13 = scalar_lea.vmem %s2958_s0, %s2258_s16 }
  0x12   : > { %1941 = vmatpush3.bf16.msra.mxu0 %v2273_v6  ;;  %v2282_v15 = vld [vmem:[%s2959_s1 + $0xa0] sm:$0xff]   ;;  %v2286_v19 = vld [vmem:[%s2959_s1 + $0x98] sm:$0xff]   ;;  %v2290_v23 = vld [vmem:[%s2959_s1 + $0x90] sm:$0xff]  }
  0x13   : > { %2005 = vmatpush3.bf16.msra.mxu1 %v2274_v7  ;;  %1942 = vmatprep.subr.bf16.mxu0 %v2275_v8  ;;  %v2291_v24 = vld [vmem:[%s2959_s1 + $0x48] sm:$0xff]   ;;  %v2295_v28 = vld [vmem:[%s2959_s1 + $0x40] sm:$0xff]   ;;  %v2305_v36 = vld [vmem:[%s2959_s1 + $0x178] sm:$0xff]  }
  0x14   : > { %2006 = vmatprep.subr.bf16.mxu1 %v2276_v9  ;;  %v2292_v25 = vld [vmem:[%s2959_s1 + $0xc8] sm:$0xff]   ;;  %v2296_v29 = vld [vmem:[%s2959_s1 + $0xc0] sm:$0xff]   ;;  %v2306_v37 = vld [vmem:[%s2959_s1 + $0x1f8] sm:$0xff]  }
  0x15   : > { %v2293_v26 = vld [vmem:[%s2959_s1 + $0x8] sm:$0xff]   ;;  %v2297_v30 = vld [vmem:[%s2959_s1] sm:$0xff]   ;;  %v2307_v38 = vld [vmem:[%s2959_s1 + $0x138] sm:$0xff]  }
  0x16   : > { %1943 = vmatpush3.bf16.msra.mxu0 %v2277_v10  ;;  %v2294_v27 = vld [vmem:[%s2959_s1 + $0x88] sm:$0xff]   ;;  %v2298_v31 = vld [vmem:[%s2959_s1 + $0x80] sm:$0xff]   ;;  %v2308_v39 = vld [vmem:[%s2959_s1 + $0x1b8] sm:$0xff]  }
  0x17   : > { %2007 = vmatpush3.bf16.msra.mxu1 %v2278_v11  ;;  %1944 = vmatprep.subr.bf16.mxu0 %v2279_v12  ;;  %v2299_v32 = vld [vmem:[%s2577_s13] ss:$36 sps:$4 sm:$0xff]   ;;  %v2302_v34 = vld [vmem:[%s2577_s13 + $0x8] ss:$36 sps:$4 sm:$0xff]   ;;  %v2311_v41 = vld [vmem:[%s2577_s13 + $0x54] ss:$36 sps:$4 sm:$0xff]  }
  0x18   : > { %2008 = vmatprep.subr.bf16.mxu1 %v2280_v13  ;;  %v2301_v33 = vld [vmem:[%s2577_s13 + $0x4] ss:$36 sps:$4 sm:$0xff]   ;;  %v2304_v35 = vld [vmem:[%s2577_s13 + $0xc] ss:$36 sps:$4 sm:$0xff]   ;;  %v2319_v48 = vld [vmem:[%s2577_s13 + $0x94] ss:$36 sps:$4 sm:$0xff]  }
  0x19   : > { %1241 = vmatprep.mubr.bf16.mxu0 %v2301_v33  ;;  %1338 = vmatprep.mubr.bf16.mxu1 %v2304_v35  ;;  %v2309_v40 = vld [vmem:[%s2577_s13 + $0x4c] ss:$36 sps:$4 sm:$0xff]   ;;  %v2321_v49 = vld [vmem:[%s2577_s13 + $0x9c] ss:$36 sps:$4 sm:$0xff]   ;;  %v2331_v57 = vld [vmem:[%s2577_s13 + $0xe4] ss:$36 sps:$4 sm:$0xff]  }
  0x1a   : > { %1945 = vmatpush3.bf16.msra.mxu0 %v2281_v14  ;;  %v2313_v42 = vld [vmem:[%s2577_s13 + $0x48] ss:$36 sps:$4 sm:$0xff]   ;;  %v2314_v43 = vld [vmem:[%s2577_s13 + $0x50] ss:$36 sps:$4 sm:$0xff]   ;;  %v2324_v51 = vld [vmem:[%s2577_s13 + $0x98] ss:$36 sps:$4 sm:$0xff]  }
  0x1b   : > { %2009 = vmatpush3.bf16.msra.mxu1 %v2282_v15  ;;  %1946 = vmatprep.subr.bf16.mxu0 %v2283_v16  ;;  %v2315_v44 = vld [vmem:[%s2959_s1 + $0x170] sm:$0xff]   ;;  %v2325_v52 = vld [vmem:[%s2959_s1 + $0x168] sm:$0xff]   ;;  %v2329_v56 = vld [vmem:[%s2577_s13 + $0xdc] ss:$36 sps:$4 sm:$0xff]  }
  0x1c   : > { %2010 = vmatprep.subr.bf16.mxu1 %v2284_v17  ;;  %v2316_v45 = vld [vmem:[%s2959_s1 + $0x1f0] sm:$0xff]   ;;  %v2326_v53 = vld [vmem:[%s2959_s1 + $0x1e8] sm:$0xff]   ;;  %v2333_v58 = vld [vmem:[%s2577_s13 + $0xd8] ss:$36 sps:$4 sm:$0xff]  }
  0x1d   : > { %v2317_v46 = vld [vmem:[%s2959_s1 + $0x130] sm:$0xff]   ;;  %v2327_v54 = vld [vmem:[%s2959_s1 + $0x128] sm:$0xff]   ;;  %v2334_v59 = vld [vmem:[%s2577_s13 + $0xe0] ss:$36 sps:$4 sm:$0xff]  }
  0x1e   : > { %1947 = vmatpush3.bf16.msra.mxu0 %v2285_v18  ;;  %v2318_v47 = vld [vmem:[%s2959_s1 + $0x1b0] sm:$0xff]   ;;  %v2328_v55 = vld [vmem:[%s2959_s1 + $0x1a8] sm:$0xff]   ;;  %v2335_v60 = vld [vmem:[%s2959_s1 + $0x160] sm:$0xff]  }
  0x1f   : > { %2011 = vmatpush3.bf16.msra.mxu1 %v2286_v19  ;;  %1948 = vmatprep.subr.bf16.mxu0 %v2287_v20  ;;  %v2323_v50 = vld [vmem:[%s2577_s13 + $0x90] ss:$36 sps:$4 sm:$0xff]   ;;  %v2336_v61 = vld [vmem:[%s2959_s1 + $0x1e0] sm:$0xff]   ;;  %v2345_v3 = vld [vmem:[%s2959_s1 + $0x158] sm:$0xff]  }
  0x20   : > { %2012 = vmatprep.subr.bf16.mxu1 %v2288_v21  ;;  %v2337_v62 = vld [vmem:[%s2959_s1 + $0x120] sm:$0xff]   ;;  %v2341_v1 = vld [vmem:[%s2577_s13 + $0x12c] ss:$36 sps:$4 sm:$0xff]   ;;  %v2346_v5 = vld [vmem:[%s2959_s1 + $0x1d8] sm:$0xff]  }
  0x21   : > { %v2338_v63 = vld [vmem:[%s2959_s1 + $0x1a0] sm:$0xff]   ;;  %v2344_v4 = vld [vmem:[%s2577_s13 + $0x128] ss:$36 sps:$4 sm:$0xff]   ;;  %v2347_v6 = vld [vmem:[%s2959_s1 + $0x118] sm:$0xff]  }
  0x22   : > { %1949 = vmatpush3.bf16.msra.mxu0 %v2289_v22  ;;  %v2339_v0 = vld [vmem:[%s2577_s13 + $0x124] ss:$36 sps:$4 sm:$0xff]   ;;  %v2348_v7 = vld [vmem:[%s2959_s1 + $0x198] sm:$0xff]   ;;  %v2349_v8 = vld [vmem:[%s2577_s13 + $0x16c] ss:$36 sps:$4 sm:$0xff]  }
  0x23   : > { %2013 = vmatpush3.bf16.msra.mxu1 %v2290_v23  ;;  %1950 = vmatprep.subr.bf16.mxu0 %v2291_v24  ;;  %v2343_v2 = vld [vmem:[%s2577_s13 + $0x120] ss:$36 sps:$4 sm:$0xff]   ;;  %v2351_v9 = vld [vmem:[%s2577_s13 + $0x174] ss:$36 sps:$4 sm:$0xff]   ;;  %v2353_v12 = vld [vmem:[%s2577_s13 + $0x168] ss:$36 sps:$4 sm:$0xff]  }
  0x24   : > { %2014 = vmatprep.subr.bf16.mxu1 %v2292_v25  ;;  %v2355_v10 = vld [vmem:[%s2959_s1 + $0x150] sm:$0xff]   ;;  %v2361_v17 = vld [vmem:[%s2577_s13 + $0x1bc] ss:$36 sps:$4 sm:$0xff]   ;;  %v2365_v18 = vld [vmem:[%s2959_s1 + $0x148] sm:$0xff]  }
  0x25   : > { %v2356_v11 = vld [vmem:[%s2959_s1 + $0x1d0] sm:$0xff]   ;;  %v2366_v19 = vld [vmem:[%s2959_s1 + $0x1c8] sm:$0xff]   ;;  %v2364_v23 = vld [vmem:[%s2577_s13 + $0x1b8] ss:$36 sps:$4 sm:$0xff]  }
  0x26   : > { %1951 = vmatpush3.bf16.msra.mxu0 %v2293_v26  ;;  %v2357_v13 = vld [vmem:[%s2959_s1 + $0x110] sm:$0xff]   ;;  %v2367_v20 = vld [vmem:[%s2959_s1 + $0x108] sm:$0xff]   ;;  %v2369_v24 = vld [vmem:[%s2577_s13 + $0x1fc] ss:$36 sps:$4 sm:$0xff]  }
  0x27   : > { %2015 = vmatpush3.bf16.msra.mxu1 %v2294_v27  ;;  %1952 = vmatprep.subr.bf16.mxu0 %v2295_v28  ;;  %v2358_v14 = vld [vmem:[%s2959_s1 + $0x190] sm:$0xff]   ;;  %v2368_v21 = vld [vmem:[%s2959_s1 + $0x188] sm:$0xff]   ;;  %v2375_v26 = vld [vmem:[%s2959_s1 + $0x140] sm:$0xff]  }
  0x28   : > { %2016 = vmatprep.subr.bf16.mxu1 %v2296_v29  ;;  %v2354_v15 = vld [vmem:[%s2577_s13 + $0x170] ss:$36 sps:$4 sm:$0xff]   ;;  %v2371_v25 = vld [vmem:[%s2577_s13 + $0x204] ss:$36 sps:$4 sm:$0xff]  }
  0x29   : > { %v2359_v16 = vld [vmem:[%s2577_s13 + $0x1b4] ss:$36 sps:$4 sm:$0xff]   ;;  %v2376_v27 = vld [vmem:[%s2959_s1 + $0x1c0] sm:$0xff]  }
  0x2a   : > { %1953 = vmatpush3.bf16.msra.mxu0 %v2297_v30  ;;  %v2363_v22 = vld [vmem:[%s2577_s13 + $0x1b0] ss:$36 sps:$4 sm:$0xff]   ;;  %v2377_v28 = vld [vmem:[%s2959_s1 + $0x100] sm:$0xff]   ;;  %v2373_v30 = vld [vmem:[%s2577_s13 + $0x1f8] ss:$36 sps:$4 sm:$0xff]  }
  0x2b   : > { %2017 = vmatpush3.bf16.msra.mxu1 %v2298_v31  ;;  %2066 = vmatprep.subr.bf16.mxu0 %v2305_v36  ;;  %v2378_v29 = vld [vmem:[%s2959_s1 + $0x180] sm:$0xff]   ;;  %v2381_v33 = vld [vmem:[%s2577_s13 + $0x14] ss:$36 sps:$4 sm:$0xff]  }
  0x2c   : > { %2130 = vmatprep.subr.bf16.mxu1 %v2306_v37  ;;  %v2374_v31 = vld [vmem:[%s2577_s13 + $0x200] ss:$36 sps:$4 sm:$0xff]   ;;  %v2379_v35 = vld [vmem:[%s2577_s13 + $0x10] ss:$36 sps:$4 sm:$0xff]   ;;  %v2382_v36 = vld [vmem:[%s2577_s13 + $0x18] ss:$36 sps:$4 sm:$0xff]  }
  0x2d   : > { %1242 = vmatmul.mubr.bf16.vlgmr.msra.gmra.mxu0 %v2299_v32  ;;  %v2385_v32 = vld [vmem:[%s2959_s1 + $0x238] sm:$0xff]  }
  0x2e   : > { %1339 = vmatmul.mubr.bf16.vlgmr.msra.gmra.mxu1 %v2302_v34  ;;  %2067 = vmatpush3.bf16.msra.mxu0 %v2307_v38  ;;  %v2384_v34 = vld [vmem:[%s2577_s13 + $0x1c] ss:$36 sps:$4 sm:$0xff]   ;;  %v2388_v38 = vld [vmem:[%s2577_s13 + $0x64] ss:$36 sps:$4 sm:$0xff]  }
  0x2f   : > { %2131 = vmatpush3.bf16.msra.mxu1 %v2308_v39  ;;  %1249 = vmatprep.mubr.bf16.mxu0 %v2309_v40  ;;  %v2386_v37 = vld [vmem:[%s2577_s13 + $0x5c] ss:$36 sps:$4 sm:$0xff]   ;;  %v2392_v39 = vld [vmem:[%s2959_s1 + $0x230] sm:$0xff]   ;;  %v2399_v40 = vld [vmem:[%s2959_s1 + $0x228] sm:$0xff]  }
  0x30   : > { %1346 = vmatprep.mubr.bf16.mxu1 %v2311_v41  ;;  %2068 = vmatprep.subr.bf16.mxu0 %v2315_v44  ;;  %v2390_v41 = vld [vmem:[%s2577_s13 + $0x58] ss:$36 sps:$4 sm:$0xff]   ;;  %v2395_v44 = vld [vmem:[%s2577_s13 + $0xac] ss:$36 sps:$4 sm:$0xff]  }
  0x31   : > { %2132 = vmatprep.subr.bf16.mxu1 %v2316_v45  ;;  %v2406_v45 = vld [vmem:[%s2959_s1 + $0x220] sm:$0xff]  }
  0x32   : > { %2069 = vmatpush3.bf16.msra.mxu0 %v2317_v46  ;;  %v2413_v46 = vld [vmem:[%s2959_s1 + $0x218] sm:$0xff]  }
  0x33   : > { %2133 = vmatpush3.bf16.msra.mxu1 %v2318_v47  ;;  %2070 = vmatprep.subr.bf16.mxu0 %v2325_v52  ;;  %v2397_v47 = vld [vmem:[%s2577_s13 + $0xa0] ss:$36 sps:$4 sm:$0xff]   ;;  %v2404_v52 = vld [vmem:[%s2577_s13 + $0xe8] ss:$36 sps:$4 sm:$0xff]  }
  0x34   : > { %2134 = vmatprep.subr.bf16.mxu1 %v2326_v53  ;;  %v2427_v53 = vld [vmem:[%s2959_s1 + $0x208] sm:$0xff]  }
  0x35   : > { %1250 = vmatmul.mubr.bf16.gmra.mxu0 %v2313_v42  ;;  %v2391_v42 = vld [vmem:[%s2577_s13 + $0x60] ss:$36 sps:$4 sm:$0xff]  }
  0x36   : > { %1347 = vmatmul.mubr.bf16.gmra.mxu1 %v2314_v43  ;;  %1257 = vmatprep.mubr.bf16.mxu0 %v2319_v48  ;;  %v2393_v43 = vld [vmem:[%s2577_s13 + $0xa4] ss:$36 sps:$4 sm:$0xff]  }
  0x37   : > { %1354 = vmatprep.mubr.bf16.mxu1 %v2321_v49  ;;  %2071 = vmatpush3.bf16.msra.mxu0 %v2327_v54  ;;  %v2398_v48 = vld [vmem:[%s2577_s13 + $0xa8] ss:$36 sps:$4 sm:$0xff]   ;;  %v2405_v54 = vld [vmem:[%s2577_s13 + $0xf0] ss:$36 sps:$4 sm:$0xff]  }
  0x38   : > { %2135 = vmatpush3.bf16.msra.mxu1 %v2328_v55  ;;  %2072 = vmatprep.subr.bf16.mxu0 %v2335_v60  ;;  %v2400_v49 = vld [vmem:[%s2577_s13 + $0xec] ss:$36 sps:$4 sm:$0xff]   ;;  %v2407_v55 = vld [vmem:[%s2577_s13 + $0x134] ss:$36 sps:$4 sm:$0xff]   ;;  %v2414_v60 = vld [vmem:[%s2577_s13 + $0x17c] ss:$36 sps:$4 sm:$0xff]  }
  0x39   : > { %2136 = vmatprep.subr.bf16.mxu1 %v2336_v61  ;;  %v2416_v61 = vld [vmem:[%s2577_s13 + $0x184] ss:$36 sps:$4 sm:$0xff]  }
  0x3b   : > { %2073 = vmatpush3.bf16.msra.mxu0 %v2337_v62  ;;  %v2418_v62 = vld [vmem:[%s2577_s13 + $0x178] ss:$36 sps:$4 sm:$0xff]  }
  0x3c   : > { %2137 = vmatpush3.bf16.msra.mxu1 %v2338_v63  ;;  %2074 = vmatprep.subr.bf16.mxu0 %v2345_v3  ;;  %v2419_v63 = vld [vmem:[%s2577_s13 + $0x180] ss:$36 sps:$4 sm:$0xff]   ;;  %v2426_v3 = vld [vmem:[%s2577_s13 + $0x1c8] ss:$36 sps:$4 sm:$0xff]  }
  0x3d   : > { %1258 = vmatmul.mubr.bf16.gmra.mxu0 %v2323_v50  ;;  %2138 = vmatprep.subr.bf16.mxu1 %v2346_v5  ;;  %v2402_v50 = vld [vmem:[%s2577_s13 + $0xf4] ss:$36 sps:$4 sm:$0xff]  }
  0x3e   : > { %1355 = vmatmul.mubr.bf16.gmra.mxu1 %v2324_v51  ;;  %1265 = vmatprep.mubr.bf16.mxu0 %v2329_v56  ;;  %v2420_v51 = vld [vmem:[%s2959_s1 + $0x210] sm:$0xff]   ;;  %v2409_v56 = vld [vmem:[%s2577_s13 + $0x13c] ss:$36 sps:$4 sm:$0xff]  }
  0x3f   : > { %1362 = vmatprep.mubr.bf16.mxu1 %v2331_v57  ;;  %2075 = vmatpush3.bf16.msra.mxu0 %v2347_v6  ;;  %v2434_v57 = vld [vmem:[%s2959_s1 + $0x200] sm:$0xff]   ;;  %v2430_v5 = vld [vmem:[%s2577_s13 + $0x214] ss:$36 sps:$4 sm:$0xff]   ;;  %v2432_v6 = vld [vmem:[%s2577_s13 + $0x208] ss:$36 sps:$4 sm:$0xff]  }
  0x40   : > { %2139 = vmatpush3.bf16.msra.mxu1 %v2348_v7  ;;  %2076 = vmatprep.subr.bf16.mxu0 %v2355_v10  ;;  %v2433_v7 = vld [vmem:[%s2577_s13 + $0x210] ss:$36 sps:$4 sm:$0xff]   ;;  %v2437_v10 = vld [vmem:[%s2577_s13 + $0x68] ss:$36 sps:$4 sm:$0xff]  }
  0x41   : > { %2140 = vmatprep.subr.bf16.mxu1 %v2356_v11  ;;  %v2438_v11 = vld [vmem:[%s2577_s13 + $0x188] ss:$36 sps:$4 sm:$0xff]  }
  0x43   : > { %2077 = vmatpush3.bf16.msra.mxu0 %v2357_v13  ;;  %v2440_v13 = vld [vmem:[%s2577_s13 + $0x1d0] ss:$36 sps:$4 sm:$0xff]  }
  0x44   : > { %2141 = vmatpush3.bf16.msra.mxu1 %v2358_v14  ;;  %2078 = vmatprep.subr.bf16.mxu0 %v2365_v18  ;;  %v2441_v14 = vld [vmem:[%s2577_s13 + $0xf8] ss:$36 sps:$4 sm:$0xff]   ;;  %v2780_v18 = vld [vmem:[%s2960_s2] ss:$0 sm:$0xff] }
  0x45   : > { %1266 = vmatmul.mubr.bf16.gmra.mxu0 %v2333_v58  ;;  %2142 = vmatprep.subr.bf16.mxu1 %v2366_v19  ;;  %v2411_v58 = vld [vmem:[%s2577_s13 + $0x130] ss:$36 sps:$4 sm:$0xff]  }
  0x46   : > { %1363 = vmatmul.mubr.bf16.gmra.mxu1 %v2334_v59  ;;  %1273 = vmatprep.mubr.bf16.mxu0 %v2339_v0  ;;  %v2412_v59 = vld [vmem:[%s2577_s13 + $0x138] ss:$36 sps:$4 sm:$0xff]   ;;  %v2421_v0 = vld [vmem:[%s2577_s13 + $0x1c4] ss:$36 sps:$4 sm:$0xff]  }
  0x47   : > { %1370 = vmatprep.mubr.bf16.mxu1 %v2341_v1  ;;  %2079 = vmatpush3.bf16.msra.mxu0 %v2367_v20  ;;  %v2423_v1 = vld [vmem:[%s2577_s13 + $0x1cc] ss:$36 sps:$4 sm:$0xff]  }
  0x48   : > { %2143 = vmatpush3.bf16.msra.mxu1 %v2368_v21  ;;  %2080 = vmatprep.subr.bf16.mxu0 %v2375_v26 }
  0x49   : > { %2144 = vmatprep.subr.bf16.mxu1 %v2376_v27 }
  0x4b   : > { %2081 = vmatpush3.bf16.msra.mxu0 %v2377_v28 }
  0x4c   : > { %2145 = vmatpush3.bf16.msra.mxu1 %v2378_v29  ;;  %2210 = vmatprep.subr.bf16.mxu0 %v2385_v32 }
  0x4d   : > { %1274 = vmatmul.mubr.bf16.gmra.mxu0 %v2343_v2  ;;  %2242 = vmatprep.subr.bf16.mxu1 %v2385_v32  ;;  %v2425_v2 = vld [vmem:[%s2577_s13 + $0x1c0] ss:$36 sps:$4 sm:$0xff]  }
  0x4e   : > { %1371 = vmatmul.mubr.bf16.gmra.mxu1 %v2344_v4  ;;  %1281 = vmatprep.mubr.bf16.mxu0 %v2349_v8  ;;  %v2428_v4 = vld [vmem:[%s2577_s13 + $0x20c] ss:$36 sps:$4 sm:$0xff]   ;;  %v2435_v8 = vld [vmem:[%s2577_s13 + $0x20] ss:$36 sps:$4 sm:$0xff]  }
  0x4f   : > { %1378 = vmatprep.mubr.bf16.mxu1 %v2351_v9  ;;  %v2436_v9 = vld [vmem:[%s2577_s13 + $0x140] ss:$36 sps:$4 sm:$0xff]  }
  0x55   : > { %1282 = vmatmul.mubr.bf16.gmra.mxu0 %v2353_v12  ;;  %v2439_v12 = vld [vmem:[%s2577_s13 + $0xb0] ss:$36 sps:$4 sm:$0xff]  }
  0x56   : > { %1379 = vmatmul.mubr.bf16.gmra.mxu1 %v2354_v15  ;;  %1289 = vmatprep.mubr.bf16.mxu0 %v2359_v16  ;;  %v2442_v15 = vld [vmem:[%s2577_s13 + $0x218] ss:$36 sps:$4 sm:$0xff]   ;;  %s1790_s13 = sshll.u32 %s2999_s19, 3 }
  0x57   : > { %1386 = vmatprep.mubr.bf16.mxu1 %v2361_v17  ;;  %s2916_s18 = scalar_lea.vmem %s2961_s3, %s1790_s13 }
  0x5d   : > { %1290 = vmatmul.mubr.bf16.gmra.mxu0 %v2363_v22 }
  0x5e   : > { %1387 = vmatmul.mubr.bf16.gmra.mxu1 %v2364_v23  ;;  %1297 = vmatprep.mubr.bf16.mxu0 %v2369_v24 }
  0x5f   : > { %1394 = vmatprep.mubr.bf16.mxu1 %v2371_v25 }
  0x65   : > { %1298 = vmatmul.mubr.bf16.gmra.mxu0 %v2373_v30 }
  0x66   : > { %1395 = vmatmul.mubr.bf16.gmra.mxu1 %v2374_v31  ;;  %1435 = vmatprep.mubr.bf16.mxu0 %v2381_v33 }
  0x67   : > { %1532 = vmatprep.mubr.bf16.mxu1 %v2384_v34 }
  0x6d   : > { %1436 = vmatmul.mubr.bf16.vlgmr.msra.gmra.mxu0 %v2379_v35 }
  0x6e   : > { %1533 = vmatmul.mubr.bf16.vlgmr.msra.gmra.mxu1 %v2382_v36  ;;  %2211 = vmatpush3.bf16.msra.mxu0 %v2385_v32 }
  0x6f   : > { %2250 = vmatpush3.bf16.msra.mxu1 %v2385_v32  ;;  %1443 = vmatprep.mubr.bf16.mxu0 %v2386_v37 }
  0x70   : > { %1540 = vmatprep.mubr.bf16.mxu1 %v2388_v38  ;;  %2212 = vmatprep.subr.bf16.mxu0 %v2392_v39 }
  0x71   : > { %2243 = vmatprep.subr.bf16.mxu1 %v2392_v39 }
  0x72   : > { %2213 = vmatpush3.bf16.msra.mxu0 %v2392_v39 }
  0x73   : > { %2251 = vmatpush3.bf16.msra.mxu1 %v2392_v39  ;;  %2214 = vmatprep.subr.bf16.mxu0 %v2399_v40 }
  0x74   : > { %2244 = vmatprep.subr.bf16.mxu1 %v2399_v40 }
  0x75   : > { %1444 = vmatmul.mubr.bf16.gmra.mxu0 %v2390_v41 }
  0x76   : > { %1541 = vmatmul.mubr.bf16.gmra.mxu1 %v2391_v42  ;;  %1451 = vmatprep.mubr.bf16.mxu0 %v2393_v43 }
  0x77   : > { %1548 = vmatprep.mubr.bf16.mxu1 %v2395_v44  ;;  %2215 = vmatpush3.bf16.msra.mxu0 %v2399_v40 }
  0x78   : > { %2252 = vmatpush3.bf16.msra.mxu1 %v2399_v40  ;;  %2216 = vmatprep.subr.bf16.mxu0 %v2406_v45 }
  0x79   : > { %2245 = vmatprep.subr.bf16.mxu1 %v2406_v45 }
  0x7b   : > { %2217 = vmatpush3.bf16.msra.mxu0 %v2406_v45 }
  0x7c   : > { %2253 = vmatpush3.bf16.msra.mxu1 %v2406_v45  ;;  %2218 = vmatprep.subr.bf16.mxu0 %v2413_v46 }
  0x7d   : > { %1452 = vmatmul.mubr.bf16.gmra.mxu0 %v2397_v47  ;;  %2246 = vmatprep.subr.bf16.mxu1 %v2413_v46 }
  0x7e   : > { %1549 = vmatmul.mubr.bf16.gmra.mxu1 %v2398_v48  ;;  %1459 = vmatprep.mubr.bf16.mxu0 %v2400_v49 }
  0x7f   : > { %1556 = vmatprep.mubr.bf16.mxu1 %v2402_v50  ;;  %2219 = vmatpush3.bf16.msra.mxu0 %v2413_v46 }
  0x80   : > { %2254 = vmatpush3.bf16.msra.mxu1 %v2413_v46  ;;  %2220 = vmatprep.subr.bf16.mxu0 %v2420_v51 }
  0x81   : > { %2247 = vmatprep.subr.bf16.mxu1 %v2420_v51 }
  0x83   : > { %2221 = vmatpush3.bf16.msra.mxu0 %v2420_v51 }
  0x84   : > { %2255 = vmatpush3.bf16.msra.mxu1 %v2420_v51  ;;  %2222 = vmatprep.subr.bf16.mxu0 %v2427_v53 }
  0x85   : > { %1460 = vmatmul.mubr.bf16.gmra.mxu0 %v2404_v52  ;;  %2248 = vmatprep.subr.bf16.mxu1 %v2427_v53 }
  0x86   : > { %1557 = vmatmul.mubr.bf16.gmra.mxu1 %v2405_v54  ;;  %1467 = vmatprep.mubr.bf16.mxu0 %v2407_v55 }
  0x87   : > { %1564 = vmatprep.mubr.bf16.mxu1 %v2409_v56  ;;  %2223 = vmatpush3.bf16.msra.mxu0 %v2427_v53 }
  0x88   : > { %2256 = vmatpush3.bf16.msra.mxu1 %v2427_v53  ;;  %2224 = vmatprep.subr.bf16.mxu0 %v2434_v57 }
  0x89   : > { %2249 = vmatprep.subr.bf16.mxu1 %v2434_v57 }
  0x8b   : > { %2225 = vmatpush3.bf16.msra.mxu0 %v2434_v57 }
  0x8c   : > { %2257 = vmatpush3.bf16.msra.mxu1 %v2434_v57 }
  0x8d   : > { %1468 = vmatmul.mubr.bf16.gmra.mxu0 %v2411_v58 }
  0x8e   : > { %1565 = vmatmul.mubr.bf16.gmra.mxu1 %v2412_v59  ;;  %1475 = vmatprep.mubr.bf16.mxu0 %v2414_v60 }
  0x8f   : > { %1572 = vmatprep.mubr.bf16.mxu1 %v2416_v61 }
  0x95   : > { %1476 = vmatmul.mubr.bf16.gmra.mxu0 %v2418_v62 }
  0x96   : > { %1573 = vmatmul.mubr.bf16.gmra.mxu1 %v2419_v63  ;;  %1483 = vmatprep.mubr.bf16.mxu0 %v2421_v0 }
  0x97   : > { %1580 = vmatprep.mubr.bf16.mxu1 %v2423_v1 }
  0x9d   : > { %1484 = vmatmul.mubr.bf16.gmra.mxu0 %v2425_v2 }
  0x9e   : > { %1581 = vmatmul.mubr.bf16.gmra.mxu1 %v2426_v3  ;;  %1491 = vmatprep.mubr.bf16.mxu0 %v2428_v4 }
  0x9f   : > { %1588 = vmatprep.mubr.bf16.mxu1 %v2430_v5 }
  0xa5   : > { %1492 = vmatmul.mubr.bf16.gmra.mxu0 %v2432_v6 }
  0xa6   : > { %1589 = vmatmul.mubr.bf16.gmra.mxu1 %v2433_v7  ;;  %2226 = vmatprep.mubr.bf16.mxu0 %v2435_v8 }
  0xa7   : > { %2234 = vmatprep.mubr.bf16.mxu1 %v2436_v9 }
  0xad   : > { %2227 = vmatmul.mubr.bf16.vlgmr.msra.gmra.mxu0 %v2437_v10 }
  0xae   : > { %2235 = vmatmul.mubr.bf16.vlgmr.msra.gmra.mxu1 %v2438_v11  ;;  %2230 = vmatprep.mubr.bf16.mxu0 %v2439_v12 }
  0xaf   : > { %2238 = vmatprep.mubr.bf16.mxu1 %v2440_v13 }
  0xb5   : > { %2231 = vmatmul.mubr.bf16.gmra.mxu0 %v2441_v14 }
  0xb6   : > { %2239 = vmatmul.mubr.bf16.gmra.mxu1 %v2442_v15 }
  0xed   : > { %v1954_v16 = vpop.f32.mrf.mxu0 }
  0xee   : > { %v2018_v17 = vpop.f32.mrf.mxu1 }
  0xef   : > { %v1955_v19 = vpop.f32.mrf.mxu0 }
  0xf0   : > { %v1956_v20 = vadd.f32 %v1955_v19, %v1954_v16  ;;  %v2019_v21 = vpop.f32.mrf.mxu1 }
  0xf1   : > { %v2020_v22 = vadd.f32 %v2019_v21, %v2018_v17  ;;  %v1957_v23 = vpop.f32.mrf.mxu0 }
  0xf2   : > { %v1244_v24 = vadd.f32 %v1956_v20, %v2780_v18  ;;  %v2021_v25 = vpop.f32.mrf.mxu1 }
  0xf3   : > { %v1958_v26 = vpop.f32.mrf.mxu0 }
  0xf4   : > { %v2783_v27 = vadd.f32 %v2020_v22, %v1244_v24  ;;  %v1959_v28 = vadd.f32 %v1958_v26, %v1957_v23  ;;  %v2022_v29 = vpop.f32.mrf.mxu1 }
  0xf5   : > { %v2023_v30 = vadd.f32 %v2022_v29, %v2021_v25  ;;  %v1960_v31 = vpop.f32.mrf.mxu0 }
  0xf6   : > { %v1247_v32 = vadd.f32 %v1959_v28, %v2780_v18  ;;  %v2024_v33 = vpop.f32.mrf.mxu1 }
  0xf7   : > { %v1961_v34 = vpop.f32.mrf.mxu0 }
  0xf8   : > { %v2786_v35 = vadd.f32 %v2023_v30, %v1247_v32  ;;  %v1962_v36 = vadd.f32 %v1961_v34, %v1960_v31  ;;  %v2025_v37 = vpop.f32.mrf.mxu1 }
  0xf9   : > { %v2026_v38 = vadd.f32 %v2025_v37, %v2024_v33  ;;  %v1963_v39 = vpop.f32.mrf.mxu0 }
  0xfa   : > { %v1252_v40 = vadd.f32 %v1962_v36, %v2780_v18  ;;  %v2027_v41 = vpop.f32.mrf.mxu1 }
  0xfb   : > { %v1964_v42 = vpop.f32.mrf.mxu0 }
  0xfc   : > { %v2789_v43 = vadd.f32 %v2026_v38, %v1252_v40  ;;  %v1965_v44 = vadd.f32 %v1964_v42, %v1963_v39  ;;  %v2028_v45 = vpop.f32.mrf.mxu1 }
  0xfd   : > { %v2029_v46 = vadd.f32 %v2028_v45, %v2027_v41  ;;  %v1966_v47 = vpop.f32.mrf.mxu0 }
  0xfe   : > { %v1255_v48 = vadd.f32 %v1965_v44, %v2780_v18  ;;  %v2030_v49 = vpop.f32.mrf.mxu1 }
  0xff   : > { %v1967_v50 = vpop.f32.mrf.mxu0 }
 0x100   : > { %v2792_v51 = vadd.f32 %v2029_v46, %v1255_v48  ;;  %v1968_v52 = vadd.f32 %v1967_v50, %v1966_v47  ;;  %v2031_v53 = vpop.f32.mrf.mxu1 }
 0x101   : > { %v2032_v54 = vadd.f32 %v2031_v53, %v2030_v49  ;;  %v1969_v55 = vpop.f32.mrf.mxu0 }
 0x102   : > { %v1260_v56 = vadd.f32 %v1968_v52, %v2780_v18  ;;  %v2033_v57 = vpop.f32.mrf.mxu1 }
 0x103   : > { %v1970_v58 = vpop.f32.mrf.mxu0 }
 0x104   : > { %v2795_v59 = vadd.f32 %v2032_v54, %v1260_v56  ;;  %v1971_v60 = vadd.f32 %v1970_v58, %v1969_v55  ;;  %v2034_v61 = vpop.f32.mrf.mxu1 }
 0x105   : > { %v2035_v62 = vadd.f32 %v2034_v61, %v2033_v57  ;;  %v1972_v63 = vpop.f32.mrf.mxu0 }
 0x106   : > { %v1263_v0 = vadd.f32 %v1971_v60, %v2780_v18  ;;  %v2036_v1 = vpop.f32.mrf.mxu1 }
 0x107   : > { %v1973_v2 = vpop.f32.mrf.mxu0 }
 0x108   : > { %v2798_v3 = vadd.f32 %v2035_v62, %v1263_v0  ;;  %v1974_v4 = vadd.f32 %v1973_v2, %v1972_v63  ;;  %v2037_v5 = vpop.f32.mrf.mxu1 }
 0x109   : > { %v2038_v6 = vadd.f32 %v2037_v5, %v2036_v1  ;;  %v1975_v7 = vpop.f32.mrf.mxu0 }
 0x10a   : > { %v1268_v8 = vadd.f32 %v1974_v4, %v2780_v18  ;;  %v2039_v9 = vpop.f32.mrf.mxu1 }
 0x10b   : > { %v1976_v10 = vpop.f32.mrf.mxu0 }
 0x10c   : > { %v2801_v11 = vadd.f32 %v2038_v6, %v1268_v8  ;;  %v1977_v12 = vadd.f32 %v1976_v10, %v1975_v7  ;;  %v2040_v13 = vpop.f32.mrf.mxu1 }
 0x10d   : > { %v2041_v14 = vadd.f32 %v2040_v13, %v2039_v9  ;;  %v1978_v15 = vpop.f32.mrf.mxu0 }
 0x10e   : > { %v1271_v16 = vadd.f32 %v1977_v12, %v2780_v18  ;;  %v2042_v17 = vpop.f32.mrf.mxu1 }
 0x10f   : > { %v1979_v19 = vpop.f32.mrf.mxu0 }
 0x110   : > { %v2804_v20 = vadd.f32 %v2041_v14, %v1271_v16  ;;  %v1980_v21 = vadd.f32 %v1979_v19, %v1978_v15  ;;  %v2043_v22 = vpop.f32.mrf.mxu1 }
 0x111   : > { %v2044_v23 = vadd.f32 %v2043_v22, %v2042_v17  ;;  %v1981_v24 = vpop.f32.mrf.mxu0 }
 0x112   : > { %2962 = vst [vmem:[#allocation2_spill] sm:$0xff] %v2804_v20  ;;  %v1276_v25 = vadd.f32 %v1980_v21, %v2780_v18  ;;  %v2045_v26 = vpop.f32.mrf.mxu1 }
 0x113   : > { %v1982_v28 = vpop.f32.mrf.mxu0 }
 0x114   : > { %v2807_v29 = vadd.f32 %v2044_v23, %v1276_v25  ;;  %v1983_v30 = vadd.f32 %v1982_v28, %v1981_v24  ;;  %v2046_v31 = vpop.f32.mrf.mxu1 }
 0x115   : > { %v2047_v32 = vadd.f32 %v2046_v31, %v2045_v26  ;;  %v1984_v33 = vpop.f32.mrf.mxu0 }
 0x116   : > { %v1279_v34 = vadd.f32 %v1983_v30, %v2780_v18  ;;  %v2048_v36 = vpop.f32.mrf.mxu1 }
 0x117   : > { %v1985_v37 = vpop.f32.mrf.mxu0 }
 0x118   : > { %v2810_v38 = vadd.f32 %v2047_v32, %v1279_v34  ;;  %v1986_v39 = vadd.f32 %v1985_v37, %v1984_v33  ;;  %v2049_v40 = vpop.f32.mrf.mxu1 }
 0x119   : > { %v2050_v41 = vadd.f32 %v2049_v40, %v2048_v36  ;;  %v1987_v42 = vpop.f32.mrf.mxu0 }
 0x11a   : > { %2963 = vst [vmem:[#allocation3_spill] sm:$0xff] %v2810_v38  ;;  %v1284_v44 = vadd.f32 %v1986_v39, %v2780_v18  ;;  %v2051_v45 = vpop.f32.mrf.mxu1 }
 0x11b   : > { %v1988_v46 = vpop.f32.mrf.mxu0 }
 0x11c   : > { %v2813_v47 = vadd.f32 %v2050_v41, %v1284_v44  ;;  %v1989_v48 = vadd.f32 %v1988_v46, %v1987_v42  ;;  %v2052_v49 = vpop.f32.mrf.mxu1 }
 0x11d   : > { %v2053_v50 = vadd.f32 %v2052_v49, %v2051_v45  ;;  %v1990_v52 = vpop.f32.mrf.mxu0 }
 0x11e   : > { %v1287_v53 = vadd.f32 %v1989_v48, %v2780_v18  ;;  %v2054_v54 = vpop.f32.mrf.mxu1 }
 0x11f   : > { %v1991_v55 = vpop.f32.mrf.mxu0 }
 0x120   : > { %v2816_v56 = vadd.f32 %v2053_v50, %v1287_v53  ;;  %v1992_v57 = vadd.f32 %v1991_v55, %v1990_v52  ;;  %v2055_v58 = vpop.f32.mrf.mxu1 }
 0x121   : > { %v2056_v60 = vadd.f32 %v2055_v58, %v2054_v54  ;;  %v1993_v61 = vpop.f32.mrf.mxu0 }
 0x122   : > { %v1292_v62 = vadd.f32 %v1992_v57, %v2780_v18  ;;  %v2057_v63 = vpop.f32.mrf.mxu1 }
 0x123   : > { %v1994_v0 = vpop.f32.mrf.mxu0 }
 0x124   : > { %v2819_v1 = vadd.f32 %v2056_v60, %v1292_v62  ;;  %v1995_v2 = vadd.f32 %v1994_v0, %v1993_v61  ;;  %v2058_v4 = vpop.f32.mrf.mxu1 }
 0x125   : > { %v2059_v5 = vadd.f32 %v2058_v4, %v2057_v63  ;;  %v1996_v6 = vpop.f32.mrf.mxu0 }
 0x126   : > { %2964 = vst [vmem:[#allocation4_spill] sm:$0xff] %v2819_v1  ;;  %v1295_v7 = vadd.f32 %v1995_v2, %v2780_v18  ;;  %v2060_v8 = vpop.f32.mrf.mxu1 }
 0x127   : > { %v1997_v9 = vpop.f32.mrf.mxu0 }
 0x128   : > { %v2822_v10 = vadd.f32 %v2059_v5, %v1295_v7  ;;  %v1998_v12 = vadd.f32 %v1997_v9, %v1996_v6  ;;  %v2061_v13 = vpop.f32.mrf.mxu1 }
 0x129   : > { %v2062_v14 = vadd.f32 %v2061_v13, %v2060_v8  ;;  %v1999_v15 = vpop.f32.mrf.mxu0 }
 0x12a   : > { %2965 = vst [vmem:[#allocation5_spill] sm:$0xff] %v2822_v10  ;;  %v1300_v16 = vadd.f32 %v1998_v12, %v2780_v18  ;;  %v2063_v17 = vpop.f32.mrf.mxu1 }
 0x12b   : > { %v2000_v19 = vpop.f32.mrf.mxu0 }
 0x12c   : > { %v2825_v21 = vadd.f32 %v2062_v14, %v1300_v16  ;;  %v2001_v22 = vadd.f32 %v2000_v19, %v1999_v15  ;;  %v2064_v23 = vpop.f32.mrf.mxu1 }
 0x12d   : > { %v2065_v24 = vadd.f32 %v2064_v23, %v2063_v17  ;;  %v2082_v25 = vpop.f32.mrf.mxu0 }
 0x12e   : > { %2966 = vst [vmem:[#allocation6_spill] sm:$0xff] %v2825_v21  ;;  %v1303_v26 = vadd.f32 %v2001_v22, %v2780_v18  ;;  %v2828_v28 = vpop.f32.mrf.mxu1 }
 0x12f   : > { %v2083_v30 = vpop.f32.mrf.mxu0 }
 0x130   : > { %v2830_v31 = vadd.f32 %v2065_v24, %v1303_v26  ;;  %v2147_v32 = vpop.f32.mrf.mxu1 }
 0x131   : > { %v2085_v33 = vpop.f32.mrf.mxu0 }
 0x132   : > { %2967 = vst [vmem:[#allocation7_spill] sm:$0xff] %v2830_v31  ;;  %v2149_v34 = vpop.f32.mrf.mxu1 }
 0x133   : > { %v2086_v36 = vpop.f32.mrf.mxu0 }
 0x134   : > { %v2150_v37 = vpop.f32.mrf.mxu1  ;;  %v2087_v20 = vadd.f32 %v2086_v36, %v2085_v33 }
 0x135   : > { %v2088_v39 = vpop.f32.mrf.mxu0  ;;  %v2151_v33 = vadd.f32 %v2150_v37, %v2149_v34 }
 0x136   : > { %v2832_v40 = vpop.f32.mrf.mxu1 }
 0x137   : > { %v2089_v41 = vpop.f32.mrf.mxu0 }
 0x138   : > { %v2834_v42 = vpop.f32.mrf.mxu1  ;;  %v2090_v21 = vadd.f32 %v2089_v41, %v2088_v39 }
 0x139   : > { %v2091_v44 = vpop.f32.mrf.mxu0 }
 0x13a   : > { %v2836_v45 = vpop.f32.mrf.mxu1  ;;  %v1446_v36 = vadd.f32 %v2090_v21, %v2789_v43 }
 0x13b   : > { %v2092_v18 = vpop.f32.mrf.mxu0 }
 0x13c   : > { %v2838_v46 = vpop.f32.mrf.mxu1 }
 0x13d   : > { %v2094_v48 = vpop.f32.mrf.mxu0  ;;  %v2157_v43 = vadd.f32 %v2838_v46, %v2836_v45 }
 0x13e   : > { %v2840_v49 = vpop.f32.mrf.mxu1 }
 0x13f   : > { %v2095_v50 = vpop.f32.mrf.mxu0 }
 0x140   : > { %v2842_v52 = vpop.f32.mrf.mxu1 }
 0x141   : > { %v2097_v53 = vpop.f32.mrf.mxu0  ;;  %v2160_v21 = vadd.f32 %v2842_v52, %v2840_v49 }
 0x142   : > { %v2844_v54 = vpop.f32.mrf.mxu1 }
 0x143   : > { %2968 = vst [vmem:[#allocation8_spill] sm:$0xff] %v2844_v54  ;;  %v2098_v55 = vpop.f32.mrf.mxu0 }
 0x144   : > { %v2846_v57 = vpop.f32.mrf.mxu1 }
 0x145   : > { %2969 = vst [vmem:[#allocation9_spill] sm:$0xff] %v2846_v57  ;;  %v2100_v58 = vpop.f32.mrf.mxu0 }
 0x146   : > { %v2848_v60 = vpop.f32.mrf.mxu1 }
 0x147   : > { %v2101_v61 = vpop.f32.mrf.mxu0 }
 0x148   : > { %v2850_v62 = vpop.f32.mrf.mxu1  ;;  %v2102_v39 = vadd.f32 %v2101_v61, %v2100_v58 }
 0x149   : > { %v2852_v63 = vpop.f32.mrf.mxu0  ;;  %v2166_v52 = vadd.f32 %v2850_v62, %v2848_v60 }
 0x14a   : > { %2970 = vst [vmem:[#allocation10_spill] sm:$0xff] %v2852_v63  ;;  %v2854_v0 = vpop.f32.mrf.mxu1  ;;  %v1462_v37 = vadd.f32 %v2102_v39, %v2801_v11  ;;  %v2988_v39 = vld [vmem:[#allocation4_spill] sm:$0xff] }
 0x14b   : > { %2971 = vst [vmem:[#allocation11_spill] sm:$0xff] %v2854_v0  ;;  %v2856_v2 = vpop.f32.mrf.mxu0  ;;  %v2084_v0 = vadd.f32 %v2083_v30, %v2082_v25  ;;  %v1441_v25 = vadd.f32 %v2087_v20, %v2786_v35 }
 0x14c   : > { %2972 = vst [vmem:[#allocation12_spill] sm:$0xff] %v2856_v2  ;;  %v2858_v4 = vpop.f32.mrf.mxu1  ;;  %v2096_v2 = vadd.f32 %v2095_v50, %v2094_v48  ;;  %v2099_v48 = vadd.f32 %v2098_v55, %v2097_v53 }
 0x14d   : > { %2973 = vst [vmem:[#allocation13_spill] sm:$0xff] %v2858_v4  ;;  %v2106_v5 = vpop.f32.mrf.mxu0  ;;  %v1438_v38 = vadd.f32 %v2084_v0, %v2783_v27 }
 0x14e   : > { %v2860_v6 = vpop.f32.mrf.mxu1  ;;  %v2900_v55 = vadd.f32 %v2099_v48, %v2798_v3 }
 0x14f   : > { %2974 = vst [vmem:[#allocation14_spill] sm:$0xff] %v2860_v6  ;;  %v2107_v7 = vpop.f32.mrf.mxu0  ;;  %v2148_v6 = vadd.f32 %v2147_v32, %v2828_v28  ;;  %v2154_v28 = vadd.f32 %v2834_v42, %v2832_v40 }
 0x150   : > { %v2862_v8 = vpop.f32.mrf.mxu1  ;;  %v2108_v41 = vadd.f32 %v2107_v7, %v2106_v5  ;;  %v2982_v5 = vld [vmem:[#allocation3_spill] sm:$0xff] }
 0x151   : > { %2975 = vst [vmem:[#allocation15_spill] sm:$0xff] %v2862_v8  ;;  %v2109_v9 = vpop.f32.mrf.mxu0  ;;  %v1535_v32 = vadd.f32 %v2148_v6, %v1438_v38 }
 0x152   : > { %v2864_v12 = vpop.f32.mrf.mxu1  ;;  %v1470_v53 = vadd.f32 %v2108_v41, %v2807_v29 }
 0x153   : > { %2976 = vst [vmem:[#allocation16_spill] sm:$0xff] %v2864_v12  ;;  %v2110_v13 = vpop.f32.mrf.mxu0  ;;  %v2093_v12 = vadd.f32 %v2092_v18, %v2091_v44  ;;  %v1454_v18 = vadd.f32 %v2096_v2, %v2795_v59  ;;  %v1538_v59 = vadd.f32 %v2151_v33, %v1441_v25 }
 0x154   : > { %v2866_v14 = vpop.f32.mrf.mxu1 }
 0x155   : > { %2977 = vst [vmem:[#allocation17_spill] sm:$0xff] %v2866_v14  ;;  %v2112_v15 = vpop.f32.mrf.mxu0  ;;  %v1449_v44 = vadd.f32 %v2093_v12, %v2792_v51  ;;  %v2111_v51 = vadd.f32 %v2110_v13, %v2109_v9  ;;  %v2904_v49 = vadd.f32 %v2160_v21, %v1454_v18  ;;  %v2983_v9 = vld [vmem:[#allocation10_spill] sm:$0xff]  ;;  %v2984_v12 = vld [vmem:[#allocation12_spill] sm:$0xff] }
 0x156   : > { %v2176_v16 = vpop.f32.mrf.mxu1  ;;  %v2980_v58 = vld [vmem:[#allocation14_spill] sm:$0xff]  ;;  %v2105_v13 = vadd.f32 %v2984_v12, %v2983_v9 }
 0x157   : > { %v2113_v17 = vpop.f32.mrf.mxu0  ;;  %v1546_v46 = vadd.f32 %v2157_v43, %v1449_v44  ;;  %v1473_v6 = vadd.f32 %v2111_v51, %v2982_v5  ;;  %v2989_v21 = vld [vmem:[#allocation2_spill] sm:$0xff] }
 0x158   : > { %v2177_v19 = vpop.f32.mrf.mxu1  ;;  %v2114_v8 = vadd.f32 %v2113_v17, %v2112_v15  ;;  %v2981_v11 = vld [vmem:[#allocation15_spill] sm:$0xff]  ;;  %v1465_v51 = vadd.f32 %v2105_v13, %v2989_v21 }
 0x159   : > { %v2115_v22 = vpop.f32.mrf.mxu0  ;;  %v2178_v40 = vadd.f32 %v2177_v19, %v2176_v16  ;;  %v2172_v61 = vadd.f32 %v2981_v11, %v2980_v58  ;;  %v2993_v58 = vld [vmem:[#allocation13_spill] sm:$0xff] }
 0x15a   : > { %v2179_v23 = vpop.f32.mrf.mxu1  ;;  %v1478_v35 = vadd.f32 %v2114_v8, %v2813_v47  ;;  %v1543_v47 = vadd.f32 %v2154_v28, %v1446_v36  ;;  %v2985_v15 = vld [vmem:[#allocation16_spill] sm:$0xff] }
 0x15b   : > { %v2116_v24 = vpop.f32.mrf.mxu0 }
 0x15c   : > { %v2180_v26 = vpop.f32.mrf.mxu1  ;;  %v2117_v27 = vadd.f32 %v2116_v24, %v2115_v22  ;;  %v1575_v2 = vadd.f32 %v2178_v40, %v1478_v35  ;;  %v2986_v16 = vld [vmem:[#allocation17_spill] sm:$0xff] }
 0x15d   : > { %v2118_v57 = vpop.f32.mrf.mxu0  ;;  %v2181_v3 = vadd.f32 %v2180_v26, %v2179_v23  ;;  %v2175_v17 = vadd.f32 %v2986_v16, %v2985_v15  ;;  %v2987_v23 = vld [vmem:[#allocation6_spill] sm:$0xff] }
 0x15e   : > { %v2868_v54 = vpop.f32.mrf.mxu1  ;;  %v1481_v38 = vadd.f32 %v2117_v27, %v2816_v56 }
 0x15f   : > { %2978 = vst [vmem:[#allocation18_spill] sm:$0xff] %v2868_v54  ;;  %v2119_v10 = vpop.f32.mrf.mxu0  ;;  %v1570_v27 = vadd.f32 %v2175_v17, %v1473_v6 }
 0x160   : > { %v2870_v4 = vpop.f32.mrf.mxu1  ;;  %v2120_v7 = vadd.f32 %v2119_v10, %v2118_v57  ;;  %v1578_v22 = vadd.f32 %v2181_v3, %v1481_v38  ;;  %v2991_v38 = vld [vmem:[#allocation7_spill] sm:$0xff] }
 0x161   : > { %v2872_v31 = vpop.f32.mrf.mxu0 }
 0x162   : > { %v2874_v1 = vpop.f32.mrf.mxu1  ;;  %v1486_v41 = vadd.f32 %v2120_v7, %v2988_v39 }
 0x163   : > { %2979 = vst [vmem:[#allocation19_spill] sm:$0xff] %v2874_v1  ;;  %v2876_v14 = vpop.f32.mrf.mxu0 }
 0x164   : > { %v2878_v63 = vpop.f32.mrf.mxu1  ;;  %v2123_v28 = vadd.f32 %v2876_v14, %v2872_v31 }
 0x165   : > { %v2124_v54 = vpop.f32.mrf.mxu0 }
 0x166   : > { %v2883_v30 = vpop.f32.mrf.mxu1 }
 0x167   : > { %v2125_v1 = vpop.f32.mrf.mxu0 }
 0x168   : > { %v2189_v50 = vpop.f32.mrf.mxu1  ;;  %v2126_v29 = vadd.f32 %v2125_v1, %v2124_v54  ;;  %v1567_v1 = vadd.f32 %v2172_v61, %v1470_v53  ;;  %v1559_v54 = vadd.f32 %v2166_v52, %v1462_v37  ;;  %v2990_v37 = vld [vmem:[#allocation18_spill] sm:$0xff]  ;;  %v2992_v52 = vld [vmem:[#allocation11_spill] sm:$0xff] }
 0x169   : > { %v2127_v20 = vpop.f32.mrf.mxu0  ;;  %v2190_v35 = vadd.f32 %v2189_v50, %v2883_v30  ;;  %v2184_v53 = vadd.f32 %v2870_v4, %v2990_v37  ;;  %v2169_v11 = vadd.f32 %v2993_v58, %v2992_v52 }
 0x16a   : > { %v2895_v34 = vpop.f32.mrf.mxu1  ;;  %v1494_v24 = vadd.f32 %v2126_v29, %v2987_v23 }
 0x16b   : > { %v2128_v42 = vpop.f32.mrf.mxu0 }
 0x16c   : > { %v2192_v45 = vpop.f32.mrf.mxu1  ;;  %v2129_v26 = vadd.f32 %v2128_v42, %v2127_v20  ;;  %v1591_v50 = vadd.f32 %v2190_v35, %v1494_v24 }
 0x16d   : > { %v2228_v0 = vpop.f32.mrf.mxu0  ;;  %v2193_v5 = vadd.f32 %v2192_v45, %v2895_v34 }
 0x16e   : > { %v1640_v8 = vadd.f32 %v2228_v0, %v1543_v47  ;;  %v2236_v56 = vpop.f32.mrf.mxu1  ;;  %v1583_v0 = vadd.f32 %v2184_v53, %v1486_v41 }
 0x16f   : > { %v1672_v60 = vadd.f32 %v2236_v56, %v1575_v2  ;;  %v1631_v62 = vpop.f32.mrf.mxu0  ;;  %v2996_v56 = vld [vmem:[#allocation9_spill] sm:$0xff] }
 0x170   : > { %v1696_v19 = vmax.f32 %v1640_v8, 0.0  ;;  %v1632_v10 = vadd.f32 %v1631_v62, %v1535_v32  ;;  %v1663_v57 = vpop.f32.mrf.mxu1  ;;  %v2995_v8 = vld [vmem:[#allocation8_spill] sm:$0xff]  ;;  %v1562_v62 = vadd.f32 %v2169_v11, %v1465_v51 }
 0x171   : > { %v1704_v25 = vmax.f32 %v1672_v60, 0.0  ;;  %v1664_v33 = vadd.f32 %v1663_v57, %v1567_v1  ;;  %v2229_v36 = vpop.f32.mrf.mxu0  ;;  %v2163_v9 = vadd.f32 %v2996_v56, %v2995_v8  ;;  %v2997_v1 = vld [vmem:[#allocation19_spill] sm:$0xff] }
 0x172   : > { %1712 = vst [vmem:[%s2916_s18 + $0x10] sm:$0xff] %v1696_v19  ;;  %v1694_v44 = vmax.f32 %v1632_v10, 0.0  ;;  %v1643_v18 = vadd.f32 %v2229_v36, %v1546_v46  ;;  %v2237_v48 = vpop.f32.mrf.mxu1  ;;  %v1497_v46 = vadd.f32 %v2129_v26, %v2991_v38 }
 0x173   : > { %1720 = vst [vmem:[%s2916_s18 + $0x50] sm:$0xff] %v1704_v25  ;;  %v1702_v32 = vmax.f32 %v1664_v33, 0.0  ;;  %v1675_v20 = vadd.f32 %v2237_v48, %v1578_v22  ;;  %v1634_v43 = vpop.f32.mrf.mxu0 }
 0x174   : > { %1710 = vst [vmem:[%s2916_s18] sm:$0xff] %v1694_v44  ;;  %v1697_v40 = vmax.f32 %v1643_v18, 0.0  ;;  %v1635_v42 = vadd.f32 %v1634_v43, %v1538_v59  ;;  %v1666_v47 = vpop.f32.mrf.mxu1  ;;  %v2994_v59 = vld [vmem:[#allocation5_spill] sm:$0xff]  ;;  %v1594_v16 = vadd.f32 %v2193_v5, %v1497_v46 }
 0x175   : > { %1718 = vst [vmem:[%s2916_s18 + $0x40] sm:$0xff] %v1702_v32  ;;  %v1705_v31 = vmax.f32 %v1675_v20, 0.0  ;;  %v1667_v14 = vadd.f32 %v1666_v47, %v1570_v27  ;;  %v2232_v30 = vpop.f32.mrf.mxu0  ;;  %v1489_v2 = vadd.f32 %v2123_v28, %v2994_v59 }
 0x176   : > { %1713 = vst [vmem:[%s2916_s18 + $0x18] sm:$0xff] %v1697_v40  ;;  %v1695_v61 = vmax.f32 %v1635_v42, 0.0  ;;  %v1656_v29 = vadd.f32 %v2232_v30, %v1559_v54  ;;  %v2240_v4 = vpop.f32.mrf.mxu1  ;;  %v2187_v54 = vadd.f32 %v2878_v63, %v2997_v1 }
 0x177   : > { %1721 = vst [vmem:[%s2916_s18 + $0x58] sm:$0xff] %v1705_v31  ;;  %v1703_v6 = vmax.f32 %v1667_v14, 0.0  ;;  %v1688_v3 = vadd.f32 %v2240_v4, %v1591_v50  ;;  %v1647_v7 = vpop.f32.mrf.mxu0 }
 0x178   : > { %1711 = vst [vmem:[%s2916_s18 + $0x8] sm:$0xff] %v1695_v61  ;;  %v1700_v12 = vmax.f32 %v1656_v29, 0.0  ;;  %v1648_v13 = vadd.f32 %v1647_v7, %v2904_v49  ;;  %v1679_v60 = vpop.f32.mrf.mxu1  ;;  %v1554_v49 = vadd.f32 %v2163_v9, %v2900_v55  ;;  %v1586_v23 = vadd.f32 %v2187_v54, %v1489_v2 }
 0x179   : > { %1719 = vst [vmem:[%s2916_s18 + $0x48] sm:$0xff] %v1703_v6  ;;  %v1708_v34 = vmax.f32 %v1688_v3, 0.0  ;;  %v1680_v45 = vadd.f32 %v1679_v60, %v1583_v0  ;;  %v2233_v15 = vpop.f32.mrf.mxu0 }
 0x17a   : > { %1716 = vst [vmem:[%s2916_s18 + $0x30] sm:$0xff] %v1700_v12  ;;  %v1698_v17 = vmax.f32 %v1648_v13, 0.0  ;;  %v1659_v19 = vadd.f32 %v2233_v15, %v1562_v62  ;;  %v2241_v10 = vpop.f32.mrf.mxu1 }
 0x17b   : > { %1724 = vst [vmem:[%s2916_s18 + $0x70] sm:$0xff] %v1708_v34  ;;  %v1706_v57 = vmax.f32 %v1680_v45, 0.0  ;;  %v1691_v63 = vadd.f32 %v2241_v10, %v1594_v16  ;;  %v1650_v22 = vpop.f32.mrf.mxu0 }
 0x17c   : > { %1714 = vst [vmem:[%s2916_s18 + $0x20] sm:$0xff] %v1698_v17  ;;  %v1701_v24 = vmax.f32 %v1659_v19, 0.0  ;;  %v1651_v26 = vadd.f32 %v1650_v22, %v1554_v49  ;;  %v1682_v25 = vpop.f32.mrf.mxu1 }
 0x17d   : > { %1722 = vst [vmem:[%s2916_s18 + $0x60] sm:$0xff] %v1706_v57  ;;  %v1709_v33 = vmax.f32 %v1691_v63, 0.0  ;;  %v1683_v36 = vadd.f32 %v1682_v25, %v1586_v23 }
 0x17e   : > { %1717 = vst [vmem:[%s2916_s18 + $0x38] sm:$0xff] %v1701_v24  ;;  %v1699_v39 = vmax.f32 %v1651_v26, 0.0 }
 0x17f   : > { %1725 = vst [vmem:[%s2916_s18 + $0x78] sm:$0xff] %v1709_v33  ;;  %v1707_v41 = vmax.f32 %v1683_v36, 0.0 }
 0x180   : > { %1715 = vst [vmem:[%s2916_s18 + $0x28] sm:$0xff] %v1699_v39 }
 0x181   : > { %1723 = vst [vmem:[%s2916_s18 + $0x68] sm:$0xff] %v1707_v41 }
 0x182 PF: > { %s13_s12 = sadd.s32 1, %s2449_s12  }
 0x183   : > { %p10_p4 = scmp.ge.s32.totalorder %s13_s12, 4  }
 0x185   :  { %12 = sbr.rel (!%p10_p4) target bundleno = 1 (0x1), region = 62 }

// kernel: mul.76
= control target key start
LH: loop header
LB: loop body
LE: loop exit
PB: predicated region body
PF: predicated region fallthrough
CT: control target
= control target key end

     0   :  { %s716_s0 = inlined_call_operand.vmem [shape: f32[256,128], index: 0, kind: input, shape index: {}]   ;;  %s717_s1 = inlined_call_operand.vmem [shape: f32[256,128], index: 1, kind: input, shape index: {}]   ;;  %s718_s2 = inlined_call_operand.vmem [shape: f32[256,128], index: 2, kind: output, shape index: {}]  }
   0x1   :  { %v3_v0 = vld [vmem:[%s716_s0] sm:$0xff]  ;;  %v320_v2 = vld [vmem:[%s716_s0 + $0x8] sm:$0xff]  ;;  %v323_v5 = vld [vmem:[%s716_s0 + $0x10] sm:$0xff] }
   0x2   :  { %v4_v1 = vld [vmem:[%s717_s1] sm:$0xff]  ;;  %v321_v4 = vld [vmem:[%s717_s1 + $0x8] sm:$0xff]  ;;  %v324_v6 = vld [vmem:[%s717_s1 + $0x10] sm:$0xff] }
   0x3   :  { %v7_v3 = vmul.f32 %v4_v1, %v3_v0  ;;  %v16_v7 = vmul.f32 %v321_v4, %v320_v2  ;;  %v26_v8 = vmul.f32 %v324_v6, %v323_v5  ;;  %v326_v9 = vld [vmem:[%s716_s0 + $0x18] sm:$0xff]  ;;  %v329_v11 = vld [vmem:[%s716_s0 + $0x20] sm:$0xff]  ;;  %v332_v14 = vld [vmem:[%s716_s0 + $0x28] sm:$0xff] }
   0x4   :  { %v327_v10 = vld [vmem:[%s717_s1 + $0x18] sm:$0xff]  ;;  %v330_v13 = vld [vmem:[%s717_s1 + $0x20] sm:$0xff]  ;;  %v333_v15 = vld [vmem:[%s717_s1 + $0x28] sm:$0xff] }
   0x5   :  { %9 = vst [vmem:[%s718_s2] sm:$0xff] %v7_v3  ;;  %v36_v12 = vmul.f32 %v327_v10, %v326_v9  ;;  %322 = vst [vmem:[%s718_s2 + $0x8] sm:$0xff] %v16_v7  ;;  %v46_v16 = vmul.f32 %v330_v13, %v329_v11  ;;  %v56_v17 = vmul.f32 %v333_v15, %v332_v14  ;;  %v335_v18 = vld [vmem:[%s716_s0 + $0x30] sm:$0xff]  ;;  %v338_v20 = vld [vmem:[%s716_s0 + $0x38] sm:$0xff] }
   0x6   :  { %325 = vst [vmem:[%s718_s2 + $0x10] sm:$0xff] %v26_v8  ;;  %v336_v19 = vld [vmem:[%s717_s1 + $0x30] sm:$0xff]  ;;  %v339_v22 = vld [vmem:[%s717_s1 + $0x38] sm:$0xff]  ;;  %v341_v23 = vld [vmem:[%s716_s0 + $0x40] sm:$0xff] }
   0x7   :  { %328 = vst [vmem:[%s718_s2 + $0x18] sm:$0xff] %v36_v12  ;;  %v66_v21 = vmul.f32 %v336_v19, %v335_v18  ;;  %v342_v24 = vld [vmem:[%s717_s1 + $0x40] sm:$0xff]  ;;  %331 = vst [vmem:[%s718_s2 + $0x20] sm:$0xff] %v46_v16  ;;  %v76_v25 = vmul.f32 %v339_v22, %v338_v20  ;;  %v344_v27 = vld [vmem:[%s716_s0 + $0x48] sm:$0xff] }
   0x8   :  { %334 = vst [vmem:[%s718_s2 + $0x28] sm:$0xff] %v56_v17  ;;  %v86_v26 = vmul.f32 %v342_v24, %v341_v23  ;;  %v345_v28 = vld [vmem:[%s717_s1 + $0x48] sm:$0xff]  ;;  %v347_v29 = vld [vmem:[%s716_s0 + $0x50] sm:$0xff]  ;;  %v350_v32 = vld [vmem:[%s716_s0 + $0x58] sm:$0xff] }
   0x9   :  { %337 = vst [vmem:[%s718_s2 + $0x30] sm:$0xff] %v66_v21  ;;  %v96_v30 = vmul.f32 %v345_v28, %v344_v27  ;;  %v348_v31 = vld [vmem:[%s717_s1 + $0x50] sm:$0xff]  ;;  %v351_v33 = vld [vmem:[%s717_s1 + $0x58] sm:$0xff]  ;;  %340 = vst [vmem:[%s718_s2 + $0x38] sm:$0xff] %v76_v25 }
   0xa   :  { %343 = vst [vmem:[%s718_s2 + $0x40] sm:$0xff] %v86_v26  ;;  %v106_v34 = vmul.f32 %v348_v31, %v347_v29  ;;  %v116_v35 = vmul.f32 %v351_v33, %v350_v32  ;;  %v353_v36 = vld [vmem:[%s716_s0 + $0x60] sm:$0xff]  ;;  %v356_v38 = vld [vmem:[%s716_s0 + $0x68] sm:$0xff]  ;;  %v359_v41 = vld [vmem:[%s716_s0 + $0x70] sm:$0xff] }
   0xb   :  { %v354_v37 = vld [vmem:[%s717_s1 + $0x60] sm:$0xff]  ;;  %346 = vst [vmem:[%s718_s2 + $0x48] sm:$0xff] %v96_v30  ;;  %v357_v40 = vld [vmem:[%s717_s1 + $0x68] sm:$0xff]  ;;  %v360_v42 = vld [vmem:[%s717_s1 + $0x70] sm:$0xff] }
   0xc   :  { %v126_v39 = vmul.f32 %v354_v37, %v353_v36  ;;  %349 = vst [vmem:[%s718_s2 + $0x50] sm:$0xff] %v106_v34  ;;  %352 = vst [vmem:[%s718_s2 + $0x58] sm:$0xff] %v116_v35  ;;  %v136_v43 = vmul.f32 %v357_v40, %v356_v38  ;;  %v146_v44 = vmul.f32 %v360_v42, %v359_v41  ;;  %v362_v45 = vld [vmem:[%s716_s0 + $0x78] sm:$0xff]  ;;  %v365_v47 = vld [vmem:[%s716_s0 + $0x80] sm:$0xff] }
   0xd   :  { %v363_v46 = vld [vmem:[%s717_s1 + $0x78] sm:$0xff]  ;;  %v366_v49 = vld [vmem:[%s717_s1 + $0x80] sm:$0xff]  ;;  %v368_v50 = vld [vmem:[%s716_s0 + $0x88] sm:$0xff] }
   0xe   :  { %355 = vst [vmem:[%s718_s2 + $0x60] sm:$0xff] %v126_v39  ;;  %v156_v48 = vmul.f32 %v363_v46, %v362_v45  ;;  %v369_v51 = vld [vmem:[%s717_s1 + $0x88] sm:$0xff]  ;;  %358 = vst [vmem:[%s718_s2 + $0x68] sm:$0xff] %v136_v43  ;;  %v166_v52 = vmul.f32 %v366_v49, %v365_v47  ;;  %v371_v54 = vld [vmem:[%s716_s0 + $0x90] sm:$0xff] }
   0xf   :  { %361 = vst [vmem:[%s718_s2 + $0x70] sm:$0xff] %v146_v44  ;;  %v176_v53 = vmul.f32 %v369_v51, %v368_v50  ;;  %v372_v55 = vld [vmem:[%s717_s1 + $0x90] sm:$0xff]  ;;  %v374_v56 = vld [vmem:[%s716_s0 + $0x98] sm:$0xff]  ;;  %v377_v59 = vld [vmem:[%s716_s0 + $0xa0] sm:$0xff] }
  0x10   :  { %364 = vst [vmem:[%s718_s2 + $0x78] sm:$0xff] %v156_v48  ;;  %v186_v57 = vmul.f32 %v372_v55, %v371_v54  ;;  %v375_v58 = vld [vmem:[%s717_s1 + $0x98] sm:$0xff]  ;;  %v378_v60 = vld [vmem:[%s717_s1 + $0xa0] sm:$0xff]  ;;  %367 = vst [vmem:[%s718_s2 + $0x80] sm:$0xff] %v166_v52 }
  0x11   :  { %370 = vst [vmem:[%s718_s2 + $0x88] sm:$0xff] %v176_v53  ;;  %v196_v61 = vmul.f32 %v375_v58, %v374_v56  ;;  %v206_v62 = vmul.f32 %v378_v60, %v377_v59  ;;  %v380_v63 = vld [vmem:[%s716_s0 + $0xa8] sm:$0xff]  ;;  %v383_v1 = vld [vmem:[%s716_s0 + $0xb0] sm:$0xff]  ;;  %v386_v4 = vld [vmem:[%s716_s0 + $0xb8] sm:$0xff] }
  0x12   :  { %v381_v0 = vld [vmem:[%s717_s1 + $0xa8] sm:$0xff]  ;;  %373 = vst [vmem:[%s718_s2 + $0x90] sm:$0xff] %v186_v57  ;;  %v384_v3 = vld [vmem:[%s717_s1 + $0xb0] sm:$0xff]  ;;  %v387_v5 = vld [vmem:[%s717_s1 + $0xb8] sm:$0xff] }
  0x13   :  { %v216_v2 = vmul.f32 %v381_v0, %v380_v63  ;;  %376 = vst [vmem:[%s718_s2 + $0x98] sm:$0xff] %v196_v61  ;;  %379 = vst [vmem:[%s718_s2 + $0xa0] sm:$0xff] %v206_v62  ;;  %v226_v6 = vmul.f32 %v384_v3, %v383_v1  ;;  %v236_v7 = vmul.f32 %v387_v5, %v386_v4  ;;  %v389_v8 = vld [vmem:[%s716_s0 + $0xc0] sm:$0xff]  ;;  %v392_v10 = vld [vmem:[%s716_s0 + $0xc8] sm:$0xff] }
  0x14   :  { %v390_v9 = vld [vmem:[%s717_s1 + $0xc0] sm:$0xff]  ;;  %v393_v12 = vld [vmem:[%s717_s1 + $0xc8] sm:$0xff]  ;;  %v395_v13 = vld [vmem:[%s716_s0 + $0xd0] sm:$0xff] }
  0x15   :  { %382 = vst [vmem:[%s718_s2 + $0xa8] sm:$0xff] %v216_v2  ;;  %v246_v11 = vmul.f32 %v390_v9, %v389_v8  ;;  %v396_v14 = vld [vmem:[%s717_s1 + $0xd0] sm:$0xff]  ;;  %385 = vst [vmem:[%s718_s2 + $0xb0] sm:$0xff] %v226_v6  ;;  %v256_v15 = vmul.f32 %v393_v12, %v392_v10  ;;  %v398_v17 = vld [vmem:[%s716_s0 + $0xd8] sm:$0xff] }
  0x16   :  { %388 = vst [vmem:[%s718_s2 + $0xb8] sm:$0xff] %v236_v7  ;;  %v266_v16 = vmul.f32 %v396_v14, %v395_v13  ;;  %v399_v18 = vld [vmem:[%s717_s1 + $0xd8] sm:$0xff]  ;;  %v401_v19 = vld [vmem:[%s716_s0 + $0xe0] sm:$0xff]  ;;  %v404_v22 = vld [vmem:[%s716_s0 + $0xe8] sm:$0xff] }
  0x17   :  { %391 = vst [vmem:[%s718_s2 + $0xc0] sm:$0xff] %v246_v11  ;;  %v276_v20 = vmul.f32 %v399_v18, %v398_v17  ;;  %v402_v21 = vld [vmem:[%s717_s1 + $0xe0] sm:$0xff]  ;;  %v405_v23 = vld [vmem:[%s717_s1 + $0xe8] sm:$0xff]  ;;  %394 = vst [vmem:[%s718_s2 + $0xc8] sm:$0xff] %v256_v15 }
  0x18   :  { %397 = vst [vmem:[%s718_s2 + $0xd0] sm:$0xff] %v266_v16  ;;  %v286_v24 = vmul.f32 %v402_v21, %v401_v19  ;;  %v296_v25 = vmul.f32 %v405_v23, %v404_v22  ;;  %v407_v26 = vld [vmem:[%s716_s0 + $0xf0] sm:$0xff]  ;;  %v410_v28 = vld [vmem:[%s716_s0 + $0xf8] sm:$0xff] }
  0x19   :  { %v408_v27 = vld [vmem:[%s717_s1 + $0xf0] sm:$0xff]  ;;  %400 = vst [vmem:[%s718_s2 + $0xd8] sm:$0xff] %v276_v20  ;;  %v411_v30 = vld [vmem:[%s717_s1 + $0xf8] sm:$0xff] }
  0x1a   :  { %v306_v29 = vmul.f32 %v408_v27, %v407_v26  ;;  %403 = vst [vmem:[%s718_s2 + $0xe0] sm:$0xff] %v286_v24  ;;  %406 = vst [vmem:[%s718_s2 + $0xe8] sm:$0xff] %v296_v25  ;;  %v316_v31 = vmul.f32 %v411_v30, %v410_v28 }
  0x1c   :  { %409 = vst [vmem:[%s718_s2 + $0xf0] sm:$0xff] %v306_v29  ;;  %412 = vst [vmem:[%s718_s2 + $0xf8] sm:$0xff] %v316_v31 }

// kernel: redcm_d_forward.12
= control target key start
LH: loop header
LB: loop body
LE: loop exit
PB: predicated region body
PF: predicated region fallthrough
CT: control target
= control target key end

     0   :  { %s2571_s15 = smov 0   ;;  %s3071_s0 = inlined_call_operand.vmem [shape: bf16[256,1152], index: 0, kind: input, shape index: {}]   ;;  %s3072_s1 = inlined_call_operand.vmem [shape: bf16[1152,128], index: 1, kind: input, shape index: {}]   ;;  %s3073_s2 = inlined_call_operand.vmem [shape: f32[1,128], index: 2, kind: input, shape index: {}]   ;;  %s3074_s3 = inlined_call_operand.vmem [shape: f32[256,128], index: 3, kind: input, shape index: {}]   ;;  %s3075_s4 = inlined_call_operand.vmem [shape: f32[256,128], index: 4, kind: output, shape index: {}]  }
   0x1 LB: > { %s1875_s16 = sadd.s32 4294967295, %s2544_s15   ;;  %p1879_p0 = scmp.ge.s32.totalorder %s2544_s15, 1  ;;  %s2544_s15 = sphi %s2571_s15, %s14_s15  }
   0x2   : > { %p175_p1 = scmp.lt.s32.totalorder %s2544_s15, 3 }
   0x4   : > { %p176_p2 = pnand %p1879_p0, %p175_p1 }
   0x6   : > { %179 = sbr.rel (%p176_p2) target bundleno = 388 (0x184), region = 36 }
   0xb   : > { %v2362_v0 = vld [vmem:[%s3072_s1 + $0x78] sm:$0xff]   ;;  %v2366_v4 = vld [vmem:[%s3072_s1 + $0x70] sm:$0xff]   ;;  %v2370_v8 = vld [vmem:[%s3072_s1 + $0x68] sm:$0xff]   ;;  %s1880_s23 = sshll.u32 %s1875_s16, 4 }
   0xc   : > { %v2363_v1 = vld [vmem:[%s3072_s1 + $0xf8] sm:$0xff]   ;;  %2033 = vmatprep.subr.bf16.mxu0 %v2362_v0  ;;  %v2367_v5 = vld [vmem:[%s3072_s1 + $0xf0] sm:$0xff]   ;;  %v2371_v9 = vld [vmem:[%s3072_s1 + $0xe8] sm:$0xff]   ;;  %p208_p3 = scmp.lt.s32.totalorder %s1880_s23, 31 }
   0xd   : > { %v2364_v2 = vld [vmem:[%s3072_s1 + $0x38] sm:$0xff]   ;;  %2097 = vmatprep.subr.bf16.mxu1 %v2363_v1  ;;  %v2368_v6 = vld [vmem:[%s3072_s1 + $0x30] sm:$0xff]   ;;  %v2372_v10 = vld [vmem:[%s3072_s1 + $0x28] sm:$0xff]  }
   0xe   : > { %v2365_v3 = vld [vmem:[%s3072_s1 + $0xb8] sm:$0xff]   ;;  %2034 = vmatpush3.bf16.msra.mxu0 %v2364_v2  ;;  %v2369_v7 = vld [vmem:[%s3072_s1 + $0xb0] sm:$0xff]   ;;  %v2373_v11 = vld [vmem:[%s3072_s1 + $0xa8] sm:$0xff]   ;;  %s3109_s23 = smov (!%p208_p3, %s1880_s23), 31 }
   0xf   : > { %2098 = vmatpush3.bf16.msra.mxu1 %v2365_v3  ;;  %2035 = vmatprep.subr.bf16.mxu0 %v2366_v4  ;;  %v2374_v12 = vld [vmem:[%s3072_s1 + $0x60] sm:$0xff]   ;;  %v2378_v16 = vld [vmem:[%s3072_s1 + $0x58] sm:$0xff]   ;;  %v2382_v20 = vld [vmem:[%s3072_s1 + $0x50] sm:$0xff]   ;;  %s2353_s21 = smul.u32 36, %s3109_s23 }
  0x10   : > { %2099 = vmatprep.subr.bf16.mxu1 %v2367_v5  ;;  %v2375_v13 = vld [vmem:[%s3072_s1 + $0xe0] sm:$0xff]   ;;  %v2379_v17 = vld [vmem:[%s3072_s1 + $0xd8] sm:$0xff]   ;;  %v2383_v21 = vld [vmem:[%s3072_s1 + $0xd0] sm:$0xff]  }
  0x11   : > { %v2376_v14 = vld [vmem:[%s3072_s1 + $0x20] sm:$0xff]   ;;  %v2380_v18 = vld [vmem:[%s3072_s1 + $0x18] sm:$0xff]   ;;  %v2384_v22 = vld [vmem:[%s3072_s1 + $0x10] sm:$0xff]   ;;  %s2677_s6 = scalar_lea.vmem %s3071_s0, %s2353_s21 }
  0x12   : > { %2036 = vmatpush3.bf16.msra.mxu0 %v2368_v6  ;;  %v2377_v15 = vld [vmem:[%s3072_s1 + $0xa0] sm:$0xff]   ;;  %v2381_v19 = vld [vmem:[%s3072_s1 + $0x98] sm:$0xff]   ;;  %v2385_v23 = vld [vmem:[%s3072_s1 + $0x90] sm:$0xff]  }
  0x13   : > { %2100 = vmatpush3.bf16.msra.mxu1 %v2369_v7  ;;  %2037 = vmatprep.subr.bf16.mxu0 %v2370_v8  ;;  %v2386_v24 = vld [vmem:[%s3072_s1 + $0x48] sm:$0xff]   ;;  %v2390_v28 = vld [vmem:[%s3072_s1 + $0x40] sm:$0xff]   ;;  %v2400_v36 = vld [vmem:[%s3072_s1 + $0x178] sm:$0xff]  }
  0x14   : > { %2101 = vmatprep.subr.bf16.mxu1 %v2371_v9  ;;  %v2387_v25 = vld [vmem:[%s3072_s1 + $0xc8] sm:$0xff]   ;;  %v2391_v29 = vld [vmem:[%s3072_s1 + $0xc0] sm:$0xff]   ;;  %v2401_v37 = vld [vmem:[%s3072_s1 + $0x1f8] sm:$0xff]  }
  0x15   : > { %v2388_v26 = vld [vmem:[%s3072_s1 + $0x8] sm:$0xff]   ;;  %v2392_v30 = vld [vmem:[%s3072_s1] sm:$0xff]   ;;  %v2402_v38 = vld [vmem:[%s3072_s1 + $0x138] sm:$0xff]  }
  0x16   : > { %2038 = vmatpush3.bf16.msra.mxu0 %v2372_v10  ;;  %v2389_v27 = vld [vmem:[%s3072_s1 + $0x88] sm:$0xff]   ;;  %v2393_v31 = vld [vmem:[%s3072_s1 + $0x80] sm:$0xff]   ;;  %v2403_v39 = vld [vmem:[%s3072_s1 + $0x1b8] sm:$0xff]  }
  0x17   : > { %2102 = vmatpush3.bf16.msra.mxu1 %v2373_v11  ;;  %2039 = vmatprep.subr.bf16.mxu0 %v2374_v12  ;;  %v2394_v32 = vld [vmem:[%s2677_s6] ss:$36 sps:$4 sm:$0xff]   ;;  %v2397_v34 = vld [vmem:[%s2677_s6 + $0x8] ss:$36 sps:$4 sm:$0xff]   ;;  %v2406_v41 = vld [vmem:[%s2677_s6 + $0x54] ss:$36 sps:$4 sm:$0xff]  }
  0x18   : > { %2103 = vmatprep.subr.bf16.mxu1 %v2375_v13  ;;  %v2396_v33 = vld [vmem:[%s2677_s6 + $0x4] ss:$36 sps:$4 sm:$0xff]   ;;  %v2399_v35 = vld [vmem:[%s2677_s6 + $0xc] ss:$36 sps:$4 sm:$0xff]   ;;  %v2414_v48 = vld [vmem:[%s2677_s6 + $0x94] ss:$36 sps:$4 sm:$0xff]  }
  0x19   : > { %1290 = vmatprep.mubr.bf16.mxu0 %v2396_v33  ;;  %1387 = vmatprep.mubr.bf16.mxu1 %v2399_v35  ;;  %v2404_v40 = vld [vmem:[%s2677_s6 + $0x4c] ss:$36 sps:$4 sm:$0xff]   ;;  %v2416_v49 = vld [vmem:[%s2677_s6 + $0x9c] ss:$36 sps:$4 sm:$0xff]   ;;  %v2426_v57 = vld [vmem:[%s2677_s6 + $0xe4] ss:$36 sps:$4 sm:$0xff]  }
  0x1a   : > { %2040 = vmatpush3.bf16.msra.mxu0 %v2376_v14  ;;  %v2408_v42 = vld [vmem:[%s2677_s6 + $0x48] ss:$36 sps:$4 sm:$0xff]   ;;  %v2409_v43 = vld [vmem:[%s2677_s6 + $0x50] ss:$36 sps:$4 sm:$0xff]   ;;  %v2419_v51 = vld [vmem:[%s2677_s6 + $0x98] ss:$36 sps:$4 sm:$0xff]  }
  0x1b   : > { %2104 = vmatpush3.bf16.msra.mxu1 %v2377_v15  ;;  %2041 = vmatprep.subr.bf16.mxu0 %v2378_v16  ;;  %v2410_v44 = vld [vmem:[%s3072_s1 + $0x170] sm:$0xff]   ;;  %v2420_v52 = vld [vmem:[%s3072_s1 + $0x168] sm:$0xff]   ;;  %v2424_v56 = vld [vmem:[%s2677_s6 + $0xdc] ss:$36 sps:$4 sm:$0xff]  }
  0x1c   : > { %2105 = vmatprep.subr.bf16.mxu1 %v2379_v17  ;;  %v2411_v45 = vld [vmem:[%s3072_s1 + $0x1f0] sm:$0xff]   ;;  %v2421_v53 = vld [vmem:[%s3072_s1 + $0x1e8] sm:$0xff]   ;;  %v2428_v58 = vld [vmem:[%s2677_s6 + $0xd8] ss:$36 sps:$4 sm:$0xff]  }
  0x1d   : > { %v2412_v46 = vld [vmem:[%s3072_s1 + $0x130] sm:$0xff]   ;;  %v2422_v54 = vld [vmem:[%s3072_s1 + $0x128] sm:$0xff]   ;;  %v2429_v59 = vld [vmem:[%s2677_s6 + $0xe0] ss:$36 sps:$4 sm:$0xff]  }
  0x1e   : > { %2042 = vmatpush3.bf16.msra.mxu0 %v2380_v18  ;;  %v2413_v47 = vld [vmem:[%s3072_s1 + $0x1b0] sm:$0xff]   ;;  %v2423_v55 = vld [vmem:[%s3072_s1 + $0x1a8] sm:$0xff]   ;;  %v2430_v60 = vld [vmem:[%s3072_s1 + $0x160] sm:$0xff]  }
  0x1f   : > { %2106 = vmatpush3.bf16.msra.mxu1 %v2381_v19  ;;  %2043 = vmatprep.subr.bf16.mxu0 %v2382_v20  ;;  %v2418_v50 = vld [vmem:[%s2677_s6 + $0x90] ss:$36 sps:$4 sm:$0xff]   ;;  %v2431_v61 = vld [vmem:[%s3072_s1 + $0x1e0] sm:$0xff]   ;;  %v2440_v3 = vld [vmem:[%s3072_s1 + $0x158] sm:$0xff]  }
  0x20   : > { %2107 = vmatprep.subr.bf16.mxu1 %v2383_v21  ;;  %v2432_v62 = vld [vmem:[%s3072_s1 + $0x120] sm:$0xff]   ;;  %v2436_v1 = vld [vmem:[%s2677_s6 + $0x12c] ss:$36 sps:$4 sm:$0xff]   ;;  %v2441_v5 = vld [vmem:[%s3072_s1 + $0x1d8] sm:$0xff]  }
  0x21   : > { %v2433_v63 = vld [vmem:[%s3072_s1 + $0x1a0] sm:$0xff]   ;;  %v2439_v4 = vld [vmem:[%s2677_s6 + $0x128] ss:$36 sps:$4 sm:$0xff]   ;;  %v2442_v6 = vld [vmem:[%s3072_s1 + $0x118] sm:$0xff]  }
  0x22   : > { %2044 = vmatpush3.bf16.msra.mxu0 %v2384_v22  ;;  %v2434_v0 = vld [vmem:[%s2677_s6 + $0x124] ss:$36 sps:$4 sm:$0xff]   ;;  %v2443_v7 = vld [vmem:[%s3072_s1 + $0x198] sm:$0xff]   ;;  %v2444_v8 = vld [vmem:[%s2677_s6 + $0x16c] ss:$36 sps:$4 sm:$0xff]  }
  0x23   : > { %2108 = vmatpush3.bf16.msra.mxu1 %v2385_v23  ;;  %2045 = vmatprep.subr.bf16.mxu0 %v2386_v24  ;;  %v2438_v2 = vld [vmem:[%s2677_s6 + $0x120] ss:$36 sps:$4 sm:$0xff]   ;;  %v2446_v9 = vld [vmem:[%s2677_s6 + $0x174] ss:$36 sps:$4 sm:$0xff]   ;;  %v2448_v12 = vld [vmem:[%s2677_s6 + $0x168] ss:$36 sps:$4 sm:$0xff]  }
  0x24   : > { %2109 = vmatprep.subr.bf16.mxu1 %v2387_v25  ;;  %v2450_v10 = vld [vmem:[%s3072_s1 + $0x150] sm:$0xff]   ;;  %v2456_v17 = vld [vmem:[%s2677_s6 + $0x1bc] ss:$36 sps:$4 sm:$0xff]   ;;  %v2460_v18 = vld [vmem:[%s3072_s1 + $0x148] sm:$0xff]  }
  0x25   : > { %v2451_v11 = vld [vmem:[%s3072_s1 + $0x1d0] sm:$0xff]   ;;  %v2461_v19 = vld [vmem:[%s3072_s1 + $0x1c8] sm:$0xff]   ;;  %v2459_v23 = vld [vmem:[%s2677_s6 + $0x1b8] ss:$36 sps:$4 sm:$0xff]  }
  0x26   : > { %2046 = vmatpush3.bf16.msra.mxu0 %v2388_v26  ;;  %v2452_v13 = vld [vmem:[%s3072_s1 + $0x110] sm:$0xff]   ;;  %v2462_v20 = vld [vmem:[%s3072_s1 + $0x108] sm:$0xff]   ;;  %v2464_v24 = vld [vmem:[%s2677_s6 + $0x1fc] ss:$36 sps:$4 sm:$0xff]  }
  0x27   : > { %2110 = vmatpush3.bf16.msra.mxu1 %v2389_v27  ;;  %2047 = vmatprep.subr.bf16.mxu0 %v2390_v28  ;;  %v2453_v14 = vld [vmem:[%s3072_s1 + $0x190] sm:$0xff]   ;;  %v2463_v21 = vld [vmem:[%s3072_s1 + $0x188] sm:$0xff]   ;;  %v2470_v26 = vld [vmem:[%s3072_s1 + $0x140] sm:$0xff]  }
  0x28   : > { %2111 = vmatprep.subr.bf16.mxu1 %v2391_v29  ;;  %v2449_v15 = vld [vmem:[%s2677_s6 + $0x170] ss:$36 sps:$4 sm:$0xff]   ;;  %v2466_v25 = vld [vmem:[%s2677_s6 + $0x204] ss:$36 sps:$4 sm:$0xff]  }
  0x29   : > { %v2454_v16 = vld [vmem:[%s2677_s6 + $0x1b4] ss:$36 sps:$4 sm:$0xff]   ;;  %v2471_v27 = vld [vmem:[%s3072_s1 + $0x1c0] sm:$0xff]  }
  0x2a   : > { %2048 = vmatpush3.bf16.msra.mxu0 %v2392_v30  ;;  %v2458_v22 = vld [vmem:[%s2677_s6 + $0x1b0] ss:$36 sps:$4 sm:$0xff]   ;;  %v2472_v28 = vld [vmem:[%s3072_s1 + $0x100] sm:$0xff]   ;;  %v2468_v30 = vld [vmem:[%s2677_s6 + $0x1f8] ss:$36 sps:$4 sm:$0xff]  }
  0x2b   : > { %2112 = vmatpush3.bf16.msra.mxu1 %v2393_v31  ;;  %2161 = vmatprep.subr.bf16.mxu0 %v2400_v36  ;;  %v2473_v29 = vld [vmem:[%s3072_s1 + $0x180] sm:$0xff]   ;;  %v2476_v33 = vld [vmem:[%s2677_s6 + $0x14] ss:$36 sps:$4 sm:$0xff]  }
  0x2c   : > { %2225 = vmatprep.subr.bf16.mxu1 %v2401_v37  ;;  %v2469_v31 = vld [vmem:[%s2677_s6 + $0x200] ss:$36 sps:$4 sm:$0xff]   ;;  %v2474_v35 = vld [vmem:[%s2677_s6 + $0x10] ss:$36 sps:$4 sm:$0xff]   ;;  %v2477_v36 = vld [vmem:[%s2677_s6 + $0x18] ss:$36 sps:$4 sm:$0xff]  }
  0x2d   : > { %1291 = vmatmul.mubr.bf16.vlgmr.msra.gmra.mxu0 %v2394_v32  ;;  %v2480_v32 = vld [vmem:[%s3072_s1 + $0x238] sm:$0xff]  }
  0x2e   : > { %1388 = vmatmul.mubr.bf16.vlgmr.msra.gmra.mxu1 %v2397_v34  ;;  %2162 = vmatpush3.bf16.msra.mxu0 %v2402_v38  ;;  %v2479_v34 = vld [vmem:[%s2677_s6 + $0x1c] ss:$36 sps:$4 sm:$0xff]   ;;  %v2483_v38 = vld [vmem:[%s2677_s6 + $0x64] ss:$36 sps:$4 sm:$0xff]  }
  0x2f   : > { %2226 = vmatpush3.bf16.msra.mxu1 %v2403_v39  ;;  %1298 = vmatprep.mubr.bf16.mxu0 %v2404_v40  ;;  %v2481_v37 = vld [vmem:[%s2677_s6 + $0x5c] ss:$36 sps:$4 sm:$0xff]   ;;  %v2487_v39 = vld [vmem:[%s3072_s1 + $0x230] sm:$0xff]   ;;  %v2494_v40 = vld [vmem:[%s3072_s1 + $0x228] sm:$0xff]  }
  0x30   : > { %1395 = vmatprep.mubr.bf16.mxu1 %v2406_v41  ;;  %2163 = vmatprep.subr.bf16.mxu0 %v2410_v44  ;;  %v2485_v41 = vld [vmem:[%s2677_s6 + $0x58] ss:$36 sps:$4 sm:$0xff]   ;;  %v2490_v44 = vld [vmem:[%s2677_s6 + $0xac] ss:$36 sps:$4 sm:$0xff]  }
  0x31   : > { %2227 = vmatprep.subr.bf16.mxu1 %v2411_v45  ;;  %v2501_v45 = vld [vmem:[%s3072_s1 + $0x220] sm:$0xff]  }
  0x32   : > { %2164 = vmatpush3.bf16.msra.mxu0 %v2412_v46  ;;  %v2508_v46 = vld [vmem:[%s3072_s1 + $0x218] sm:$0xff]  }
  0x33   : > { %2228 = vmatpush3.bf16.msra.mxu1 %v2413_v47  ;;  %2165 = vmatprep.subr.bf16.mxu0 %v2420_v52  ;;  %v2492_v47 = vld [vmem:[%s2677_s6 + $0xa0] ss:$36 sps:$4 sm:$0xff]   ;;  %v2499_v52 = vld [vmem:[%s2677_s6 + $0xe8] ss:$36 sps:$4 sm:$0xff]  }
  0x34   : > { %2229 = vmatprep.subr.bf16.mxu1 %v2421_v53  ;;  %v2522_v53 = vld [vmem:[%s3072_s1 + $0x208] sm:$0xff]  }
  0x35   : > { %1299 = vmatmul.mubr.bf16.gmra.mxu0 %v2408_v42  ;;  %v2486_v42 = vld [vmem:[%s2677_s6 + $0x60] ss:$36 sps:$4 sm:$0xff]  }
  0x36   : > { %1396 = vmatmul.mubr.bf16.gmra.mxu1 %v2409_v43  ;;  %1306 = vmatprep.mubr.bf16.mxu0 %v2414_v48  ;;  %v2488_v43 = vld [vmem:[%s2677_s6 + $0xa4] ss:$36 sps:$4 sm:$0xff]  }
  0x37   : > { %1403 = vmatprep.mubr.bf16.mxu1 %v2416_v49  ;;  %2166 = vmatpush3.bf16.msra.mxu0 %v2422_v54  ;;  %v2493_v48 = vld [vmem:[%s2677_s6 + $0xa8] ss:$36 sps:$4 sm:$0xff]   ;;  %v2500_v54 = vld [vmem:[%s2677_s6 + $0xf0] ss:$36 sps:$4 sm:$0xff]  }
  0x38   : > { %2230 = vmatpush3.bf16.msra.mxu1 %v2423_v55  ;;  %2167 = vmatprep.subr.bf16.mxu0 %v2430_v60  ;;  %v2495_v49 = vld [vmem:[%s2677_s6 + $0xec] ss:$36 sps:$4 sm:$0xff]   ;;  %v2502_v55 = vld [vmem:[%s2677_s6 + $0x134] ss:$36 sps:$4 sm:$0xff]   ;;  %v2509_v60 = vld [vmem:[%s2677_s6 + $0x17c] ss:$36 sps:$4 sm:$0xff]  }
  0x39   : > { %2231 = vmatprep.subr.bf16.mxu1 %v2431_v61  ;;  %v2511_v61 = vld [vmem:[%s2677_s6 + $0x184] ss:$36 sps:$4 sm:$0xff]  }
  0x3b   : > { %2168 = vmatpush3.bf16.msra.mxu0 %v2432_v62  ;;  %v2513_v62 = vld [vmem:[%s2677_s6 + $0x178] ss:$36 sps:$4 sm:$0xff]  }
  0x3c   : > { %2232 = vmatpush3.bf16.msra.mxu1 %v2433_v63  ;;  %2169 = vmatprep.subr.bf16.mxu0 %v2440_v3  ;;  %v2514_v63 = vld [vmem:[%s2677_s6 + $0x180] ss:$36 sps:$4 sm:$0xff]   ;;  %v2521_v3 = vld [vmem:[%s2677_s6 + $0x1c8] ss:$36 sps:$4 sm:$0xff]  }
  0x3d   : > { %1307 = vmatmul.mubr.bf16.gmra.mxu0 %v2418_v50  ;;  %2233 = vmatprep.subr.bf16.mxu1 %v2441_v5  ;;  %v2497_v50 = vld [vmem:[%s2677_s6 + $0xf4] ss:$36 sps:$4 sm:$0xff]  }
  0x3e   : > { %1404 = vmatmul.mubr.bf16.gmra.mxu1 %v2419_v51  ;;  %1314 = vmatprep.mubr.bf16.mxu0 %v2424_v56  ;;  %v2515_v51 = vld [vmem:[%s3072_s1 + $0x210] sm:$0xff]   ;;  %v2504_v56 = vld [vmem:[%s2677_s6 + $0x13c] ss:$36 sps:$4 sm:$0xff]  }
  0x3f   : > { %1411 = vmatprep.mubr.bf16.mxu1 %v2426_v57  ;;  %2170 = vmatpush3.bf16.msra.mxu0 %v2442_v6  ;;  %v2529_v57 = vld [vmem:[%s3072_s1 + $0x200] sm:$0xff]   ;;  %v2525_v5 = vld [vmem:[%s2677_s6 + $0x214] ss:$36 sps:$4 sm:$0xff]   ;;  %v2527_v6 = vld [vmem:[%s2677_s6 + $0x208] ss:$36 sps:$4 sm:$0xff]  }
  0x40   : > { %2234 = vmatpush3.bf16.msra.mxu1 %v2443_v7  ;;  %2171 = vmatprep.subr.bf16.mxu0 %v2450_v10  ;;  %v2528_v7 = vld [vmem:[%s2677_s6 + $0x210] ss:$36 sps:$4 sm:$0xff]   ;;  %v2532_v10 = vld [vmem:[%s2677_s6 + $0x68] ss:$36 sps:$4 sm:$0xff]  }
  0x41   : > { %2235 = vmatprep.subr.bf16.mxu1 %v2451_v11  ;;  %v2533_v11 = vld [vmem:[%s2677_s6 + $0x188] ss:$36 sps:$4 sm:$0xff]  }
  0x43   : > { %2172 = vmatpush3.bf16.msra.mxu0 %v2452_v13  ;;  %v2535_v13 = vld [vmem:[%s2677_s6 + $0x1d0] ss:$36 sps:$4 sm:$0xff]  }
  0x44   : > { %2236 = vmatpush3.bf16.msra.mxu1 %v2453_v14  ;;  %2173 = vmatprep.subr.bf16.mxu0 %v2460_v18  ;;  %v2536_v14 = vld [vmem:[%s2677_s6 + $0xf8] ss:$36 sps:$4 sm:$0xff]   ;;  %v2880_v18 = vld [vmem:[%s3073_s2] ss:$0 sm:$0xff] }
  0x45   : > { %1315 = vmatmul.mubr.bf16.gmra.mxu0 %v2428_v58  ;;  %2237 = vmatprep.subr.bf16.mxu1 %v2461_v19  ;;  %v2506_v58 = vld [vmem:[%s2677_s6 + $0x130] ss:$36 sps:$4 sm:$0xff]  }
  0x46   : > { %1412 = vmatmul.mubr.bf16.gmra.mxu1 %v2429_v59  ;;  %1322 = vmatprep.mubr.bf16.mxu0 %v2434_v0  ;;  %v2507_v59 = vld [vmem:[%s2677_s6 + $0x138] ss:$36 sps:$4 sm:$0xff]   ;;  %v2516_v0 = vld [vmem:[%s2677_s6 + $0x1c4] ss:$36 sps:$4 sm:$0xff]  }
  0x47   : > { %1419 = vmatprep.mubr.bf16.mxu1 %v2436_v1  ;;  %2174 = vmatpush3.bf16.msra.mxu0 %v2462_v20  ;;  %v2518_v1 = vld [vmem:[%s2677_s6 + $0x1cc] ss:$36 sps:$4 sm:$0xff]  }
  0x48   : > { %2238 = vmatpush3.bf16.msra.mxu1 %v2463_v21  ;;  %2175 = vmatprep.subr.bf16.mxu0 %v2470_v26 }
  0x49   : > { %2239 = vmatprep.subr.bf16.mxu1 %v2471_v27 }
  0x4b   : > { %2176 = vmatpush3.bf16.msra.mxu0 %v2472_v28 }
  0x4c   : > { %2240 = vmatpush3.bf16.msra.mxu1 %v2473_v29  ;;  %2305 = vmatprep.subr.bf16.mxu0 %v2480_v32 }
  0x4d   : > { %1323 = vmatmul.mubr.bf16.gmra.mxu0 %v2438_v2  ;;  %2337 = vmatprep.subr.bf16.mxu1 %v2480_v32  ;;  %v2520_v2 = vld [vmem:[%s2677_s6 + $0x1c0] ss:$36 sps:$4 sm:$0xff]  }
  0x4e   : > { %1420 = vmatmul.mubr.bf16.gmra.mxu1 %v2439_v4  ;;  %1330 = vmatprep.mubr.bf16.mxu0 %v2444_v8  ;;  %v2523_v4 = vld [vmem:[%s2677_s6 + $0x20c] ss:$36 sps:$4 sm:$0xff]   ;;  %v2530_v8 = vld [vmem:[%s2677_s6 + $0x20] ss:$36 sps:$4 sm:$0xff]  }
  0x4f   : > { %1427 = vmatprep.mubr.bf16.mxu1 %v2446_v9  ;;  %v2531_v9 = vld [vmem:[%s2677_s6 + $0x140] ss:$36 sps:$4 sm:$0xff]  }
  0x55   : > { %1331 = vmatmul.mubr.bf16.gmra.mxu0 %v2448_v12  ;;  %v2534_v12 = vld [vmem:[%s2677_s6 + $0xb0] ss:$36 sps:$4 sm:$0xff]  }
  0x56   : > { %1428 = vmatmul.mubr.bf16.gmra.mxu1 %v2449_v15  ;;  %1338 = vmatprep.mubr.bf16.mxu0 %v2454_v16  ;;  %v2537_v15 = vld [vmem:[%s2677_s6 + $0x218] ss:$36 sps:$4 sm:$0xff]   ;;  %s1883_s6 = sshll.u32 %s3109_s23, 3 }
  0x57   : > { %1435 = vmatprep.mubr.bf16.mxu1 %v2456_v17  ;;  %s3002_s29 = scalar_lea.vmem %s3074_s3, %s1883_s6  ;;  %s3025_s16 = scalar_lea.vmem %s3075_s4, %s1883_s6 }
  0x5d   : > { %1339 = vmatmul.mubr.bf16.gmra.mxu0 %v2458_v22 }
  0x5e   : > { %1436 = vmatmul.mubr.bf16.gmra.mxu1 %v2459_v23  ;;  %1346 = vmatprep.mubr.bf16.mxu0 %v2464_v24 }
  0x5f   : > { %1443 = vmatprep.mubr.bf16.mxu1 %v2466_v25 }
  0x65   : > { %1347 = vmatmul.mubr.bf16.gmra.mxu0 %v2468_v30 }
  0x66   : > { %1444 = vmatmul.mubr.bf16.gmra.mxu1 %v2469_v31  ;;  %1484 = vmatprep.mubr.bf16.mxu0 %v2476_v33 }
  0x67   : > { %1581 = vmatprep.mubr.bf16.mxu1 %v2479_v34 }
  0x6d   : > { %1485 = vmatmul.mubr.bf16.vlgmr.msra.gmra.mxu0 %v2474_v35 }
  0x6e   : > { %1582 = vmatmul.mubr.bf16.vlgmr.msra.gmra.mxu1 %v2477_v36  ;;  %2306 = vmatpush3.bf16.msra.mxu0 %v2480_v32 }
  0x6f   : > { %2345 = vmatpush3.bf16.msra.mxu1 %v2480_v32  ;;  %1492 = vmatprep.mubr.bf16.mxu0 %v2481_v37 }
  0x70   : > { %1589 = vmatprep.mubr.bf16.mxu1 %v2483_v38  ;;  %2307 = vmatprep.subr.bf16.mxu0 %v2487_v39 }
  0x71   : > { %2338 = vmatprep.subr.bf16.mxu1 %v2487_v39 }
  0x72   : > { %2308 = vmatpush3.bf16.msra.mxu0 %v2487_v39 }
  0x73   : > { %2346 = vmatpush3.bf16.msra.mxu1 %v2487_v39  ;;  %2309 = vmatprep.subr.bf16.mxu0 %v2494_v40 }
  0x74   : > { %2339 = vmatprep.subr.bf16.mxu1 %v2494_v40 }
  0x75   : > { %1493 = vmatmul.mubr.bf16.gmra.mxu0 %v2485_v41 }
  0x76   : > { %1590 = vmatmul.mubr.bf16.gmra.mxu1 %v2486_v42  ;;  %1500 = vmatprep.mubr.bf16.mxu0 %v2488_v43 }
  0x77   : > { %1597 = vmatprep.mubr.bf16.mxu1 %v2490_v44  ;;  %2310 = vmatpush3.bf16.msra.mxu0 %v2494_v40 }
  0x78   : > { %2347 = vmatpush3.bf16.msra.mxu1 %v2494_v40  ;;  %2311 = vmatprep.subr.bf16.mxu0 %v2501_v45 }
  0x79   : > { %2340 = vmatprep.subr.bf16.mxu1 %v2501_v45 }
  0x7b   : > { %2312 = vmatpush3.bf16.msra.mxu0 %v2501_v45 }
  0x7c   : > { %2348 = vmatpush3.bf16.msra.mxu1 %v2501_v45  ;;  %2313 = vmatprep.subr.bf16.mxu0 %v2508_v46 }
  0x7d   : > { %1501 = vmatmul.mubr.bf16.gmra.mxu0 %v2492_v47  ;;  %2341 = vmatprep.subr.bf16.mxu1 %v2508_v46 }
  0x7e   : > { %1598 = vmatmul.mubr.bf16.gmra.mxu1 %v2493_v48  ;;  %1508 = vmatprep.mubr.bf16.mxu0 %v2495_v49 }
  0x7f   : > { %1605 = vmatprep.mubr.bf16.mxu1 %v2497_v50  ;;  %2314 = vmatpush3.bf16.msra.mxu0 %v2508_v46 }
  0x80   : > { %2349 = vmatpush3.bf16.msra.mxu1 %v2508_v46  ;;  %2315 = vmatprep.subr.bf16.mxu0 %v2515_v51 }
  0x81   : > { %2342 = vmatprep.subr.bf16.mxu1 %v2515_v51 }
  0x83   : > { %2316 = vmatpush3.bf16.msra.mxu0 %v2515_v51 }
  0x84   : > { %2350 = vmatpush3.bf16.msra.mxu1 %v2515_v51  ;;  %2317 = vmatprep.subr.bf16.mxu0 %v2522_v53 }
  0x85   : > { %1509 = vmatmul.mubr.bf16.gmra.mxu0 %v2499_v52  ;;  %2343 = vmatprep.subr.bf16.mxu1 %v2522_v53 }
  0x86   : > { %1606 = vmatmul.mubr.bf16.gmra.mxu1 %v2500_v54  ;;  %1516 = vmatprep.mubr.bf16.mxu0 %v2502_v55 }
  0x87   : > { %1613 = vmatprep.mubr.bf16.mxu1 %v2504_v56  ;;  %2318 = vmatpush3.bf16.msra.mxu0 %v2522_v53 }
  0x88   : > { %2351 = vmatpush3.bf16.msra.mxu1 %v2522_v53  ;;  %2319 = vmatprep.subr.bf16.mxu0 %v2529_v57 }
  0x89   : > { %2344 = vmatprep.subr.bf16.mxu1 %v2529_v57 }
  0x8b   : > { %2320 = vmatpush3.bf16.msra.mxu0 %v2529_v57 }
  0x8c   : > { %2352 = vmatpush3.bf16.msra.mxu1 %v2529_v57 }
  0x8d   : > { %1517 = vmatmul.mubr.bf16.gmra.mxu0 %v2506_v58 }
  0x8e   : > { %1614 = vmatmul.mubr.bf16.gmra.mxu1 %v2507_v59  ;;  %1524 = vmatprep.mubr.bf16.mxu0 %v2509_v60 }
  0x8f   : > { %1621 = vmatprep.mubr.bf16.mxu1 %v2511_v61 }
  0x95   : > { %1525 = vmatmul.mubr.bf16.gmra.mxu0 %v2513_v62 }
  0x96   : > { %1622 = vmatmul.mubr.bf16.gmra.mxu1 %v2514_v63  ;;  %1532 = vmatprep.mubr.bf16.mxu0 %v2516_v0 }
  0x97   : > { %1629 = vmatprep.mubr.bf16.mxu1 %v2518_v1 }
  0x9d   : > { %1533 = vmatmul.mubr.bf16.gmra.mxu0 %v2520_v2 }
  0x9e   : > { %1630 = vmatmul.mubr.bf16.gmra.mxu1 %v2521_v3  ;;  %1540 = vmatprep.mubr.bf16.mxu0 %v2523_v4 }
  0x9f   : > { %1637 = vmatprep.mubr.bf16.mxu1 %v2525_v5 }
  0xa5   : > { %1541 = vmatmul.mubr.bf16.gmra.mxu0 %v2527_v6 }
  0xa6   : > { %1638 = vmatmul.mubr.bf16.gmra.mxu1 %v2528_v7  ;;  %2321 = vmatprep.mubr.bf16.mxu0 %v2530_v8 }
  0xa7   : > { %2329 = vmatprep.mubr.bf16.mxu1 %v2531_v9 }
  0xad   : > { %2322 = vmatmul.mubr.bf16.vlgmr.msra.gmra.mxu0 %v2532_v10 }
  0xae   : > { %2330 = vmatmul.mubr.bf16.vlgmr.msra.gmra.mxu1 %v2533_v11  ;;  %2325 = vmatprep.mubr.bf16.mxu0 %v2534_v12 }
  0xaf   : > { %2333 = vmatprep.mubr.bf16.mxu1 %v2535_v13 }
  0xb5   : > { %2326 = vmatmul.mubr.bf16.gmra.mxu0 %v2536_v14 }
  0xb6   : > { %2334 = vmatmul.mubr.bf16.gmra.mxu1 %v2537_v15 }
  0xed   : > { %v2049_v16 = vpop.f32.mrf.mxu0 }
  0xee   : > { %v2113_v17 = vpop.f32.mrf.mxu1 }
  0xef   : > { %v2050_v19 = vpop.f32.mrf.mxu0 }
  0xf0   : > { %v2051_v20 = vadd.f32 %v2050_v19, %v2049_v16  ;;  %v2114_v21 = vpop.f32.mrf.mxu1 }
  0xf1   : > { %v2115_v22 = vadd.f32 %v2114_v21, %v2113_v17  ;;  %v2052_v23 = vpop.f32.mrf.mxu0 }
  0xf2   : > { %v1293_v24 = vadd.f32 %v2051_v20, %v2880_v18  ;;  %v2116_v25 = vpop.f32.mrf.mxu1 }
  0xf3   : > { %v2053_v26 = vpop.f32.mrf.mxu0 }
  0xf4   : > { %v2883_v27 = vadd.f32 %v2115_v22, %v1293_v24  ;;  %v2054_v28 = vadd.f32 %v2053_v26, %v2052_v23  ;;  %v2117_v29 = vpop.f32.mrf.mxu1 }
  0xf5   : > { %v2118_v30 = vadd.f32 %v2117_v29, %v2116_v25  ;;  %v2055_v31 = vpop.f32.mrf.mxu0 }
  0xf6   : > { %v1296_v32 = vadd.f32 %v2054_v28, %v2880_v18  ;;  %v2119_v33 = vpop.f32.mrf.mxu1 }
  0xf7   : > { %v2056_v34 = vpop.f32.mrf.mxu0 }
  0xf8   : > { %v2886_v35 = vadd.f32 %v2118_v30, %v1296_v32  ;;  %v2057_v36 = vadd.f32 %v2056_v34, %v2055_v31  ;;  %v2120_v37 = vpop.f32.mrf.mxu1 }
  0xf9   : > { %v2121_v38 = vadd.f32 %v2120_v37, %v2119_v33  ;;  %v2058_v39 = vpop.f32.mrf.mxu0 }
  0xfa   : > { %v1301_v40 = vadd.f32 %v2057_v36, %v2880_v18  ;;  %v2122_v41 = vpop.f32.mrf.mxu1 }
  0xfb   : > { %v2059_v42 = vpop.f32.mrf.mxu0 }
  0xfc   : > { %v2889_v43 = vadd.f32 %v2121_v38, %v1301_v40  ;;  %v2060_v44 = vadd.f32 %v2059_v42, %v2058_v39  ;;  %v2123_v45 = vpop.f32.mrf.mxu1 }
  0xfd   : > { %v2124_v46 = vadd.f32 %v2123_v45, %v2122_v41  ;;  %v2061_v47 = vpop.f32.mrf.mxu0 }
  0xfe   : > { %v1304_v48 = vadd.f32 %v2060_v44, %v2880_v18  ;;  %v2125_v49 = vpop.f32.mrf.mxu1 }
  0xff   : > { %v2062_v50 = vpop.f32.mrf.mxu0 }
 0x100   : > { %v2892_v51 = vadd.f32 %v2124_v46, %v1304_v48  ;;  %v2063_v52 = vadd.f32 %v2062_v50, %v2061_v47  ;;  %v2126_v53 = vpop.f32.mrf.mxu1 }
 0x101   : > { %v2127_v54 = vadd.f32 %v2126_v53, %v2125_v49  ;;  %v2064_v55 = vpop.f32.mrf.mxu0 }
 0x102   : > { %v1309_v56 = vadd.f32 %v2063_v52, %v2880_v18  ;;  %v2128_v57 = vpop.f32.mrf.mxu1 }
 0x103   : > { %v2065_v58 = vpop.f32.mrf.mxu0 }
 0x104   : > { %v2895_v59 = vadd.f32 %v2127_v54, %v1309_v56  ;;  %v2066_v60 = vadd.f32 %v2065_v58, %v2064_v55  ;;  %v2129_v61 = vpop.f32.mrf.mxu1 }
 0x105   : > { %v2130_v62 = vadd.f32 %v2129_v61, %v2128_v57  ;;  %v2067_v63 = vpop.f32.mrf.mxu0 }
 0x106   : > { %v1312_v0 = vadd.f32 %v2066_v60, %v2880_v18  ;;  %v2131_v1 = vpop.f32.mrf.mxu1 }
 0x107   : > { %v2068_v2 = vpop.f32.mrf.mxu0 }
 0x108   : > { %v2898_v3 = vadd.f32 %v2130_v62, %v1312_v0  ;;  %v2069_v4 = vadd.f32 %v2068_v2, %v2067_v63  ;;  %v2132_v5 = vpop.f32.mrf.mxu1 }
 0x109   : > { %v2133_v6 = vadd.f32 %v2132_v5, %v2131_v1  ;;  %v2070_v7 = vpop.f32.mrf.mxu0 }
 0x10a   : > { %3076 = vst [vmem:[#allocation2_spill] sm:$0xff] %v2898_v3  ;;  %v1317_v8 = vadd.f32 %v2069_v4, %v2880_v18  ;;  %v2134_v9 = vpop.f32.mrf.mxu1 }
 0x10b   : > { %v2071_v10 = vpop.f32.mrf.mxu0 }
 0x10c   : > { %v2901_v11 = vadd.f32 %v2133_v6, %v1317_v8  ;;  %v2072_v12 = vadd.f32 %v2071_v10, %v2070_v7  ;;  %v2135_v13 = vpop.f32.mrf.mxu1 }
 0x10d   : > { %v2136_v14 = vadd.f32 %v2135_v13, %v2134_v9  ;;  %v2073_v15 = vpop.f32.mrf.mxu0 }
 0x10e   : > { %v1320_v16 = vadd.f32 %v2072_v12, %v2880_v18  ;;  %v2137_v17 = vpop.f32.mrf.mxu1 }
 0x10f   : > { %v2074_v19 = vpop.f32.mrf.mxu0 }
 0x110   : > { %v2904_v20 = vadd.f32 %v2136_v14, %v1320_v16  ;;  %v2075_v21 = vadd.f32 %v2074_v19, %v2073_v15  ;;  %v2138_v22 = vpop.f32.mrf.mxu1 }
 0x111   : > { %v2139_v23 = vadd.f32 %v2138_v22, %v2137_v17  ;;  %v2076_v24 = vpop.f32.mrf.mxu0 }
 0x112   : > { %v1325_v25 = vadd.f32 %v2075_v21, %v2880_v18  ;;  %v2140_v26 = vpop.f32.mrf.mxu1 }
 0x113   : > { %v2077_v28 = vpop.f32.mrf.mxu0 }
 0x114   : > { %v2907_v29 = vadd.f32 %v2139_v23, %v1325_v25  ;;  %v2078_v30 = vadd.f32 %v2077_v28, %v2076_v24  ;;  %v2141_v31 = vpop.f32.mrf.mxu1 }
 0x115   : > { %v2142_v32 = vadd.f32 %v2141_v31, %v2140_v26  ;;  %v2079_v33 = vpop.f32.mrf.mxu0 }
 0x116   : > { %v1328_v34 = vadd.f32 %v2078_v30, %v2880_v18  ;;  %v2143_v36 = vpop.f32.mrf.mxu1 }
 0x117   : > { %v2080_v37 = vpop.f32.mrf.mxu0 }
 0x118   : > { %v2910_v38 = vadd.f32 %v2142_v32, %v1328_v34  ;;  %v2081_v39 = vadd.f32 %v2080_v37, %v2079_v33  ;;  %v2144_v40 = vpop.f32.mrf.mxu1 }
 0x119   : > { %v2145_v41 = vadd.f32 %v2144_v40, %v2143_v36  ;;  %v2082_v42 = vpop.f32.mrf.mxu0 }
 0x11a   : > { %v1333_v44 = vadd.f32 %v2081_v39, %v2880_v18  ;;  %v2146_v45 = vpop.f32.mrf.mxu1 }
 0x11b   : > { %v2083_v46 = vpop.f32.mrf.mxu0 }
 0x11c   : > { %v2913_v47 = vadd.f32 %v2145_v41, %v1333_v44  ;;  %v2084_v48 = vadd.f32 %v2083_v46, %v2082_v42  ;;  %v2147_v49 = vpop.f32.mrf.mxu1 }
 0x11d   : > { %v2148_v50 = vadd.f32 %v2147_v49, %v2146_v45  ;;  %v2085_v52 = vpop.f32.mrf.mxu0 }
 0x11e   : > { %v1336_v53 = vadd.f32 %v2084_v48, %v2880_v18  ;;  %v2149_v54 = vpop.f32.mrf.mxu1 }
 0x11f   : > { %v2086_v55 = vpop.f32.mrf.mxu0 }
 0x120   : > { %v2916_v56 = vadd.f32 %v2148_v50, %v1336_v53  ;;  %v2087_v57 = vadd.f32 %v2086_v55, %v2085_v52  ;;  %v2150_v58 = vpop.f32.mrf.mxu1 }
 0x121   : > { %v2151_v60 = vadd.f32 %v2150_v58, %v2149_v54  ;;  %v2088_v61 = vpop.f32.mrf.mxu0 }
 0x122   : > { %3077 = vst [vmem:[#allocation3_spill] sm:$0xff] %v2916_v56  ;;  %v1341_v62 = vadd.f32 %v2087_v57, %v2880_v18  ;;  %v2152_v63 = vpop.f32.mrf.mxu1 }
 0x123   : > { %v2089_v0 = vpop.f32.mrf.mxu0 }
 0x124   : > { %v2919_v1 = vadd.f32 %v2151_v60, %v1341_v62  ;;  %v2090_v2 = vadd.f32 %v2089_v0, %v2088_v61  ;;  %v2153_v4 = vpop.f32.mrf.mxu1 }
 0x125   : > { %v2154_v5 = vadd.f32 %v2153_v4, %v2152_v63  ;;  %v2091_v6 = vpop.f32.mrf.mxu0 }
 0x126   : > { %3078 = vst [vmem:[#allocation4_spill] sm:$0xff] %v2919_v1  ;;  %v1344_v7 = vadd.f32 %v2090_v2, %v2880_v18  ;;  %v2155_v8 = vpop.f32.mrf.mxu1 }
 0x127   : > { %v2092_v9 = vpop.f32.mrf.mxu0 }
 0x128   : > { %v2922_v10 = vadd.f32 %v2154_v5, %v1344_v7  ;;  %v2093_v12 = vadd.f32 %v2092_v9, %v2091_v6  ;;  %v2156_v13 = vpop.f32.mrf.mxu1 }
 0x129   : > { %v2157_v14 = vadd.f32 %v2156_v13, %v2155_v8  ;;  %v2094_v15 = vpop.f32.mrf.mxu0 }
 0x12a   : > { %3079 = vst [vmem:[#allocation5_spill] sm:$0xff] %v2922_v10  ;;  %v1349_v16 = vadd.f32 %v2093_v12, %v2880_v18  ;;  %v2158_v17 = vpop.f32.mrf.mxu1 }
 0x12b   : > { %v2095_v19 = vpop.f32.mrf.mxu0 }
 0x12c   : > { %v2925_v21 = vadd.f32 %v2157_v14, %v1349_v16  ;;  %v2096_v22 = vadd.f32 %v2095_v19, %v2094_v15  ;;  %v2159_v23 = vpop.f32.mrf.mxu1 }
 0x12d   : > { %v2160_v24 = vadd.f32 %v2159_v23, %v2158_v17  ;;  %v2177_v25 = vpop.f32.mrf.mxu0 }
 0x12e   : > { %3080 = vst [vmem:[#allocation6_spill] sm:$0xff] %v2925_v21  ;;  %v1352_v26 = vadd.f32 %v2096_v22, %v2880_v18  ;;  %v2241_v28 = vpop.f32.mrf.mxu1 }
 0x12f   : > { %v2178_v30 = vpop.f32.mrf.mxu0 }
 0x130   : > { %v2928_v31 = vadd.f32 %v2160_v24, %v1352_v26  ;;  %v2242_v32 = vpop.f32.mrf.mxu1  ;;  %v2179_v1 = vadd.f32 %v2178_v30, %v2177_v25 }
 0x131   : > { %v2180_v33 = vpop.f32.mrf.mxu0 }
 0x132   : > { %3081 = vst [vmem:[#allocation7_spill] sm:$0xff] %v2928_v31  ;;  %v2244_v34 = vpop.f32.mrf.mxu1 }
 0x133   : > { %v2181_v36 = vpop.f32.mrf.mxu0 }
 0x134   : > { %v2245_v37 = vpop.f32.mrf.mxu1  ;;  %v2182_v3 = vadd.f32 %v2181_v36, %v2180_v33 }
 0x135   : > { %v2183_v39 = vpop.f32.mrf.mxu0  ;;  %v2246_v30 = vadd.f32 %v2245_v37, %v2244_v34 }
 0x136   : > { %v2247_v40 = vpop.f32.mrf.mxu1  ;;  %v1490_v56 = vadd.f32 %v2182_v3, %v2886_v35 }
 0x137   : > { %v2184_v41 = vpop.f32.mrf.mxu0 }
 0x138   : > { %v2248_v42 = vpop.f32.mrf.mxu1  ;;  %v2971_v37 = vadd.f32 %v2246_v30, %v1490_v56 }
 0x139   : > { %v2186_v44 = vpop.f32.mrf.mxu0 }
 0x13a   : > { %v2250_v45 = vpop.f32.mrf.mxu1 }
 0x13b   : > { %v2187_v46 = vpop.f32.mrf.mxu0 }
 0x13c   : > { %v2251_v48 = vpop.f32.mrf.mxu1 }
 0x13d   : > { %v2189_v49 = vpop.f32.mrf.mxu0 }
 0x13e   : > { %v2253_v50 = vpop.f32.mrf.mxu1 }
 0x13f   : > { %v2190_v18 = vpop.f32.mrf.mxu0 }
 0x140   : > { %v2254_v52 = vpop.f32.mrf.mxu1 }
 0x141   : > { %v2930_v53 = vpop.f32.mrf.mxu0 }
 0x142   : > { %v2932_v54 = vpop.f32.mrf.mxu1 }
 0x143   : > { %v2193_v55 = vpop.f32.mrf.mxu0 }
 0x144   : > { %v2934_v57 = vpop.f32.mrf.mxu1 }
 0x145   : > { %v2195_v58 = vpop.f32.mrf.mxu0 }
 0x146   : > { %v2936_v60 = vpop.f32.mrf.mxu1 }
 0x147   : > { %3082 = vst [vmem:[#allocation8_spill] sm:$0xff] %v2936_v60  ;;  %v2196_v61 = vpop.f32.mrf.mxu0  ;;  %v2243_v60 = vadd.f32 %v2242_v32, %v2241_v28  ;;  %v2255_v28 = vadd.f32 %v2254_v52, %v2253_v50 }
 0x148   : > { %v2938_v62 = vpop.f32.mrf.mxu1 }
 0x149   : > { %3083 = vst [vmem:[#allocation9_spill] sm:$0xff] %v2938_v62  ;;  %v2198_v63 = vpop.f32.mrf.mxu0 }
 0x14a   : > { %v2940_v0 = vpop.f32.mrf.mxu1 }
 0x14b   : > { %3084 = vst [vmem:[#allocation10_spill] sm:$0xff] %v2940_v0  ;;  %v2199_v2 = vpop.f32.mrf.mxu0 }
 0x14c   : > { %v2942_v4 = vpop.f32.mrf.mxu1 }
 0x14d   : > { %3085 = vst [vmem:[#allocation11_spill] sm:$0xff] %v2942_v4  ;;  %v2201_v5 = vpop.f32.mrf.mxu0 }
 0x14e   : > { %v2944_v6 = vpop.f32.mrf.mxu1 }
 0x14f   : > { %3086 = vst [vmem:[#allocation12_spill] sm:$0xff] %v2944_v6  ;;  %v2202_v7 = vpop.f32.mrf.mxu0  ;;  %v2188_v6 = vadd.f32 %v2187_v46, %v2186_v44  ;;  %v2249_v44 = vadd.f32 %v2248_v42, %v2247_v40  ;;  %v2197_v46 = vadd.f32 %v2196_v61, %v2195_v58 }
 0x150   : > { %v2946_v8 = vpop.f32.mrf.mxu1 }
 0x151   : > { %3087 = vst [vmem:[#allocation13_spill] sm:$0xff] %v2946_v8  ;;  %v2204_v9 = vpop.f32.mrf.mxu0  ;;  %v2185_v8 = vadd.f32 %v2184_v41, %v2183_v39  ;;  %v1498_v33 = vadd.f32 %v2188_v6, %v2892_v51  ;;  %v2194_v51 = vadd.f32 %v2193_v55, %v2930_v53  ;;  %v3092_v53 = vld [vmem:[#allocation3_spill] sm:$0xff] }
 0x152   : > { %v2948_v12 = vpop.f32.mrf.mxu1 }
 0x153   : > { %3088 = vst [vmem:[#allocation14_spill] sm:$0xff] %v2948_v12  ;;  %v2205_v13 = vpop.f32.mrf.mxu0 }
 0x154   : > { %v2950_v14 = vpop.f32.mrf.mxu1  ;;  %v2206_v35 = vadd.f32 %v2205_v13, %v2204_v9 }
 0x155   : > { %3089 = vst [vmem:[#allocation15_spill] sm:$0xff] %v2950_v14  ;;  %v2207_v15 = vpop.f32.mrf.mxu0  ;;  %v2191_v14 = vadd.f32 %v2190_v18, %v2189_v49  ;;  %v2200_v49 = vadd.f32 %v2199_v2, %v2198_v63  ;;  %v2203_v18 = vadd.f32 %v2202_v7, %v2201_v5  ;;  %v3093_v63 = vld [vmem:[#allocation8_spill] sm:$0xff]  ;;  %v3094_v2 = vld [vmem:[#allocation9_spill] sm:$0xff] }
 0x156   : > { %v2271_v16 = vpop.f32.mrf.mxu1  ;;  %v2261_v5 = vadd.f32 %v3094_v2, %v3093_v63 }
 0x157   : > { %v2208_v17 = vpop.f32.mrf.mxu0  ;;  %v1503_v36 = vadd.f32 %v2191_v14, %v2895_v59  ;;  %v1519_v56 = vadd.f32 %v2203_v18, %v2907_v29 }
 0x158   : > { %v2272_v19 = vpop.f32.mrf.mxu1  ;;  %v2209_v39 = vadd.f32 %v2208_v17, %v2207_v15  ;;  %v3098_v7 = vld [vmem:[#allocation13_spill] sm:$0xff] }
 0x159   : > { %v2210_v22 = vpop.f32.mrf.mxu0  ;;  %v2976_v58 = vadd.f32 %v2255_v28, %v1503_v36  ;;  %v2273_v52 = vadd.f32 %v2272_v19, %v2271_v16  ;;  %v3103_v36 = vld [vmem:[#allocation4_spill] sm:$0xff]  ;;  %v3105_v28 = vld [vmem:[#allocation6_spill] sm:$0xff] }
 0x15a   : > { %v2952_v23 = vpop.f32.mrf.mxu1  ;;  %v1527_v59 = vadd.f32 %v2209_v39, %v2913_v47  ;;  %v1522_v47 = vadd.f32 %v2206_v35, %v2910_v38  ;;  %v3099_v38 = vld [vmem:[#allocation2_spill] sm:$0xff] }
 0x15b   : > { %3090 = vst [vmem:[#allocation16_spill] sm:$0xff] %v2952_v23  ;;  %v2211_v24 = vpop.f32.mrf.mxu0  ;;  %v1487_v23 = vadd.f32 %v2179_v1, %v2883_v27  ;;  %v2252_v1 = vadd.f32 %v2251_v48, %v2250_v45  ;;  %v2980_v45 = vadd.f32 %v2934_v57, %v2932_v54  ;;  %v1511_v48 = vadd.f32 %v2197_v46, %v2901_v11  ;;  %v3095_v54 = vld [vmem:[#allocation10_spill] sm:$0xff]  ;;  %v3096_v57 = vld [vmem:[#allocation11_spill] sm:$0xff]  ;;  %v3097_v11 = vld [vmem:[#allocation12_spill] sm:$0xff] }
 0x15c   : > { %v2275_v26 = vpop.f32.mrf.mxu1  ;;  %v2212_v3 = vadd.f32 %v2211_v24, %v2210_v22  ;;  %v2264_v6 = vadd.f32 %v3096_v57, %v3095_v54  ;;  %v3101_v13 = vld [vmem:[#allocation15_spill] sm:$0xff]  ;;  %v1624_v19 = vadd.f32 %v2273_v52, %v1527_v59 }
 0x15d   : > { %v2213_v10 = vpop.f32.mrf.mxu0  ;;  %v1584_v34 = vadd.f32 %v2243_v60, %v1487_v23  ;;  %v1595_v42 = vadd.f32 %v2252_v1, %v1498_v33  ;;  %v1608_v30 = vadd.f32 %v2261_v5, %v1511_v48 }
 0x15e   : > { %v2954_v31 = vpop.f32.mrf.mxu1  ;;  %v1530_v55 = vadd.f32 %v2212_v3, %v3092_v53 }
 0x15f   : > { %3091 = vst [vmem:[#allocation17_spill] sm:$0xff] %v2954_v31  ;;  %v2214_v21 = vpop.f32.mrf.mxu0  ;;  %v1495_v31 = vadd.f32 %v2185_v8, %v2889_v43 }
 0x160   : > { %v2956_v12 = vpop.f32.mrf.mxu1  ;;  %v2215_v60 = vadd.f32 %v2214_v21, %v2213_v10  ;;  %v3005_v10 = vadd.f32 %v2194_v51, %v3099_v38  ;;  %v3100_v21 = vld [vmem:[#allocation14_spill] sm:$0xff]  ;;  %v1760_v38 = vld [vmem:[%s3002_s29 + $0x8] sm:$0xff] }
 0x161   : > { %v2958_v4 = vpop.f32.mrf.mxu0  ;;  %v1592_v8 = vadd.f32 %v2249_v44, %v1495_v31  ;;  %v1514_v31 = vadd.f32 %v2200_v49, %v2904_v20  ;;  %v2267_v20 = vadd.f32 %v3098_v7, %v3097_v11  ;;  %v2270_v14 = vadd.f32 %v3101_v13, %v3100_v21 }
 0x162   : > { %v2960_v0 = vpop.f32.mrf.mxu1  ;;  %v3102_v15 = vld [vmem:[#allocation16_spill] sm:$0xff]  ;;  %v1535_v39 = vadd.f32 %v2215_v60, %v3103_v36 }
 0x163   : > { %v2962_v62 = vpop.f32.mrf.mxu0  ;;  %v2276_v16 = vadd.f32 %v2275_v26, %v3102_v15  ;;  %v1616_v24 = vadd.f32 %v2267_v20, %v1519_v56  ;;  %v3010_v33 = vadd.f32 %v2264_v6, %v1514_v31  ;;  %v1619_v18 = vadd.f32 %v2270_v14, %v1522_v47  ;;  %v1770_v6 = vld [vmem:[%s3002_s29 + $0x58] sm:$0xff] }
 0x164   : > { %v2967_v25 = vpop.f32.mrf.mxu1  ;;  %v2218_v59 = vadd.f32 %v2962_v62, %v2958_v4  ;;  %v3107_v14 = vld [vmem:[#allocation5_spill] sm:$0xff] }
 0x165   : > { %v2219_v41 = vpop.f32.mrf.mxu0  ;;  %v1627_v49 = vadd.f32 %v2276_v16, %v1530_v55  ;;  %v1767_v55 = vld [vmem:[%s3002_s29 + $0x40] sm:$0xff] }
 0x166   : > { %v2283_v27 = vpop.f32.mrf.mxu1  ;;  %v3104_v1 = vld [vmem:[#allocation17_spill] sm:$0xff]  ;;  %v1538_v15 = vadd.f32 %v2218_v59, %v3107_v14  ;;  %v1603_v59 = vadd.f32 %v2980_v45, %v3005_v10 }
 0x167   : > { %v2220_v43 = vpop.f32.mrf.mxu0  ;;  %v2279_v26 = vadd.f32 %v2956_v12, %v3104_v1  ;;  %v1759_v12 = vld [vmem:[%s3002_s29] sm:$0xff] }
 0x168   : > { %v2284_v32 = vpop.f32.mrf.mxu1  ;;  %v2221_v9 = vadd.f32 %v2220_v43, %v2219_v41  ;;  %v1761_v41 = vld [vmem:[%s3002_s29 + $0x10] sm:$0xff] }
 0x169   : > { %v2222_v40 = vpop.f32.mrf.mxu0  ;;  %v1769_v43 = vld [vmem:[%s3002_s29 + $0x50] sm:$0xff]  ;;  %v2285_v52 = vadd.f32 %v2284_v32, %v2283_v27  ;;  %v1632_v5 = vadd.f32 %v2279_v26, %v1535_v39 }
 0x16a   : > { %v2985_v50 = vpop.f32.mrf.mxu1  ;;  %v1543_v35 = vadd.f32 %v2221_v9, %v3105_v28  ;;  %v1765_v39 = vld [vmem:[%s3002_s29 + $0x30] sm:$0xff]  ;;  %v1763_v28 = vld [vmem:[%s3002_s29 + $0x20] sm:$0xff] }
 0x16b   : > { %v2223_v61 = vpop.f32.mrf.mxu0 }
 0x16c   : > { %v2995_v29 = vpop.f32.mrf.mxu1  ;;  %v2224_v48 = vadd.f32 %v2223_v61, %v2222_v40  ;;  %v1762_v61 = vld [vmem:[%s3002_s29 + $0x18] sm:$0xff]  ;;  %v1640_v11 = vadd.f32 %v2285_v52, %v1543_v35 }
 0x16d   : > { %v2323_v17 = vpop.f32.mrf.mxu0 }
 0x16e   : > { %v1689_v22 = vadd.f32 %v2323_v17, %v1592_v8  ;;  %v2331_v23 = vpop.f32.mrf.mxu1 }
 0x16f   : > { %v1721_v44 = vadd.f32 %v2331_v23, %v1624_v19  ;;  %v1680_v46 = vpop.f32.mrf.mxu0  ;;  %v2288_v23 = vadd.f32 %v2995_v29, %v2985_v50 }
 0x170   : > { %v1745_v3 = vmax.f32 %v1689_v22, 0.0  ;;  %v1681_v8 = vadd.f32 %v1680_v46, %v1584_v34  ;;  %v1712_v51 = vpop.f32.mrf.mxu1  ;;  %v2282_v46 = vadd.f32 %v2967_v25, %v2960_v0 }
 0x171   : > { %v1753_v31 = vmax.f32 %v1721_v44, 0.0  ;;  %v1713_v56 = vadd.f32 %v1712_v51, %v1616_v24  ;;  %v2324_v47 = vpop.f32.mrf.mxu0 }
 0x172   : > { %v1777_v34 = vmul.f32 %v1761_v41, %v1745_v3  ;;  %v1743_v53 = vmax.f32 %v1681_v8, 0.0  ;;  %v1692_v60 = vadd.f32 %v2324_v47, %v1595_v42  ;;  %v2332_v62 = vpop.f32.mrf.mxu1  ;;  %v3106_v42 = vld [vmem:[#allocation7_spill] sm:$0xff]  ;;  %v1771_v8 = vld [vmem:[%s3002_s29 + $0x60] sm:$0xff]  ;;  %v1635_v52 = vadd.f32 %v2282_v46, %v1538_v15 }
 0x173   : > { %v1785_v4 = vmul.f32 %v1769_v43, %v1753_v31  ;;  %v1751_v40 = vmax.f32 %v1713_v56, 0.0  ;;  %v1724_v63 = vadd.f32 %v2332_v62, %v1627_v49  ;;  %v1683_v2 = vpop.f32.mrf.mxu0  ;;  %v1546_v7 = vadd.f32 %v2224_v48, %v3106_v42  ;;  %v1764_v62 = vld [vmem:[%s3002_s29 + $0x28] sm:$0xff] }
 0x174   : > { %1793 = vst [vmem:[%s3025_s16 + $0x10] sm:$0xff] %v1777_v34  ;;  %v1775_v54 = vmul.f32 %v1759_v12, %v1743_v53  ;;  %v1746_v57 = vmax.f32 %v1692_v60, 0.0  ;;  %v1684_v27 = vadd.f32 %v1683_v2, %v2971_v37  ;;  %v1715_v32 = vpop.f32.mrf.mxu1  ;;  %v1768_v37 = vld [vmem:[%s3002_s29 + $0x48] sm:$0xff]  ;;  %v1766_v12 = vld [vmem:[%s3002_s29 + $0x38] sm:$0xff] }
 0x175   : > { %1801 = vst [vmem:[%s3025_s16 + $0x50] sm:$0xff] %v1785_v4  ;;  %v1783_v20 = vmul.f32 %v1767_v55, %v1751_v40  ;;  %v1754_v9 = vmax.f32 %v1724_v63, 0.0  ;;  %v1716_v21 = vadd.f32 %v1715_v32, %v1619_v18  ;;  %v2327_v13 = vpop.f32.mrf.mxu0  ;;  %v1773_v18 = vld [vmem:[%s3002_s29 + $0x70] sm:$0xff]  ;;  %v1643_v43 = vadd.f32 %v2288_v23, %v1546_v7  ;;  %v1772_v63 = vld [vmem:[%s3002_s29 + $0x68] sm:$0xff] }
 0x176   : > { %1791 = vst [vmem:[%s3025_s16] sm:$0xff] %v1775_v54  ;;  %v1778_v16 = vmul.f32 %v1762_v61, %v1746_v57  ;;  %v1744_v17 = vmax.f32 %v1684_v27, 0.0  ;;  %v1705_v19 = vadd.f32 %v2327_v13, %v1608_v30  ;;  %v2335_v22 = vpop.f32.mrf.mxu1 }
 0x177   : > { %1799 = vst [vmem:[%s3025_s16 + $0x40] sm:$0xff] %v1783_v20  ;;  %v1786_v24 = vmul.f32 %v1770_v6, %v1754_v9  ;;  %v1752_v36 = vmax.f32 %v1716_v21, 0.0  ;;  %v1737_v41 = vadd.f32 %v2335_v22, %v1640_v11  ;;  %v1696_v44 = vpop.f32.mrf.mxu0 }
 0x178   : > { %1794 = vst [vmem:[%s3025_s16 + $0x18] sm:$0xff] %v1778_v16  ;;  %v1776_v49 = vmul.f32 %v1760_v38, %v1744_v17  ;;  %v1749_v30 = vmax.f32 %v1705_v19, 0.0  ;;  %v1697_v1 = vadd.f32 %v1696_v44, %v2976_v58  ;;  %v1728_v50 = vpop.f32.mrf.mxu1 }
 0x179   : > { %1802 = vst [vmem:[%s3025_s16 + $0x58] sm:$0xff] %v1786_v24  ;;  %v1784_v29 = vmul.f32 %v1768_v37, %v1752_v36  ;;  %v1757_v26 = vmax.f32 %v1737_v41, 0.0  ;;  %v1729_v35 = vadd.f32 %v1728_v50, %v1632_v5  ;;  %v2328_v3 = vpop.f32.mrf.mxu0 }
 0x17a   : > { %1792 = vst [vmem:[%s3025_s16 + $0x8] sm:$0xff] %v1776_v49  ;;  %v1781_v0 = vmul.f32 %v1765_v39, %v1749_v30  ;;  %v1747_v25 = vmax.f32 %v1697_v1, 0.0  ;;  %v1708_v51 = vadd.f32 %v2328_v3, %v3010_v33  ;;  %v2336_v58 = vpop.f32.mrf.mxu1  ;;  %v1774_v33 = vld [vmem:[%s3002_s29 + $0x78] sm:$0xff] }
 0x17b   : > { %1800 = vst [vmem:[%s3025_s16 + $0x48] sm:$0xff] %v1784_v29  ;;  %v1789_v48 = vmul.f32 %v1773_v18, %v1757_v26  ;;  %v1755_v31 = vmax.f32 %v1729_v35, 0.0  ;;  %v1740_v56 = vadd.f32 %v2336_v58, %v1643_v43  ;;  %v1699_v47 = vpop.f32.mrf.mxu0 }
 0x17c   : > { %1797 = vst [vmem:[%s3025_s16 + $0x30] sm:$0xff] %v1781_v0  ;;  %v1779_v34 = vmul.f32 %v1763_v28, %v1747_v25  ;;  %v1750_v53 = vmax.f32 %v1708_v51, 0.0  ;;  %v1700_v55 = vadd.f32 %v1699_v47, %v1603_v59  ;;  %v1731_v60 = vpop.f32.mrf.mxu1 }
 0x17d   : > { %1805 = vst [vmem:[%s3025_s16 + $0x70] sm:$0xff] %v1789_v48  ;;  %v1787_v45 = vmul.f32 %v1771_v8, %v1755_v31  ;;  %v1758_v10 = vmax.f32 %v1740_v56, 0.0  ;;  %v1732_v4 = vadd.f32 %v1731_v60, %v1635_v52 }
 0x17e   : > { %1795 = vst [vmem:[%s3025_s16 + $0x20] sm:$0xff] %v1779_v34  ;;  %v1782_v40 = vmul.f32 %v1766_v12, %v1750_v53  ;;  %v1748_v61 = vmax.f32 %v1700_v55, 0.0 }
 0x17f   : > { %1803 = vst [vmem:[%s3025_s16 + $0x60] sm:$0xff] %v1787_v45  ;;  %v1790_v2 = vmul.f32 %v1774_v33, %v1758_v10  ;;  %v1756_v5 = vmax.f32 %v1732_v4, 0.0 }
 0x180   : > { %1798 = vst [vmem:[%s3025_s16 + $0x38] sm:$0xff] %v1782_v40  ;;  %v1780_v54 = vmul.f32 %v1764_v62, %v1748_v61 }
 0x181   : > { %1806 = vst [vmem:[%s3025_s16 + $0x78] sm:$0xff] %v1790_v2  ;;  %v1788_v57 = vmul.f32 %v1772_v63, %v1756_v5 }
 0x182   : > { %1796 = vst [vmem:[%s3025_s16 + $0x28] sm:$0xff] %v1780_v54 }
 0x183   : > { %1804 = vst [vmem:[%s3025_s16 + $0x68] sm:$0xff] %v1788_v57 }
 0x184 PF: > { %s14_s15 = sadd.s32 1, %s2544_s15  }
 0x185   : > { %p11_p4 = scmp.ge.s32.totalorder %s14_s15, 4  }
 0x187   :  { %13 = sbr.rel (!%p11_p4) target bundleno = 1 (0x1), region = 69 }

// kernel: redcm_d_forward.13
= control target key start
LH: loop header
LB: loop body
LE: loop exit
PB: predicated region body
PF: predicated region fallthrough
CT: control target
= control target key end

     0   :  { %s2571_s15 = smov 0   ;;  %s3071_s0 = inlined_call_operand.vmem [shape: bf16[256,1152], index: 0, kind: input, shape index: {}]   ;;  %s3072_s1 = inlined_call_operand.vmem [shape: bf16[1152,128], index: 1, kind: input, shape index: {}]   ;;  %s3073_s2 = inlined_call_operand.vmem [shape: f32[1,128], index: 2, kind: input, shape index: {}]   ;;  %s3074_s3 = inlined_call_operand.vmem [shape: f32[256,128], index: 3, kind: input, shape index: {}]   ;;  %s3075_s4 = inlined_call_operand.vmem [shape: f32[256,128], index: 4, kind: output, shape index: {}]  }
   0x1 LB: > { %s1875_s16 = sadd.s32 4294967295, %s2544_s15   ;;  %p1879_p0 = scmp.ge.s32.totalorder %s2544_s15, 1  ;;  %s2544_s15 = sphi %s2571_s15, %s14_s15  }
   0x2   : > { %p175_p1 = scmp.lt.s32.totalorder %s2544_s15, 3 }
   0x4   : > { %p176_p2 = pnand %p1879_p0, %p175_p1 }
   0x6   : > { %179 = sbr.rel (%p176_p2) target bundleno = 388 (0x184), region = 36 }
   0xb   : > { %v2362_v0 = vld [vmem:[%s3072_s1 + $0x78] sm:$0xff]   ;;  %v2366_v4 = vld [vmem:[%s3072_s1 + $0x70] sm:$0xff]   ;;  %v2370_v8 = vld [vmem:[%s3072_s1 + $0x68] sm:$0xff]   ;;  %s1880_s23 = sshll.u32 %s1875_s16, 4 }
   0xc   : > { %v2363_v1 = vld [vmem:[%s3072_s1 + $0xf8] sm:$0xff]   ;;  %2033 = vmatprep.subr.bf16.mxu0 %v2362_v0  ;;  %v2367_v5 = vld [vmem:[%s3072_s1 + $0xf0] sm:$0xff]   ;;  %v2371_v9 = vld [vmem:[%s3072_s1 + $0xe8] sm:$0xff]   ;;  %p208_p3 = scmp.lt.s32.totalorder %s1880_s23, 31 }
   0xd   : > { %v2364_v2 = vld [vmem:[%s3072_s1 + $0x38] sm:$0xff]   ;;  %2097 = vmatprep.subr.bf16.mxu1 %v2363_v1  ;;  %v2368_v6 = vld [vmem:[%s3072_s1 + $0x30] sm:$0xff]   ;;  %v2372_v10 = vld [vmem:[%s3072_s1 + $0x28] sm:$0xff]  }
   0xe   : > { %v2365_v3 = vld [vmem:[%s3072_s1 + $0xb8] sm:$0xff]   ;;  %2034 = vmatpush3.bf16.msra.mxu0 %v2364_v2  ;;  %v2369_v7 = vld [vmem:[%s3072_s1 + $0xb0] sm:$0xff]   ;;  %v2373_v11 = vld [vmem:[%s3072_s1 + $0xa8] sm:$0xff]   ;;  %s3109_s23 = smov (!%p208_p3, %s1880_s23), 31 }
   0xf   : > { %2098 = vmatpush3.bf16.msra.mxu1 %v2365_v3  ;;  %2035 = vmatprep.subr.bf16.mxu0 %v2366_v4  ;;  %v2374_v12 = vld [vmem:[%s3072_s1 + $0x60] sm:$0xff]   ;;  %v2378_v16 = vld [vmem:[%s3072_s1 + $0x58] sm:$0xff]   ;;  %v2382_v20 = vld [vmem:[%s3072_s1 + $0x50] sm:$0xff]   ;;  %s2353_s21 = smul.u32 36, %s3109_s23 }
  0x10   : > { %2099 = vmatprep.subr.bf16.mxu1 %v2367_v5  ;;  %v2375_v13 = vld [vmem:[%s3072_s1 + $0xe0] sm:$0xff]   ;;  %v2379_v17 = vld [vmem:[%s3072_s1 + $0xd8] sm:$0xff]   ;;  %v2383_v21 = vld [vmem:[%s3072_s1 + $0xd0] sm:$0xff]  }
  0x11   : > { %v2376_v14 = vld [vmem:[%s3072_s1 + $0x20] sm:$0xff]   ;;  %v2380_v18 = vld [vmem:[%s3072_s1 + $0x18] sm:$0xff]   ;;  %v2384_v22 = vld [vmem:[%s3072_s1 + $0x10] sm:$0xff]   ;;  %s2677_s6 = scalar_lea.vmem %s3071_s0, %s2353_s21 }
  0x12   : > { %2036 = vmatpush3.bf16.msra.mxu0 %v2368_v6  ;;  %v2377_v15 = vld [vmem:[%s3072_s1 + $0xa0] sm:$0xff]   ;;  %v2381_v19 = vld [vmem:[%s3072_s1 + $0x98] sm:$0xff]   ;;  %v2385_v23 = vld [vmem:[%s3072_s1 + $0x90] sm:$0xff]  }
  0x13   : > { %2100 = vmatpush3.bf16.msra.mxu1 %v2369_v7  ;;  %2037 = vmatprep.subr.bf16.mxu0 %v2370_v8  ;;  %v2386_v24 = vld [vmem:[%s3072_s1 + $0x48] sm:$0xff]   ;;  %v2390_v28 = vld [vmem:[%s3072_s1 + $0x40] sm:$0xff]   ;;  %v2400_v36 = vld [vmem:[%s3072_s1 + $0x178] sm:$0xff]  }
  0x14   : > { %2101 = vmatprep.subr.bf16.mxu1 %v2371_v9  ;;  %v2387_v25 = vld [vmem:[%s3072_s1 + $0xc8] sm:$0xff]   ;;  %v2391_v29 = vld [vmem:[%s3072_s1 + $0xc0] sm:$0xff]   ;;  %v2401_v37 = vld [vmem:[%s3072_s1 + $0x1f8] sm:$0xff]  }
  0x15   : > { %v2388_v26 = vld [vmem:[%s3072_s1 + $0x8] sm:$0xff]   ;;  %v2392_v30 = vld [vmem:[%s3072_s1] sm:$0xff]   ;;  %v2402_v38 = vld [vmem:[%s3072_s1 + $0x138] sm:$0xff]  }
  0x16   : > { %2038 = vmatpush3.bf16.msra.mxu0 %v2372_v10  ;;  %v2389_v27 = vld [vmem:[%s3072_s1 + $0x88] sm:$0xff]   ;;  %v2393_v31 = vld [vmem:[%s3072_s1 + $0x80] sm:$0xff]   ;;  %v2403_v39 = vld [vmem:[%s3072_s1 + $0x1b8] sm:$0xff]  }
  0x17   : > { %2102 = vmatpush3.bf16.msra.mxu1 %v2373_v11  ;;  %2039 = vmatprep.subr.bf16.mxu0 %v2374_v12  ;;  %v2394_v32 = vld [vmem:[%s2677_s6] ss:$36 sps:$4 sm:$0xff]   ;;  %v2397_v34 = vld [vmem:[%s2677_s6 + $0x8] ss:$36 sps:$4 sm:$0xff]   ;;  %v2406_v41 = vld [vmem:[%s2677_s6 + $0x54] ss:$36 sps:$4 sm:$0xff]  }
  0x18   : > { %2103 = vmatprep.subr.bf16.mxu1 %v2375_v13  ;;  %v2396_v33 = vld [vmem:[%s2677_s6 + $0x4] ss:$36 sps:$4 sm:$0xff]   ;;  %v2399_v35 = vld [vmem:[%s2677_s6 + $0xc] ss:$36 sps:$4 sm:$0xff]   ;;  %v2414_v48 = vld [vmem:[%s2677_s6 + $0x94] ss:$36 sps:$4 sm:$0xff]  }
  0x19   : > { %1290 = vmatprep.mubr.bf16.mxu0 %v2396_v33  ;;  %1387 = vmatprep.mubr.bf16.mxu1 %v2399_v35  ;;  %v2404_v40 = vld [vmem:[%s2677_s6 + $0x4c] ss:$36 sps:$4 sm:$0xff]   ;;  %v2416_v49 = vld [vmem:[%s2677_s6 + $0x9c] ss:$36 sps:$4 sm:$0xff]   ;;  %v2426_v57 = vld [vmem:[%s2677_s6 + $0xe4] ss:$36 sps:$4 sm:$0xff]  }
  0x1a   : > { %2040 = vmatpush3.bf16.msra.mxu0 %v2376_v14  ;;  %v2408_v42 = vld [vmem:[%s2677_s6 + $0x48] ss:$36 sps:$4 sm:$0xff]   ;;  %v2409_v43 = vld [vmem:[%s2677_s6 + $0x50] ss:$36 sps:$4 sm:$0xff]   ;;  %v2419_v51 = vld [vmem:[%s2677_s6 + $0x98] ss:$36 sps:$4 sm:$0xff]  }
  0x1b   : > { %2104 = vmatpush3.bf16.msra.mxu1 %v2377_v15  ;;  %2041 = vmatprep.subr.bf16.mxu0 %v2378_v16  ;;  %v2410_v44 = vld [vmem:[%s3072_s1 + $0x170] sm:$0xff]   ;;  %v2420_v52 = vld [vmem:[%s3072_s1 + $0x168] sm:$0xff]   ;;  %v2424_v56 = vld [vmem:[%s2677_s6 + $0xdc] ss:$36 sps:$4 sm:$0xff]  }
  0x1c   : > { %2105 = vmatprep.subr.bf16.mxu1 %v2379_v17  ;;  %v2411_v45 = vld [vmem:[%s3072_s1 + $0x1f0] sm:$0xff]   ;;  %v2421_v53 = vld [vmem:[%s3072_s1 + $0x1e8] sm:$0xff]   ;;  %v2428_v58 = vld [vmem:[%s2677_s6 + $0xd8] ss:$36 sps:$4 sm:$0xff]  }
  0x1d   : > { %v2412_v46 = vld [vmem:[%s3072_s1 + $0x130] sm:$0xff]   ;;  %v2422_v54 = vld [vmem:[%s3072_s1 + $0x128] sm:$0xff]   ;;  %v2429_v59 = vld [vmem:[%s2677_s6 + $0xe0] ss:$36 sps:$4 sm:$0xff]  }
  0x1e   : > { %2042 = vmatpush3.bf16.msra.mxu0 %v2380_v18  ;;  %v2413_v47 = vld [vmem:[%s3072_s1 + $0x1b0] sm:$0xff]   ;;  %v2423_v55 = vld [vmem:[%s3072_s1 + $0x1a8] sm:$0xff]   ;;  %v2430_v60 = vld [vmem:[%s3072_s1 + $0x160] sm:$0xff]  }
  0x1f   : > { %2106 = vmatpush3.bf16.msra.mxu1 %v2381_v19  ;;  %2043 = vmatprep.subr.bf16.mxu0 %v2382_v20  ;;  %v2418_v50 = vld [vmem:[%s2677_s6 + $0x90] ss:$36 sps:$4 sm:$0xff]   ;;  %v2431_v61 = vld [vmem:[%s3072_s1 + $0x1e0] sm:$0xff]   ;;  %v2440_v3 = vld [vmem:[%s3072_s1 + $0x158] sm:$0xff]  }
  0x20   : > { %2107 = vmatprep.subr.bf16.mxu1 %v2383_v21  ;;  %v2432_v62 = vld [vmem:[%s3072_s1 + $0x120] sm:$0xff]   ;;  %v2436_v1 = vld [vmem:[%s2677_s6 + $0x12c] ss:$36 sps:$4 sm:$0xff]   ;;  %v2441_v5 = vld [vmem:[%s3072_s1 + $0x1d8] sm:$0xff]  }
  0x21   : > { %v2433_v63 = vld [vmem:[%s3072_s1 + $0x1a0] sm:$0xff]   ;;  %v2439_v4 = vld [vmem:[%s2677_s6 + $0x128] ss:$36 sps:$4 sm:$0xff]   ;;  %v2442_v6 = vld [vmem:[%s3072_s1 + $0x118] sm:$0xff]  }
  0x22   : > { %2044 = vmatpush3.bf16.msra.mxu0 %v2384_v22  ;;  %v2434_v0 = vld [vmem:[%s2677_s6 + $0x124] ss:$36 sps:$4 sm:$0xff]   ;;  %v2443_v7 = vld [vmem:[%s3072_s1 + $0x198] sm:$0xff]   ;;  %v2444_v8 = vld [vmem:[%s2677_s6 + $0x16c] ss:$36 sps:$4 sm:$0xff]  }
  0x23   : > { %2108 = vmatpush3.bf16.msra.mxu1 %v2385_v23  ;;  %2045 = vmatprep.subr.bf16.mxu0 %v2386_v24  ;;  %v2438_v2 = vld [vmem:[%s2677_s6 + $0x120] ss:$36 sps:$4 sm:$0xff]   ;;  %v2446_v9 = vld [vmem:[%s2677_s6 + $0x174] ss:$36 sps:$4 sm:$0xff]   ;;  %v2448_v12 = vld [vmem:[%s2677_s6 + $0x168] ss:$36 sps:$4 sm:$0xff]  }
  0x24   : > { %2109 = vmatprep.subr.bf16.mxu1 %v2387_v25  ;;  %v2450_v10 = vld [vmem:[%s3072_s1 + $0x150] sm:$0xff]   ;;  %v2456_v17 = vld [vmem:[%s2677_s6 + $0x1bc] ss:$36 sps:$4 sm:$0xff]   ;;  %v2460_v18 = vld [vmem:[%s3072_s1 + $0x148] sm:$0xff]  }
  0x25   : > { %v2451_v11 = vld [vmem:[%s3072_s1 + $0x1d0] sm:$0xff]   ;;  %v2461_v19 = vld [vmem:[%s3072_s1 + $0x1c8] sm:$0xff]   ;;  %v2459_v23 = vld [vmem:[%s2677_s6 + $0x1b8] ss:$36 sps:$4 sm:$0xff]  }
  0x26   : > { %2046 = vmatpush3.bf16.msra.mxu0 %v2388_v26  ;;  %v2452_v13 = vld [vmem:[%s3072_s1 + $0x110] sm:$0xff]   ;;  %v2462_v20 = vld [vmem:[%s3072_s1 + $0x108] sm:$0xff]   ;;  %v2464_v24 = vld [vmem:[%s2677_s6 + $0x1fc] ss:$36 sps:$4 sm:$0xff]  }
  0x27   : > { %2110 = vmatpush3.bf16.msra.mxu1 %v2389_v27  ;;  %2047 = vmatprep.subr.bf16.mxu0 %v2390_v28  ;;  %v2453_v14 = vld [vmem:[%s3072_s1 + $0x190] sm:$0xff]   ;;  %v2463_v21 = vld [vmem:[%s3072_s1 + $0x188] sm:$0xff]   ;;  %v2470_v26 = vld [vmem:[%s3072_s1 + $0x140] sm:$0xff]  }
  0x28   : > { %2111 = vmatprep.subr.bf16.mxu1 %v2391_v29  ;;  %v2449_v15 = vld [vmem:[%s2677_s6 + $0x170] ss:$36 sps:$4 sm:$0xff]   ;;  %v2466_v25 = vld [vmem:[%s2677_s6 + $0x204] ss:$36 sps:$4 sm:$0xff]  }
  0x29   : > { %v2454_v16 = vld [vmem:[%s2677_s6 + $0x1b4] ss:$36 sps:$4 sm:$0xff]   ;;  %v2471_v27 = vld [vmem:[%s3072_s1 + $0x1c0] sm:$0xff]  }
  0x2a   : > { %2048 = vmatpush3.bf16.msra.mxu0 %v2392_v30  ;;  %v2458_v22 = vld [vmem:[%s2677_s6 + $0x1b0] ss:$36 sps:$4 sm:$0xff]   ;;  %v2472_v28 = vld [vmem:[%s3072_s1 + $0x100] sm:$0xff]   ;;  %v2468_v30 = vld [vmem:[%s2677_s6 + $0x1f8] ss:$36 sps:$4 sm:$0xff]  }
  0x2b   : > { %2112 = vmatpush3.bf16.msra.mxu1 %v2393_v31  ;;  %2161 = vmatprep.subr.bf16.mxu0 %v2400_v36  ;;  %v2473_v29 = vld [vmem:[%s3072_s1 + $0x180] sm:$0xff]   ;;  %v2476_v33 = vld [vmem:[%s2677_s6 + $0x14] ss:$36 sps:$4 sm:$0xff]  }
  0x2c   : > { %2225 = vmatprep.subr.bf16.mxu1 %v2401_v37  ;;  %v2469_v31 = vld [vmem:[%s2677_s6 + $0x200] ss:$36 sps:$4 sm:$0xff]   ;;  %v2474_v35 = vld [vmem:[%s2677_s6 + $0x10] ss:$36 sps:$4 sm:$0xff]   ;;  %v2477_v36 = vld [vmem:[%s2677_s6 + $0x18] ss:$36 sps:$4 sm:$0xff]  }
  0x2d   : > { %1291 = vmatmul.mubr.bf16.vlgmr.msra.gmra.mxu0 %v2394_v32  ;;  %v2480_v32 = vld [vmem:[%s3072_s1 + $0x238] sm:$0xff]  }
  0x2e   : > { %1388 = vmatmul.mubr.bf16.vlgmr.msra.gmra.mxu1 %v2397_v34  ;;  %2162 = vmatpush3.bf16.msra.mxu0 %v2402_v38  ;;  %v2479_v34 = vld [vmem:[%s2677_s6 + $0x1c] ss:$36 sps:$4 sm:$0xff]   ;;  %v2483_v38 = vld [vmem:[%s2677_s6 + $0x64] ss:$36 sps:$4 sm:$0xff]  }
  0x2f   : > { %2226 = vmatpush3.bf16.msra.mxu1 %v2403_v39  ;;  %1298 = vmatprep.mubr.bf16.mxu0 %v2404_v40  ;;  %v2481_v37 = vld [vmem:[%s2677_s6 + $0x5c] ss:$36 sps:$4 sm:$0xff]   ;;  %v2487_v39 = vld [vmem:[%s3072_s1 + $0x230] sm:$0xff]   ;;  %v2494_v40 = vld [vmem:[%s3072_s1 + $0x228] sm:$0xff]  }
  0x30   : > { %1395 = vmatprep.mubr.bf16.mxu1 %v2406_v41  ;;  %2163 = vmatprep.subr.bf16.mxu0 %v2410_v44  ;;  %v2485_v41 = vld [vmem:[%s2677_s6 + $0x58] ss:$36 sps:$4 sm:$0xff]   ;;  %v2490_v44 = vld [vmem:[%s2677_s6 + $0xac] ss:$36 sps:$4 sm:$0xff]  }
  0x31   : > { %2227 = vmatprep.subr.bf16.mxu1 %v2411_v45  ;;  %v2501_v45 = vld [vmem:[%s3072_s1 + $0x220] sm:$0xff]  }
  0x32   : > { %2164 = vmatpush3.bf16.msra.mxu0 %v2412_v46  ;;  %v2508_v46 = vld [vmem:[%s3072_s1 + $0x218] sm:$0xff]  }
  0x33   : > { %2228 = vmatpush3.bf16.msra.mxu1 %v2413_v47  ;;  %2165 = vmatprep.subr.bf16.mxu0 %v2420_v52  ;;  %v2492_v47 = vld [vmem:[%s2677_s6 + $0xa0] ss:$36 sps:$4 sm:$0xff]   ;;  %v2499_v52 = vld [vmem:[%s2677_s6 + $0xe8] ss:$36 sps:$4 sm:$0xff]  }
  0x34   : > { %2229 = vmatprep.subr.bf16.mxu1 %v2421_v53  ;;  %v2522_v53 = vld [vmem:[%s3072_s1 + $0x208] sm:$0xff]  }
  0x35   : > { %1299 = vmatmul.mubr.bf16.gmra.mxu0 %v2408_v42  ;;  %v2486_v42 = vld [vmem:[%s2677_s6 + $0x60] ss:$36 sps:$4 sm:$0xff]  }
  0x36   : > { %1396 = vmatmul.mubr.bf16.gmra.mxu1 %v2409_v43  ;;  %1306 = vmatprep.mubr.bf16.mxu0 %v2414_v48  ;;  %v2488_v43 = vld [vmem:[%s2677_s6 + $0xa4] ss:$36 sps:$4 sm:$0xff]  }
  0x37   : > { %1403 = vmatprep.mubr.bf16.mxu1 %v2416_v49  ;;  %2166 = vmatpush3.bf16.msra.mxu0 %v2422_v54  ;;  %v2493_v48 = vld [vmem:[%s2677_s6 + $0xa8] ss:$36 sps:$4 sm:$0xff]   ;;  %v2500_v54 = vld [vmem:[%s2677_s6 + $0xf0] ss:$36 sps:$4 sm:$0xff]  }
  0x38   : > { %2230 = vmatpush3.bf16.msra.mxu1 %v2423_v55  ;;  %2167 = vmatprep.subr.bf16.mxu0 %v2430_v60  ;;  %v2495_v49 = vld [vmem:[%s2677_s6 + $0xec] ss:$36 sps:$4 sm:$0xff]   ;;  %v2502_v55 = vld [vmem:[%s2677_s6 + $0x134] ss:$36 sps:$4 sm:$0xff]   ;;  %v2509_v60 = vld [vmem:[%s2677_s6 + $0x17c] ss:$36 sps:$4 sm:$0xff]  }
  0x39   : > { %2231 = vmatprep.subr.bf16.mxu1 %v2431_v61  ;;  %v2511_v61 = vld [vmem:[%s2677_s6 + $0x184] ss:$36 sps:$4 sm:$0xff]  }
  0x3b   : > { %2168 = vmatpush3.bf16.msra.mxu0 %v2432_v62  ;;  %v2513_v62 = vld [vmem:[%s2677_s6 + $0x178] ss:$36 sps:$4 sm:$0xff]  }
  0x3c   : > { %2232 = vmatpush3.bf16.msra.mxu1 %v2433_v63  ;;  %2169 = vmatprep.subr.bf16.mxu0 %v2440_v3  ;;  %v2514_v63 = vld [vmem:[%s2677_s6 + $0x180] ss:$36 sps:$4 sm:$0xff]   ;;  %v2521_v3 = vld [vmem:[%s2677_s6 + $0x1c8] ss:$36 sps:$4 sm:$0xff]  }
  0x3d   : > { %1307 = vmatmul.mubr.bf16.gmra.mxu0 %v2418_v50  ;;  %2233 = vmatprep.subr.bf16.mxu1 %v2441_v5  ;;  %v2497_v50 = vld [vmem:[%s2677_s6 + $0xf4] ss:$36 sps:$4 sm:$0xff]  }
  0x3e   : > { %1404 = vmatmul.mubr.bf16.gmra.mxu1 %v2419_v51  ;;  %1314 = vmatprep.mubr.bf16.mxu0 %v2424_v56  ;;  %v2515_v51 = vld [vmem:[%s3072_s1 + $0x210] sm:$0xff]   ;;  %v2504_v56 = vld [vmem:[%s2677_s6 + $0x13c] ss:$36 sps:$4 sm:$0xff]  }
  0x3f   : > { %1411 = vmatprep.mubr.bf16.mxu1 %v2426_v57  ;;  %2170 = vmatpush3.bf16.msra.mxu0 %v2442_v6  ;;  %v2529_v57 = vld [vmem:[%s3072_s1 + $0x200] sm:$0xff]   ;;  %v2525_v5 = vld [vmem:[%s2677_s6 + $0x214] ss:$36 sps:$4 sm:$0xff]   ;;  %v2527_v6 = vld [vmem:[%s2677_s6 + $0x208] ss:$36 sps:$4 sm:$0xff]  }
  0x40   : > { %2234 = vmatpush3.bf16.msra.mxu1 %v2443_v7  ;;  %2171 = vmatprep.subr.bf16.mxu0 %v2450_v10  ;;  %v2528_v7 = vld [vmem:[%s2677_s6 + $0x210] ss:$36 sps:$4 sm:$0xff]   ;;  %v2532_v10 = vld [vmem:[%s2677_s6 + $0x68] ss:$36 sps:$4 sm:$0xff]  }
  0x41   : > { %2235 = vmatprep.subr.bf16.mxu1 %v2451_v11  ;;  %v2533_v11 = vld [vmem:[%s2677_s6 + $0x188] ss:$36 sps:$4 sm:$0xff]  }
  0x43   : > { %2172 = vmatpush3.bf16.msra.mxu0 %v2452_v13  ;;  %v2535_v13 = vld [vmem:[%s2677_s6 + $0x1d0] ss:$36 sps:$4 sm:$0xff]  }
  0x44   : > { %2236 = vmatpush3.bf16.msra.mxu1 %v2453_v14  ;;  %2173 = vmatprep.subr.bf16.mxu0 %v2460_v18  ;;  %v2536_v14 = vld [vmem:[%s2677_s6 + $0xf8] ss:$36 sps:$4 sm:$0xff]   ;;  %v2880_v18 = vld [vmem:[%s3073_s2] ss:$0 sm:$0xff] }
  0x45   : > { %1315 = vmatmul.mubr.bf16.gmra.mxu0 %v2428_v58  ;;  %2237 = vmatprep.subr.bf16.mxu1 %v2461_v19  ;;  %v2506_v58 = vld [vmem:[%s2677_s6 + $0x130] ss:$36 sps:$4 sm:$0xff]  }
  0x46   : > { %1412 = vmatmul.mubr.bf16.gmra.mxu1 %v2429_v59  ;;  %1322 = vmatprep.mubr.bf16.mxu0 %v2434_v0  ;;  %v2507_v59 = vld [vmem:[%s2677_s6 + $0x138] ss:$36 sps:$4 sm:$0xff]   ;;  %v2516_v0 = vld [vmem:[%s2677_s6 + $0x1c4] ss:$36 sps:$4 sm:$0xff]  }
  0x47   : > { %1419 = vmatprep.mubr.bf16.mxu1 %v2436_v1  ;;  %2174 = vmatpush3.bf16.msra.mxu0 %v2462_v20  ;;  %v2518_v1 = vld [vmem:[%s2677_s6 + $0x1cc] ss:$36 sps:$4 sm:$0xff]  }
  0x48   : > { %2238 = vmatpush3.bf16.msra.mxu1 %v2463_v21  ;;  %2175 = vmatprep.subr.bf16.mxu0 %v2470_v26 }
  0x49   : > { %2239 = vmatprep.subr.bf16.mxu1 %v2471_v27 }
  0x4b   : > { %2176 = vmatpush3.bf16.msra.mxu0 %v2472_v28 }
  0x4c   : > { %2240 = vmatpush3.bf16.msra.mxu1 %v2473_v29  ;;  %2305 = vmatprep.subr.bf16.mxu0 %v2480_v32 }
  0x4d   : > { %1323 = vmatmul.mubr.bf16.gmra.mxu0 %v2438_v2  ;;  %2337 = vmatprep.subr.bf16.mxu1 %v2480_v32  ;;  %v2520_v2 = vld [vmem:[%s2677_s6 + $0x1c0] ss:$36 sps:$4 sm:$0xff]  }
  0x4e   : > { %1420 = vmatmul.mubr.bf16.gmra.mxu1 %v2439_v4  ;;  %1330 = vmatprep.mubr.bf16.mxu0 %v2444_v8  ;;  %v2523_v4 = vld [vmem:[%s2677_s6 + $0x20c] ss:$36 sps:$4 sm:$0xff]   ;;  %v2530_v8 = vld [vmem:[%s2677_s6 + $0x20] ss:$36 sps:$4 sm:$0xff]  }
  0x4f   : > { %1427 = vmatprep.mubr.bf16.mxu1 %v2446_v9  ;;  %v2531_v9 = vld [vmem:[%s2677_s6 + $0x140] ss:$36 sps:$4 sm:$0xff]  }
  0x55   : > { %1331 = vmatmul.mubr.bf16.gmra.mxu0 %v2448_v12  ;;  %v2534_v12 = vld [vmem:[%s2677_s6 + $0xb0] ss:$36 sps:$4 sm:$0xff]  }
  0x56   : > { %1428 = vmatmul.mubr.bf16.gmra.mxu1 %v2449_v15  ;;  %1338 = vmatprep.mubr.bf16.mxu0 %v2454_v16  ;;  %v2537_v15 = vld [vmem:[%s2677_s6 + $0x218] ss:$36 sps:$4 sm:$0xff]   ;;  %s1883_s6 = sshll.u32 %s3109_s23, 3 }
  0x57   : > { %1435 = vmatprep.mubr.bf16.mxu1 %v2456_v17  ;;  %s3002_s29 = scalar_lea.vmem %s3074_s3, %s1883_s6  ;;  %s3025_s16 = scalar_lea.vmem %s3075_s4, %s1883_s6 }
  0x5d   : > { %1339 = vmatmul.mubr.bf16.gmra.mxu0 %v2458_v22 }
  0x5e   : > { %1436 = vmatmul.mubr.bf16.gmra.mxu1 %v2459_v23  ;;  %1346 = vmatprep.mubr.bf16.mxu0 %v2464_v24 }
  0x5f   : > { %1443 = vmatprep.mubr.bf16.mxu1 %v2466_v25 }
  0x65   : > { %1347 = vmatmul.mubr.bf16.gmra.mxu0 %v2468_v30 }
  0x66   : > { %1444 = vmatmul.mubr.bf16.gmra.mxu1 %v2469_v31  ;;  %1484 = vmatprep.mubr.bf16.mxu0 %v2476_v33 }
  0x67   : > { %1581 = vmatprep.mubr.bf16.mxu1 %v2479_v34 }
  0x6d   : > { %1485 = vmatmul.mubr.bf16.vlgmr.msra.gmra.mxu0 %v2474_v35 }
  0x6e   : > { %1582 = vmatmul.mubr.bf16.vlgmr.msra.gmra.mxu1 %v2477_v36  ;;  %2306 = vmatpush3.bf16.msra.mxu0 %v2480_v32 }
  0x6f   : > { %2345 = vmatpush3.bf16.msra.mxu1 %v2480_v32  ;;  %1492 = vmatprep.mubr.bf16.mxu0 %v2481_v37 }
  0x70   : > { %1589 = vmatprep.mubr.bf16.mxu1 %v2483_v38  ;;  %2307 = vmatprep.subr.bf16.mxu0 %v2487_v39 }
  0x71   : > { %2338 = vmatprep.subr.bf16.mxu1 %v2487_v39 }
  0x72   : > { %2308 = vmatpush3.bf16.msra.mxu0 %v2487_v39 }
  0x73   : > { %2346 = vmatpush3.bf16.msra.mxu1 %v2487_v39  ;;  %2309 = vmatprep.subr.bf16.mxu0 %v2494_v40 }
  0x74   : > { %2339 = vmatprep.subr.bf16.mxu1 %v2494_v40 }
  0x75   : > { %1493 = vmatmul.mubr.bf16.gmra.mxu0 %v2485_v41 }
  0x76   : > { %1590 = vmatmul.mubr.bf16.gmra.mxu1 %v2486_v42  ;;  %1500 = vmatprep.mubr.bf16.mxu0 %v2488_v43 }
  0x77   : > { %1597 = vmatprep.mubr.bf16.mxu1 %v2490_v44  ;;  %2310 = vmatpush3.bf16.msra.mxu0 %v2494_v40 }
  0x78   : > { %2347 = vmatpush3.bf16.msra.mxu1 %v2494_v40  ;;  %2311 = vmatprep.subr.bf16.mxu0 %v2501_v45 }
  0x79   : > { %2340 = vmatprep.subr.bf16.mxu1 %v2501_v45 }
  0x7b   : > { %2312 = vmatpush3.bf16.msra.mxu0 %v2501_v45 }
  0x7c   : > { %2348 = vmatpush3.bf16.msra.mxu1 %v2501_v45  ;;  %2313 = vmatprep.subr.bf16.mxu0 %v2508_v46 }
  0x7d   : > { %1501 = vmatmul.mubr.bf16.gmra.mxu0 %v2492_v47  ;;  %2341 = vmatprep.subr.bf16.mxu1 %v2508_v46 }
  0x7e   : > { %1598 = vmatmul.mubr.bf16.gmra.mxu1 %v2493_v48  ;;  %1508 = vmatprep.mubr.bf16.mxu0 %v2495_v49 }
  0x7f   : > { %1605 = vmatprep.mubr.bf16.mxu1 %v2497_v50  ;;  %2314 = vmatpush3.bf16.msra.mxu0 %v2508_v46 }
  0x80   : > { %2349 = vmatpush3.bf16.msra.mxu1 %v2508_v46  ;;  %2315 = vmatprep.subr.bf16.mxu0 %v2515_v51 }
  0x81   : > { %2342 = vmatprep.subr.bf16.mxu1 %v2515_v51 }
  0x83   : > { %2316 = vmatpush3.bf16.msra.mxu0 %v2515_v51 }
  0x84   : > { %2350 = vmatpush3.bf16.msra.mxu1 %v2515_v51  ;;  %2317 = vmatprep.subr.bf16.mxu0 %v2522_v53 }
  0x85   : > { %1509 = vmatmul.mubr.bf16.gmra.mxu0 %v2499_v52  ;;  %2343 = vmatprep.subr.bf16.mxu1 %v2522_v53 }
  0x86   : > { %1606 = vmatmul.mubr.bf16.gmra.mxu1 %v2500_v54  ;;  %1516 = vmatprep.mubr.bf16.mxu0 %v2502_v55 }
  0x87   : > { %1613 = vmatprep.mubr.bf16.mxu1 %v2504_v56  ;;  %2318 = vmatpush3.bf16.msra.mxu0 %v2522_v53 }
  0x88   : > { %2351 = vmatpush3.bf16.msra.mxu1 %v2522_v53  ;;  %2319 = vmatprep.subr.bf16.mxu0 %v2529_v57 }
  0x89   : > { %2344 = vmatprep.subr.bf16.mxu1 %v2529_v57 }
  0x8b   : > { %2320 = vmatpush3.bf16.msra.mxu0 %v2529_v57 }
  0x8c   : > { %2352 = vmatpush3.bf16.msra.mxu1 %v2529_v57 }
  0x8d   : > { %1517 = vmatmul.mubr.bf16.gmra.mxu0 %v2506_v58 }
  0x8e   : > { %1614 = vmatmul.mubr.bf16.gmra.mxu1 %v2507_v59  ;;  %1524 = vmatprep.mubr.bf16.mxu0 %v2509_v60 }
  0x8f   : > { %1621 = vmatprep.mubr.bf16.mxu1 %v2511_v61 }
  0x95   : > { %1525 = vmatmul.mubr.bf16.gmra.mxu0 %v2513_v62 }
  0x96   : > { %1622 = vmatmul.mubr.bf16.gmra.mxu1 %v2514_v63  ;;  %1532 = vmatprep.mubr.bf16.mxu0 %v2516_v0 }
  0x97   : > { %1629 = vmatprep.mubr.bf16.mxu1 %v2518_v1 }
  0x9d   : > { %1533 = vmatmul.mubr.bf16.gmra.mxu0 %v2520_v2 }
  0x9e   : > { %1630 = vmatmul.mubr.bf16.gmra.mxu1 %v2521_v3  ;;  %1540 = vmatprep.mubr.bf16.mxu0 %v2523_v4 }
  0x9f   : > { %1637 = vmatprep.mubr.bf16.mxu1 %v2525_v5 }
  0xa5   : > { %1541 = vmatmul.mubr.bf16.gmra.mxu0 %v2527_v6 }
  0xa6   : > { %1638 = vmatmul.mubr.bf16.gmra.mxu1 %v2528_v7  ;;  %2321 = vmatprep.mubr.bf16.mxu0 %v2530_v8 }
  0xa7   : > { %2329 = vmatprep.mubr.bf16.mxu1 %v2531_v9 }
  0xad   : > { %2322 = vmatmul.mubr.bf16.vlgmr.msra.gmra.mxu0 %v2532_v10 }
  0xae   : > { %2330 = vmatmul.mubr.bf16.vlgmr.msra.gmra.mxu1 %v2533_v11  ;;  %2325 = vmatprep.mubr.bf16.mxu0 %v2534_v12 }
  0xaf   : > { %2333 = vmatprep.mubr.bf16.mxu1 %v2535_v13 }
  0xb5   : > { %2326 = vmatmul.mubr.bf16.gmra.mxu0 %v2536_v14 }
  0xb6   : > { %2334 = vmatmul.mubr.bf16.gmra.mxu1 %v2537_v15 }
  0xed   : > { %v2049_v16 = vpop.f32.mrf.mxu0 }
  0xee   : > { %v2113_v17 = vpop.f32.mrf.mxu1 }
  0xef   : > { %v2050_v19 = vpop.f32.mrf.mxu0 }
  0xf0   : > { %v2051_v20 = vadd.f32 %v2050_v19, %v2049_v16  ;;  %v2114_v21 = vpop.f32.mrf.mxu1 }
  0xf1   : > { %v2115_v22 = vadd.f32 %v2114_v21, %v2113_v17  ;;  %v2052_v23 = vpop.f32.mrf.mxu0 }
  0xf2   : > { %v1293_v24 = vadd.f32 %v2051_v20, %v2880_v18  ;;  %v2116_v25 = vpop.f32.mrf.mxu1 }
  0xf3   : > { %v2053_v26 = vpop.f32.mrf.mxu0 }
  0xf4   : > { %v2883_v27 = vadd.f32 %v2115_v22, %v1293_v24  ;;  %v2054_v28 = vadd.f32 %v2053_v26, %v2052_v23  ;;  %v2117_v29 = vpop.f32.mrf.mxu1 }
  0xf5   : > { %v2118_v30 = vadd.f32 %v2117_v29, %v2116_v25  ;;  %v2055_v31 = vpop.f32.mrf.mxu0 }
  0xf6   : > { %v1296_v32 = vadd.f32 %v2054_v28, %v2880_v18  ;;  %v2119_v33 = vpop.f32.mrf.mxu1 }
  0xf7   : > { %v2056_v34 = vpop.f32.mrf.mxu0 }
  0xf8   : > { %v2886_v35 = vadd.f32 %v2118_v30, %v1296_v32  ;;  %v2057_v36 = vadd.f32 %v2056_v34, %v2055_v31  ;;  %v2120_v37 = vpop.f32.mrf.mxu1 }
  0xf9   : > { %v2121_v38 = vadd.f32 %v2120_v37, %v2119_v33  ;;  %v2058_v39 = vpop.f32.mrf.mxu0 }
  0xfa   : > { %v1301_v40 = vadd.f32 %v2057_v36, %v2880_v18  ;;  %v2122_v41 = vpop.f32.mrf.mxu1 }
  0xfb   : > { %v2059_v42 = vpop.f32.mrf.mxu0 }
  0xfc   : > { %v2889_v43 = vadd.f32 %v2121_v38, %v1301_v40  ;;  %v2060_v44 = vadd.f32 %v2059_v42, %v2058_v39  ;;  %v2123_v45 = vpop.f32.mrf.mxu1 }
  0xfd   : > { %v2124_v46 = vadd.f32 %v2123_v45, %v2122_v41  ;;  %v2061_v47 = vpop.f32.mrf.mxu0 }
  0xfe   : > { %v1304_v48 = vadd.f32 %v2060_v44, %v2880_v18  ;;  %v2125_v49 = vpop.f32.mrf.mxu1 }
  0xff   : > { %v2062_v50 = vpop.f32.mrf.mxu0 }
 0x100   : > { %v2892_v51 = vadd.f32 %v2124_v46, %v1304_v48  ;;  %v2063_v52 = vadd.f32 %v2062_v50, %v2061_v47  ;;  %v2126_v53 = vpop.f32.mrf.mxu1 }
 0x101   : > { %v2127_v54 = vadd.f32 %v2126_v53, %v2125_v49  ;;  %v2064_v55 = vpop.f32.mrf.mxu0 }
 0x102   : > { %v1309_v56 = vadd.f32 %v2063_v52, %v2880_v18  ;;  %v2128_v57 = vpop.f32.mrf.mxu1 }
 0x103   : > { %v2065_v58 = vpop.f32.mrf.mxu0 }
 0x104   : > { %v2895_v59 = vadd.f32 %v2127_v54, %v1309_v56  ;;  %v2066_v60 = vadd.f32 %v2065_v58, %v2064_v55  ;;  %v2129_v61 = vpop.f32.mrf.mxu1 }
 0x105   : > { %v2130_v62 = vadd.f32 %v2129_v61, %v2128_v57  ;;  %v2067_v63 = vpop.f32.mrf.mxu0 }
 0x106   : > { %v1312_v0 = vadd.f32 %v2066_v60, %v2880_v18  ;;  %v2131_v1 = vpop.f32.mrf.mxu1 }
 0x107   : > { %v2068_v2 = vpop.f32.mrf.mxu0 }
 0x108   : > { %v2898_v3 = vadd.f32 %v2130_v62, %v1312_v0  ;;  %v2069_v4 = vadd.f32 %v2068_v2, %v2067_v63  ;;  %v2132_v5 = vpop.f32.mrf.mxu1 }
 0x109   : > { %v2133_v6 = vadd.f32 %v2132_v5, %v2131_v1  ;;  %v2070_v7 = vpop.f32.mrf.mxu0 }
 0x10a   : > { %3076 = vst [vmem:[#allocation2_spill] sm:$0xff] %v2898_v3  ;;  %v1317_v8 = vadd.f32 %v2069_v4, %v2880_v18  ;;  %v2134_v9 = vpop.f32.mrf.mxu1 }
 0x10b   : > { %v2071_v10 = vpop.f32.mrf.mxu0 }
 0x10c   : > { %v2901_v11 = vadd.f32 %v2133_v6, %v1317_v8  ;;  %v2072_v12 = vadd.f32 %v2071_v10, %v2070_v7  ;;  %v2135_v13 = vpop.f32.mrf.mxu1 }
 0x10d   : > { %v2136_v14 = vadd.f32 %v2135_v13, %v2134_v9  ;;  %v2073_v15 = vpop.f32.mrf.mxu0 }
 0x10e   : > { %v1320_v16 = vadd.f32 %v2072_v12, %v2880_v18  ;;  %v2137_v17 = vpop.f32.mrf.mxu1 }
 0x10f   : > { %v2074_v19 = vpop.f32.mrf.mxu0 }
 0x110   : > { %v2904_v20 = vadd.f32 %v2136_v14, %v1320_v16  ;;  %v2075_v21 = vadd.f32 %v2074_v19, %v2073_v15  ;;  %v2138_v22 = vpop.f32.mrf.mxu1 }
 0x111   : > { %v2139_v23 = vadd.f32 %v2138_v22, %v2137_v17  ;;  %v2076_v24 = vpop.f32.mrf.mxu0 }
 0x112   : > { %v1325_v25 = vadd.f32 %v2075_v21, %v2880_v18  ;;  %v2140_v26 = vpop.f32.mrf.mxu1 }
 0x113   : > { %v2077_v28 = vpop.f32.mrf.mxu0 }
 0x114   : > { %v2907_v29 = vadd.f32 %v2139_v23, %v1325_v25  ;;  %v2078_v30 = vadd.f32 %v2077_v28, %v2076_v24  ;;  %v2141_v31 = vpop.f32.mrf.mxu1 }
 0x115   : > { %v2142_v32 = vadd.f32 %v2141_v31, %v2140_v26  ;;  %v2079_v33 = vpop.f32.mrf.mxu0 }
 0x116   : > { %v1328_v34 = vadd.f32 %v2078_v30, %v2880_v18  ;;  %v2143_v36 = vpop.f32.mrf.mxu1 }
 0x117   : > { %v2080_v37 = vpop.f32.mrf.mxu0 }
 0x118   : > { %v2910_v38 = vadd.f32 %v2142_v32, %v1328_v34  ;;  %v2081_v39 = vadd.f32 %v2080_v37, %v2079_v33  ;;  %v2144_v40 = vpop.f32.mrf.mxu1 }
 0x119   : > { %v2145_v41 = vadd.f32 %v2144_v40, %v2143_v36  ;;  %v2082_v42 = vpop.f32.mrf.mxu0 }
 0x11a   : > { %v1333_v44 = vadd.f32 %v2081_v39, %v2880_v18  ;;  %v2146_v45 = vpop.f32.mrf.mxu1 }
 0x11b   : > { %v2083_v46 = vpop.f32.mrf.mxu0 }
 0x11c   : > { %v2913_v47 = vadd.f32 %v2145_v41, %v1333_v44  ;;  %v2084_v48 = vadd.f32 %v2083_v46, %v2082_v42  ;;  %v2147_v49 = vpop.f32.mrf.mxu1 }
 0x11d   : > { %v2148_v50 = vadd.f32 %v2147_v49, %v2146_v45  ;;  %v2085_v52 = vpop.f32.mrf.mxu0 }
 0x11e   : > { %v1336_v53 = vadd.f32 %v2084_v48, %v2880_v18  ;;  %v2149_v54 = vpop.f32.mrf.mxu1 }
 0x11f   : > { %v2086_v55 = vpop.f32.mrf.mxu0 }
 0x120   : > { %v2916_v56 = vadd.f32 %v2148_v50, %v1336_v53  ;;  %v2087_v57 = vadd.f32 %v2086_v55, %v2085_v52  ;;  %v2150_v58 = vpop.f32.mrf.mxu1 }
 0x121   : > { %v2151_v60 = vadd.f32 %v2150_v58, %v2149_v54  ;;  %v2088_v61 = vpop.f32.mrf.mxu0 }
 0x122   : > { %3077 = vst [vmem:[#allocation3_spill] sm:$0xff] %v2916_v56  ;;  %v1341_v62 = vadd.f32 %v2087_v57, %v2880_v18  ;;  %v2152_v63 = vpop.f32.mrf.mxu1 }
 0x123   : > { %v2089_v0 = vpop.f32.mrf.mxu0 }
 0x124   : > { %v2919_v1 = vadd.f32 %v2151_v60, %v1341_v62  ;;  %v2090_v2 = vadd.f32 %v2089_v0, %v2088_v61  ;;  %v2153_v4 = vpop.f32.mrf.mxu1 }
 0x125   : > { %v2154_v5 = vadd.f32 %v2153_v4, %v2152_v63  ;;  %v2091_v6 = vpop.f32.mrf.mxu0 }
 0x126   : > { %3078 = vst [vmem:[#allocation4_spill] sm:$0xff] %v2919_v1  ;;  %v1344_v7 = vadd.f32 %v2090_v2, %v2880_v18  ;;  %v2155_v8 = vpop.f32.mrf.mxu1 }
 0x127   : > { %v2092_v9 = vpop.f32.mrf.mxu0 }
 0x128   : > { %v2922_v10 = vadd.f32 %v2154_v5, %v1344_v7  ;;  %v2093_v12 = vadd.f32 %v2092_v9, %v2091_v6  ;;  %v2156_v13 = vpop.f32.mrf.mxu1 }
 0x129   : > { %v2157_v14 = vadd.f32 %v2156_v13, %v2155_v8  ;;  %v2094_v15 = vpop.f32.mrf.mxu0 }
 0x12a   : > { %3079 = vst [vmem:[#allocation5_spill] sm:$0xff] %v2922_v10  ;;  %v1349_v16 = vadd.f32 %v2093_v12, %v2880_v18  ;;  %v2158_v17 = vpop.f32.mrf.mxu1 }
 0x12b   : > { %v2095_v19 = vpop.f32.mrf.mxu0 }
 0x12c   : > { %v2925_v21 = vadd.f32 %v2157_v14, %v1349_v16  ;;  %v2096_v22 = vadd.f32 %v2095_v19, %v2094_v15  ;;  %v2159_v23 = vpop.f32.mrf.mxu1 }
 0x12d   : > { %v2160_v24 = vadd.f32 %v2159_v23, %v2158_v17  ;;  %v2177_v25 = vpop.f32.mrf.mxu0 }
 0x12e   : > { %3080 = vst [vmem:[#allocation6_spill] sm:$0xff] %v2925_v21  ;;  %v1352_v26 = vadd.f32 %v2096_v22, %v2880_v18  ;;  %v2241_v28 = vpop.f32.mrf.mxu1 }
 0x12f   : > { %v2178_v30 = vpop.f32.mrf.mxu0 }
 0x130   : > { %v2928_v31 = vadd.f32 %v2160_v24, %v1352_v26  ;;  %v2242_v32 = vpop.f32.mrf.mxu1  ;;  %v2179_v1 = vadd.f32 %v2178_v30, %v2177_v25 }
 0x131   : > { %v2180_v33 = vpop.f32.mrf.mxu0 }
 0x132   : > { %3081 = vst [vmem:[#allocation7_spill] sm:$0xff] %v2928_v31  ;;  %v2244_v34 = vpop.f32.mrf.mxu1 }
 0x133   : > { %v2181_v36 = vpop.f32.mrf.mxu0 }
 0x134   : > { %v2245_v37 = vpop.f32.mrf.mxu1  ;;  %v2182_v3 = vadd.f32 %v2181_v36, %v2180_v33 }
 0x135   : > { %v2183_v39 = vpop.f32.mrf.mxu0  ;;  %v2246_v30 = vadd.f32 %v2245_v37, %v2244_v34 }
 0x136   : > { %v2247_v40 = vpop.f32.mrf.mxu1  ;;  %v1490_v56 = vadd.f32 %v2182_v3, %v2886_v35 }
 0x137   : > { %v2184_v41 = vpop.f32.mrf.mxu0 }
 0x138   : > { %v2248_v42 = vpop.f32.mrf.mxu1  ;;  %v2971_v37 = vadd.f32 %v2246_v30, %v1490_v56 }
 0x139   : > { %v2186_v44 = vpop.f32.mrf.mxu0 }
 0x13a   : > { %v2250_v45 = vpop.f32.mrf.mxu1 }
 0x13b   : > { %v2187_v46 = vpop.f32.mrf.mxu0 }
 0x13c   : > { %v2251_v48 = vpop.f32.mrf.mxu1 }
 0x13d   : > { %v2189_v49 = vpop.f32.mrf.mxu0 }
 0x13e   : > { %v2253_v50 = vpop.f32.mrf.mxu1 }
 0x13f   : > { %v2190_v18 = vpop.f32.mrf.mxu0 }
 0x140   : > { %v2254_v52 = vpop.f32.mrf.mxu1 }
 0x141   : > { %v2930_v53 = vpop.f32.mrf.mxu0 }
 0x142   : > { %v2932_v54 = vpop.f32.mrf.mxu1 }
 0x143   : > { %v2193_v55 = vpop.f32.mrf.mxu0 }
 0x144   : > { %v2934_v57 = vpop.f32.mrf.mxu1 }
 0x145   : > { %v2195_v58 = vpop.f32.mrf.mxu0 }
 0x146   : > { %v2936_v60 = vpop.f32.mrf.mxu1 }
 0x147   : > { %3082 = vst [vmem:[#allocation8_spill] sm:$0xff] %v2936_v60  ;;  %v2196_v61 = vpop.f32.mrf.mxu0  ;;  %v2243_v60 = vadd.f32 %v2242_v32, %v2241_v28  ;;  %v2255_v28 = vadd.f32 %v2254_v52, %v2253_v50 }
 0x148   : > { %v2938_v62 = vpop.f32.mrf.mxu1 }
 0x149   : > { %3083 = vst [vmem:[#allocation9_spill] sm:$0xff] %v2938_v62  ;;  %v2198_v63 = vpop.f32.mrf.mxu0 }
 0x14a   : > { %v2940_v0 = vpop.f32.mrf.mxu1 }
 0x14b   : > { %3084 = vst [vmem:[#allocation10_spill] sm:$0xff] %v2940_v0  ;;  %v2199_v2 = vpop.f32.mrf.mxu0 }
 0x14c   : > { %v2942_v4 = vpop.f32.mrf.mxu1 }
 0x14d   : > { %3085 = vst [vmem:[#allocation11_spill] sm:$0xff] %v2942_v4  ;;  %v2201_v5 = vpop.f32.mrf.mxu0 }
 0x14e   : > { %v2944_v6 = vpop.f32.mrf.mxu1 }
 0x14f   : > { %3086 = vst [vmem:[#allocation12_spill] sm:$0xff] %v2944_v6  ;;  %v2202_v7 = vpop.f32.mrf.mxu0  ;;  %v2188_v6 = vadd.f32 %v2187_v46, %v2186_v44  ;;  %v2249_v44 = vadd.f32 %v2248_v42, %v2247_v40  ;;  %v2197_v46 = vadd.f32 %v2196_v61, %v2195_v58 }
 0x150   : > { %v2946_v8 = vpop.f32.mrf.mxu1 }
 0x151   : > { %3087 = vst [vmem:[#allocation13_spill] sm:$0xff] %v2946_v8  ;;  %v2204_v9 = vpop.f32.mrf.mxu0  ;;  %v2185_v8 = vadd.f32 %v2184_v41, %v2183_v39  ;;  %v1498_v33 = vadd.f32 %v2188_v6, %v2892_v51  ;;  %v2194_v51 = vadd.f32 %v2193_v55, %v2930_v53  ;;  %v3092_v53 = vld [vmem:[#allocation3_spill] sm:$0xff] }
 0x152   : > { %v2948_v12 = vpop.f32.mrf.mxu1 }
 0x153   : > { %3088 = vst [vmem:[#allocation14_spill] sm:$0xff] %v2948_v12  ;;  %v2205_v13 = vpop.f32.mrf.mxu0 }
 0x154   : > { %v2950_v14 = vpop.f32.mrf.mxu1  ;;  %v2206_v35 = vadd.f32 %v2205_v13, %v2204_v9 }
 0x155   : > { %3089 = vst [vmem:[#allocation15_spill] sm:$0xff] %v2950_v14  ;;  %v2207_v15 = vpop.f32.mrf.mxu0  ;;  %v2191_v14 = vadd.f32 %v2190_v18, %v2189_v49  ;;  %v2200_v49 = vadd.f32 %v2199_v2, %v2198_v63  ;;  %v2203_v18 = vadd.f32 %v2202_v7, %v2201_v5  ;;  %v3093_v63 = vld [vmem:[#allocation8_spill] sm:$0xff]  ;;  %v3094_v2 = vld [vmem:[#allocation9_spill] sm:$0xff] }
 0x156   : > { %v2271_v16 = vpop.f32.mrf.mxu1  ;;  %v2261_v5 = vadd.f32 %v3094_v2, %v3093_v63 }
 0x157   : > { %v2208_v17 = vpop.f32.mrf.mxu0  ;;  %v1503_v36 = vadd.f32 %v2191_v14, %v2895_v59  ;;  %v1519_v56 = vadd.f32 %v2203_v18, %v2907_v29 }
 0x158   : > { %v2272_v19 = vpop.f32.mrf.mxu1  ;;  %v2209_v39 = vadd.f32 %v2208_v17, %v2207_v15  ;;  %v3098_v7 = vld [vmem:[#allocation13_spill] sm:$0xff] }
 0x159   : > { %v2210_v22 = vpop.f32.mrf.mxu0  ;;  %v2976_v58 = vadd.f32 %v2255_v28, %v1503_v36  ;;  %v2273_v52 = vadd.f32 %v2272_v19, %v2271_v16  ;;  %v3103_v36 = vld [vmem:[#allocation4_spill] sm:$0xff]  ;;  %v3105_v28 = vld [vmem:[#allocation6_spill] sm:$0xff] }
 0x15a   : > { %v2952_v23 = vpop.f32.mrf.mxu1  ;;  %v1527_v59 = vadd.f32 %v2209_v39, %v2913_v47  ;;  %v1522_v47 = vadd.f32 %v2206_v35, %v2910_v38  ;;  %v3099_v38 = vld [vmem:[#allocation2_spill] sm:$0xff] }
 0x15b   : > { %3090 = vst [vmem:[#allocation16_spill] sm:$0xff] %v2952_v23  ;;  %v2211_v24 = vpop.f32.mrf.mxu0  ;;  %v1487_v23 = vadd.f32 %v2179_v1, %v2883_v27  ;;  %v2252_v1 = vadd.f32 %v2251_v48, %v2250_v45  ;;  %v2980_v45 = vadd.f32 %v2934_v57, %v2932_v54  ;;  %v1511_v48 = vadd.f32 %v2197_v46, %v2901_v11  ;;  %v3095_v54 = vld [vmem:[#allocation10_spill] sm:$0xff]  ;;  %v3096_v57 = vld [vmem:[#allocation11_spill] sm:$0xff]  ;;  %v3097_v11 = vld [vmem:[#allocation12_spill] sm:$0xff] }
 0x15c   : > { %v2275_v26 = vpop.f32.mrf.mxu1  ;;  %v2212_v3 = vadd.f32 %v2211_v24, %v2210_v22  ;;  %v2264_v6 = vadd.f32 %v3096_v57, %v3095_v54  ;;  %v3101_v13 = vld [vmem:[#allocation15_spill] sm:$0xff]  ;;  %v1624_v19 = vadd.f32 %v2273_v52, %v1527_v59 }
 0x15d   : > { %v2213_v10 = vpop.f32.mrf.mxu0  ;;  %v1584_v34 = vadd.f32 %v2243_v60, %v1487_v23  ;;  %v1595_v42 = vadd.f32 %v2252_v1, %v1498_v33  ;;  %v1608_v30 = vadd.f32 %v2261_v5, %v1511_v48 }
 0x15e   : > { %v2954_v31 = vpop.f32.mrf.mxu1  ;;  %v1530_v55 = vadd.f32 %v2212_v3, %v3092_v53 }
 0x15f   : > { %3091 = vst [vmem:[#allocation17_spill] sm:$0xff] %v2954_v31  ;;  %v2214_v21 = vpop.f32.mrf.mxu0  ;;  %v1495_v31 = vadd.f32 %v2185_v8, %v2889_v43 }
 0x160   : > { %v2956_v12 = vpop.f32.mrf.mxu1  ;;  %v2215_v60 = vadd.f32 %v2214_v21, %v2213_v10  ;;  %v3005_v10 = vadd.f32 %v2194_v51, %v3099_v38  ;;  %v3100_v21 = vld [vmem:[#allocation14_spill] sm:$0xff]  ;;  %v1760_v38 = vld [vmem:[%s3002_s29 + $0x8] sm:$0xff] }
 0x161   : > { %v2958_v4 = vpop.f32.mrf.mxu0  ;;  %v1592_v8 = vadd.f32 %v2249_v44, %v1495_v31  ;;  %v1514_v31 = vadd.f32 %v2200_v49, %v2904_v20  ;;  %v2267_v20 = vadd.f32 %v3098_v7, %v3097_v11  ;;  %v2270_v14 = vadd.f32 %v3101_v13, %v3100_v21 }
 0x162   : > { %v2960_v0 = vpop.f32.mrf.mxu1  ;;  %v3102_v15 = vld [vmem:[#allocation16_spill] sm:$0xff]  ;;  %v1535_v39 = vadd.f32 %v2215_v60, %v3103_v36 }
 0x163   : > { %v2962_v62 = vpop.f32.mrf.mxu0  ;;  %v2276_v16 = vadd.f32 %v2275_v26, %v3102_v15  ;;  %v1616_v24 = vadd.f32 %v2267_v20, %v1519_v56  ;;  %v3010_v33 = vadd.f32 %v2264_v6, %v1514_v31  ;;  %v1619_v18 = vadd.f32 %v2270_v14, %v1522_v47  ;;  %v1770_v6 = vld [vmem:[%s3002_s29 + $0x58] sm:$0xff] }
 0x164   : > { %v2967_v25 = vpop.f32.mrf.mxu1  ;;  %v2218_v59 = vadd.f32 %v2962_v62, %v2958_v4  ;;  %v3107_v14 = vld [vmem:[#allocation5_spill] sm:$0xff] }
 0x165   : > { %v2219_v41 = vpop.f32.mrf.mxu0  ;;  %v1627_v49 = vadd.f32 %v2276_v16, %v1530_v55  ;;  %v1767_v55 = vld [vmem:[%s3002_s29 + $0x40] sm:$0xff] }
 0x166   : > { %v2283_v27 = vpop.f32.mrf.mxu1  ;;  %v3104_v1 = vld [vmem:[#allocation17_spill] sm:$0xff]  ;;  %v1538_v15 = vadd.f32 %v2218_v59, %v3107_v14  ;;  %v1603_v59 = vadd.f32 %v2980_v45, %v3005_v10 }
 0x167   : > { %v2220_v43 = vpop.f32.mrf.mxu0  ;;  %v2279_v26 = vadd.f32 %v2956_v12, %v3104_v1  ;;  %v1759_v12 = vld [vmem:[%s3002_s29] sm:$0xff] }
 0x168   : > { %v2284_v32 = vpop.f32.mrf.mxu1  ;;  %v2221_v9 = vadd.f32 %v2220_v43, %v2219_v41  ;;  %v1761_v41 = vld [vmem:[%s3002_s29 + $0x10] sm:$0xff] }
 0x169   : > { %v2222_v40 = vpop.f32.mrf.mxu0  ;;  %v1769_v43 = vld [vmem:[%s3002_s29 + $0x50] sm:$0xff]  ;;  %v2285_v52 = vadd.f32 %v2284_v32, %v2283_v27  ;;  %v1632_v5 = vadd.f32 %v2279_v26, %v1535_v39 }
 0x16a   : > { %v2985_v50 = vpop.f32.mrf.mxu1  ;;  %v1543_v35 = vadd.f32 %v2221_v9, %v3105_v28  ;;  %v1765_v39 = vld [vmem:[%s3002_s29 + $0x30] sm:$0xff]  ;;  %v1763_v28 = vld [vmem:[%s3002_s29 + $0x20] sm:$0xff] }
 0x16b   : > { %v2223_v61 = vpop.f32.mrf.mxu0 }
 0x16c   : > { %v2995_v29 = vpop.f32.mrf.mxu1  ;;  %v2224_v48 = vadd.f32 %v2223_v61, %v2222_v40  ;;  %v1762_v61 = vld [vmem:[%s3002_s29 + $0x18] sm:$0xff]  ;;  %v1640_v11 = vadd.f32 %v2285_v52, %v1543_v35 }
 0x16d   : > { %v2323_v17 = vpop.f32.mrf.mxu0 }
 0x16e   : > { %v1689_v22 = vadd.f32 %v2323_v17, %v1592_v8  ;;  %v2331_v23 = vpop.f32.mrf.mxu1 }
 0x16f   : > { %v1721_v44 = vadd.f32 %v2331_v23, %v1624_v19  ;;  %v1680_v46 = vpop.f32.mrf.mxu0  ;;  %v2288_v23 = vadd.f32 %v2995_v29, %v2985_v50 }
 0x170   : > { %v1745_v3 = vmax.f32 %v1689_v22, 0.0  ;;  %v1681_v8 = vadd.f32 %v1680_v46, %v1584_v34  ;;  %v1712_v51 = vpop.f32.mrf.mxu1  ;;  %v2282_v46 = vadd.f32 %v2967_v25, %v2960_v0 }
 0x171   : > { %v1753_v31 = vmax.f32 %v1721_v44, 0.0  ;;  %v1713_v56 = vadd.f32 %v1712_v51, %v1616_v24  ;;  %v2324_v47 = vpop.f32.mrf.mxu0 }
 0x172   : > { %v1777_v34 = vadd.f32 %v1761_v41, %v1745_v3  ;;  %v1743_v53 = vmax.f32 %v1681_v8, 0.0  ;;  %v1692_v60 = vadd.f32 %v2324_v47, %v1595_v42  ;;  %v2332_v62 = vpop.f32.mrf.mxu1  ;;  %v3106_v42 = vld [vmem:[#allocation7_spill] sm:$0xff]  ;;  %v1771_v8 = vld [vmem:[%s3002_s29 + $0x60] sm:$0xff]  ;;  %v1635_v52 = vadd.f32 %v2282_v46, %v1538_v15 }
 0x173   : > { %v1785_v4 = vadd.f32 %v1769_v43, %v1753_v31  ;;  %v1751_v40 = vmax.f32 %v1713_v56, 0.0  ;;  %v1724_v63 = vadd.f32 %v2332_v62, %v1627_v49  ;;  %v1683_v2 = vpop.f32.mrf.mxu0  ;;  %v1546_v7 = vadd.f32 %v2224_v48, %v3106_v42  ;;  %v1764_v62 = vld [vmem:[%s3002_s29 + $0x28] sm:$0xff] }
 0x174   : > { %1793 = vst [vmem:[%s3025_s16 + $0x10] sm:$0xff] %v1777_v34  ;;  %v1775_v54 = vadd.f32 %v1759_v12, %v1743_v53  ;;  %v1746_v57 = vmax.f32 %v1692_v60, 0.0  ;;  %v1684_v27 = vadd.f32 %v1683_v2, %v2971_v37  ;;  %v1715_v32 = vpop.f32.mrf.mxu1  ;;  %v1768_v37 = vld [vmem:[%s3002_s29 + $0x48] sm:$0xff]  ;;  %v1766_v12 = vld [vmem:[%s3002_s29 + $0x38] sm:$0xff] }
 0x175   : > { %1801 = vst [vmem:[%s3025_s16 + $0x50] sm:$0xff] %v1785_v4  ;;  %v1783_v20 = vadd.f32 %v1767_v55, %v1751_v40  ;;  %v1754_v9 = vmax.f32 %v1724_v63, 0.0  ;;  %v1716_v21 = vadd.f32 %v1715_v32, %v1619_v18  ;;  %v2327_v13 = vpop.f32.mrf.mxu0  ;;  %v1773_v18 = vld [vmem:[%s3002_s29 + $0x70] sm:$0xff]  ;;  %v1643_v43 = vadd.f32 %v2288_v23, %v1546_v7  ;;  %v1772_v63 = vld [vmem:[%s3002_s29 + $0x68] sm:$0xff] }
 0x176   : > { %1791 = vst [vmem:[%s3025_s16] sm:$0xff] %v1775_v54  ;;  %v1778_v16 = vadd.f32 %v1762_v61, %v1746_v57  ;;  %v1744_v17 = vmax.f32 %v1684_v27, 0.0  ;;  %v1705_v19 = vadd.f32 %v2327_v13, %v1608_v30  ;;  %v2335_v22 = vpop.f32.mrf.mxu1 }
 0x177   : > { %1799 = vst [vmem:[%s3025_s16 + $0x40] sm:$0xff] %v1783_v20  ;;  %v1786_v24 = vadd.f32 %v1770_v6, %v1754_v9  ;;  %v1752_v36 = vmax.f32 %v1716_v21, 0.0  ;;  %v1737_v41 = vadd.f32 %v2335_v22, %v1640_v11  ;;  %v1696_v44 = vpop.f32.mrf.mxu0 }
 0x178   : > { %1794 = vst [vmem:[%s3025_s16 + $0x18] sm:$0xff] %v1778_v16  ;;  %v1776_v49 = vadd.f32 %v1760_v38, %v1744_v17  ;;  %v1749_v30 = vmax.f32 %v1705_v19, 0.0  ;;  %v1697_v1 = vadd.f32 %v1696_v44, %v2976_v58  ;;  %v1728_v50 = vpop.f32.mrf.mxu1 }
 0x179   : > { %1802 = vst [vmem:[%s3025_s16 + $0x58] sm:$0xff] %v1786_v24  ;;  %v1784_v29 = vadd.f32 %v1768_v37, %v1752_v36  ;;  %v1757_v26 = vmax.f32 %v1737_v41, 0.0  ;;  %v1729_v35 = vadd.f32 %v1728_v50, %v1632_v5  ;;  %v2328_v3 = vpop.f32.mrf.mxu0 }
 0x17a   : > { %1792 = vst [vmem:[%s3025_s16 + $0x8] sm:$0xff] %v1776_v49  ;;  %v1781_v0 = vadd.f32 %v1765_v39, %v1749_v30  ;;  %v1747_v25 = vmax.f32 %v1697_v1, 0.0  ;;  %v1708_v51 = vadd.f32 %v2328_v3, %v3010_v33  ;;  %v2336_v58 = vpop.f32.mrf.mxu1  ;;  %v1774_v33 = vld [vmem:[%s3002_s29 + $0x78] sm:$0xff] }
 0x17b   : > { %1800 = vst [vmem:[%s3025_s16 + $0x48] sm:$0xff] %v1784_v29  ;;  %v1789_v48 = vadd.f32 %v1773_v18, %v1757_v26  ;;  %v1755_v31 = vmax.f32 %v1729_v35, 0.0  ;;  %v1740_v56 = vadd.f32 %v2336_v58, %v1643_v43  ;;  %v1699_v47 = vpop.f32.mrf.mxu0 }
 0x17c   : > { %1797 = vst [vmem:[%s3025_s16 + $0x30] sm:$0xff] %v1781_v0  ;;  %v1779_v34 = vadd.f32 %v1763_v28, %v1747_v25  ;;  %v1750_v53 = vmax.f32 %v1708_v51, 0.0  ;;  %v1700_v55 = vadd.f32 %v1699_v47, %v1603_v59  ;;  %v1731_v60 = vpop.f32.mrf.mxu1 }
 0x17d   : > { %1805 = vst [vmem:[%s3025_s16 + $0x70] sm:$0xff] %v1789_v48  ;;  %v1787_v45 = vadd.f32 %v1771_v8, %v1755_v31  ;;  %v1758_v10 = vmax.f32 %v1740_v56, 0.0  ;;  %v1732_v4 = vadd.f32 %v1731_v60, %v1635_v52 }
 0x17e   : > { %1795 = vst [vmem:[%s3025_s16 + $0x20] sm:$0xff] %v1779_v34  ;;  %v1782_v40 = vadd.f32 %v1766_v12, %v1750_v53  ;;  %v1748_v61 = vmax.f32 %v1700_v55, 0.0 }
 0x17f   : > { %1803 = vst [vmem:[%s3025_s16 + $0x60] sm:$0xff] %v1787_v45  ;;  %v1790_v2 = vadd.f32 %v1774_v33, %v1758_v10  ;;  %v1756_v5 = vmax.f32 %v1732_v4, 0.0 }
 0x180   : > { %1798 = vst [vmem:[%s3025_s16 + $0x38] sm:$0xff] %v1782_v40  ;;  %v1780_v54 = vadd.f32 %v1764_v62, %v1748_v61 }
 0x181   : > { %1806 = vst [vmem:[%s3025_s16 + $0x78] sm:$0xff] %v1790_v2  ;;  %v1788_v57 = vadd.f32 %v1772_v63, %v1756_v5 }
 0x182   : > { %1796 = vst [vmem:[%s3025_s16 + $0x28] sm:$0xff] %v1780_v54 }
 0x183   : > { %1804 = vst [vmem:[%s3025_s16 + $0x68] sm:$0xff] %v1788_v57 }
 0x184 PF: > { %s14_s15 = sadd.s32 1, %s2544_s15  }
 0x185   : > { %p11_p4 = scmp.ge.s32.totalorder %s14_s15, 4  }
 0x187   :  { %13 = sbr.rel (!%p11_p4) target bundleno = 1 (0x1), region = 69 }

// kernel: redcm_d_forward.15
= control target key start
LH: loop header
LB: loop body
LE: loop exit
PB: predicated region body
PF: predicated region fallthrough
CT: control target
= control target key end

     0   :  { %s6568_s12 = smov 0   ;;  %s7911_s0 = inlined_call_operand.vmem [shape: bf16[256,3456], index: 0, kind: input, shape index: {}]   ;;  %s7912_s1 = inlined_call_operand.vmem [shape: bf16[3456,128], index: 1, kind: input, shape index: {}]   ;;  %s7913_s2 = inlined_call_operand.vmem [shape: f32[1,128], index: 2, kind: input, shape index: {}]   ;;  %s7914_s3 = inlined_call_operand.vmem [shape: f32[256,128], index: 3, kind: output, shape index: {}]  }
   0x1 LB: > { %s4671_s13 = sadd.s32 4294967295, %s6546_s12   ;;  %p4675_p0 = scmp.ge.s32.totalorder %s6546_s12, 1  ;;  %s6546_s12 = sphi %s6568_s12, %s13_s12  }
   0x2   : > { %p139_p1 = scmp.lt.s32.totalorder %s6546_s12, 3 }
   0x4   : > { %p140_p2 = pnand %p4675_p0, %p139_p1 }
   0x6   : > { %143 = sbr.rel (%p140_p2) target bundleno = 692 (0x2b4), region = 32 }
   0xb   : > { %v6004_v0 = vld [vmem:[%s7912_s1 + $0x78] sm:$0xff]   ;;  %v6008_v4 = vld [vmem:[%s7912_s1 + $0x70] sm:$0xff]   ;;  %v6012_v8 = vld [vmem:[%s7912_s1 + $0x68] sm:$0xff]   ;;  %s4676_s17 = sshll.u32 %s4671_s13, 4 }
   0xc   : > { %v6005_v1 = vld [vmem:[%s7912_s1 + $0x38] sm:$0xff]   ;;  %5115 = vmatprep.subr.bf16.mxu0 %v6004_v0  ;;  %v6009_v5 = vld [vmem:[%s7912_s1 + $0x30] sm:$0xff]   ;;  %v6013_v9 = vld [vmem:[%s7912_s1 + $0x28] sm:$0xff]   ;;  %p165_p3 = scmp.lt.s32.totalorder %s4676_s17, 31 }
   0xd   : > { %v6006_v2 = vld [vmem:[%s7912_s1 + $0xf8] sm:$0xff]   ;;  %5116 = vmatpush3.bf16.msra.mxu0 %v6005_v1  ;;  %v6010_v6 = vld [vmem:[%s7912_s1 + $0xf0] sm:$0xff]   ;;  %v6014_v10 = vld [vmem:[%s7912_s1 + $0xe8] sm:$0xff]  }
   0xe   : > { %v6007_v3 = vld [vmem:[%s7912_s1 + $0xb8] sm:$0xff]   ;;  %5179 = vmatprep.subr.bf16.mxu1 %v6006_v2  ;;  %5117 = vmatprep.subr.bf16.mxu0 %v6008_v4  ;;  %v6011_v7 = vld [vmem:[%s7912_s1 + $0xb0] sm:$0xff]   ;;  %v6015_v11 = vld [vmem:[%s7912_s1 + $0xa8] sm:$0xff]   ;;  %s7970_s17 = smov (!%p165_p3, %s4676_s17), 31 }
   0xf   : > { %5180 = vmatpush3.bf16.msra.mxu1 %v6007_v3  ;;  %v6016_v12 = vld [vmem:[%s7912_s1 + $0x60] sm:$0xff]   ;;  %v6020_v16 = vld [vmem:[%s7912_s1 + $0x58] sm:$0xff]   ;;  %v6024_v20 = vld [vmem:[%s7912_s1 + $0x50] sm:$0xff]   ;;  %s5995_s14 = smul.u32 108, %s7970_s17 }
  0x10   : > { %5181 = vmatprep.subr.bf16.mxu1 %v6010_v6  ;;  %v6017_v13 = vld [vmem:[%s7912_s1 + $0x20] sm:$0xff]   ;;  %v6021_v17 = vld [vmem:[%s7912_s1 + $0x18] sm:$0xff]   ;;  %v6025_v21 = vld [vmem:[%s7912_s1 + $0x10] sm:$0xff]  }
  0x11   : > { %5118 = vmatpush3.bf16.msra.mxu0 %v6009_v5  ;;  %v6018_v14 = vld [vmem:[%s7912_s1 + $0xe0] sm:$0xff]   ;;  %v6022_v18 = vld [vmem:[%s7912_s1 + $0xd8] sm:$0xff]   ;;  %v6026_v22 = vld [vmem:[%s7912_s1 + $0xd0] sm:$0xff]   ;;  %s6671_s13 = scalar_lea.vmem %s7911_s0, %s5995_s14 }
  0x12   : > { %5119 = vmatprep.subr.bf16.mxu0 %v6012_v8  ;;  %v6019_v15 = vld [vmem:[%s7912_s1 + $0xa0] sm:$0xff]   ;;  %v6023_v19 = vld [vmem:[%s7912_s1 + $0x98] sm:$0xff]   ;;  %v6027_v23 = vld [vmem:[%s7912_s1 + $0x90] sm:$0xff]  }
  0x13   : > { %5182 = vmatpush3.bf16.msra.mxu1 %v6011_v7  ;;  %v6028_v24 = vld [vmem:[%s7912_s1 + $0x48] sm:$0xff]   ;;  %v6032_v28 = vld [vmem:[%s7912_s1 + $0x40] sm:$0xff]   ;;  %v6039_v34 = vld [vmem:[%s7912_s1 + $0x178] sm:$0xff]  }
  0x14   : > { %5183 = vmatprep.subr.bf16.mxu1 %v6014_v10  ;;  %v6029_v25 = vld [vmem:[%s7912_s1 + $0x8] sm:$0xff]   ;;  %v6033_v29 = vld [vmem:[%s7912_s1] sm:$0xff]   ;;  %v6043_v37 = vld [vmem:[%s7912_s1 + $0x138] sm:$0xff]  }
  0x15   : > { %5120 = vmatpush3.bf16.msra.mxu0 %v6013_v9  ;;  %v6030_v26 = vld [vmem:[%s7912_s1 + $0xc8] sm:$0xff]   ;;  %v6034_v30 = vld [vmem:[%s7912_s1 + $0xc0] sm:$0xff]   ;;  %v6047_v40 = vld [vmem:[%s7912_s1 + $0x170] sm:$0xff]  }
  0x16   : > { %5121 = vmatprep.subr.bf16.mxu0 %v6016_v12  ;;  %v6031_v27 = vld [vmem:[%s7912_s1 + $0x88] sm:$0xff]   ;;  %v6037_v32 = vld [vmem:[%s6671_s13 + $0x4] ss:$108 sps:$4 sm:$0xff]   ;;  %v6052_v44 = vld [vmem:[%s6671_s13 + $0x1b4] ss:$108 sps:$4 sm:$0xff]  }
  0x17   : > { %5184 = vmatpush3.bf16.msra.mxu1 %v6015_v11  ;;  %v6035_v31 = vld [vmem:[%s6671_s13] ss:$108 sps:$4 sm:$0xff]   ;;  %3257 = vmatprep.mubr.bf16.mxu0 %v6037_v32  ;;  %v6040_v35 = vld [vmem:[%s6671_s13 + $0x8] ss:$108 sps:$4 sm:$0xff]   ;;  %v6046_v39 = vld [vmem:[%s6671_s13 + $0xd8] ss:$108 sps:$4 sm:$0xff]  }
  0x18   : > { %5185 = vmatprep.subr.bf16.mxu1 %v6018_v14  ;;  %v6038_v33 = vld [vmem:[%s7912_s1 + $0x80] sm:$0xff]   ;;  %v6042_v36 = vld [vmem:[%s6671_s13 + $0xc] ss:$108 sps:$4 sm:$0xff]   ;;  %v6044_v38 = vld [vmem:[%s6671_s13 + $0xdc] ss:$108 sps:$4 sm:$0xff]  }
  0x19   : > { %5122 = vmatpush3.bf16.msra.mxu0 %v6017_v13  ;;  %3354 = vmatprep.mubr.bf16.mxu1 %v6042_v36  ;;  %v6048_v41 = vld [vmem:[%s6671_s13 + $0xe4] ss:$108 sps:$4 sm:$0xff]   ;;  %v6051_v43 = vld [vmem:[%s6671_s13 + $0xe0] ss:$108 sps:$4 sm:$0xff]   ;;  %v6056_v46 = vld [vmem:[%s6671_s13 + $0x1bc] ss:$108 sps:$4 sm:$0xff]  }
  0x1a   : > { %5123 = vmatprep.subr.bf16.mxu0 %v6020_v16  ;;  %v6050_v42 = vld [vmem:[%s7912_s1 + $0x130] sm:$0xff]   ;;  %v6055_v45 = vld [vmem:[%s7912_s1 + $0x168] sm:$0xff]   ;;  %v6063_v50 = vld [vmem:[%s7912_s1 + $0x160] sm:$0xff]  }
  0x1b   : > { %5186 = vmatpush3.bf16.msra.mxu1 %v6019_v15  ;;  %v6058_v47 = vld [vmem:[%s7912_s1 + $0x128] sm:$0xff]   ;;  %v6054_v48 = vld [vmem:[%s6671_s13 + $0x1b0] ss:$108 sps:$4 sm:$0xff]   ;;  %v6059_v51 = vld [vmem:[%s6671_s13 + $0x1b8] ss:$108 sps:$4 sm:$0xff]  }
  0x1c   : > { %5187 = vmatprep.subr.bf16.mxu1 %v6022_v18  ;;  %v6060_v49 = vld [vmem:[%s6671_s13 + $0x28c] ss:$108 sps:$4 sm:$0xff]   ;;  %v6066_v52 = vld [vmem:[%s7912_s1 + $0x120] sm:$0xff]   ;;  %v6062_v55 = vld [vmem:[%s6671_s13 + $0x288] ss:$108 sps:$4 sm:$0xff]  }
  0x1d   : > { %5124 = vmatpush3.bf16.msra.mxu0 %v6021_v17  ;;  %v6064_v53 = vld [vmem:[%s6671_s13 + $0x294] ss:$108 sps:$4 sm:$0xff]   ;;  %v6071_v54 = vld [vmem:[%s7912_s1 + $0x158] sm:$0xff]   ;;  %v6068_v57 = vld [vmem:[%s6671_s13 + $0x364] ss:$108 sps:$4 sm:$0xff]  }
  0x1e   : > { %5125 = vmatprep.subr.bf16.mxu0 %v6024_v20  ;;  %v6074_v56 = vld [vmem:[%s7912_s1 + $0x118] sm:$0xff]   ;;  %v6078_v61 = vld [vmem:[%s7912_s1 + $0x1f0] sm:$0xff]   ;;  %v6070_v1 = vld [vmem:[%s6671_s13 + $0x360] ss:$108 sps:$4 sm:$0xff]  }
  0x1f   : > { %5188 = vmatpush3.bf16.msra.mxu1 %v6023_v19  ;;  %v6067_v58 = vld [vmem:[%s6671_s13 + $0x290] ss:$108 sps:$4 sm:$0xff]   ;;  %v6072_v62 = vld [vmem:[%s6671_s13 + $0x36c] ss:$108 sps:$4 sm:$0xff]   ;;  %v6075_v4 = vld [vmem:[%s6671_s13 + $0x368] ss:$108 sps:$4 sm:$0xff]  }
  0x20   : > { %5189 = vmatprep.subr.bf16.mxu1 %v6026_v22  ;;  %v6076_v59 = vld [vmem:[%s7912_s1 + $0x1f8] sm:$0xff]   ;;  %v6081_v63 = vld [vmem:[%s7912_s1 + $0x1b0] sm:$0xff]   ;;  %v6088_v5 = vld [vmem:[%s7912_s1 + $0x1e8] sm:$0xff]  }
  0x21   : > { %5126 = vmatpush3.bf16.msra.mxu0 %v6025_v21  ;;  %v6077_v60 = vld [vmem:[%s7912_s1 + $0x1b8] sm:$0xff]   ;;  %v6083_v0 = vld [vmem:[%s7912_s1 + $0x150] sm:$0xff]   ;;  %v6089_v6 = vld [vmem:[%s7912_s1 + $0x1a8] sm:$0xff]  }
  0x22   : > { %5127 = vmatprep.subr.bf16.mxu0 %v6028_v24  ;;  %v6079_v2 = vld [vmem:[%s6671_s13 + $0x43c] ss:$108 sps:$4 sm:$0xff]   ;;  %v6086_v3 = vld [vmem:[%s7912_s1 + $0x110] sm:$0xff]   ;;  %v6090_v7 = vld [vmem:[%s7912_s1 + $0x1e0] sm:$0xff]  }
  0x23   : > { %5190 = vmatpush3.bf16.msra.mxu1 %v6027_v23  ;;  %v6084_v8 = vld [vmem:[%s6671_s13 + $0x444] ss:$108 sps:$4 sm:$0xff]   ;;  %v6095_v10 = vld [vmem:[%s7912_s1 + $0x148] sm:$0xff]   ;;  %v6091_v13 = vld [vmem:[%s6671_s13 + $0x514] ss:$108 sps:$4 sm:$0xff]  }
  0x24   : > { %5191 = vmatprep.subr.bf16.mxu1 %v6030_v26  ;;  %v6093_v9 = vld [vmem:[%s7912_s1 + $0x1a0] sm:$0xff]   ;;  %v6098_v14 = vld [vmem:[%s7912_s1 + $0x108] sm:$0xff]   ;;  %v6100_v16 = vld [vmem:[%s7912_s1 + $0x1d8] sm:$0xff]  }
  0x25   : > { %5128 = vmatpush3.bf16.msra.mxu0 %v6029_v25  ;;  %v6082_v11 = vld [vmem:[%s6671_s13 + $0x438] ss:$108 sps:$4 sm:$0xff]   ;;  %v6087_v12 = vld [vmem:[%s6671_s13 + $0x440] ss:$108 sps:$4 sm:$0xff]   ;;  %v6096_v15 = vld [vmem:[%s6671_s13 + $0x51c] ss:$108 sps:$4 sm:$0xff]  }
  0x26   : > { %5129 = vmatprep.subr.bf16.mxu0 %v6032_v28  ;;  %v6101_v17 = vld [vmem:[%s7912_s1 + $0x198] sm:$0xff]   ;;  %v6102_v18 = vld [vmem:[%s7912_s1 + $0x1d0] sm:$0xff]   ;;  %v6107_v21 = vld [vmem:[%s7912_s1 + $0x140] sm:$0xff]  }
  0x27   : > { %5192 = vmatpush3.bf16.msra.mxu1 %v6031_v27  ;;  %v6094_v19 = vld [vmem:[%s6671_s13 + $0x510] ss:$108 sps:$4 sm:$0xff]   ;;  %v6103_v22 = vld [vmem:[%s6671_s13 + $0x5ec] ss:$108 sps:$4 sm:$0xff]   ;;  %v6110_v24 = vld [vmem:[%s7912_s1 + $0x100] sm:$0xff]  }
  0x28   : > { %5193 = vmatprep.subr.bf16.mxu1 %v6034_v30  ;;  %v6105_v20 = vld [vmem:[%s7912_s1 + $0x190] sm:$0xff]   ;;  %v6099_v23 = vld [vmem:[%s6671_s13 + $0x518] ss:$108 sps:$4 sm:$0xff]   ;;  %v6112_v26 = vld [vmem:[%s7912_s1 + $0x1c8] sm:$0xff]  }
  0x29   : > { %5130 = vmatpush3.bf16.msra.mxu0 %v6033_v29  ;;  %v6108_v25 = vld [vmem:[%s6671_s13 + $0x5f4] ss:$108 sps:$4 sm:$0xff]   ;;  %v6113_v27 = vld [vmem:[%s7912_s1 + $0x188] sm:$0xff]   ;;  %v6123_v36 = vld [vmem:[%s7912_s1 + $0x238] sm:$0xff]  }
  0x2a   : > { %5243 = vmatprep.subr.bf16.mxu0 %v6039_v34  ;;  %v6114_v28 = vld [vmem:[%s7912_s1 + $0x1c0] sm:$0xff]   ;;  %v6106_v29 = vld [vmem:[%s6671_s13 + $0x5e8] ss:$108 sps:$4 sm:$0xff]  }
  0x2b   : > { %5194 = vmatpush3.bf16.msra.mxu1 %v6038_v33  ;;  %v6118_v30 = vld [vmem:[%s7912_s1 + $0x180] sm:$0xff]   ;;  %v6111_v33 = vld [vmem:[%s6671_s13 + $0x5f0] ss:$108 sps:$4 sm:$0xff]  }
  0x2c   : > { %3258 = vmatmul.mubr.bf16.vlgmr.msra.gmra.mxu0 %v6035_v31  ;;  %5307 = vmatprep.subr.bf16.mxu1 %v6076_v59  ;;  %v6119_v31 = vld [vmem:[%s7912_s1 + $0x278] sm:$0xff]   ;;  %v6117_v32 = vld [vmem:[%s6671_s13 + $0x14] ss:$108 sps:$4 sm:$0xff]  }
  0x2d   : > { %5244 = vmatpush3.bf16.msra.mxu0 %v6043_v37  ;;  %3265 = vmatprep.mubr.bf16.mxu0 %v6044_v38  ;;  %v6122_v34 = vld [vmem:[%s6671_s13 + $0x1c] ss:$108 sps:$4 sm:$0xff]   ;;  %v6124_v37 = vld [vmem:[%s6671_s13 + $0xec] ss:$108 sps:$4 sm:$0xff]   ;;  %v6127_v38 = vld [vmem:[%s7912_s1 + $0x270] sm:$0xff]  }
  0x2e   : > { %3355 = vmatmul.mubr.bf16.vlgmr.msra.gmra.mxu1 %v6040_v35  ;;  %5245 = vmatprep.subr.bf16.mxu0 %v6047_v40  ;;  %v6115_v35 = vld [vmem:[%s6671_s13 + $0x10] ss:$108 sps:$4 sm:$0xff]   ;;  %v6128_v40 = vld [vmem:[%s6671_s13 + $0xf4] ss:$108 sps:$4 sm:$0xff]  }
  0x2f   : > { %3362 = vmatprep.mubr.bf16.mxu1 %v6048_v41  ;;  %5308 = vmatpush3.bf16.msra.mxu1 %v6077_v60  ;;  %v6130_v41 = vld [vmem:[%s7912_s1 + $0x230] sm:$0xff]  }
  0x30   : > { %5309 = vmatprep.subr.bf16.mxu1 %v6078_v61  ;;  %v6163_v59 = vld [vmem:[%s7912_s1 + $0x250] sm:$0xff]  }
  0x31   : > { %5246 = vmatpush3.bf16.msra.mxu0 %v6050_v42  ;;  %v6135_v42 = vld [vmem:[%s7912_s1 + $0x268] sm:$0xff]   ;;  %v6144_v60 = vld [vmem:[%s6671_s13 + $0x2a4] ss:$108 sps:$4 sm:$0xff]  }
  0x32   : > { %5247 = vmatprep.subr.bf16.mxu0 %v6055_v45  ;;  %v6138_v45 = vld [vmem:[%s7912_s1 + $0x228] sm:$0xff]   ;;  %v6166_v61 = vld [vmem:[%s7912_s1 + $0x210] sm:$0xff]  }
  0x33   : > { %5310 = vmatpush3.bf16.msra.mxu1 %v6081_v63  ;;  %v6148_v63 = vld [vmem:[%s6671_s13 + $0x374] ss:$108 sps:$4 sm:$0xff]  }
  0x34   : > { %3266 = vmatmul.mubr.bf16.gmra.mxu0 %v6046_v39  ;;  %5311 = vmatprep.subr.bf16.mxu1 %v6088_v5  ;;  %v6120_v39 = vld [vmem:[%s6671_s13 + $0x18] ss:$108 sps:$4 sm:$0xff]  }
  0x35   : > { %3273 = vmatprep.mubr.bf16.mxu0 %v6052_v44  ;;  %5248 = vmatpush3.bf16.msra.mxu0 %v6058_v47  ;;  %v6132_v44 = vld [vmem:[%s6671_s13 + $0x1c4] ss:$108 sps:$4 sm:$0xff]  }
  0x36   : > { %3363 = vmatmul.mubr.bf16.gmra.mxu1 %v6051_v43  ;;  %5249 = vmatprep.subr.bf16.mxu0 %v6063_v50  ;;  %v6126_v43 = vld [vmem:[%s6671_s13 + $0xe8] ss:$108 sps:$4 sm:$0xff]   ;;  %v6131_v47 = vld [vmem:[%s6671_s13 + $0xf0] ss:$108 sps:$4 sm:$0xff]   ;;  %v6173_v5 = vld [vmem:[%s7912_s1 + $0x2a0] sm:$0xff]  }
  0x37   : > { %3370 = vmatprep.mubr.bf16.mxu1 %v6056_v46  ;;  %5312 = vmatpush3.bf16.msra.mxu1 %v6089_v6  ;;  %v6143_v46 = vld [vmem:[%s7912_s1 + $0x260] sm:$0xff]   ;;  %v6151_v50 = vld [vmem:[%s7912_s1 + $0x258] sm:$0xff]   ;;  %v6175_v6 = vld [vmem:[%s7912_s1 + $0x248] sm:$0xff]  }
  0x38   : > { %5313 = vmatprep.subr.bf16.mxu1 %v6090_v7  ;;  %v6150_v7 = vld [vmem:[%s6671_s13 + $0x370] ss:$108 sps:$4 sm:$0xff]  }
  0x39   : > { %5250 = vmatpush3.bf16.msra.mxu0 %v6066_v52  ;;  %v6156_v52 = vld [vmem:[%s7912_s1 + $0x2f8] sm:$0xff]  }
  0x3a   : > { %5251 = vmatprep.subr.bf16.mxu0 %v6071_v54  ;;  %v6157_v54 = vld [vmem:[%s7912_s1 + $0x2b8] sm:$0xff]  }
  0x3b   : > { %5314 = vmatpush3.bf16.msra.mxu1 %v6093_v9  ;;  %v6159_v9 = vld [vmem:[%s6671_s13 + $0x44c] ss:$108 sps:$4 sm:$0xff]  }
  0x3c   : > { %3274 = vmatmul.mubr.bf16.gmra.mxu0 %v6054_v48  ;;  %5315 = vmatprep.subr.bf16.mxu1 %v6100_v16  ;;  %v6136_v48 = vld [vmem:[%s6671_s13 + $0x1cc] ss:$108 sps:$4 sm:$0xff]   ;;  %v6187_v16 = vld [vmem:[%s7912_s1 + $0x240] sm:$0xff]  }
  0x3d   : > { %3281 = vmatprep.mubr.bf16.mxu0 %v6060_v49  ;;  %5252 = vmatpush3.bf16.msra.mxu0 %v6074_v56  ;;  %v6146_v49 = vld [vmem:[%s7912_s1 + $0x220] sm:$0xff]   ;;  %v6154_v56 = vld [vmem:[%s7912_s1 + $0x218] sm:$0xff]  }
  0x3e   : > { %3371 = vmatmul.mubr.bf16.gmra.mxu1 %v6059_v51  ;;  %5253 = vmatprep.subr.bf16.mxu0 %v6083_v0  ;;  %v6134_v51 = vld [vmem:[%s6671_s13 + $0x1c0] ss:$108 sps:$4 sm:$0xff]  }
  0x3f   : > { %3378 = vmatprep.mubr.bf16.mxu1 %v6064_v53  ;;  %5316 = vmatpush3.bf16.msra.mxu1 %v6101_v17  ;;  %v6140_v53 = vld [vmem:[%s6671_s13 + $0x29c] ss:$108 sps:$4 sm:$0xff]  }
  0x40   : > { %5317 = vmatprep.subr.bf16.mxu1 %v6102_v18  ;;  %v6168_v0 = vld [vmem:[%s7912_s1 + $0x2e8] sm:$0xff]   ;;  %v6171_v18 = vld [vmem:[%s6671_s13 + $0x524] ss:$108 sps:$4 sm:$0xff]  }
  0x41   : > { %5254 = vmatpush3.bf16.msra.mxu0 %v6086_v3  ;;  %v6147_v3 = vld [vmem:[%s6671_s13 + $0x2a0] ss:$108 sps:$4 sm:$0xff]   ;;  %v6162_v17 = vld [vmem:[%s6671_s13 + $0x448] ss:$108 sps:$4 sm:$0xff]  }
  0x42   : > { %5255 = vmatprep.subr.bf16.mxu0 %v6095_v10  ;;  %v6180_v10 = vld [vmem:[%s7912_s1 + $0x2d8] sm:$0xff]  }
  0x43   : > { %5318 = vmatpush3.bf16.msra.mxu1 %v6105_v20  ;;  %v6192_v20 = vld [vmem:[%s7912_s1 + $0x2c8] sm:$0xff]  }
  0x44   : > { %3282 = vmatmul.mubr.bf16.gmra.mxu0 %v6062_v55  ;;  %5319 = vmatprep.subr.bf16.mxu1 %v6112_v26  ;;  %v6158_v55 = vld [vmem:[%s7912_s1 + $0x2f0] sm:$0xff]   ;;  %v6199_v26 = vld [vmem:[%s7912_s1 + $0x378] sm:$0xff]  }
  0x45   : > { %3289 = vmatprep.mubr.bf16.mxu0 %v6068_v57  ;;  %5256 = vmatpush3.bf16.msra.mxu0 %v6098_v14  ;;  %v6139_v57 = vld [vmem:[%s6671_s13 + $0x1c8] ss:$108 sps:$4 sm:$0xff]  }
  0x46   : > { %3379 = vmatmul.mubr.bf16.gmra.mxu1 %v6067_v58  ;;  %5257 = vmatprep.subr.bf16.mxu0 %v6107_v21  ;;  %v6161_v58 = vld [vmem:[%s7912_s1 + $0x2b0] sm:$0xff]   ;;  %v6193_v21 = vld [vmem:[%s7912_s1 + $0x288] sm:$0xff]  }
  0x47   : > { %3386 = vmatprep.mubr.bf16.mxu1 %v6072_v62  ;;  %5320 = vmatpush3.bf16.msra.mxu1 %v6113_v27  ;;  %v6142_v62 = vld [vmem:[%s6671_s13 + $0x298] ss:$108 sps:$4 sm:$0xff]   ;;  %v6185_v14 = vld [vmem:[%s7912_s1 + $0x290] sm:$0xff]   ;;  %v6174_v27 = vld [vmem:[%s6671_s13 + $0x520] ss:$108 sps:$4 sm:$0xff]  }
  0x48   : > { %5321 = vmatprep.subr.bf16.mxu1 %v6114_v28  ;;  %v6183_v28 = vld [vmem:[%s6671_s13 + $0x5fc] ss:$108 sps:$4 sm:$0xff]  }
  0x49   : > { %5258 = vmatpush3.bf16.msra.mxu0 %v6110_v24  ;;  %v6176_v24 = vld [vmem:[%s6671_s13 + $0x52c] ss:$108 sps:$4 sm:$0xff]  }
  0x4a   : > { %5371 = vmatprep.subr.bf16.mxu0 %v6119_v31  ;;  %v6186_v31 = vld [vmem:[%s6671_s13 + $0x5f8] ss:$108 sps:$4 sm:$0xff]  }
  0x4b   : > { %5322 = vmatpush3.bf16.msra.mxu1 %v6118_v30  ;;  %v6188_v30 = vld [vmem:[%s6671_s13 + $0x604] ss:$108 sps:$4 sm:$0xff]  }
  0x4c   : > { %3290 = vmatmul.mubr.bf16.gmra.mxu0 %v6070_v1  ;;  %5435 = vmatprep.subr.bf16.mxu1 %v6156_v52  ;;  %v6169_v1 = vld [vmem:[%s7912_s1 + $0x2a8] sm:$0xff]  }
  0x4d   : > { %3297 = vmatprep.mubr.bf16.mxu0 %v6079_v2  ;;  %v6170_v2 = vld [vmem:[%s7912_s1 + $0x2e0] sm:$0xff]   ;;  %v6216_v52 = vld [vmem:[%s6671_s13 + $0x1dc] ss:$108 sps:$4 sm:$0xff]  }
  0x4e   : > { %3387 = vmatmul.mubr.bf16.gmra.mxu1 %v6075_v4  ;;  %v6152_v4 = vld [vmem:[%s6671_s13 + $0x37c] ss:$108 sps:$4 sm:$0xff]  }
  0x4f   : > { %3394 = vmatprep.mubr.bf16.mxu1 %v6084_v8  ;;  %v6178_v8 = vld [vmem:[%s7912_s1 + $0x208] sm:$0xff]  }
  0x54   : > { %3298 = vmatmul.mubr.bf16.gmra.mxu0 %v6082_v11  ;;  %v6181_v11 = vld [vmem:[%s7912_s1 + $0x298] sm:$0xff]  }
  0x55   : > { %3305 = vmatprep.mubr.bf16.mxu0 %v6091_v13  ;;  %v6155_v13 = vld [vmem:[%s6671_s13 + $0x378] ss:$108 sps:$4 sm:$0xff]  }
  0x56   : > { %3395 = vmatmul.mubr.bf16.gmra.mxu1 %v6087_v12  ;;  %v6182_v12 = vld [vmem:[%s7912_s1 + $0x2d0] sm:$0xff]  }
  0x57   : > { %3402 = vmatprep.mubr.bf16.mxu1 %v6096_v15  ;;  %v6164_v15 = vld [vmem:[%s6671_s13 + $0x454] ss:$108 sps:$4 sm:$0xff]  }
  0x5c   : > { %3306 = vmatmul.mubr.bf16.gmra.mxu0 %v6094_v19  ;;  %v6190_v19 = vld [vmem:[%s7912_s1 + $0x200] sm:$0xff]  }
  0x5d   : > { %3313 = vmatprep.mubr.bf16.mxu0 %v6103_v22  ;;  %v6194_v22 = vld [vmem:[%s7912_s1 + $0x2c0] sm:$0xff]  }
  0x5e   : > { %3403 = vmatmul.mubr.bf16.gmra.mxu1 %v6099_v23  ;;  %v6167_v23 = vld [vmem:[%s6671_s13 + $0x450] ss:$108 sps:$4 sm:$0xff]  }
  0x5f   : > { %3410 = vmatprep.mubr.bf16.mxu1 %v6108_v25  ;;  %v6198_v25 = vld [vmem:[%s7912_s1 + $0x280] sm:$0xff]  }
  0x64   : > { %3314 = vmatmul.mubr.bf16.gmra.mxu0 %v6106_v29  ;;  %v6179_v29 = vld [vmem:[%s6671_s13 + $0x528] ss:$108 sps:$4 sm:$0xff]  }
  0x65   : > { %3451 = vmatprep.mubr.bf16.mxu0 %v6117_v32  ;;  %v6197_v32 = vld [vmem:[%s6671_s13 + $0x24] ss:$108 sps:$4 sm:$0xff]  }
  0x66   : > { %3411 = vmatmul.mubr.bf16.gmra.mxu1 %v6111_v33  ;;  %v6191_v33 = vld [vmem:[%s6671_s13 + $0x600] ss:$108 sps:$4 sm:$0xff]  }
  0x67   : > { %3548 = vmatprep.mubr.bf16.mxu1 %v6122_v34  ;;  %v6202_v34 = vld [vmem:[%s6671_s13 + $0x2c] ss:$108 sps:$4 sm:$0xff]  }
  0x6c   : > { %3452 = vmatmul.mubr.bf16.vlgmr.msra.gmra.mxu0 %v6115_v35  ;;  %v6195_v35 = vld [vmem:[%s6671_s13 + $0x20] ss:$108 sps:$4 sm:$0xff]  }
  0x6d   : > { %5372 = vmatpush3.bf16.msra.mxu0 %v6123_v36  ;;  %3459 = vmatprep.mubr.bf16.mxu0 %v6124_v37  ;;  %v6203_v36 = vld [vmem:[%s7912_s1 + $0x338] sm:$0xff]   ;;  %v6200_v37 = vld [vmem:[%s6671_s13 + $0x28] ss:$108 sps:$4 sm:$0xff]  }
  0x6e   : > { %5373 = vmatprep.subr.bf16.mxu0 %v6127_v38  ;;  %3549 = vmatmul.mubr.bf16.vlgmr.msra.gmra.mxu1 %v6120_v39  ;;  %v6204_v38 = vld [vmem:[%s6671_s13 + $0xfc] ss:$108 sps:$4 sm:$0xff]   ;;  %v6207_v39 = vld [vmem:[%s7912_s1 + $0x370] sm:$0xff]  }
  0x6f   : > { %3556 = vmatprep.mubr.bf16.mxu1 %v6128_v40  ;;  %5436 = vmatpush3.bf16.msra.mxu1 %v6157_v54  ;;  %v6208_v40 = vld [vmem:[%s6671_s13 + $0x104] ss:$108 sps:$4 sm:$0xff]   ;;  %v6231_v54 = vld [vmem:[%s7912_s1 + $0x358] sm:$0xff]  }
  0x70   : > { %5437 = vmatprep.subr.bf16.mxu1 %v6158_v55  ;;  %v6248_v55 = vld [vmem:[%s7912_s1 + $0x3e8] sm:$0xff]  }
  0x71   : > { %5374 = vmatpush3.bf16.msra.mxu0 %v6130_v41  ;;  %v6210_v41 = vld [vmem:[%s7912_s1 + $0x330] sm:$0xff]  }
  0x72   : > { %5375 = vmatprep.subr.bf16.mxu0 %v6135_v42  ;;  %v6236_v42 = vld [vmem:[%s7912_s1 + $0x3f8] sm:$0xff]  }
  0x73   : > { %5438 = vmatpush3.bf16.msra.mxu1 %v6161_v58  ;;  %v6214_v58 = vld [vmem:[%s6671_s13 + $0x1d0] ss:$108 sps:$4 sm:$0xff]  }
  0x74   : > { %3460 = vmatmul.mubr.bf16.gmra.mxu0 %v6126_v43  ;;  %5439 = vmatprep.subr.bf16.mxu1 %v6168_v0  ;;  %v6237_v43 = vld [vmem:[%s7912_s1 + $0x3b8] sm:$0xff]   ;;  %v6243_v0 = vld [vmem:[%s7912_s1 + $0x350] sm:$0xff]  }
  0x75   : > { %3467 = vmatprep.mubr.bf16.mxu0 %v6132_v44  ;;  %5376 = vmatpush3.bf16.msra.mxu0 %v6138_v45  ;;  %v6238_v44 = vld [vmem:[%s7912_s1 + $0x3f0] sm:$0xff]   ;;  %v6206_v45 = vld [vmem:[%s6671_s13 + $0xf8] ss:$108 sps:$4 sm:$0xff]  }
  0x76   : > { %5377 = vmatprep.subr.bf16.mxu0 %v6143_v46  ;;  %3557 = vmatmul.mubr.bf16.gmra.mxu1 %v6131_v47  ;;  %v6215_v46 = vld [vmem:[%s7912_s1 + $0x368] sm:$0xff]   ;;  %v6212_v47 = vld [vmem:[%s6671_s13 + $0x1d4] ss:$108 sps:$4 sm:$0xff]  }
  0x77   : > { %3564 = vmatprep.mubr.bf16.mxu1 %v6136_v48  ;;  %5440 = vmatpush3.bf16.msra.mxu1 %v6169_v1  ;;  %v6241_v48 = vld [vmem:[%s7912_s1 + $0x3b0] sm:$0xff]  }
  0x78   : > { %5441 = vmatprep.subr.bf16.mxu1 %v6170_v2  ;;  %v6246_v1 = vld [vmem:[%s7912_s1 + $0x310] sm:$0xff]   ;;  %v6255_v2 = vld [vmem:[%s7912_s1 + $0x348] sm:$0xff]  }
  0x79   : > { %5378 = vmatpush3.bf16.msra.mxu0 %v6146_v49  ;;  %v6211_v49 = vld [vmem:[%s6671_s13 + $0x100] ss:$108 sps:$4 sm:$0xff]  }
  0x7a   : > { %5379 = vmatprep.subr.bf16.mxu0 %v6151_v50  ;;  %v6218_v50 = vld [vmem:[%s7912_s1 + $0x328] sm:$0xff]  }
  0x7b   : > { %5442 = vmatpush3.bf16.msra.mxu1 %v6173_v5  ;;  %v6261_v5 = vld [vmem:[%s7912_s1 + $0x398] sm:$0xff]  }
  0x7c   : > { %3468 = vmatmul.mubr.bf16.gmra.mxu0 %v6134_v51  ;;  %5443 = vmatprep.subr.bf16.mxu1 %v6180_v10  ;;  %v6223_v51 = vld [vmem:[%s7912_s1 + $0x360] sm:$0xff]  }
  0x7d   : > { %3475 = vmatprep.mubr.bf16.mxu0 %v6140_v53  ;;  %5380 = vmatpush3.bf16.msra.mxu0 %v6154_v56  ;;  %v6226_v53 = vld [vmem:[%s7912_s1 + $0x320] sm:$0xff]   ;;  %v6249_v56 = vld [vmem:[%s7912_s1 + $0x3a8] sm:$0xff]  }
  0x7e   : > { %5381 = vmatprep.subr.bf16.mxu0 %v6163_v59  ;;  %3565 = vmatmul.mubr.bf16.gmra.mxu1 %v6139_v57  ;;  %v6250_v57 = vld [vmem:[%s7912_s1 + $0x3e0] sm:$0xff]   ;;  %v6220_v59 = vld [vmem:[%s6671_s13 + $0x2ac] ss:$108 sps:$4 sm:$0xff]  }
  0x7f   : > { %3572 = vmatprep.mubr.bf16.mxu1 %v6144_v60  ;;  %5444 = vmatpush3.bf16.msra.mxu1 %v6181_v11  ;;  %v6253_v60 = vld [vmem:[%s7912_s1 + $0x3a0] sm:$0xff]   ;;  %v6227_v11 = vld [vmem:[%s6671_s13 + $0x2b0] ss:$108 sps:$4 sm:$0xff]  }
  0x80   : > { %5445 = vmatprep.subr.bf16.mxu1 %v6182_v12  ;;  %v6267_v10 = vld [vmem:[%s7912_s1 + $0x340] sm:$0xff]   ;;  %v6232_v12 = vld [vmem:[%s6671_s13 + $0x38c] ss:$108 sps:$4 sm:$0xff]  }
  0x81   : > { %5382 = vmatpush3.bf16.msra.mxu0 %v6166_v61  ;;  %v6219_v61 = vld [vmem:[%s6671_s13 + $0x1d8] ss:$108 sps:$4 sm:$0xff]  }
  0x82   : > { %5383 = vmatprep.subr.bf16.mxu0 %v6175_v6  ;;  %v6262_v6 = vld [vmem:[%s7912_s1 + $0x3d0] sm:$0xff]  }
  0x83   : > { %5446 = vmatpush3.bf16.msra.mxu1 %v6185_v14  ;;  %v6272_v14 = vld [vmem:[%s7912_s1 + $0x3c8] sm:$0xff]  }
  0x84   : > { %3476 = vmatmul.mubr.bf16.gmra.mxu0 %v6142_v62  ;;  %5447 = vmatprep.subr.bf16.mxu1 %v6192_v20  ;;  %v6234_v62 = vld [vmem:[%s7912_s1 + $0x318] sm:$0xff]   ;;  %v6278_v20 = vld [vmem:[%s7912_s1 + $0x380] sm:$0xff]  }
  0x85   : > { %3483 = vmatprep.mubr.bf16.mxu0 %v6148_v63  ;;  %5384 = vmatpush3.bf16.msra.mxu0 %v6178_v8  ;;  %v6224_v63 = vld [vmem:[%s6671_s13 + $0x2b4] ss:$108 sps:$4 sm:$0xff]   ;;  %v6258_v8 = vld [vmem:[%s7912_s1 + $0x308] sm:$0xff]  }
  0x86   : > { %3573 = vmatmul.mubr.bf16.gmra.mxu1 %v6147_v3  ;;  %5385 = vmatprep.subr.bf16.mxu0 %v6187_v16  ;;  %v6260_v3 = vld [vmem:[%s7912_s1 + $0x3d8] sm:$0xff]   ;;  %v6274_v16 = vld [vmem:[%s7912_s1 + $0x3c0] sm:$0xff]  }
  0x87   : > { %3580 = vmatprep.mubr.bf16.mxu1 %v6152_v4  ;;  %5448 = vmatpush3.bf16.msra.mxu1 %v6193_v21  ;;  %v6222_v4 = vld [vmem:[%s6671_s13 + $0x2a8] ss:$108 sps:$4 sm:$0xff]   ;;  %v6279_v21 = vld [vmem:[%s7912_s1 + $0x478] sm:$0xff]  }
  0x88   : > { %5449 = vmatprep.subr.bf16.mxu1 %v6194_v22  ;;  %v6244_v22 = vld [vmem:[%s6671_s13 + $0x464] ss:$108 sps:$4 sm:$0xff]  }
  0x89   : > { %5386 = vmatpush3.bf16.msra.mxu0 %v6190_v19  ;;  %v6239_v19 = vld [vmem:[%s6671_s13 + $0x45c] ss:$108 sps:$4 sm:$0xff]  }
  0x8a   : > { %5499 = vmatprep.subr.bf16.mxu0 %v6199_v26  ;;  %v6256_v26 = vld [vmem:[%s6671_s13 + $0x53c] ss:$108 sps:$4 sm:$0xff]  }
  0x8b   : > { %5450 = vmatpush3.bf16.msra.mxu1 %v6198_v25  ;;  %v6247_v25 = vld [vmem:[%s6671_s13 + $0x460] ss:$108 sps:$4 sm:$0xff]  }
  0x8c   : > { %3484 = vmatmul.mubr.bf16.gmra.mxu0 %v6150_v7  ;;  %5563 = vmatprep.subr.bf16.mxu1 %v6236_v42  ;;  %v6228_v7 = vld [vmem:[%s6671_s13 + $0x384] ss:$108 sps:$4 sm:$0xff]  }
  0x8d   : > { %3491 = vmatprep.mubr.bf16.mxu0 %v6159_v9  ;;  %v6265_v9 = vld [vmem:[%s7912_s1 + $0x390] sm:$0xff]  }
  0x8e   : > { %3581 = vmatmul.mubr.bf16.gmra.mxu1 %v6155_v13  ;;  %v6270_v13 = vld [vmem:[%s7912_s1 + $0x300] sm:$0xff]  }
  0x8f   : > { %3588 = vmatprep.mubr.bf16.mxu1 %v6164_v15  ;;  %v6273_v15 = vld [vmem:[%s7912_s1 + $0x388] sm:$0xff]  }
  0x94   : > { %3492 = vmatmul.mubr.bf16.gmra.mxu0 %v6162_v17  ;;  %v6230_v17 = vld [vmem:[%s6671_s13 + $0x380] ss:$108 sps:$4 sm:$0xff]  }
  0x95   : > { %3499 = vmatprep.mubr.bf16.mxu0 %v6171_v18  ;;  %v6235_v18 = vld [vmem:[%s6671_s13 + $0x388] ss:$108 sps:$4 sm:$0xff]  }
  0x96   : > { %3589 = vmatmul.mubr.bf16.gmra.mxu1 %v6167_v23  ;;  %v6242_v23 = vld [vmem:[%s6671_s13 + $0x458] ss:$108 sps:$4 sm:$0xff]  }
  0x97   : > { %3596 = vmatprep.mubr.bf16.mxu1 %v6176_v24  ;;  %v6251_v24 = vld [vmem:[%s6671_s13 + $0x534] ss:$108 sps:$4 sm:$0xff]  }
  0x9c   : > { %3500 = vmatmul.mubr.bf16.gmra.mxu0 %v6174_v27  ;;  %v6254_v27 = vld [vmem:[%s6671_s13 + $0x530] ss:$108 sps:$4 sm:$0xff]  }
  0x9d   : > { %3507 = vmatprep.mubr.bf16.mxu0 %v6183_v28  ;;  %v6263_v28 = vld [vmem:[%s6671_s13 + $0x60c] ss:$108 sps:$4 sm:$0xff]  }
  0x9e   : > { %3597 = vmatmul.mubr.bf16.gmra.mxu1 %v6179_v29  ;;  %v6259_v29 = vld [vmem:[%s6671_s13 + $0x538] ss:$108 sps:$4 sm:$0xff]  }
  0x9f   : > { %3604 = vmatprep.mubr.bf16.mxu1 %v6188_v30  ;;  %v6268_v30 = vld [vmem:[%s6671_s13 + $0x614] ss:$108 sps:$4 sm:$0xff]  }
  0xa4   : > { %3508 = vmatmul.mubr.bf16.gmra.mxu0 %v6186_v31  ;;  %v6266_v31 = vld [vmem:[%s6671_s13 + $0x608] ss:$108 sps:$4 sm:$0xff]  }
  0xa5   : > { %3645 = vmatprep.mubr.bf16.mxu0 %v6197_v32  ;;  %v6277_v32 = vld [vmem:[%s6671_s13 + $0x34] ss:$108 sps:$4 sm:$0xff]  }
  0xa6   : > { %3605 = vmatmul.mubr.bf16.gmra.mxu1 %v6191_v33  ;;  %v6316_v33 = vld [vmem:[%s7912_s1 + $0x4f8] sm:$0xff]  }
  0xa7   : > { %3742 = vmatprep.mubr.bf16.mxu1 %v6202_v34  ;;  %v6271_v34 = vld [vmem:[%s6671_s13 + $0x610] ss:$108 sps:$4 sm:$0xff]  }
  0xac   : > { %3646 = vmatmul.mubr.bf16.vlgmr.msra.gmra.mxu0 %v6195_v35  ;;  %v6282_v35 = vld [vmem:[%s6671_s13 + $0x3c] ss:$108 sps:$4 sm:$0xff]  }
  0xad   : > { %5500 = vmatpush3.bf16.msra.mxu0 %v6203_v36  ;;  %3653 = vmatprep.mubr.bf16.mxu0 %v6204_v38  ;;  %v6275_v36 = vld [vmem:[%s6671_s13 + $0x30] ss:$108 sps:$4 sm:$0xff]   ;;  %v6280_v38 = vld [vmem:[%s6671_s13 + $0x38] ss:$108 sps:$4 sm:$0xff]  }
  0xae   : > { %5501 = vmatprep.subr.bf16.mxu0 %v6207_v39  ;;  %3743 = vmatmul.mubr.bf16.vlgmr.msra.gmra.mxu1 %v6200_v37  ;;  %v6283_v37 = vld [vmem:[%s7912_s1 + $0x438] sm:$0xff]  }
  0xaf   : > { %3750 = vmatprep.mubr.bf16.mxu1 %v6208_v40  ;;  %5564 = vmatpush3.bf16.msra.mxu1 %v6237_v43  ;;  %v6284_v39 = vld [vmem:[%s6671_s13 + $0x10c] ss:$108 sps:$4 sm:$0xff]   ;;  %v6287_v40 = vld [vmem:[%s7912_s1 + $0x470] sm:$0xff]   ;;  %v7087_v43 = vld [vmem:[%s7913_s2] ss:$0 sm:$0xff] }
  0xb0   : > { %5565 = vmatprep.subr.bf16.mxu1 %v6238_v44  ;;  %v6317_v44 = vld [vmem:[%s7912_s1 + $0x4b8] sm:$0xff]  }
  0xb1   : > { %5502 = vmatpush3.bf16.msra.mxu0 %v6210_v41  ;;  %v6288_v41 = vld [vmem:[%s6671_s13 + $0x114] ss:$108 sps:$4 sm:$0xff]  }
  0xb2   : > { %5503 = vmatprep.subr.bf16.mxu0 %v6215_v46  ;;  %v6318_v46 = vld [vmem:[%s7912_s1 + $0x4f0] sm:$0xff]  }
  0xb3   : > { %5566 = vmatpush3.bf16.msra.mxu1 %v6241_v48  ;;  %v6286_v48 = vld [vmem:[%s6671_s13 + $0x108] ss:$108 sps:$4 sm:$0xff]  }
  0xb4   : > { %3654 = vmatmul.mubr.bf16.gmra.mxu0 %v6206_v45  ;;  %5567 = vmatprep.subr.bf16.mxu1 %v6248_v55  ;;  %v6290_v45 = vld [vmem:[%s7912_s1 + $0x430] sm:$0xff]  }
  0xb5   : > { %3661 = vmatprep.mubr.bf16.mxu0 %v6212_v47  ;;  %5504 = vmatpush3.bf16.msra.mxu0 %v6218_v50  ;;  %v6322_v55 = vld [vmem:[%s7912_s1 + $0x4b0] sm:$0xff]  }
  0xb6   : > { %5505 = vmatprep.subr.bf16.mxu0 %v6223_v51  ;;  %3751 = vmatmul.mubr.bf16.gmra.mxu1 %v6211_v49  ;;  %v6295_v49 = vld [vmem:[%s7912_s1 + $0x468] sm:$0xff]  }
  0xb7   : > { %3758 = vmatprep.mubr.bf16.mxu1 %v6216_v52  ;;  %5568 = vmatpush3.bf16.msra.mxu1 %v6249_v56  ;;  %v6292_v52 = vld [vmem:[%s6671_s13 + $0x1e4] ss:$108 sps:$4 sm:$0xff]  }
  0xb8   : > { %5569 = vmatprep.subr.bf16.mxu1 %v6250_v57 }
  0xb9   : > { %5506 = vmatpush3.bf16.msra.mxu0 %v6226_v53 }
  0xba   : > { %5507 = vmatprep.subr.bf16.mxu0 %v6231_v54  ;;  %v6298_v54 = vld [vmem:[%s7912_s1 + $0x428] sm:$0xff]  }
  0xbb   : > { %5570 = vmatpush3.bf16.msra.mxu1 %v6253_v60 }
  0xbc   : > { %3662 = vmatmul.mubr.bf16.gmra.mxu0 %v6214_v58  ;;  %5571 = vmatprep.subr.bf16.mxu1 %v6260_v3  ;;  %v6291_v58 = vld [vmem:[%s6671_s13 + $0x110] ss:$108 sps:$4 sm:$0xff]  }
  0xbd   : > { %3669 = vmatprep.mubr.bf16.mxu0 %v6220_v59  ;;  %5508 = vmatpush3.bf16.msra.mxu0 %v6234_v62  ;;  %v6303_v59 = vld [vmem:[%s7912_s1 + $0x460] sm:$0xff]   ;;  %v6296_v62 = vld [vmem:[%s6671_s13 + $0x1ec] ss:$108 sps:$4 sm:$0xff]  }
  0xbe   : > { %5509 = vmatprep.subr.bf16.mxu0 %v6243_v0  ;;  %3759 = vmatmul.mubr.bf16.gmra.mxu1 %v6219_v61 }
  0xbf   : > { %3766 = vmatprep.mubr.bf16.mxu1 %v6224_v63  ;;  %5572 = vmatpush3.bf16.msra.mxu1 %v6261_v5  ;;  %v6328_v63 = vld [vmem:[%s7912_s1 + $0x4e8] sm:$0xff]  }
  0xc0   : > { %5573 = vmatprep.subr.bf16.mxu1 %v6262_v6  ;;  %v6329_v5 = vld [vmem:[%s7912_s1 + $0x4a8] sm:$0xff]  }
  0xc1   : > { %5510 = vmatpush3.bf16.msra.mxu0 %v6246_v1 }
  0xc2   : > { %5511 = vmatprep.subr.bf16.mxu0 %v6255_v2  ;;  %v6306_v2 = vld [vmem:[%s7912_s1 + $0x420] sm:$0xff]  }
  0xc3   : > { %5574 = vmatpush3.bf16.msra.mxu1 %v6265_v9 }
  0xc4   : > { %3670 = vmatmul.mubr.bf16.gmra.mxu0 %v6222_v4  ;;  %5575 = vmatprep.subr.bf16.mxu1 %v6272_v14 }
  0xc5   : > { %3677 = vmatprep.mubr.bf16.mxu0 %v6228_v7  ;;  %5512 = vmatpush3.bf16.msra.mxu0 %v6258_v8  ;;  %v6330_v8 = vld [vmem:[%s7912_s1 + $0x4e0] sm:$0xff]  }
  0xc6   : > { %5513 = vmatprep.subr.bf16.mxu0 %v6267_v10  ;;  %3767 = vmatmul.mubr.bf16.gmra.mxu1 %v6227_v11  ;;  %v6294_v11 = vld [vmem:[%s6671_s13 + $0x1e0] ss:$108 sps:$4 sm:$0xff]  }
  0xc7   : > { %3774 = vmatprep.mubr.bf16.mxu1 %v6232_v12  ;;  %5576 = vmatpush3.bf16.msra.mxu1 %v6273_v15  ;;  %v6311_v12 = vld [vmem:[%s7912_s1 + $0x458] sm:$0xff]  }
  0xc8   : > { %5577 = vmatprep.subr.bf16.mxu1 %v6274_v16  ;;  %v6300_v15 = vld [vmem:[%s6671_s13 + $0x2bc] ss:$108 sps:$4 sm:$0xff]  }
  0xc9   : > { %5514 = vmatpush3.bf16.msra.mxu0 %v6270_v13 }
  0xca   : > { %5627 = vmatprep.subr.bf16.mxu0 %v6279_v21  ;;  %v6299_v21 = vld [vmem:[%s6671_s13 + $0x1e8] ss:$108 sps:$4 sm:$0xff]  }
  0xcb   : > { %5578 = vmatpush3.bf16.msra.mxu1 %v6278_v20 }
  0xcc   : > { %3678 = vmatmul.mubr.bf16.gmra.mxu0 %v6230_v17  ;;  %5691 = vmatprep.subr.bf16.mxu1 %v6316_v33  ;;  %v6341_v33 = vld [vmem:[%s7912_s1 + $0x498] sm:$0xff]  }
  0xcd   : > { %3685 = vmatprep.mubr.bf16.mxu0 %v6239_v19 }
  0xce   : > { %3775 = vmatmul.mubr.bf16.gmra.mxu1 %v6235_v18  ;;  %v6334_v18 = vld [vmem:[%s7912_s1 + $0x4a0] sm:$0xff]  }
  0xcf   : > { %3782 = vmatprep.mubr.bf16.mxu1 %v6244_v22  ;;  %v6315_v22 = vld [vmem:[%s7912_s1 + $0x418] sm:$0xff]  }
  0xd4   : > { %3686 = vmatmul.mubr.bf16.gmra.mxu0 %v6242_v23  ;;  %v6323_v23 = vld [vmem:[%s7912_s1 + $0x450] sm:$0xff]  }
  0xd5   : > { %3693 = vmatprep.mubr.bf16.mxu0 %v6251_v24 }
  0xd6   : > { %3783 = vmatmul.mubr.bf16.gmra.mxu1 %v6247_v25 }
  0xd7   : > { %3790 = vmatprep.mubr.bf16.mxu1 %v6256_v26  ;;  %v6304_v26 = vld [vmem:[%s6671_s13 + $0x2c4] ss:$108 sps:$4 sm:$0xff]  }
  0xdc   : > { %3694 = vmatmul.mubr.bf16.gmra.mxu0 %v6254_v27  ;;  %v6340_v27 = vld [vmem:[%s7912_s1 + $0x4d8] sm:$0xff]  }
  0xdd   : > { %3701 = vmatprep.mubr.bf16.mxu0 %v6263_v28 }
  0xde   : > { %3791 = vmatmul.mubr.bf16.gmra.mxu1 %v6259_v29 }
  0xdf   : > { %3798 = vmatprep.mubr.bf16.mxu1 %v6268_v30  ;;  %v6327_v30 = vld [vmem:[%s7912_s1 + $0x410] sm:$0xff]  }
  0xe4   : > { %3702 = vmatmul.mubr.bf16.gmra.mxu0 %v6266_v31 }
  0xe5   : > { %3839 = vmatprep.mubr.bf16.mxu0 %v6277_v32 }
  0xe6   : > { %3799 = vmatmul.mubr.bf16.gmra.mxu1 %v6271_v34 }
  0xe7   : > { %3936 = vmatprep.mubr.bf16.mxu1 %v6282_v35 }
  0xec   : > { %v5131_v42 = vpop.f32.mrf.mxu0  ;;  %3840 = vmatmul.mubr.bf16.vlgmr.msra.gmra.mxu0 %v6275_v36  ;;  %v6342_v36 = vld [vmem:[%s7912_s1 + $0x4d0] sm:$0xff]  }
  0xed   : > { %5628 = vmatpush3.bf16.msra.mxu0 %v6283_v37  ;;  %3847 = vmatprep.mubr.bf16.mxu0 %v6284_v39  ;;  %v6302_v39 = vld [vmem:[%s6671_s13 + $0x2b8] ss:$108 sps:$4 sm:$0xff]  }
  0xee   : > { %v5132_v47 = vpop.f32.mrf.mxu0  ;;  %5629 = vmatprep.subr.bf16.mxu0 %v6287_v40  ;;  %v5195_v51 = vpop.f32.mrf.mxu1  ;;  %3937 = vmatmul.mubr.bf16.vlgmr.msra.gmra.mxu1 %v6280_v38  ;;  %v6335_v40 = vld [vmem:[%s7912_s1 + $0x448] sm:$0xff]  }
  0xef   : > { %v5133_v50 = vadd.f32 %v5132_v47, %v5131_v42  ;;  %3944 = vmatprep.mubr.bf16.mxu1 %v6288_v41  ;;  %5692 = vmatpush3.bf16.msra.mxu1 %v6317_v44  ;;  %v6310_v44 = vld [vmem:[%s6671_s13 + $0x394] ss:$108 sps:$4 sm:$0xff]  }
  0xf0   : > { %v5134_v53 = vpop.f32.mrf.mxu0  ;;  %v5196_v57 = vpop.f32.mrf.mxu1  ;;  %5693 = vmatprep.subr.bf16.mxu1 %v6318_v46 }
  0xf1   : > { %v3260_v56 = vadd.f32 %v5133_v50, %v7087_v43  ;;  %5630 = vmatpush3.bf16.msra.mxu0 %v6290_v45  ;;  %v5197_v60 = vadd.f32 %v5196_v57, %v5195_v51  ;;  %v6339_v45 = vld [vmem:[%s7912_s1 + $0x408] sm:$0xff]  }
  0xf2   : > { %v5135_v61 = vpop.f32.mrf.mxu0  ;;  %5631 = vmatprep.subr.bf16.mxu0 %v6295_v49  ;;  %v5198_v1 = vpop.f32.mrf.mxu1  ;;  %v6307_v51 = vld [vmem:[%s6671_s13 + $0x2c0] ss:$108 sps:$4 sm:$0xff]  }
  0xf3   : > { %v5136_v0 = vadd.f32 %v5135_v61, %v5134_v53  ;;  %v7121_v3 = vadd.f32 %v5197_v60, %v3260_v56  ;;  %5694 = vmatpush3.bf16.msra.mxu1 %v6322_v55  ;;  %v6352_v55 = vld [vmem:[%s7912_s1 + $0x4c8] sm:$0xff]   ;;  %v6351_v61 = vld [vmem:[%s7912_s1 + $0x400] sm:$0xff]  }
  0xf4   : > { %v5137_v4 = vpop.f32.mrf.mxu0  ;;  %3848 = vmatmul.mubr.bf16.gmra.mxu0 %v6286_v48  ;;  %v5199_v7 = vpop.f32.mrf.mxu1  ;;  %5695 = vmatprep.subr.bf16.mxu1 %v6328_v63  ;;  %v6346_v48 = vld [vmem:[%s7912_s1 + $0x490] sm:$0xff]  }
  0xf5   : > { %v3263_v6 = vadd.f32 %v5136_v0, %v7087_v43  ;;  %3855 = vmatprep.mubr.bf16.mxu0 %v6292_v52  ;;  %5632 = vmatpush3.bf16.msra.mxu0 %v6298_v54  ;;  %v5200_v9 = vadd.f32 %v5199_v7, %v5198_v1  ;;  %v6347_v52 = vld [vmem:[%s7912_s1 + $0x440] sm:$0xff]  }
  0xf6   : > { %v5138_v10 = vpop.f32.mrf.mxu0  ;;  %5633 = vmatprep.subr.bf16.mxu0 %v6303_v59  ;;  %v5201_v14 = vpop.f32.mrf.mxu1  ;;  %3945 = vmatmul.mubr.bf16.gmra.mxu1 %v6291_v58  ;;  %v6314_v58 = vld [vmem:[%s6671_s13 + $0x39c] ss:$108 sps:$4 sm:$0xff]   ;;  %v6354_v1 = vld [vmem:[%s7912_s1 + $0x4c0] sm:$0xff]  }
  0xf7   : > { %v5139_v13 = vadd.f32 %v5138_v10, %v5137_v4  ;;  %v7135_v16 = vadd.f32 %v5200_v9, %v3263_v6  ;;  %3952 = vmatprep.mubr.bf16.mxu1 %v6296_v62  ;;  %5696 = vmatpush3.bf16.msra.mxu1 %v6329_v5  ;;  %v6353_v62 = vld [vmem:[%s7912_s1 + $0x488] sm:$0xff]   ;;  %v6359_v5 = vld [vmem:[%s7912_s1 + $0x578] sm:$0xff]  }
  0xf8   : > { %v5140_v17 = vpop.f32.mrf.mxu0  ;;  %v5202_v20 = vpop.f32.mrf.mxu1  ;;  %5697 = vmatprep.subr.bf16.mxu1 %v6330_v8  ;;  %v6308_v8 = vld [vmem:[%s6671_s13 + $0x390] ss:$108 sps:$4 sm:$0xff]  }
  0xf9   : > { %v3268_v19 = vadd.f32 %v5139_v13, %v7087_v43  ;;  %5634 = vmatpush3.bf16.msra.mxu0 %v6306_v2  ;;  %v5203_v24 = vadd.f32 %v5202_v20, %v5201_v14  ;;  %v6321_v14 = vld [vmem:[%s6671_s13 + $0x46c] ss:$108 sps:$4 sm:$0xff]  }
  0xfa   : > { %v5141_v25 = vpop.f32.mrf.mxu0  ;;  %5635 = vmatprep.subr.bf16.mxu0 %v6311_v12  ;;  %v5204_v29 = vpop.f32.mrf.mxu1  ;;  %v6312_v20 = vld [vmem:[%s6671_s13 + $0x398] ss:$108 sps:$4 sm:$0xff]  }
  0xfb   : > { %v5142_v28 = vadd.f32 %v5141_v25, %v5140_v17  ;;  %v7155_v31 = vadd.f32 %v5203_v24, %v3268_v19  ;;  %5698 = vmatpush3.bf16.msra.mxu1 %v6334_v18 }
  0xfc   : > { %v5143_v32 = vpop.f32.mrf.mxu0  ;;  %3856 = vmatmul.mubr.bf16.gmra.mxu0 %v6294_v11  ;;  %v5205_v35 = vpop.f32.mrf.mxu1  ;;  %5699 = vmatprep.subr.bf16.mxu1 %v6340_v27  ;;  %v6358_v11 = vld [vmem:[%s7912_s1 + $0x480] sm:$0xff]  }
  0xfd   : > { %v3271_v34 = vadd.f32 %v5142_v28, %v7087_v43  ;;  %3863 = vmatprep.mubr.bf16.mxu0 %v6300_v15  ;;  %5636 = vmatpush3.bf16.msra.mxu0 %v6315_v22  ;;  %v5206_v37 = vadd.f32 %v5205_v35, %v5204_v29 }
  0xfe   : > { %v5144_v38 = vpop.f32.mrf.mxu0  ;;  %5637 = vmatprep.subr.bf16.mxu0 %v6323_v23  ;;  %v5207_v42 = vpop.f32.mrf.mxu1  ;;  %3953 = vmatmul.mubr.bf16.gmra.mxu1 %v6299_v21  ;;  %v6326_v23 = vld [vmem:[%s6671_s13 + $0x474] ss:$108 sps:$4 sm:$0xff]  }
  0xff   : > { %v5145_v41 = vadd.f32 %v5144_v38, %v5143_v32  ;;  %v7172_v46 = vadd.f32 %v5206_v37, %v3271_v34  ;;  %3960 = vmatprep.mubr.bf16.mxu1 %v6304_v26  ;;  %5700 = vmatpush3.bf16.msra.mxu1 %v6341_v33  ;;  %v6319_v33 = vld [vmem:[%s6671_s13 + $0x468] ss:$108 sps:$4 sm:$0xff]  }
 0x100   : > { %v5146_v47 = vpop.f32.mrf.mxu0  ;;  %v5208_v50 = vpop.f32.mrf.mxu1  ;;  %5701 = vmatprep.subr.bf16.mxu1 %v6342_v36  ;;  %v6333_v36 = vld [vmem:[%s6671_s13 + $0x544] ss:$108 sps:$4 sm:$0xff]  }
 0x101   : > { %v3276_v49 = vadd.f32 %v5145_v41, %v7087_v43  ;;  %5638 = vmatpush3.bf16.msra.mxu0 %v6327_v30  ;;  %v5209_v53 = vadd.f32 %v5208_v50, %v5207_v42  ;;  %v6324_v41 = vld [vmem:[%s6671_s13 + $0x470] ss:$108 sps:$4 sm:$0xff]  }
 0x102   : > { %v5147_v54 = vpop.f32.mrf.mxu0  ;;  %5639 = vmatprep.subr.bf16.mxu0 %v6335_v40  ;;  %v5210_v57 = vpop.f32.mrf.mxu1 }
 0x103   : > { %v5148_v56 = vadd.f32 %v5147_v54, %v5146_v47  ;;  %v7186_v59 = vadd.f32 %v5209_v53, %v3276_v49  ;;  %5702 = vmatpush3.bf16.msra.mxu1 %v6346_v48 }
 0x104   : > { %v5149_v60 = vpop.f32.mrf.mxu0  ;;  %3864 = vmatmul.mubr.bf16.gmra.mxu0 %v6302_v39  ;;  %v5211_v0 = vpop.f32.mrf.mxu1  ;;  %5703 = vmatprep.subr.bf16.mxu1 %v6352_v55 }
 0x105   : > { %v3279_v63 = vadd.f32 %v5148_v56, %v7087_v43  ;;  %3871 = vmatprep.mubr.bf16.mxu0 %v6310_v44  ;;  %5640 = vmatpush3.bf16.msra.mxu0 %v6339_v45  ;;  %v5212_v2 = vadd.f32 %v5211_v0, %v5210_v57  ;;  %v6338_v45 = vld [vmem:[%s6671_s13 + $0x54c] ss:$108 sps:$4 sm:$0xff]  }
 0x106   : > { %v5150_v4 = vpop.f32.mrf.mxu0  ;;  %5641 = vmatprep.subr.bf16.mxu0 %v6347_v52  ;;  %v5213_v7 = vpop.f32.mrf.mxu1  ;;  %3961 = vmatmul.mubr.bf16.gmra.mxu1 %v6307_v51  ;;  %v6396_v51 = vld [vmem:[%s7912_s1 + $0x5f8] sm:$0xff]   ;;  %v6331_v56 = vld [vmem:[%s6671_s13 + $0x540] ss:$108 sps:$4 sm:$0xff]  }
 0x107   : > { %v5151_v6 = vadd.f32 %v5150_v4, %v5149_v60  ;;  %v7202_v9 = vadd.f32 %v5212_v2, %v3279_v63  ;;  %3968 = vmatprep.mubr.bf16.mxu1 %v6314_v58  ;;  %5704 = vmatpush3.bf16.msra.mxu1 %v6353_v62  ;;  %v6345_v60 = vld [vmem:[%s6671_s13 + $0x61c] ss:$108 sps:$4 sm:$0xff]  }
 0x108   : > { %v5152_v10 = vpop.f32.mrf.mxu0  ;;  %v5214_v13 = vpop.f32.mrf.mxu1  ;;  %5705 = vmatprep.subr.bf16.mxu1 %v6354_v1  ;;  %v6336_v1 = vld [vmem:[%s6671_s13 + $0x548] ss:$108 sps:$4 sm:$0xff]  }
 0x109   : > { %v3284_v12 = vadd.f32 %v5151_v6, %v7087_v43  ;;  %5642 = vmatpush3.bf16.msra.mxu0 %v6351_v61  ;;  %v5215_v15 = vadd.f32 %v5214_v13, %v5213_v7 }
 0x10a   : > { %v5153_v17 = vpop.f32.mrf.mxu0  ;;  %5755 = vmatprep.subr.bf16.mxu0 %v6359_v5  ;;  %v5216_v19 = vpop.f32.mrf.mxu1  ;;  %v6350_v5 = vld [vmem:[%s6671_s13 + $0x624] ss:$108 sps:$4 sm:$0xff]  }
 0x10b   : > { %v5154_v18 = vadd.f32 %v5153_v17, %v5152_v10  ;;  %v7210_v21 = vadd.f32 %v5215_v15, %v3284_v12  ;;  %5706 = vmatpush3.bf16.msra.mxu1 %v6358_v11  ;;  %v6343_v15 = vld [vmem:[%s6671_s13 + $0x618] ss:$108 sps:$4 sm:$0xff]  }
 0x10c   : > { %v5155_v22 = vpop.f32.mrf.mxu0  ;;  %3872 = vmatmul.mubr.bf16.gmra.mxu0 %v6308_v8  ;;  %v5217_v25 = vpop.f32.mrf.mxu1  ;;  %5819 = vmatprep.subr.bf16.mxu1 %v6396_v51 }
 0x10d   : > { %v3287_v24 = vadd.f32 %v5154_v18, %v7087_v43  ;;  %3879 = vmatprep.mubr.bf16.mxu0 %v6321_v14  ;;  %v5218_v26 = vadd.f32 %v5217_v25, %v5216_v19  ;;  %v6357_v19 = vld [vmem:[%s6671_s13 + $0x44] ss:$108 sps:$4 sm:$0xff]   ;;  %v6348_v25 = vld [vmem:[%s6671_s13 + $0x620] ss:$108 sps:$4 sm:$0xff]  }
 0x10e   : > { %v5156_v27 = vpop.f32.mrf.mxu0  ;;  %v5219_v29 = vpop.f32.mrf.mxu1  ;;  %3969 = vmatmul.mubr.bf16.gmra.mxu1 %v6312_v20 }
 0x10f   : > { %v5157_v28 = vadd.f32 %v5156_v27, %v5155_v22  ;;  %v7214_v30 = vadd.f32 %v5218_v26, %v3287_v24  ;;  %3976 = vmatprep.mubr.bf16.mxu1 %v6326_v23 }
 0x110   : > { %v5158_v32 = vpop.f32.mrf.mxu0  ;;  %v5220_v35 = vpop.f32.mrf.mxu1 }
 0x111   : > { %v3292_v34 = vadd.f32 %v5157_v28, %v7087_v43  ;;  %v5221_v37 = vadd.f32 %v5220_v35, %v5219_v29  ;;  %v6362_v28 = vld [vmem:[%s6671_s13 + $0x4c] ss:$108 sps:$4 sm:$0xff]  }
 0x112   : > { %v5159_v38 = vpop.f32.mrf.mxu0  ;;  %v5222_v40 = vpop.f32.mrf.mxu1 }
 0x113   : > { %v5160_v39 = vadd.f32 %v5159_v38, %v5158_v32  ;;  %v7220_v42 = vadd.f32 %v5221_v37, %v3292_v34  ;;  %v6355_v37 = vld [vmem:[%s6671_s13 + $0x40] ss:$108 sps:$4 sm:$0xff]  }
 0x114   : > { %v5161_v44 = vpop.f32.mrf.mxu0  ;;  %3880 = vmatmul.mubr.bf16.gmra.mxu0 %v6319_v33  ;;  %v5223_v48 = vpop.f32.mrf.mxu1 }
 0x115   : > { %v3295_v47 = vadd.f32 %v5160_v39, %v7087_v43  ;;  %3887 = vmatprep.mubr.bf16.mxu0 %v6333_v36  ;;  %v5224_v49 = vadd.f32 %v5223_v48, %v5222_v40  ;;  %v6363_v40 = vld [vmem:[%s7912_s1 + $0x538] sm:$0xff]  }
 0x116   : > { %v5162_v50 = vpop.f32.mrf.mxu0  ;;  %v5225_v53 = vpop.f32.mrf.mxu1  ;;  %3977 = vmatmul.mubr.bf16.gmra.mxu1 %v6324_v41 }
 0x117   : > { %v5163_v52 = vadd.f32 %v5162_v50, %v5161_v44  ;;  %v7227_v54 = vadd.f32 %v5224_v49, %v3295_v47  ;;  %3984 = vmatprep.mubr.bf16.mxu1 %v6338_v45  ;;  %v6360_v45 = vld [vmem:[%s6671_s13 + $0x48] ss:$108 sps:$4 sm:$0xff]  }
 0x118   : > { %v5164_v55 = vpop.f32.mrf.mxu0  ;;  %v5226_v58 = vpop.f32.mrf.mxu1  ;;  %v6366_v47 = vld [vmem:[%s6671_s13 + $0x11c] ss:$108 sps:$4 sm:$0xff]   ;;  %v6367_v50 = vld [vmem:[%s7912_s1 + $0x570] sm:$0xff]  }
 0x119   : > { %v3300_v57 = vadd.f32 %v5163_v52, %v7087_v43  ;;  %v5227_v61 = vadd.f32 %v5226_v58, %v5225_v53  ;;  %v6370_v53 = vld [vmem:[%s6671_s13 + $0x124] ss:$108 sps:$4 sm:$0xff]   ;;  %v6397_v58 = vld [vmem:[%s7912_s1 + $0x5b8] sm:$0xff]  }
 0x11a   : > { %v5165_v62 = vpop.f32.mrf.mxu0  ;;  %v5228_v0 = vpop.f32.mrf.mxu1 }
 0x11b   : > { %v5166_v63 = vadd.f32 %v5165_v62, %v5164_v55  ;;  %v7233_v2 = vadd.f32 %v5227_v61, %v3300_v57  ;;  %v6371_v55 = vld [vmem:[%s7912_s1 + $0x530] sm:$0xff]  }
 0x11c   : > { %v5167_v4 = vpop.f32.mrf.mxu0  ;;  %3888 = vmatmul.mubr.bf16.gmra.mxu0 %v6331_v56  ;;  %v5229_v7 = vpop.f32.mrf.mxu1  ;;  %v6398_v62 = vld [vmem:[%s7912_s1 + $0x5f0] sm:$0xff]  }
 0x11d   : > { %v3303_v6 = vadd.f32 %v5166_v63, %v7087_v43  ;;  %3895 = vmatprep.mubr.bf16.mxu0 %v6345_v60  ;;  %v5230_v8 = vadd.f32 %v5229_v7, %v5228_v0  ;;  %v6379_v7 = vld [vmem:[%s7912_s1 + $0x528] sm:$0xff]  }
 0x11e   : > { %v5168_v10 = vpop.f32.mrf.mxu0  ;;  %v5231_v12 = vpop.f32.mrf.mxu1  ;;  %3985 = vmatmul.mubr.bf16.gmra.mxu1 %v6336_v1  ;;  %v6364_v1 = vld [vmem:[%s6671_s13 + $0x118] ss:$108 sps:$4 sm:$0xff]  }
 0x11f   : > { %v5169_v11 = vadd.f32 %v5168_v10, %v5167_v4  ;;  %v7237_v13 = vadd.f32 %v5230_v8, %v3303_v6  ;;  %3992 = vmatprep.mubr.bf16.mxu1 %v6350_v5  ;;  %v6375_v4 = vld [vmem:[%s7912_s1 + $0x568] sm:$0xff]  }
 0x120   : > { %v5170_v14 = vpop.f32.mrf.mxu0  ;;  %v5232_v18 = vpop.f32.mrf.mxu1 }
 0x121   : > { %v3308_v17 = vadd.f32 %v5169_v11, %v7087_v43  ;;  %v5233_v20 = vadd.f32 %v5232_v18, %v5231_v12  ;;  %v6402_v11 = vld [vmem:[%s7912_s1 + $0x5b0] sm:$0xff]  }
 0x122   : > { %v5171_v22 = vpop.f32.mrf.mxu0  ;;  %v5234_v24 = vpop.f32.mrf.mxu1 }
 0x123   : > { %v5172_v23 = vadd.f32 %v5171_v22, %v5170_v14  ;;  %v7243_v26 = vadd.f32 %v5233_v20, %v3308_v17  ;;  %v6383_v17 = vld [vmem:[%s7912_s1 + $0x560] sm:$0xff]   ;;  %v6378_v20 = vld [vmem:[%s6671_s13 + $0x1fc] ss:$108 sps:$4 sm:$0xff]  }
 0x124   : > { %v5173_v27 = vpop.f32.mrf.mxu0  ;;  %3896 = vmatmul.mubr.bf16.gmra.mxu0 %v6343_v15  ;;  %v5235_v32 = vpop.f32.mrf.mxu1  ;;  %v6368_v15 = vld [vmem:[%s6671_s13 + $0x120] ss:$108 sps:$4 sm:$0xff]  }
 0x125   : > { %v3311_v29 = vadd.f32 %v5172_v23, %v7087_v43  ;;  %4033 = vmatprep.mubr.bf16.mxu0 %v6357_v19  ;;  %v5236_v33 = vadd.f32 %v5235_v32, %v5234_v24  ;;  %v6408_v22 = vld [vmem:[%s7912_s1 + $0x5e8] sm:$0xff]  }
 0x126   : > { %v5174_v34 = vpop.f32.mrf.mxu0  ;;  %v5237_v36 = vpop.f32.mrf.mxu1  ;;  %3993 = vmatmul.mubr.bf16.gmra.mxu1 %v6348_v25 }
 0x127   : > { %v5175_v35 = vadd.f32 %v5174_v34, %v5173_v27  ;;  %v7248_v38 = vadd.f32 %v5236_v33, %v3311_v29  ;;  %4130 = vmatprep.mubr.bf16.mxu1 %v6362_v28  ;;  %v6409_v28 = vld [vmem:[%s7912_s1 + $0x5a8] sm:$0xff]   ;;  %v6410_v33 = vld [vmem:[%s7912_s1 + $0x5e0] sm:$0xff]  }
 0x128   : > { %v5176_v39 = vpop.f32.mrf.mxu0  ;;  %v5238_v44 = vpop.f32.mrf.mxu1 }
 0x129   : > { %v3316_v41 = vadd.f32 %v5175_v35, %v7087_v43  ;;  %v5239_v48 = vadd.f32 %v5238_v44, %v5237_v36  ;;  %v6391_v36 = vld [vmem:[%s7912_s1 + $0x558] sm:$0xff]  }
 0x12a   : > { %v5177_v49 = vpop.f32.mrf.mxu0  ;;  %v5240_v52 = vpop.f32.mrf.mxu1 }
 0x12b   : > { %v5178_v51 = vadd.f32 %v5177_v49, %v5176_v39  ;;  %v7263_v56 = vadd.f32 %v5239_v48, %v3316_v41  ;;  %v6376_v49 = vld [vmem:[%s6671_s13 + $0x1f8] ss:$108 sps:$4 sm:$0xff]  }
 0x12c   : > { %v5259_v57 = vpop.f32.mrf.mxu0  ;;  %4034 = vmatmul.mubr.bf16.vlgmr.msra.gmra.mxu0 %v6355_v37  ;;  %v5241_v61 = vpop.f32.mrf.mxu1 }
 0x12d   : > { %v3319_v60 = vadd.f32 %v5178_v51, %v7087_v43  ;;  %5756 = vmatpush3.bf16.msra.mxu0 %v6363_v40  ;;  %4041 = vmatprep.mubr.bf16.mxu0 %v6366_v47  ;;  %v5242_v63 = vadd.f32 %v5241_v61, %v5240_v52  ;;  %v6374_v43 = vld [vmem:[%s6671_s13 + $0x1f4] ss:$108 sps:$4 sm:$0xff]   ;;  %v6382_v40 = vld [vmem:[%s6671_s13 + $0x2cc] ss:$108 sps:$4 sm:$0xff]  }
 0x12e   : > { %v5260_v0 = vpop.f32.mrf.mxu0  ;;  %5757 = vmatprep.subr.bf16.mxu0 %v6367_v50  ;;  %v5323_v6 = vpop.f32.mrf.mxu1  ;;  %4131 = vmatmul.mubr.bf16.vlgmr.msra.gmra.mxu1 %v6360_v45  ;;  %v6414_v45 = vld [vmem:[%s7912_s1 + $0x5a0] sm:$0xff]   ;;  %v6395_v50 = vld [vmem:[%s7912_s1 + $0x518] sm:$0xff]   ;;  %v6403_v51 = vld [vmem:[%s7912_s1 + $0x550] sm:$0xff]  }
 0x12f   : > { %v5261_v5 = vadd.f32 %v5260_v0, %v5259_v57  ;;  %v7280_v8 = vadd.f32 %v5242_v63, %v3319_v60  ;;  %4138 = vmatprep.mubr.bf16.mxu1 %v6370_v53  ;;  %5820 = vmatpush3.bf16.msra.mxu1 %v6397_v58  ;;  %v6407_v60 = vld [vmem:[%s7912_s1 + $0x510] sm:$0xff]   ;;  %v6421_v63 = vld [vmem:[%s7912_s1 + $0x598] sm:$0xff]  }
 0x130   : > { %v5262_v10 = vpop.f32.mrf.mxu0  ;;  %v5324_v14 = vpop.f32.mrf.mxu1  ;;  %5821 = vmatprep.subr.bf16.mxu1 %v6398_v62 }
 0x131   : > { %v3454_v12 = vadd.f32 %v5261_v5, %v7121_v3  ;;  %5758 = vmatpush3.bf16.msra.mxu0 %v6371_v55  ;;  %v5325_v18 = vadd.f32 %v5324_v14, %v5323_v6  ;;  %v6387_v3 = vld [vmem:[%s7912_s1 + $0x520] sm:$0xff]  }
 0x132   : > { %v5263_v19 = vpop.f32.mrf.mxu0  ;;  %5759 = vmatprep.subr.bf16.mxu0 %v6375_v4  ;;  %v5326_v24 = vpop.f32.mrf.mxu1  ;;  %v6386_v55 = vld [vmem:[%s6671_s13 + $0x2d4] ss:$108 sps:$4 sm:$0xff]  }
 0x133   : > { %v5264_v23 = vadd.f32 %v5263_v19, %v5262_v10  ;;  %v7297_v25 = vadd.f32 %v5325_v18, %v3454_v12  ;;  %5822 = vmatpush3.bf16.msra.mxu1 %v6402_v11  ;;  %v6422_v4 = vld [vmem:[%s7912_s1 + $0x5d0] sm:$0xff]  }
 0x134   : > { %v5265_v27 = vpop.f32.mrf.mxu0  ;;  %4042 = vmatmul.mubr.bf16.gmra.mxu0 %v6364_v1  ;;  %v5327_v32 = vpop.f32.mrf.mxu1  ;;  %5823 = vmatprep.subr.bf16.mxu1 %v6408_v22  ;;  %v6427_v22 = vld [vmem:[%s7912_s1 + $0x540] sm:$0xff]  }
 0x135   : > { %v3457_v29 = vadd.f32 %v5264_v23, %v7135_v16  ;;  %4049 = vmatprep.mubr.bf16.mxu0 %v6374_v43  ;;  %5760 = vmatpush3.bf16.msra.mxu0 %v6379_v7  ;;  %v5328_v34 = vadd.f32 %v5327_v32, %v5326_v24  ;;  %v6372_v16 = vld [vmem:[%s6671_s13 + $0x1f0] ss:$108 sps:$4 sm:$0xff]   ;;  %v6380_v43 = vld [vmem:[%s6671_s13 + $0x2c8] ss:$108 sps:$4 sm:$0xff]  }
 0x136   : > { %v5266_v35 = vpop.f32.mrf.mxu0  ;;  %5761 = vmatprep.subr.bf16.mxu0 %v6383_v17  ;;  %v5329_v39 = vpop.f32.mrf.mxu1  ;;  %4139 = vmatmul.mubr.bf16.gmra.mxu1 %v6368_v15  ;;  %v6415_v7 = vld [vmem:[%s7912_s1 + $0x548] sm:$0xff]   ;;  %v6426_v17 = vld [vmem:[%s7912_s1 + $0x590] sm:$0xff]  }
 0x137   : > { %v5267_v37 = vadd.f32 %v5266_v35, %v5265_v27  ;;  %v7311_v41 = vadd.f32 %v5328_v34, %v3457_v29  ;;  %4146 = vmatprep.mubr.bf16.mxu1 %v6378_v20  ;;  %5824 = vmatpush3.bf16.msra.mxu1 %v6409_v28  ;;  %v6419_v15 = vld [vmem:[%s7912_s1 + $0x508] sm:$0xff]   ;;  %v6384_v20 = vld [vmem:[%s6671_s13 + $0x2d0] ss:$108 sps:$4 sm:$0xff]  }
 0x138   : > { %v5268_v44 = vpop.f32.mrf.mxu0  ;;  %v5330_v48 = vpop.f32.mrf.mxu1  ;;  %5825 = vmatprep.subr.bf16.mxu1 %v6410_v33  ;;  %v6394_v29 = vld [vmem:[%s6671_s13 + $0x3ac] ss:$108 sps:$4 sm:$0xff]  }
 0x139   : > { %v3462_v47 = vadd.f32 %v5267_v37, %v7155_v31  ;;  %5762 = vmatpush3.bf16.msra.mxu0 %v6387_v3  ;;  %v5331_v52 = vadd.f32 %v5330_v48, %v5329_v39  ;;  %v6420_v31 = vld [vmem:[%s7912_s1 + $0x5d8] sm:$0xff]   ;;  %v6432_v3 = vld [vmem:[%s7912_s1 + $0x5c8] sm:$0xff]   ;;  %v6434_v37 = vld [vmem:[%s7912_s1 + $0x5c0] sm:$0xff]  }
 0x13a   : > { %v5269_v53 = vpop.f32.mrf.mxu0  ;;  %5763 = vmatprep.subr.bf16.mxu0 %v6391_v36  ;;  %v5332_v58 = vpop.f32.mrf.mxu1  ;;  %v6433_v33 = vld [vmem:[%s7912_s1 + $0x588] sm:$0xff]   ;;  %v6431_v36 = vld [vmem:[%s7912_s1 + $0x500] sm:$0xff]  }
 0x13b   : > { %v5270_v57 = vadd.f32 %v5269_v53, %v5268_v44  ;;  %v7331_v61 = vadd.f32 %v5331_v52, %v3462_v47  ;;  %5826 = vmatpush3.bf16.msra.mxu1 %v6414_v45  ;;  %v6388_v45 = vld [vmem:[%s6671_s13 + $0x3a0] ss:$108 sps:$4 sm:$0xff]   ;;  %v6401_v52 = vld [vmem:[%s6671_s13 + $0x47c] ss:$108 sps:$4 sm:$0xff]  }
 0x13c   : > { %v5271_v62 = vpop.f32.mrf.mxu0  ;;  %4050 = vmatmul.mubr.bf16.gmra.mxu0 %v6372_v16  ;;  %v5333_v1 = vpop.f32.mrf.mxu1  ;;  %5827 = vmatprep.subr.bf16.mxu1 %v6420_v31  ;;  %v6392_v31 = vld [vmem:[%s6671_s13 + $0x3a8] ss:$108 sps:$4 sm:$0xff]  }
 0x13d   : > { %v3465_v0 = vadd.f32 %v5270_v57, %v7172_v46  ;;  %4057 = vmatprep.mubr.bf16.mxu0 %v6382_v40  ;;  %5764 = vmatpush3.bf16.msra.mxu0 %v6395_v50  ;;  %v5334_v5 = vadd.f32 %v5333_v1, %v5332_v58  ;;  %v6390_v46 = vld [vmem:[%s6671_s13 + $0x3a4] ss:$108 sps:$4 sm:$0xff]  }
 0x13e   : > { %v5272_v6 = vpop.f32.mrf.mxu0  ;;  %5765 = vmatprep.subr.bf16.mxu0 %v6403_v51  ;;  %v5335_v11 = vpop.f32.mrf.mxu1  ;;  %4147 = vmatmul.mubr.bf16.gmra.mxu1 %v6376_v49  ;;  %v6438_v49 = vld [vmem:[%s7912_s1 + $0x580] sm:$0xff]  }
 0x13f   : > { %v5273_v10 = vadd.f32 %v5272_v6, %v5271_v62  ;;  %v7345_v12 = vadd.f32 %v5334_v5, %v3465_v0  ;;  %4154 = vmatprep.mubr.bf16.mxu1 %v6386_v55  ;;  %5828 = vmatpush3.bf16.msra.mxu1 %v6421_v63 }
 0x140   : > { %v5274_v14 = vpop.f32.mrf.mxu0  ;;  %v5336_v19 = vpop.f32.mrf.mxu1  ;;  %5829 = vmatprep.subr.bf16.mxu1 %v6422_v4 }
 0x141   : > { %v3470_v18 = vadd.f32 %v5273_v10, %v7186_v59  ;;  %5766 = vmatpush3.bf16.msra.mxu0 %v6407_v60  ;;  %v5337_v23 = vadd.f32 %v5336_v19, %v5335_v11  ;;  %v6406_v60 = vld [vmem:[%s6671_s13 + $0x484] ss:$108 sps:$4 sm:$0xff]  }
 0x142   : > { %v5275_v24 = vpop.f32.mrf.mxu0  ;;  %5767 = vmatprep.subr.bf16.mxu0 %v6415_v7  ;;  %v5338_v28 = vpop.f32.mrf.mxu1  ;;  %v6399_v11 = vld [vmem:[%s6671_s13 + $0x478] ss:$108 sps:$4 sm:$0xff]  }
 0x143   : > { %v5276_v27 = vadd.f32 %v5275_v24, %v5274_v14  ;;  %v7362_v32 = vadd.f32 %v5337_v23, %v3470_v18  ;;  %5830 = vmatpush3.bf16.msra.mxu1 %v6426_v17  ;;  %v6418_v24 = vld [vmem:[%s6671_s13 + $0x55c] ss:$108 sps:$4 sm:$0xff]  }
 0x144   : > { %v5277_v59 = vpop.f32.mrf.mxu0  ;;  %4058 = vmatmul.mubr.bf16.gmra.mxu0 %v6380_v43  ;;  %v5339_v35 = vpop.f32.mrf.mxu1  ;;  %5831 = vmatprep.subr.bf16.mxu1 %v6432_v3 }
 0x145   : > { %v3473_v34 = vadd.f32 %v5276_v27, %v7202_v9  ;;  %4065 = vmatprep.mubr.bf16.mxu0 %v6390_v46  ;;  %5768 = vmatpush3.bf16.msra.mxu0 %v6419_v15  ;;  %v5340_v39 = vadd.f32 %v5339_v35, %v5338_v28  ;;  %v6439_v9 = vld [vmem:[%s7912_s1 + $0x678] sm:$0xff]  }
 0x146   : > { %v5278_v16 = vpop.f32.mrf.mxu0  ;;  %5769 = vmatprep.subr.bf16.mxu0 %v6427_v22  ;;  %v5341_v44 = vpop.f32.mrf.mxu1  ;;  %4155 = vmatmul.mubr.bf16.gmra.mxu1 %v6384_v20  ;;  %v6404_v20 = vld [vmem:[%s6671_s13 + $0x480] ss:$108 sps:$4 sm:$0xff]   ;;  %v6411_v35 = vld [vmem:[%s6671_s13 + $0x550] ss:$108 sps:$4 sm:$0xff]  }
 0x147   : > { %v5279_v40 = vadd.f32 %v5278_v16, %v5277_v59  ;;  %v7378_v47 = vadd.f32 %v5340_v39, %v3473_v34  ;;  %4162 = vmatprep.mubr.bf16.mxu1 %v6394_v29  ;;  %5832 = vmatpush3.bf16.msra.mxu1 %v6433_v33  ;;  %v6425_v39 = vld [vmem:[%s6671_s13 + $0x62c] ss:$108 sps:$4 sm:$0xff]  }
 0x148   : > { %v5280_v48 = vpop.f32.mrf.mxu0  ;;  %v5342_v51 = vpop.f32.mrf.mxu1  ;;  %5833 = vmatprep.subr.bf16.mxu1 %v6434_v37 }
 0x149   : > { %v3478_v50 = vadd.f32 %v5279_v40, %v7210_v21  ;;  %5770 = vmatpush3.bf16.msra.mxu0 %v6431_v36  ;;  %v5343_v53 = vadd.f32 %v5342_v51, %v5341_v44  ;;  %v7392_v21 = vld [vmem:[%s7912_s1 + $0x6b8] sm:$0xff]  }
 0x14a   : > { %v5281_v55 = vpop.f32.mrf.mxu0  ;;  %5883 = vmatprep.subr.bf16.mxu0 %v6439_v9  ;;  %v5344_v58 = vpop.f32.mrf.mxu1  ;;  %v6416_v44 = vld [vmem:[%s6671_s13 + $0x558] ss:$108 sps:$4 sm:$0xff]  }
 0x14b   : > { %v5282_v57 = vadd.f32 %v5281_v55, %v5280_v48  ;;  %v7387_v62 = vadd.f32 %v5343_v53, %v3478_v50  ;;  %5834 = vmatpush3.bf16.msra.mxu1 %v6438_v49  ;;  %v6430_v49 = vld [vmem:[%s6671_s13 + $0x634] ss:$108 sps:$4 sm:$0xff]  }
 0x14c   : > { %v5283_v63 = vpop.f32.mrf.mxu0  ;;  %4066 = vmatmul.mubr.bf16.gmra.mxu0 %v6388_v45  ;;  %v5345_v1 = vpop.f32.mrf.mxu1  ;;  %5963 = vmatprep.subr.bf16.mxu1 %v7392_v21 }
 0x14d   : > { %v3481_v0 = vadd.f32 %v5282_v57, %v7214_v30  ;;  %4073 = vmatprep.mubr.bf16.mxu0 %v6401_v52  ;;  %v5346_v4 = vadd.f32 %v5345_v1, %v5344_v58  ;;  %v6413_v30 = vld [vmem:[%s6671_s13 + $0x554] ss:$108 sps:$4 sm:$0xff]  }
 0x14e   : > { %v5284_v5 = vpop.f32.mrf.mxu0  ;;  %v5347_v43 = vpop.f32.mrf.mxu1  ;;  %4163 = vmatmul.mubr.bf16.gmra.mxu1 %v6392_v31  ;;  %v6423_v58 = vld [vmem:[%s6671_s13 + $0x628] ss:$108 sps:$4 sm:$0xff]  }
 0x14f   : > { %v5285_v6 = vadd.f32 %v5284_v5, %v5283_v63  ;;  %v7396_v7 = vadd.f32 %v5346_v4, %v3481_v0  ;;  %4170 = vmatprep.mubr.bf16.mxu1 %v6406_v60  ;;  %v6437_v0 = vld [vmem:[%s6671_s13 + $0x54] ss:$108 sps:$4 sm:$0xff]  }
 0x150   : > { %v5286_v10 = vpop.f32.mrf.mxu0  ;;  %v5348_v14 = vpop.f32.mrf.mxu1 }
 0x151   : > { %v3486_v46 = vadd.f32 %v5285_v6, %v7220_v42  ;;  %v5349_v15 = vadd.f32 %v5348_v14, %v5347_v43  ;;  %v6428_v6 = vld [vmem:[%s6671_s13 + $0x630] ss:$108 sps:$4 sm:$0xff]  }
 0x152   : > { %v5287_v17 = vpop.f32.mrf.mxu0  ;;  %v5350_v19 = vpop.f32.mrf.mxu1 }
 0x153   : > { %v5288_v18 = vadd.f32 %v5287_v17, %v5286_v10  ;;  %v7402_v22 = vadd.f32 %v5349_v15, %v3486_v46 }
 0x154   : > { %v5289_v23 = vpop.f32.mrf.mxu0  ;;  %4074 = vmatmul.mubr.bf16.gmra.mxu0 %v6399_v11  ;;  %v5351_v27 = vpop.f32.mrf.mxu1  ;;  %v6442_v11 = vld [vmem:[%s6671_s13 + $0x5c] ss:$108 sps:$4 sm:$0xff]  }
 0x155   : > { %v3489_v3 = vadd.f32 %v5288_v18, %v7227_v54  ;;  %4081 = vmatprep.mubr.bf16.mxu0 %v6413_v30  ;;  %v5352_v28 = vadd.f32 %v5351_v27, %v5350_v19  ;;  %v6435_v18 = vld [vmem:[%s6671_s13 + $0x50] ss:$108 sps:$4 sm:$0xff]  }
 0x156   : > { %v5290_v42 = vpop.f32.mrf.mxu0  ;;  %v5353_v59 = vpop.f32.mrf.mxu1  ;;  %4171 = vmatmul.mubr.bf16.gmra.mxu1 %v6404_v20 }
 0x157   : > { %v5291_v29 = vadd.f32 %v5290_v42, %v5289_v23  ;;  %v7406_v33 = vadd.f32 %v5352_v28, %v3489_v3  ;;  %4178 = vmatprep.mubr.bf16.mxu1 %v6418_v24  ;;  %v6443_v23 = vld [vmem:[%s7912_s1 + $0x638] sm:$0xff]   ;;  %v6447_v42 = vld [vmem:[%s7912_s1 + $0x670] sm:$0xff]  }
 0x158   : > { %v5292_v34 = vpop.f32.mrf.mxu0  ;;  %v5354_v37 = vpop.f32.mrf.mxu1  ;;  %v6446_v3 = vld [vmem:[%s6671_s13 + $0x12c] ss:$108 sps:$4 sm:$0xff]  }
 0x159   : > { %v3494_v36 = vadd.f32 %v5291_v29, %v7233_v2  ;;  %v5355_v16 = vadd.f32 %v5354_v37, %v5353_v59 }
 0x15a   : > { %v5293_v54 = vpop.f32.mrf.mxu0  ;;  %v5356_v40 = vpop.f32.mrf.mxu1 }
 0x15b   : > { %v5294_v9 = vadd.f32 %v5293_v54, %v5292_v34  ;;  %v7412_v45 = vadd.f32 %v5355_v16, %v3494_v36  ;;  %v6440_v34 = vld [vmem:[%s6671_s13 + $0x58] ss:$108 sps:$4 sm:$0xff]   ;;  %v6481_v54 = vld [vmem:[%s7912_s1 + $0x6b0] sm:$0xff]  }
 0x15c   : > { %v5295_v48 = vpop.f32.mrf.mxu0  ;;  %4082 = vmatmul.mubr.bf16.gmra.mxu0 %v6411_v35  ;;  %v5357_v51 = vpop.f32.mrf.mxu1  ;;  %v6450_v35 = vld [vmem:[%s6671_s13 + $0x134] ss:$108 sps:$4 sm:$0xff]  }
 0x15d   : > { %v3497_v50 = vadd.f32 %v5294_v9, %v7237_v13  ;;  %4089 = vmatprep.mubr.bf16.mxu0 %v6425_v39  ;;  %v5358_v52 = vadd.f32 %v5357_v51, %v5356_v40 }
 0x15e   : > { %v5296_v2 = vpop.f32.mrf.mxu0  ;;  %v5359_v55 = vpop.f32.mrf.mxu1  ;;  %4179 = vmatmul.mubr.bf16.gmra.mxu1 %v6416_v44  ;;  %v6455_v44 = vld [vmem:[%s7912_s1 + $0x668] sm:$0xff]  }
 0x15f   : > { %v5297_v53 = vadd.f32 %v5296_v2, %v5295_v48  ;;  %v7416_v31 = vadd.f32 %v5358_v52, %v3497_v50  ;;  %4186 = vmatprep.mubr.bf16.mxu1 %v6430_v49  ;;  %v6444_v50 = vld [vmem:[%s6671_s13 + $0x128] ss:$108 sps:$4 sm:$0xff]   ;;  %v6454_v52 = vld [vmem:[%s6671_s13 + $0x204] ss:$108 sps:$4 sm:$0xff]  }
 0x160   : > { %v5298_v57 = vpop.f32.mrf.mxu0  ;;  %v5360_v63 = vpop.f32.mrf.mxu1  ;;  %v6459_v2 = vld [vmem:[%s7912_s1 + $0x628] sm:$0xff]  }
 0x161   : > { %v3502_v60 = vadd.f32 %v5297_v53, %v7243_v26  ;;  %v5361_v1 = vadd.f32 %v5360_v63, %v5359_v55  ;;  %v6486_v63 = vld [vmem:[%s7912_s1 + $0x6a8] sm:$0xff]  }
 0x162   : > { %v5299_v13 = vpop.f32.mrf.mxu0  ;;  %v5362_v5 = vpop.f32.mrf.mxu1 }
 0x163   : > { %v5300_v4 = vadd.f32 %v5299_v13, %v5298_v57  ;;  %v7422_v43 = vadd.f32 %v5361_v1, %v3502_v60  ;;  %v6463_v57 = vld [vmem:[%s7912_s1 + $0x660] sm:$0xff]  }
 0x164   : > { %v5301_v10 = vpop.f32.mrf.mxu0  ;;  %4090 = vmatmul.mubr.bf16.gmra.mxu0 %v6423_v58  ;;  %v5363_v14 = vpop.f32.mrf.mxu1 }
 0x165   : > { %v3505_v46 = vadd.f32 %v5300_v4, %v7248_v38  ;;  %4227 = vmatprep.mubr.bf16.mxu0 %v6437_v0  ;;  %v5364_v30 = vadd.f32 %v5363_v14, %v5362_v5  ;;  %v6458_v4 = vld [vmem:[%s6671_s13 + $0x20c] ss:$108 sps:$4 sm:$0xff]  }
 0x166   : > { %v5302_v26 = vpop.f32.mrf.mxu0  ;;  %v5365_v17 = vpop.f32.mrf.mxu1  ;;  %4187 = vmatmul.mubr.bf16.gmra.mxu1 %v6428_v6 }
 0x167   : > { %v5303_v15 = vadd.f32 %v5302_v26, %v5301_v10  ;;  %v7427_v19 = vadd.f32 %v5364_v30, %v3505_v46  ;;  %4324 = vmatprep.mubr.bf16.mxu1 %v6442_v11  ;;  %v6467_v10 = vld [vmem:[%s7912_s1 + $0x620] sm:$0xff]  }
 0x168   : > { %v5304_v20 = vpop.f32.mrf.mxu0  ;;  %v5366_v24 = vpop.f32.mrf.mxu1  ;;  %v6491_v11 = vld [vmem:[%s7912_s1 + $0x6a0] sm:$0xff]  }
 0x169   : > { %v3510_v38 = vadd.f32 %v5303_v15, %v7263_v56  ;;  %v5367_v27 = vadd.f32 %v5366_v24, %v5365_v17  ;;  %v6451_v56 = vld [vmem:[%s7912_s1 + $0x630] sm:$0xff]   ;;  %v6475_v24 = vld [vmem:[%s7912_s1 + $0x618] sm:$0xff]  }
 0x16a   : > { %v5305_v28 = vpop.f32.mrf.mxu0  ;;  %v5368_v59 = vpop.f32.mrf.mxu1 }
 0x16b   : > { %v5306_v29 = vadd.f32 %v5305_v28, %v5304_v20  ;;  %v7439_v36 = vadd.f32 %v5367_v27, %v3510_v38  ;;  %v6462_v38 = vld [vmem:[%s6671_s13 + $0x2dc] ss:$108 sps:$4 sm:$0xff]   ;;  %v6480_v28 = vld [vmem:[%s7912_s1 + $0x650] sm:$0xff]  }
 0x16c   : > { %v5387_v37 = vpop.f32.mrf.mxu0  ;;  %4228 = vmatmul.mubr.bf16.vlgmr.msra.gmra.mxu0 %v6435_v18  ;;  %v5369_v16 = vpop.f32.mrf.mxu1  ;;  %v6452_v18 = vld [vmem:[%s6671_s13 + $0x200] ss:$108 sps:$4 sm:$0xff]  }
 0x16d   : > { %v3513_v39 = vadd.f32 %v5306_v29, %v7280_v8  ;;  %5884 = vmatpush3.bf16.msra.mxu0 %v6443_v23  ;;  %4235 = vmatprep.mubr.bf16.mxu0 %v6446_v3  ;;  %v5370_v9 = vadd.f32 %v5369_v16, %v5368_v59  ;;  %v6456_v59 = vld [vmem:[%s6671_s13 + $0x208] ss:$108 sps:$4 sm:$0xff]  }
 0x16e   : > { %v5388_v40 = vpop.f32.mrf.mxu0  ;;  %5885 = vmatprep.subr.bf16.mxu0 %v6447_v42  ;;  %v5451_v49 = vpop.f32.mrf.mxu1  ;;  %4325 = vmatmul.mubr.bf16.vlgmr.msra.gmra.mxu1 %v6440_v34  ;;  %v6485_v16 = vld [vmem:[%s7912_s1 + $0x610] sm:$0xff]  }
 0x16f   : > { %v5389_v48 = vadd.f32 %v5388_v40, %v5387_v37  ;;  %v7452_v8 = vadd.f32 %v5370_v9, %v3513_v39  ;;  %4332 = vmatprep.mubr.bf16.mxu1 %v6450_v35  ;;  %5964 = vmatpush3.bf16.msra.mxu1 %v7392_v21  ;;  %v6448_v21 = vld [vmem:[%s6671_s13 + $0x130] ss:$108 sps:$4 sm:$0xff]  }
 0x170   : > { %v5390_v51 = vpop.f32.mrf.mxu0  ;;  %v5452_v55 = vpop.f32.mrf.mxu1  ;;  %5965 = vmatprep.subr.bf16.mxu1 %v6481_v54  ;;  %v6466_v37 = vld [vmem:[%s6671_s13 + $0x2e4] ss:$108 sps:$4 sm:$0xff]  }
 0x171   : > { %v3648_v53 = vadd.f32 %v5389_v48, %v7297_v25  ;;  %5886 = vmatpush3.bf16.msra.mxu0 %v6451_v56  ;;  %v5453_v58 = vadd.f32 %v5452_v55, %v5451_v49  ;;  %v6495_v55 = vld [vmem:[%s7912_s1 + $0x608] sm:$0xff]  }
 0x172   : > { %v5391_v60 = vpop.f32.mrf.mxu0  ;;  %5887 = vmatprep.subr.bf16.mxu0 %v6455_v44  ;;  %v5454_v1 = vpop.f32.mrf.mxu1 }
 0x173   : > { %v5392_v0 = vadd.f32 %v5391_v60, %v5390_v51  ;;  %v7467_v13 = vadd.f32 %v5453_v58, %v3648_v53  ;;  %5966 = vmatpush3.bf16.msra.mxu1 %v6481_v54  ;;  %v6501_v54 = vld [vmem:[%s7912_s1 + $0x690] sm:$0xff]   ;;  %v6460_v51 = vld [vmem:[%s6671_s13 + $0x2d8] ss:$108 sps:$4 sm:$0xff]  }
 0x174   : > { %v5393_v25 = vpop.f32.mrf.mxu0  ;;  %4236 = vmatmul.mubr.bf16.gmra.mxu0 %v6444_v50  ;;  %v5455_v6 = vpop.f32.mrf.mxu1  ;;  %5967 = vmatprep.subr.bf16.mxu1 %v6486_v63  ;;  %v6470_v53 = vld [vmem:[%s6671_s13 + $0x3b4] ss:$108 sps:$4 sm:$0xff]  }
 0x175   : > { %v3651_v5 = vadd.f32 %v5392_v0, %v7311_v41  ;;  %4243 = vmatprep.mubr.bf16.mxu0 %v6454_v52  ;;  %5888 = vmatpush3.bf16.msra.mxu0 %v6459_v2  ;;  %v5456_v46 = vadd.f32 %v5455_v6, %v5454_v1  ;;  %v6471_v41 = vld [vmem:[%s7912_s1 + $0x658] sm:$0xff]   ;;  %v6500_v60 = vld [vmem:[%s7912_s1 + $0x640] sm:$0xff]  }
 0x176   : > { %v5394_v14 = vpop.f32.mrf.mxu0  ;;  %5889 = vmatprep.subr.bf16.mxu0 %v6463_v57  ;;  %v5457_v26 = vpop.f32.mrf.mxu1  ;;  %4333 = vmatmul.mubr.bf16.gmra.mxu1 %v6448_v21  ;;  %v6464_v1 = vld [vmem:[%s6671_s13 + $0x2e0] ss:$108 sps:$4 sm:$0xff]  }
 0x177   : > { %v5395_v30 = vadd.f32 %v5394_v14, %v5393_v25  ;;  %v7480_v15 = vadd.f32 %v5456_v46, %v3651_v5  ;;  %4340 = vmatprep.mubr.bf16.mxu1 %v6458_v4  ;;  %5968 = vmatpush3.bf16.msra.mxu1 %v6486_v63  ;;  %v6474_v4 = vld [vmem:[%s6671_s13 + $0x3bc] ss:$108 sps:$4 sm:$0xff]  }
 0x178   : > { %v5396_v17 = vpop.f32.mrf.mxu0  ;;  %v5458_v23 = vpop.f32.mrf.mxu1  ;;  %5969 = vmatprep.subr.bf16.mxu1 %v6491_v11 }
 0x179   : > { %v3656_v20 = vadd.f32 %v5395_v30, %v7331_v61  ;;  %5890 = vmatpush3.bf16.msra.mxu0 %v6467_v10  ;;  %v5459_v3 = vadd.f32 %v5458_v23, %v5457_v26  ;;  %v6496_v61 = vld [vmem:[%s7912_s1 + $0x698] sm:$0xff]   ;;  %v6505_v10 = vld [vmem:[%s7912_s1 + $0x600] sm:$0xff]  }
 0x17a   : > { %v5397_v27 = vpop.f32.mrf.mxu0  ;;  %5891 = vmatprep.subr.bf16.mxu0 %v6471_v41  ;;  %v5460_v29 = vpop.f32.mrf.mxu1  ;;  %v6479_v23 = vld [vmem:[%s6671_s13 + $0x48c] ss:$108 sps:$4 sm:$0xff]  }
 0x17b   : > { %v5398_v42 = vadd.f32 %v5397_v27, %v5396_v17  ;;  %v7495_v34 = vadd.f32 %v5459_v3, %v3656_v20  ;;  %5970 = vmatpush3.bf16.msra.mxu1 %v6491_v11  ;;  %v6510_v11 = vld [vmem:[%s7912_s1 + $0x680] sm:$0xff]   ;;  %v6468_v17 = vld [vmem:[%s6671_s13 + $0x3b0] ss:$108 sps:$4 sm:$0xff]  }
 0x17c   : > { %v5399_v35 = vpop.f32.mrf.mxu0  ;;  %4244 = vmatmul.mubr.bf16.gmra.mxu0 %v6452_v18  ;;  %v5461_v39 = vpop.f32.mrf.mxu1  ;;  %5971 = vmatprep.subr.bf16.mxu1 %v6496_v61 }
 0x17d   : > { %v3659_v56 = vadd.f32 %v5398_v42, %v7345_v12  ;;  %4251 = vmatprep.mubr.bf16.mxu0 %v6462_v38  ;;  %5892 = vmatpush3.bf16.msra.mxu0 %v6475_v24  ;;  %v5462_v9 = vadd.f32 %v5461_v39, %v5460_v29  ;;  %v6490_v12 = vld [vmem:[%s7912_s1 + $0x648] sm:$0xff]   ;;  %v6484_v29 = vld [vmem:[%s6671_s13 + $0x494] ss:$108 sps:$4 sm:$0xff]  }
 0x17e   : > { %v5400_v40 = vpop.f32.mrf.mxu0  ;;  %5893 = vmatprep.subr.bf16.mxu0 %v6480_v28  ;;  %v5463_v48 = vpop.f32.mrf.mxu1  ;;  %4341 = vmatmul.mubr.bf16.gmra.mxu1 %v6456_v59  ;;  %v6472_v28 = vld [vmem:[%s6671_s13 + $0x3b8] ss:$108 sps:$4 sm:$0xff]  }
 0x17f   : > { %v5401_v44 = vadd.f32 %v5400_v40, %v5399_v35  ;;  %v7508_v49 = vadd.f32 %v5462_v9, %v3659_v56  ;;  %4348 = vmatprep.mubr.bf16.mxu1 %v6466_v37  ;;  %5972 = vmatpush3.bf16.msra.mxu1 %v6496_v61  ;;  %v6477_v9 = vld [vmem:[%s6671_s13 + $0x488] ss:$108 sps:$4 sm:$0xff]  }
 0x180   : > { %v5402_v50 = vpop.f32.mrf.mxu0  ;;  %v5464_v2 = vpop.f32.mrf.mxu1  ;;  %5973 = vmatprep.subr.bf16.mxu1 %v6501_v54 }
 0x181   : > { %v3664_v52 = vadd.f32 %v5401_v44, %v7362_v32  ;;  %5894 = vmatpush3.bf16.msra.mxu0 %v6485_v16  ;;  %v5465_v57 = vadd.f32 %v5464_v2, %v5463_v48  ;;  %v6506_v32 = vld [vmem:[%s7912_s1 + $0x688] sm:$0xff]   ;;  %v6489_v44 = vld [vmem:[%s6671_s13 + $0x564] ss:$108 sps:$4 sm:$0xff]  }
 0x182   : > { %v5403_v58 = vpop.f32.mrf.mxu0  ;;  %5895 = vmatprep.subr.bf16.mxu0 %v6490_v12  ;;  %v5466_v0 = vpop.f32.mrf.mxu1 }
 0x183   : > { %v5404_v63 = vadd.f32 %v5403_v58, %v5402_v50  ;;  %v7523_v21 = vadd.f32 %v5465_v57, %v3664_v52  ;;  %5974 = vmatpush3.bf16.msra.mxu1 %v6501_v54  ;;  %v6482_v52 = vld [vmem:[%s6671_s13 + $0x490] ss:$108 sps:$4 sm:$0xff]  }
 0x184   : > { %v5405_v25 = vpop.f32.mrf.mxu0  ;;  %4252 = vmatmul.mubr.bf16.gmra.mxu0 %v6460_v51  ;;  %v5467_v6 = vpop.f32.mrf.mxu1  ;;  %5975 = vmatprep.subr.bf16.mxu1 %v6506_v32 }
 0x185   : > { %v3667_v5 = vadd.f32 %v5404_v63, %v7378_v47  ;;  %4259 = vmatprep.mubr.bf16.mxu0 %v6470_v53  ;;  %5896 = vmatpush3.bf16.msra.mxu0 %v6495_v55  ;;  %v5468_v46 = vadd.f32 %v5467_v6, %v5466_v0  ;;  %v6494_v55 = vld [vmem:[%s6671_s13 + $0x56c] ss:$108 sps:$4 sm:$0xff]   ;;  %v6499_v6 = vld [vmem:[%s6671_s13 + $0x63c] ss:$108 sps:$4 sm:$0xff]  }
 0x186   : > { %v5406_v14 = vpop.f32.mrf.mxu0  ;;  %5897 = vmatprep.subr.bf16.mxu0 %v6500_v60  ;;  %v5469_v30 = vpop.f32.mrf.mxu1  ;;  %4349 = vmatmul.mubr.bf16.gmra.mxu1 %v6464_v1 }
 0x187   : > { %v5407_v41 = vadd.f32 %v5406_v14, %v5405_v25  ;;  %v7533_v47 = vadd.f32 %v5468_v46, %v3667_v5  ;;  %4356 = vmatprep.mubr.bf16.mxu1 %v6474_v4  ;;  %5976 = vmatpush3.bf16.msra.mxu1 %v6506_v32  ;;  %v6487_v25 = vld [vmem:[%s6671_s13 + $0x560] ss:$108 sps:$4 sm:$0xff]   ;;  %v6492_v14 = vld [vmem:[%s6671_s13 + $0x568] ss:$108 sps:$4 sm:$0xff]  }
 0x188   : > { %v5408_v26 = vpop.f32.mrf.mxu0  ;;  %v5470_v20 = vpop.f32.mrf.mxu1  ;;  %5977 = vmatprep.subr.bf16.mxu1 %v6510_v11 }
 0x189   : > { %v3672_v18 = vadd.f32 %v5407_v41, %v7387_v62  ;;  %5898 = vmatpush3.bf16.msra.mxu0 %v6505_v10  ;;  %v5471_v38 = vadd.f32 %v5470_v20, %v5469_v30 }
 0x18a   : > { %v5409_v24 = vpop.f32.mrf.mxu0  ;;  %v5472_v27 = vpop.f32.mrf.mxu1 }
 0x18b   : > { %v5410_v3 = vadd.f32 %v5409_v24, %v5408_v26  ;;  %v7539_v61 = vadd.f32 %v5471_v38, %v3672_v18  ;;  %5978 = vmatpush3.bf16.msra.mxu1 %v6510_v11  ;;  %v6504_v26 = vld [vmem:[%s6671_s13 + $0x644] ss:$108 sps:$4 sm:$0xff]  }
 0x18c   : > { %v5411_v42 = vpop.f32.mrf.mxu0  ;;  %4260 = vmatmul.mubr.bf16.gmra.mxu0 %v6468_v17  ;;  %v5473_v62 = vpop.f32.mrf.mxu1 }
 0x18d   : > { %v3675_v59 = vadd.f32 %v5410_v3, %v7396_v7  ;;  %4267 = vmatprep.mubr.bf16.mxu0 %v6479_v23  ;;  %v5474_v35 = vadd.f32 %v5473_v62, %v5472_v27  ;;  %v6497_v27 = vld [vmem:[%s6671_s13 + $0x638] ss:$108 sps:$4 sm:$0xff]  }
 0x18e   : > { %v5412_v37 = vpop.f32.mrf.mxu0  ;;  %v5475_v39 = vpop.f32.mrf.mxu1  ;;  %4357 = vmatmul.mubr.bf16.gmra.mxu1 %v6472_v28 }
 0x18f   : > { %v5413_v56 = vadd.f32 %v5412_v37, %v5411_v42  ;;  %v7543_v16 = vadd.f32 %v5474_v35, %v3675_v59  ;;  %4364 = vmatprep.mubr.bf16.mxu1 %v6484_v29  ;;  %v6509_v29 = vld [vmem:[%s6671_s13 + $0x64] ss:$108 sps:$4 sm:$0xff]   ;;  %v6502_v37 = vld [vmem:[%s6671_s13 + $0x640] ss:$108 sps:$4 sm:$0xff]  }
 0x190   : > { %v5414_v54 = vpop.f32.mrf.mxu0  ;;  %v5476_v12 = vpop.f32.mrf.mxu1 }
 0x191   : > { %v3680_v40 = vadd.f32 %v5413_v56, %v7402_v22  ;;  %v5477_v48 = vadd.f32 %v5476_v12, %v5475_v39 }
 0x192   : > { %v5415_v7 = vpop.f32.mrf.mxu0  ;;  %v5478_v51 = vpop.f32.mrf.mxu1 }
 0x193   : > { %v5416_v50 = vadd.f32 %v5415_v7, %v5414_v54  ;;  %v7549_v2 = vadd.f32 %v5477_v48, %v3680_v40  ;;  %v6511_v54 = vld [vmem:[%s6671_s13 + $0x68] ss:$108 sps:$4 sm:$0xff]  }
 0x194   : > { %v5417_v53 = vpop.f32.mrf.mxu0  ;;  %4268 = vmatmul.mubr.bf16.gmra.mxu0 %v6477_v9  ;;  %v5479_v58 = vpop.f32.mrf.mxu1 }
 0x195   : > { %v3683_v57 = vadd.f32 %v5416_v50, %v7406_v33  ;;  %4275 = vmatprep.mubr.bf16.mxu0 %v6489_v44  ;;  %v5480_v60 = vadd.f32 %v5479_v58, %v5478_v51  ;;  %v6507_v51 = vld [vmem:[%s6671_s13 + $0x60] ss:$108 sps:$4 sm:$0xff]  }
 0x196   : > { %v5418_v22 = vpop.f32.mrf.mxu0  ;;  %v5481_v63 = vpop.f32.mrf.mxu1  ;;  %4365 = vmatmul.mubr.bf16.gmra.mxu1 %v6482_v52 }
 0x197   : > { %v5419_v32 = vadd.f32 %v5418_v22, %v5417_v53  ;;  %v7553_v0 = vadd.f32 %v5480_v60, %v3683_v57  ;;  %4372 = vmatprep.mubr.bf16.mxu1 %v6494_v55  ;;  %v6515_v55 = vld [vmem:[%s6671_s13 + $0x13c] ss:$108 sps:$4 sm:$0xff]   ;;  %v6512_v22 = vld [vmem:[%s6671_s13 + $0x140] ss:$108 sps:$4 sm:$0xff]  }
 0x198   : > { %v5420_v1 = vpop.f32.mrf.mxu0  ;;  %v5482_v5 = vpop.f32.mrf.mxu1 }
 0x199   : > { %v3688_v4 = vadd.f32 %v5419_v32, %v7412_v45  ;;  %v5483_v10 = vadd.f32 %v5482_v5, %v5481_v63 }
 0x19a   : > { %v5421_v33 = vpop.f32.mrf.mxu0  ;;  %v5484_v46 = vpop.f32.mrf.mxu1 }
 0x19b   : > { %v5422_v11 = vadd.f32 %v5421_v33, %v5420_v1  ;;  %v7559_v41 = vadd.f32 %v5483_v10, %v3688_v4  ;;  %v6519_v1 = vld [vmem:[%s6671_s13 + $0x218] ss:$108 sps:$4 sm:$0xff]  }
 0x19c   : > { %v5423_v30 = vpop.f32.mrf.mxu0  ;;  %4276 = vmatmul.mubr.bf16.gmra.mxu0 %v6487_v25  ;;  %v5485_v18 = vpop.f32.mrf.mxu1 }
 0x19d   : > { %v3691_v17 = vadd.f32 %v5422_v11, %v7416_v31  ;;  %4283 = vmatprep.mubr.bf16.mxu0 %v6499_v6  ;;  %v5486_v20 = vadd.f32 %v5485_v18, %v5484_v46  ;;  %v6513_v46 = vld [vmem:[%s6671_s13 + $0x138] ss:$108 sps:$4 sm:$0xff]  }
 0x19e   : > { %v5424_v45 = vpop.f32.mrf.mxu0  ;;  %v5487_v38 = vpop.f32.mrf.mxu1  ;;  %4373 = vmatmul.mubr.bf16.gmra.mxu1 %v6492_v14 }
 0x19f   : > { %v5425_v23 = vadd.f32 %v5424_v45, %v5423_v30  ;;  %v7563_v24 = vadd.f32 %v5486_v20, %v3691_v17  ;;  %4380 = vmatprep.mubr.bf16.mxu1 %v6504_v26  ;;  %v6518_v26 = vld [vmem:[%s6671_s13 + $0x214] ss:$108 sps:$4 sm:$0xff]   ;;  %v6520_v45 = vld [vmem:[%s6671_s13 + $0x2f0] ss:$108 sps:$4 sm:$0xff]  }
 0x1a0   : > { %v5426_v3 = vpop.f32.mrf.mxu0  ;;  %v5488_v42 = vpop.f32.mrf.mxu1 }
 0x1a1   : > { %v3696_v28 = vadd.f32 %v5425_v23, %v7422_v43  ;;  %v5489_v59 = vadd.f32 %v5488_v42, %v5487_v38 }
 0x1a2   : > { %v5427_v31 = vpop.f32.mrf.mxu0  ;;  %v5490_v35 = vpop.f32.mrf.mxu1 }
 0x1a3   : > { %v5428_v62 = vadd.f32 %v5427_v31, %v5426_v3  ;;  %v7569_v56 = vadd.f32 %v5489_v59, %v3696_v28  ;;  %v6527_v3 = vld [vmem:[%s6671_s13 + $0x3c8] ss:$108 sps:$4 sm:$0xff]  }
 0x1a4   : > { %v5429_v39 = vpop.f32.mrf.mxu0  ;;  %4284 = vmatmul.mubr.bf16.gmra.mxu0 %v6497_v27  ;;  %v5491_v40 = vpop.f32.mrf.mxu1 }
 0x1a5   : > { %v3699_v9 = vadd.f32 %v5428_v62, %v7427_v19  ;;  %4421 = vmatprep.mubr.bf16.mxu0 %v6509_v29  ;;  %v5492_v12 = vadd.f32 %v5491_v40, %v5490_v35  ;;  %v6516_v35 = vld [vmem:[%s6671_s13 + $0x210] ss:$108 sps:$4 sm:$0xff]  }
 0x1a6   : > { %v5430_v43 = vpop.f32.mrf.mxu0  ;;  %v5493_v48 = vpop.f32.mrf.mxu1  ;;  %4381 = vmatmul.mubr.bf16.gmra.mxu1 %v6502_v37 }
 0x1a7   : > { %v5431_v44 = vadd.f32 %v5430_v43, %v5429_v39  ;;  %v7573_v7 = vadd.f32 %v5492_v12, %v3699_v9  ;;  %5979 = vmatprep.mubr.bf16.mxu1 %v6511_v54  ;;  %v6523_v54 = vld [vmem:[%s6671_s13 + $0x2ec] ss:$108 sps:$4 sm:$0xff]  }
 0x1a8   : > { %v5432_v50 = vpop.f32.mrf.mxu0  ;;  %v5494_v53 = vpop.f32.mrf.mxu1  ;;  %v6528_v43 = vld [vmem:[%s6671_s13 + $0x4a0] ss:$108 sps:$4 sm:$0xff]  }
 0x1a9   : > { %v3704_v52 = vadd.f32 %v5431_v44, %v7439_v36  ;;  %v5495_v57 = vadd.f32 %v5494_v53, %v5493_v48 }
 0x1aa   : > { %v5433_v19 = vpop.f32.mrf.mxu0  ;;  %v5496_v60 = vpop.f32.mrf.mxu1 }
 0x1ab   : > { %v5434_v58 = vadd.f32 %v5433_v19, %v5432_v50  ;;  %v7579_v32 = vadd.f32 %v5495_v57, %v3704_v52  ;;  %v6535_v50 = vld [vmem:[%s6671_s13 + $0x578] ss:$108 sps:$4 sm:$0xff]  }
 0x1ac   : > { %v5515_v63 = vpop.f32.mrf.mxu0  ;;  %4422 = vmatmul.mubr.bf16.vlgmr.msra.gmra.mxu0 %v6507_v51  ;;  %v5497_v4 = vpop.f32.mrf.mxu1 }
 0x1ad   : > { %v3707_v25 = vadd.f32 %v5434_v58, %v7452_v8  ;;  %4429 = vmatprep.mubr.bf16.mxu0 %v6515_v55  ;;  %v5498_v5 = vadd.f32 %v5497_v4, %v5496_v60  ;;  %v6521_v60 = vld [vmem:[%s6671_s13 + $0x2e8] ss:$108 sps:$4 sm:$0xff]  }
 0x1ae   : > { %v5516_v36 = vpop.f32.mrf.mxu0  ;;  %v5579_v10 = vpop.f32.mrf.mxu1  ;;  %5980 = vmatmul.mubr.bf16.vlgmr.msra.gmra.mxu1 %v6512_v22 }
 0x1af   : > { %v5517_v6 = vadd.f32 %v5516_v36, %v5515_v63  ;;  %v7583_v33 = vadd.f32 %v5498_v5, %v3707_v25  ;;  %5983 = vmatprep.mubr.bf16.mxu1 %v6519_v1  ;;  %v6526_v1 = vld [vmem:[%s6671_s13 + $0x3c4] ss:$108 sps:$4 sm:$0xff]  }
 0x1b0   : > { %v5518_v11 = vpop.f32.mrf.mxu0  ;;  %v5580_v30 = vpop.f32.mrf.mxu1  ;;  %v6536_v36 = vld [vmem:[%s6671_s13 + $0x650] ss:$108 sps:$4 sm:$0xff]  }
 0x1b1   : > { %v3842_v14 = vadd.f32 %v5517_v6, %v7467_v13  ;;  %v5581_v17 = vadd.f32 %v5580_v30, %v5579_v10 }
 0x1b2   : > { %v5519_v8 = vpop.f32.mrf.mxu0  ;;  %v5582_v20 = vpop.f32.mrf.mxu1 }
 0x1b3   : > { %v5520_v18 = vadd.f32 %v5519_v8, %v5518_v11  ;;  %v7589_v23 = vadd.f32 %v5581_v17, %v3842_v14 }
 0x1b4   : > { %v5521_v38 = vpop.f32.mrf.mxu0  ;;  %4430 = vmatmul.mubr.bf16.gmra.mxu0 %v6513_v46  ;;  %v5583_v28 = vpop.f32.mrf.mxu1 }
 0x1b5   : > { %v3845_v27 = vadd.f32 %v5520_v18, %v7480_v15  ;;  %4437 = vmatprep.mubr.bf16.mxu0 %v6518_v26  ;;  %v5584_v42 = vadd.f32 %v5583_v28, %v5582_v20  ;;  %v6524_v18 = vld [vmem:[%s6671_s13 + $0x3c0] ss:$108 sps:$4 sm:$0xff]  }
 0x1b6   : > { %v5522_v13 = vpop.f32.mrf.mxu0  ;;  %v5585_v59 = vpop.f32.mrf.mxu1  ;;  %5984 = vmatmul.mubr.bf16.gmra.mxu1 %v6520_v45 }
 0x1b7   : > { %v5523_v29 = vadd.f32 %v5522_v13, %v5521_v38  ;;  %v7593_v31 = vadd.f32 %v5584_v42, %v3845_v27  ;;  %5987 = vmatprep.mubr.bf16.mxu1 %v6527_v3  ;;  %v6531_v38 = vld [vmem:[%s6671_s13 + $0x49c] ss:$108 sps:$4 sm:$0xff]  }
 0x1b8   : > { %v5524_v62 = vpop.f32.mrf.mxu0  ;;  %v5586_v39 = vpop.f32.mrf.mxu1 }
 0x1b9   : > { %v3850_v37 = vadd.f32 %v5523_v29, %v7495_v34  ;;  %v5587_v9 = vadd.f32 %v5586_v39, %v5585_v59 }
 0x1ba   : > { %v5525_v15 = vpop.f32.mrf.mxu0  ;;  %v5588_v12 = vpop.f32.mrf.mxu1 }
 0x1bb   : > { %v5526_v40 = vadd.f32 %v5525_v15, %v5524_v62  ;;  %v7599_v44 = vadd.f32 %v5587_v9, %v3850_v37  ;;  %v6529_v9 = vld [vmem:[%s6671_s13 + $0x498] ss:$108 sps:$4 sm:$0xff]  }
 0x1bc   : > { %v5527_v48 = vpop.f32.mrf.mxu0  ;;  %4438 = vmatmul.mubr.bf16.gmra.mxu0 %v6516_v35  ;;  %v5589_v52 = vpop.f32.mrf.mxu1 }
 0x1bd   : > { %v3853_v51 = vadd.f32 %v5526_v40, %v7508_v49  ;;  %4445 = vmatprep.mubr.bf16.mxu0 %v6523_v54  ;;  %v5590_v53 = vadd.f32 %v5589_v52, %v5588_v12  ;;  %v6534_v12 = vld [vmem:[%s6671_s13 + $0x574] ss:$108 sps:$4 sm:$0xff]  }
 0x1be   : > { %v5528_v34 = vpop.f32.mrf.mxu0  ;;  %v5591_v57 = vpop.f32.mrf.mxu1  ;;  %5988 = vmatmul.mubr.bf16.gmra.mxu1 %v6528_v43 }
 0x1bf   : > { %v5529_v55 = vadd.f32 %v5528_v34, %v5527_v48  ;;  %v7603_v19 = vadd.f32 %v5590_v53, %v3853_v51  ;;  %5991 = vmatprep.mubr.bf16.mxu1 %v6535_v50 }
 0x1c0   : > { %v5530_v58 = vpop.f32.mrf.mxu0  ;;  %v5592_v63 = vpop.f32.mrf.mxu1 }
 0x1c1   : > { %v3858_v22 = vadd.f32 %v5529_v55, %v7523_v21  ;;  %v5593_v25 = vadd.f32 %v5592_v63, %v5591_v57  ;;  %v6532_v63 = vld [vmem:[%s6671_s13 + $0x570] ss:$108 sps:$4 sm:$0xff]  }
 0x1c2   : > { %v5531_v4 = vpop.f32.mrf.mxu0  ;;  %v5594_v5 = vpop.f32.mrf.mxu1 }
 0x1c3   : > { %v5532_v49 = vadd.f32 %v5531_v4, %v5530_v58  ;;  %v7609_v6 = vadd.f32 %v5593_v25, %v3858_v22  ;;  %v6539_v4 = vld [vmem:[%s6671_s13 + $0x64c] ss:$108 sps:$4 sm:$0xff]  }
 0x1c4   : > { %v5533_v10 = vpop.f32.mrf.mxu0  ;;  %4446 = vmatmul.mubr.bf16.gmra.mxu0 %v6521_v60  ;;  %v5595_v46 = vpop.f32.mrf.mxu1 }
 0x1c5   : > { %v3861_v11 = vadd.f32 %v5532_v49, %v7533_v47  ;;  %4453 = vmatprep.mubr.bf16.mxu0 %v6526_v1  ;;  %v5596_v14 = vadd.f32 %v5595_v46, %v5594_v5 }
 0x1c6   : > { %v5534_v30 = vpop.f32.mrf.mxu0  ;;  %v5597_v26 = vpop.f32.mrf.mxu1  ;;  %5992 = vmatmul.mubr.bf16.gmra.mxu1 %v6536_v36 }
 0x1c7   : > { %v5535_v21 = vadd.f32 %v5534_v30, %v5533_v10  ;;  %v7612_v17 = vadd.f32 %v5596_v14, %v3861_v11 }
 0x1c8   : > { %v5536_v8 = vpop.f32.mrf.mxu0  ;;  %v5598_v45 = vpop.f32.mrf.mxu1 }
 0x1c9   : > { %v3866_v20 = vadd.f32 %v5535_v21, %v7539_v61  ;;  %v5599_v3 = vadd.f32 %v5598_v45, %v5597_v26 }
 0x1ca   : > { %v5537_v27 = vpop.f32.mrf.mxu0  ;;  %v5600_v47 = vpop.f32.mrf.mxu1 }
 0x1cb   : > { %v5538_v28 = vadd.f32 %v5537_v27, %v5536_v8  ;;  %v7617_v42 = vadd.f32 %v5599_v3, %v3866_v20  ;;  %v6537_v20 = vld [vmem:[%s6671_s13 + $0x648] ss:$108 sps:$4 sm:$0xff]   ;;  %s4679_s13 = sshll.u32 %s7970_s17, 3 }
 0x1cc   : > { %v5539_v13 = vpop.f32.mrf.mxu0  ;;  %4454 = vmatmul.mubr.bf16.gmra.mxu0 %v6524_v18  ;;  %v5601_v59 = vpop.f32.mrf.mxu1  ;;  %s7827_s20 = scalar_lea.vmem %s7914_s3, %s4679_s13 }
 0x1cd   : > { %v3869_v29 = vadd.f32 %v5538_v28, %v7543_v16  ;;  %4461 = vmatprep.mubr.bf16.mxu0 %v6531_v38  ;;  %v5602_v62 = vadd.f32 %v5601_v59, %v5600_v47 }
 0x1ce   : > { %v5540_v35 = vpop.f32.mrf.mxu0  ;;  %v5603_v61 = vpop.f32.mrf.mxu1 }
 0x1cf   : > { %v5541_v37 = vadd.f32 %v5540_v35, %v5539_v13  ;;  %v7620_v39 = vadd.f32 %v5602_v62, %v3869_v29 }
 0x1d0   : > { %v5542_v54 = vpop.f32.mrf.mxu0  ;;  %v5604_v40 = vpop.f32.mrf.mxu1 }
 0x1d1   : > { %v3874_v15 = vadd.f32 %v5541_v37, %v7549_v2  ;;  %v5605_v43 = vadd.f32 %v5604_v40, %v5603_v61 }
 0x1d2   : > { %v5543_v48 = vpop.f32.mrf.mxu0  ;;  %v5606_v51 = vpop.f32.mrf.mxu1 }
 0x1d3   : > { %v5544_v50 = vadd.f32 %v5543_v48, %v5542_v54  ;;  %v7625_v16 = vadd.f32 %v5605_v43, %v3874_v15 }
 0x1d4   : > { %v5545_v52 = vpop.f32.mrf.mxu0  ;;  %4462 = vmatmul.mubr.bf16.gmra.mxu0 %v6529_v9  ;;  %v5607_v34 = vpop.f32.mrf.mxu1 }
 0x1d5   : > { %v3877_v53 = vadd.f32 %v5544_v50, %v7553_v0  ;;  %4469 = vmatprep.mubr.bf16.mxu0 %v6534_v12  ;;  %v5608_v55 = vadd.f32 %v5607_v34, %v5606_v51 }
 0x1d6   : > { %v5546_v57 = vpop.f32.mrf.mxu0  ;;  %v5609_v2 = vpop.f32.mrf.mxu1 }
 0x1d7   : > { %v5547_v58 = vadd.f32 %v5546_v57, %v5545_v52  ;;  %v7628_v60 = vadd.f32 %v5608_v55, %v3877_v53 }
 0x1d8   : > { %v5548_v22 = vpop.f32.mrf.mxu0  ;;  %v5610_v25 = vpop.f32.mrf.mxu1 }
 0x1d9   : > { %v3882_v1 = vadd.f32 %v5547_v58, %v7559_v41  ;;  %v5611_v49 = vadd.f32 %v5610_v25, %v5609_v2 }
 0x1da   : > { %v5549_v5 = vpop.f32.mrf.mxu0  ;;  %v5612_v10 = vpop.f32.mrf.mxu1 }
 0x1db   : > { %v5550_v36 = vadd.f32 %v5549_v5, %v5548_v22  ;;  %v7633_v0 = vadd.f32 %v5611_v49, %v3882_v1 }
 0x1dc   : > { %v5551_v11 = vpop.f32.mrf.mxu0  ;;  %4470 = vmatmul.mubr.bf16.gmra.mxu0 %v6532_v63  ;;  %v5613_v14 = vpop.f32.mrf.mxu1 }
 0x1dd   : > { %v3885_v46 = vadd.f32 %v5550_v36, %v7563_v24  ;;  %4477 = vmatprep.mubr.bf16.mxu0 %v6539_v4  ;;  %v5614_v30 = vadd.f32 %v5613_v14, %v5612_v10 }
 0x1de   : > { %v5552_v21 = vpop.f32.mrf.mxu0  ;;  %v5615_v8 = vpop.f32.mrf.mxu1 }
 0x1df   : > { %v5553_v26 = vadd.f32 %v5552_v21, %v5551_v11  ;;  %v7636_v41 = vadd.f32 %v5614_v30, %v3885_v46 }
 0x1e0   : > { %v5554_v18 = vpop.f32.mrf.mxu0  ;;  %v5616_v38 = vpop.f32.mrf.mxu1 }
 0x1e1   : > { %v3890_v45 = vadd.f32 %v5553_v26, %v7569_v56  ;;  %v5617_v3 = vadd.f32 %v5616_v38, %v5615_v8 }
 0x1e2   : > { %v5555_v27 = vpop.f32.mrf.mxu0  ;;  %v5618_v47 = vpop.f32.mrf.mxu1 }
 0x1e3   : > { %v5556_v28 = vadd.f32 %v5555_v27, %v5554_v18  ;;  %v7640_v13 = vadd.f32 %v5617_v3, %v3890_v45 }
 0x1e4   : > { %v5557_v24 = vpop.f32.mrf.mxu0  ;;  %4478 = vmatmul.mubr.bf16.gmra.mxu0 %v6537_v20  ;;  %v5619_v59 = vpop.f32.mrf.mxu1 }
 0x1e5   : > { %v3893_v29 = vadd.f32 %v5556_v28, %v7573_v7  ;;  %v5620_v62 = vadd.f32 %v5619_v59, %v5618_v47 }
 0x1e6   : > { %v5558_v35 = vpop.f32.mrf.mxu0  ;;  %v5621_v61 = vpop.f32.mrf.mxu1 }
 0x1e7   : > { %v5559_v37 = vadd.f32 %v5558_v35, %v5557_v24  ;;  %v7643_v54 = vadd.f32 %v5620_v62, %v3893_v29 }
 0x1e8   : > { %v5560_v9 = vpop.f32.mrf.mxu0  ;;  %v5622_v15 = vpop.f32.mrf.mxu1 }
 0x1e9   : > { %v3898_v56 = vadd.f32 %v5559_v37, %v7579_v32  ;;  %v5623_v40 = vadd.f32 %v5622_v15, %v5621_v61 }
 0x1ea   : > { %v5561_v12 = vpop.f32.mrf.mxu0  ;;  %v5624_v48 = vpop.f32.mrf.mxu1 }
 0x1eb   : > { %v5562_v43 = vadd.f32 %v5561_v12, %v5560_v9  ;;  %v7646_v50 = vadd.f32 %v5623_v40, %v3898_v56 }
 0x1ec   : > { %v5643_v51 = vpop.f32.mrf.mxu0  ;;  %v5625_v52 = vpop.f32.mrf.mxu1 }
 0x1ed   : > { %v3901_v7 = vadd.f32 %v5562_v43, %v7583_v33  ;;  %v5626_v53 = vadd.f32 %v5625_v52, %v5624_v48 }
 0x1ee   : > { %v5644_v34 = vpop.f32.mrf.mxu0  ;;  %v5707_v57 = vpop.f32.mrf.mxu1 }
 0x1ef   : > { %v5645_v55 = vadd.f32 %v5644_v34, %v5643_v51  ;;  %v7649_v58 = vadd.f32 %v5626_v53, %v3901_v7 }
 0x1f0   : > { %v5646_v2 = vpop.f32.mrf.mxu0  ;;  %v5708_v22 = vpop.f32.mrf.mxu1 }
 0x1f1   : > { %v4036_v32 = vadd.f32 %v5645_v55, %v7589_v23  ;;  %v5709_v63 = vadd.f32 %v5708_v22, %v5707_v57 }
 0x1f2   : > { %v5647_v1 = vpop.f32.mrf.mxu0  ;;  %v5710_v4 = vpop.f32.mrf.mxu1 }
 0x1f3   : > { %v5648_v25 = vadd.f32 %v5647_v1, %v5646_v2  ;;  %v7652_v49 = vadd.f32 %v5709_v63, %v4036_v32 }
 0x1f4   : > { %v5649_v5 = vpop.f32.mrf.mxu0  ;;  %v5711_v36 = vpop.f32.mrf.mxu1 }
 0x1f5   : > { %v4039_v33 = vadd.f32 %v5648_v25, %v7593_v31  ;;  %v5712_v10 = vadd.f32 %v5711_v36, %v5710_v4 }
 0x1f6   : > { %v5650_v11 = vpop.f32.mrf.mxu0  ;;  %v5713_v14 = vpop.f32.mrf.mxu1 }
 0x1f7   : > { %v5651_v46 = vadd.f32 %v5650_v11, %v5649_v5  ;;  %v7655_v30 = vadd.f32 %v5712_v10, %v4039_v33 }
 0x1f8   : > { %v5652_v21 = vpop.f32.mrf.mxu0  ;;  %v5714_v26 = vpop.f32.mrf.mxu1 }
 0x1f9   : > { %v4044_v23 = vadd.f32 %v5651_v46, %v7599_v44  ;;  %v5715_v8 = vadd.f32 %v5714_v26, %v5713_v14 }
 0x1fa   : > { %v5653_v18 = vpop.f32.mrf.mxu0  ;;  %v5716_v45 = vpop.f32.mrf.mxu1 }
 0x1fb   : > { %v5654_v20 = vadd.f32 %v5653_v18, %v5652_v21  ;;  %v7658_v38 = vadd.f32 %v5715_v8, %v4044_v23 }
 0x1fc   : > { %v5655_v3 = vpop.f32.mrf.mxu0  ;;  %v5717_v27 = vpop.f32.mrf.mxu1 }
 0x1fd   : > { %v4047_v31 = vadd.f32 %v5654_v20, %v7603_v19  ;;  %v5718_v28 = vadd.f32 %v5717_v27, %v5716_v45 }
 0x1fe   : > { %v5656_v47 = vpop.f32.mrf.mxu0  ;;  %v5719_v29 = vpop.f32.mrf.mxu1 }
 0x1ff   : > { %v5657_v24 = vadd.f32 %v5656_v47, %v5655_v3  ;;  %v7661_v59 = vadd.f32 %v5718_v28, %v4047_v31 }
 0x200   : > { %v5658_v62 = vpop.f32.mrf.mxu0  ;;  %v5720_v35 = vpop.f32.mrf.mxu1 }
 0x201   : > { %v4052_v44 = vadd.f32 %v5657_v24, %v7609_v6  ;;  %v5721_v37 = vadd.f32 %v5720_v35, %v5719_v29 }
 0x202   : > { %v5659_v61 = vpop.f32.mrf.mxu0  ;;  %v5722_v56 = vpop.f32.mrf.mxu1 }
 0x203   : > { %v5660_v9 = vadd.f32 %v5659_v61, %v5658_v62  ;;  %v7664_v15 = vadd.f32 %v5721_v37, %v4052_v44 }
 0x204   : > { %v5661_v40 = vpop.f32.mrf.mxu0  ;;  %v5723_v12 = vpop.f32.mrf.mxu1 }
 0x205   : > { %v4055_v19 = vadd.f32 %v5660_v9, %v7612_v17  ;;  %v5724_v43 = vadd.f32 %v5723_v12, %v5722_v56 }
 0x206   : > { %v5662_v48 = vpop.f32.mrf.mxu0  ;;  %v5725_v7 = vpop.f32.mrf.mxu1 }
 0x207   : > { %v5663_v51 = vadd.f32 %v5662_v48, %v5661_v40  ;;  %v7667_v52 = vadd.f32 %v5724_v43, %v4055_v19 }
 0x208   : > { %v5664_v53 = vpop.f32.mrf.mxu0  ;;  %v5726_v34 = vpop.f32.mrf.mxu1 }
 0x209   : > { %v4060_v6 = vadd.f32 %v5663_v51, %v7617_v42  ;;  %v5727_v55 = vadd.f32 %v5726_v34, %v5725_v7 }
 0x20a   : > { %v5665_v57 = vpop.f32.mrf.mxu0  ;;  %v5728_v32 = vpop.f32.mrf.mxu1 }
 0x20b   : > { %v5666_v2 = vadd.f32 %v5665_v57, %v5664_v53  ;;  %v7670_v22 = vadd.f32 %v5727_v55, %v4060_v6 }
 0x20c   : > { %v5667_v63 = vpop.f32.mrf.mxu0  ;;  %v5729_v1 = vpop.f32.mrf.mxu1 }
 0x20d   : > { %v4063_v17 = vadd.f32 %v5666_v2, %v7620_v39  ;;  %v5730_v25 = vadd.f32 %v5729_v1, %v5728_v32 }
 0x20e   : > { %v5668_v4 = vpop.f32.mrf.mxu0  ;;  %v5731_v33 = vpop.f32.mrf.mxu1 }
 0x20f   : > { %v5669_v5 = vadd.f32 %v5668_v4, %v5667_v63  ;;  %v7673_v36 = vadd.f32 %v5730_v25, %v4063_v17 }
 0x210   : > { %v5670_v10 = vpop.f32.mrf.mxu0  ;;  %v5732_v11 = vpop.f32.mrf.mxu1 }
 0x211   : > { %v4068_v42 = vadd.f32 %v5669_v5, %v7625_v16  ;;  %v5733_v46 = vadd.f32 %v5732_v11, %v5731_v33 }
 0x212   : > { %v5671_v14 = vpop.f32.mrf.mxu0  ;;  %v5734_v23 = vpop.f32.mrf.mxu1 }
 0x213   : > { %v5672_v21 = vadd.f32 %v5671_v14, %v5670_v10  ;;  %v7676_v26 = vadd.f32 %v5733_v46, %v4068_v42 }
 0x214   : > { %v5673_v8 = vpop.f32.mrf.mxu0  ;;  %v5735_v18 = vpop.f32.mrf.mxu1 }
 0x215   : > { %v4071_v39 = vadd.f32 %v5672_v21, %v7628_v60  ;;  %v5736_v20 = vadd.f32 %v5735_v18, %v5734_v23 }
 0x216   : > { %v5674_v45 = vpop.f32.mrf.mxu0  ;;  %v5737_v31 = vpop.f32.mrf.mxu1 }
 0x217   : > { %v5675_v3 = vadd.f32 %v5674_v45, %v5673_v8  ;;  %v7679_v27 = vadd.f32 %v5736_v20, %v4071_v39 }
 0x218   : > { %v5676_v28 = vpop.f32.mrf.mxu0  ;;  %v5738_v47 = vpop.f32.mrf.mxu1 }
 0x219   : > { %v4076_v16 = vadd.f32 %v5675_v3, %v7633_v0  ;;  %v5739_v24 = vadd.f32 %v5738_v47, %v5737_v31 }
 0x21a   : > { %v5677_v29 = vpop.f32.mrf.mxu0  ;;  %v5740_v44 = vpop.f32.mrf.mxu1 }
 0x21b   : > { %v5678_v62 = vadd.f32 %v5677_v29, %v5676_v28  ;;  %v7682_v35 = vadd.f32 %v5739_v24, %v4076_v16 }
 0x21c   : > { %v5679_v37 = vpop.f32.mrf.mxu0  ;;  %v5741_v61 = vpop.f32.mrf.mxu1 }
 0x21d   : > { %7915 = vst [vmem:[#allocation2_spill] sm:$0xff] %v7682_v35  ;;  %v4079_v60 = vadd.f32 %v5678_v62, %v7636_v41  ;;  %v5742_v9 = vadd.f32 %v5741_v61, %v5740_v44 }
 0x21e   : > { %v5680_v56 = vpop.f32.mrf.mxu0  ;;  %v5743_v19 = vpop.f32.mrf.mxu1 }
 0x21f   : > { %v5681_v40 = vadd.f32 %v5680_v56, %v5679_v37  ;;  %v7685_v12 = vadd.f32 %v5742_v9, %v4079_v60 }
 0x220   : > { %v5682_v43 = vpop.f32.mrf.mxu0  ;;  %v5744_v48 = vpop.f32.mrf.mxu1 }
 0x221   : > { %7916 = vst [vmem:[#allocation3_spill] sm:$0xff] %v7685_v12  ;;  %v4084_v0 = vadd.f32 %v5681_v40, %v7640_v13  ;;  %v5745_v51 = vadd.f32 %v5744_v48, %v5743_v19 }
 0x222   : > { %v5683_v7 = vpop.f32.mrf.mxu0  ;;  %v5746_v6 = vpop.f32.mrf.mxu1 }
 0x223   : > { %v5684_v53 = vadd.f32 %v5683_v7, %v5682_v43  ;;  %v7688_v34 = vadd.f32 %v5745_v51, %v4084_v0 }
 0x224   : > { %v5685_v55 = vpop.f32.mrf.mxu0  ;;  %v5747_v57 = vpop.f32.mrf.mxu1 }
 0x225   : > { %7917 = vst [vmem:[#allocation4_spill] sm:$0xff] %v7688_v34  ;;  %v4087_v41 = vadd.f32 %v5684_v53, %v7643_v54  ;;  %v5748_v2 = vadd.f32 %v5747_v57, %v5746_v6 }
 0x226   : > { %v5686_v32 = vpop.f32.mrf.mxu0  ;;  %v5749_v17 = vpop.f32.mrf.mxu1 }
 0x227   : > { %v5687_v63 = vadd.f32 %v5686_v32, %v5685_v55  ;;  %v7691_v1 = vadd.f32 %v5748_v2, %v4087_v41 }
 0x228   : > { %v5688_v25 = vpop.f32.mrf.mxu0  ;;  %v5750_v4 = vpop.f32.mrf.mxu1 }
 0x229   : > { %7918 = vst [vmem:[#allocation5_spill] sm:$0xff] %v7691_v1  ;;  %v4092_v13 = vadd.f32 %v5687_v63, %v7646_v50  ;;  %v5751_v5 = vadd.f32 %v5750_v4, %v5749_v17 }
 0x22a   : > { %v5689_v33 = vpop.f32.mrf.mxu0  ;;  %v5752_v42 = vpop.f32.mrf.mxu1 }
 0x22b   : > { %v5690_v10 = vadd.f32 %v5689_v33, %v5688_v25  ;;  %v7694_v11 = vadd.f32 %v5751_v5, %v4092_v13 }
 0x22c   : > { %v5771_v46 = vpop.f32.mrf.mxu0  ;;  %v5753_v14 = vpop.f32.mrf.mxu1 }
 0x22d   : > { %7919 = vst [vmem:[#allocation6_spill] sm:$0xff] %v7694_v11  ;;  %v4095_v54 = vadd.f32 %v5690_v10, %v7649_v58  ;;  %v5754_v21 = vadd.f32 %v5753_v14, %v5752_v42 }
 0x22e   : > { %v5772_v23 = vpop.f32.mrf.mxu0  ;;  %v7697_v8 = vpop.f32.mrf.mxu1 }
 0x22f   : > { %v7699_v39 = vadd.f32 %v5754_v21, %v4095_v54 }
 0x230   : > { %v5774_v18 = vpop.f32.mrf.mxu0  ;;  %v5836_v20 = vpop.f32.mrf.mxu1 }
 0x231   : > { %7920 = vst [vmem:[#allocation7_spill] sm:$0xff] %v7699_v39 }
 0x232   : > { %v5775_v50 = vpop.f32.mrf.mxu0  ;;  %v7701_v45 = vpop.f32.mrf.mxu1 }
 0x234   : > { %v5777_v3 = vpop.f32.mrf.mxu0  ;;  %v7703_v31 = vpop.f32.mrf.mxu1 }
 0x236   : > { %v5778_v28 = vpop.f32.mrf.mxu0  ;;  %v7705_v16 = vpop.f32.mrf.mxu1 }
 0x238   : > { %v7707_v47 = vpop.f32.mrf.mxu0  ;;  %v7709_v58 = vpop.f32.mrf.mxu1 }
 0x23a   : > { %v7711_v24 = vpop.f32.mrf.mxu0  ;;  %v7713_v29 = vpop.f32.mrf.mxu1 }
 0x23c   : > { %v7715_v62 = vpop.f32.mrf.mxu0  ;;  %v7717_v44 = vpop.f32.mrf.mxu1 }
 0x23e   : > { %v7719_v37 = vpop.f32.mrf.mxu0  ;;  %v7721_v60 = vpop.f32.mrf.mxu1 }
 0x240   : > { %v7723_v61 = vpop.f32.mrf.mxu0  ;;  %v7725_v9 = vpop.f32.mrf.mxu1 }
 0x242   : > { %v7727_v56 = vpop.f32.mrf.mxu0  ;;  %v7729_v40 = vpop.f32.mrf.mxu1 }
 0x244   : > { %v7731_v19 = vpop.f32.mrf.mxu0  ;;  %v7733_v43 = vpop.f32.mrf.mxu1 }
 0x246   : > { %v7735_v0 = vpop.f32.mrf.mxu0  ;;  %v7737_v48 = vpop.f32.mrf.mxu1 }
 0x248   : > { %v7739_v51 = vpop.f32.mrf.mxu0  ;;  %v7741_v7 = vpop.f32.mrf.mxu1 }
 0x24a   : > { %v7743_v53 = vpop.f32.mrf.mxu0  ;;  %v7745_v6 = vpop.f32.mrf.mxu1 }
 0x24c   : > { %v7747_v55 = vpop.f32.mrf.mxu0  ;;  %v7749_v41 = vpop.f32.mrf.mxu1 }
 0x24e   : > { %v7751_v57 = vpop.f32.mrf.mxu0  ;;  %v7753_v2 = vpop.f32.mrf.mxu1 }
 0x250   : > { %v7755_v32 = vpop.f32.mrf.mxu0  ;;  %v7757_v63 = vpop.f32.mrf.mxu1 }
 0x252   : > { %v7759_v17 = vpop.f32.mrf.mxu0  ;;  %v7761_v25 = vpop.f32.mrf.mxu1 }
 0x254   : > { %v7763_v13 = vpop.f32.mrf.mxu0  ;;  %v7765_v4 = vpop.f32.mrf.mxu1 }
 0x255   : > { %7921 = vst [vmem:[#allocation8_spill] sm:$0xff] %v7765_v4 }
 0x256   : > { %v7767_v5 = vpop.f32.mrf.mxu0  ;;  %v7769_v33 = vpop.f32.mrf.mxu1 }
 0x257   : > { %7922 = vst [vmem:[#allocation9_spill] sm:$0xff] %v7769_v33 }
 0x258   : > { %v7771_v10 = vpop.f32.mrf.mxu0  ;;  %v7773_v42 = vpop.f32.mrf.mxu1 }
 0x259   : > { %7923 = vst [vmem:[#allocation10_spill] sm:$0xff] %v7771_v10  ;;  %7924 = vst [vmem:[#allocation11_spill] sm:$0xff] %v7773_v42 }
 0x25a   : > { %v7775_v54 = vpop.f32.mrf.mxu0  ;;  %v7777_v14 = vpop.f32.mrf.mxu1 }
 0x25b   : > { %7925 = vst [vmem:[#allocation12_spill] sm:$0xff] %v7775_v54  ;;  %7926 = vst [vmem:[#allocation13_spill] sm:$0xff] %v7777_v14 }
 0x25c   : > { %v7779_v21 = vpop.f32.mrf.mxu0  ;;  %v7781_v39 = vpop.f32.mrf.mxu1 }
 0x25d   : > { %7927 = vst [vmem:[#allocation14_spill] sm:$0xff] %v7779_v21  ;;  %7928 = vst [vmem:[#allocation15_spill] sm:$0xff] %v7781_v39  ;;  %v5773_v21 = vadd.f32 %v5772_v23, %v5771_v46  ;;  %v5779_v46 = vadd.f32 %v5778_v28, %v5777_v3  ;;  %v5782_v28 = vadd.f32 %v7711_v24, %v7707_v47 }
 0x25e   : > { %v7783_v11 = vpop.f32.mrf.mxu0  ;;  %v7785_v1 = vpop.f32.mrf.mxu1  ;;  %v5846_v47 = vadd.f32 %v7717_v44, %v7713_v29 }
 0x25f   : > { %7929 = vst [vmem:[#allocation16_spill] sm:$0xff] %v7783_v11  ;;  %7930 = vst [vmem:[#allocation17_spill] sm:$0xff] %v7785_v1 }
 0x260   : > { %v7787_v34 = vpop.f32.mrf.mxu0  ;;  %v7789_v12 = vpop.f32.mrf.mxu1 }
 0x261   : > { %7931 = vst [vmem:[#allocation18_spill] sm:$0xff] %v7787_v34  ;;  %7932 = vst [vmem:[#allocation19_spill] sm:$0xff] %v7789_v12  ;;  %v5776_v12 = vadd.f32 %v5775_v50, %v5774_v18  ;;  %v4238_v18 = vadd.f32 %v5779_v46, %v7658_v38 }
 0x262   : > { %v7791_v33 = vpop.f32.mrf.mxu0  ;;  %v7793_v10 = vpop.f32.mrf.mxu1 }
 0x263   : > { %7933 = vst [vmem:[#allocation20_spill] sm:$0xff] %v7791_v33  ;;  %7934 = vst [vmem:[#allocation21_spill] sm:$0xff] %v7793_v10  ;;  %v4230_v33 = vadd.f32 %v5773_v21, %v7652_v49  ;;  %v5837_v10 = vadd.f32 %v5836_v20, %v7697_v8  ;;  %v5843_v20 = vadd.f32 %v7709_v58, %v7705_v16 }
 0x264   : > { %v7795_v42 = vpop.f32.mrf.mxu0  ;;  %v7797_v54 = vpop.f32.mrf.mxu1  ;;  %v4241_v16 = vadd.f32 %v5782_v28, %v7661_v59  ;;  %v5788_v59 = vadd.f32 %v7727_v56, %v7723_v61 }
 0x265   : > { %7935 = vst [vmem:[#allocation22_spill] sm:$0xff] %v7795_v42  ;;  %7936 = vst [vmem:[#allocation23_spill] sm:$0xff] %v7797_v54 }
 0x266   : > { %v7799_v14 = vpop.f32.mrf.mxu0  ;;  %v7801_v39 = vpop.f32.mrf.mxu1 }
 0x267   : > { %7937 = vst [vmem:[#allocation24_spill] sm:$0xff] %v7799_v14  ;;  %7938 = vst [vmem:[#allocation25_spill] sm:$0xff] %v7801_v39  ;;  %v4327_v39 = vadd.f32 %v5837_v10, %v4230_v33  ;;  %v4335_v10 = vadd.f32 %v5843_v20, %v4238_v18 }
 0x268   : > { %v7803_v11 = vpop.f32.mrf.mxu0  ;;  %v7805_v1 = vpop.f32.mrf.mxu1 }
 0x269   : > { %7939 = vst [vmem:[#allocation26_spill] sm:$0xff] %v7803_v11  ;;  %7940 = vst [vmem:[#allocation27_spill] sm:$0xff] %v7805_v1  ;;  %v4233_v11 = vadd.f32 %v5776_v12, %v7655_v30  ;;  %v5840_v1 = vadd.f32 %v7703_v31, %v7701_v45 }
 0x26a   : > { %v7807_v34 = vpop.f32.mrf.mxu0  ;;  %v7811_v42 = vpop.f32.mrf.mxu1 }
 0x26b   : > { %7941 = vst [vmem:[#allocation28_spill] sm:$0xff] %v7807_v34  ;;  %v4330_v3 = vadd.f32 %v5840_v1, %v4233_v11  ;;  %v5785_v1 = vadd.f32 %v7719_v37, %v7715_v62  ;;  %v4338_v37 = vadd.f32 %v5846_v47, %v4241_v16 }
 0x26c   : > { %v5899_v54 = vpop.f32.mrf.mxu0  ;;  %v7813_v35 = vpop.f32.mrf.mxu1 }
 0x26d   : > { %v4246_v46 = vadd.f32 %v5785_v1, %v7664_v15  ;;  %v5791_v15 = vadd.f32 %v7735_v0, %v7731_v19 }
 0x26e   : > { %v5900_v23 = vpop.f32.mrf.mxu0  ;;  %v5981_v34 = vpop.f32.mrf.mxu1 }
 0x26f   : > { %v5901_v14 = vadd.f32 %v5900_v23, %v5899_v54  ;;  %v5849_v23 = vadd.f32 %v7725_v9, %v7721_v60  ;;  %v4249_v60 = vadd.f32 %v5788_v59, %v7667_v52  ;;  %v5852_v9 = vadd.f32 %v7733_v43, %v7729_v40 }
 0x270   : > { %v5902_v4 = vpop.f32.mrf.mxu0  ;;  %v4520_v8 = vpop.f32.mrf.mxu1  ;;  %v5794_v52 = vadd.f32 %v7743_v53, %v7739_v51 }
 0x271   : > { %v4424_v49 = vadd.f32 %v5901_v14, %v4327_v39  ;;  %v4346_v0 = vadd.f32 %v5852_v9, %v4249_v60  ;;  %v7946_v60 = vld [vmem:[#allocation10_spill] sm:$0xff] }
 0x272   : > { %v5903_v50 = vpop.f32.mrf.mxu0  ;;  %v5982_v33 = vpop.f32.mrf.mxu1 }
 0x273   : > { %v5904_v30 = vadd.f32 %v5903_v50, %v5902_v4  ;;  %v4521_v12 = vadd.f32 %v4520_v8, %v4424_v49  ;;  %v4343_v50 = vadd.f32 %v5849_v23, %v4246_v46 }
 0x274   : > { %v5905_v39 = vpop.f32.mrf.mxu0  ;;  %v4523_v31 = vpop.f32.mrf.mxu1 }
 0x275   : > { %v4583_v45 = vmax.f32 %v4521_v12, 0.0  ;;  %v4427_v38 = vadd.f32 %v5904_v30, %v4330_v3 }
 0x276   : > { %v5906_v11 = vpop.f32.mrf.mxu0  ;;  %v5985_v54 = vpop.f32.mrf.mxu1 }
 0x277   : > { %4599 = vst [vmem:[%s7827_s20] sm:$0xff] %v4583_v45  ;;  %v5907_v58 = vadd.f32 %v5906_v11, %v5905_v39  ;;  %v4524_v24 = vadd.f32 %v4523_v31, %v4427_v38  ;;  %v4254_v39 = vadd.f32 %v5791_v15, %v7670_v22  ;;  %v5855_v45 = vadd.f32 %v7741_v7, %v7737_v48  ;;  %v7945_v15 = vld [vmem:[#allocation11_spill] sm:$0xff] }
 0x278   : > { %v5908_v4 = vpop.f32.mrf.mxu0  ;;  %v4536_v8 = vpop.f32.mrf.mxu1  ;;  %v5797_v22 = vadd.f32 %v7751_v57, %v7747_v55  ;;  %v4257_v48 = vadd.f32 %v5794_v52, %v7673_v36  ;;  %v5858_v7 = vadd.f32 %v7749_v41, %v7745_v6  ;;  %v5800_v36 = vadd.f32 %v7759_v17, %v7755_v32  ;;  %v7950_v52 = vld [vmem:[#allocation3_spill] sm:$0xff] }
 0x279   : > { %v4432_v14 = vadd.f32 %v5907_v58, %v4335_v10  ;;  %v4584_v21 = vmax.f32 %v4524_v24, 0.0  ;;  %v4351_v1 = vadd.f32 %v5855_v45, %v4254_v39  ;;  %v7948_v39 = vld [vmem:[#allocation14_spill] sm:$0xff]  ;;  %v7949_v45 = vld [vmem:[#allocation16_spill] sm:$0xff] }
 0x27a   : > { %v5909_v62 = vpop.f32.mrf.mxu0  ;;  %v5986_v28 = vpop.f32.mrf.mxu1  ;;  %v4354_v57 = vadd.f32 %v5858_v7, %v4257_v48  ;;  %v7953_v7 = vld [vmem:[#allocation4_spill] sm:$0xff] }
 0x27b   : > { %v4529_v49 = vadd.f32 %v5981_v34, %v4432_v14  ;;  %4600 = vst [vmem:[%s7827_s20 + $0x8] sm:$0xff] %v4584_v21  ;;  %v5910_v29 = vadd.f32 %v5909_v62, %v5908_v4  ;;  %v4262_v4 = vadd.f32 %v5797_v22, %v7676_v26  ;;  %v5861_v14 = vadd.f32 %v7757_v63, %v7753_v2  ;;  %v7942_v63 = vld [vmem:[#allocation8_spill] sm:$0xff] }
 0x27c   : > { %v5911_v44 = vpop.f32.mrf.mxu0  ;;  %v4539_v38 = vpop.f32.mrf.mxu1  ;;  %v5803_v26 = vadd.f32 %v7767_v5, %v7763_v13  ;;  %v4265_v2 = vadd.f32 %v5800_v36, %v7679_v27  ;;  %v7947_v27 = vld [vmem:[#allocation12_spill] sm:$0xff] }
 0x27d   : > { %v4585_v18 = vmax.f32 %v4529_v49, 0.0  ;;  %v4435_v20 = vadd.f32 %v5910_v29, %v4338_v37  ;;  %v4359_v37 = vadd.f32 %v5861_v14, %v4262_v4  ;;  %v5864_v49 = vadd.f32 %v7942_v63, %v7761_v25  ;;  %v7956_v14 = vld [vmem:[#allocation18_spill] sm:$0xff]  ;;  %v7960_v63 = vld [vmem:[#allocation5_spill] sm:$0xff] }
 0x27e   : > { %v5912_v3 = vpop.f32.mrf.mxu0  ;;  %v5989_v47 = vpop.f32.mrf.mxu1  ;;  %v5806_v9 = vadd.f32 %v7947_v27, %v7946_v60 }
 0x27f   : > { %4601 = vst [vmem:[%s7827_s20 + $0x10] sm:$0xff] %v4585_v18  ;;  %v4532_v61 = vadd.f32 %v5982_v33, %v4435_v20  ;;  %v5913_v34 = vadd.f32 %v5912_v3, %v5911_v44  ;;  %v7943_v18 = vld [vmem:[#allocation2_spill] sm:$0xff]  ;;  %v4362_v5 = vadd.f32 %v5864_v49, %v4265_v2 }
 0x280   : > { %v5914_v56 = vpop.f32.mrf.mxu0  ;;  %v4552_v46 = vpop.f32.mrf.mxu1  ;;  %v4270_v20 = vadd.f32 %v5803_v26, %v7943_v18  ;;  %v7959_v26 = vld [vmem:[#allocation24_spill] sm:$0xff] }
 0x281   : > { %v4586_v30 = vmax.f32 %v4532_v61, 0.0  ;;  %v4440_v12 = vadd.f32 %v5913_v34, %v4343_v50  ;;  %v7944_v50 = vld [vmem:[#allocation9_spill] sm:$0xff] }
 0x282   : > { %v5915_v19 = vpop.f32.mrf.mxu0  ;;  %v5990_v29 = vpop.f32.mrf.mxu1  ;;  %v5867_v3 = vadd.f32 %v7945_v15, %v7944_v50  ;;  %v7963_v15 = vld [vmem:[#allocation6_spill] sm:$0xff] }
 0x283   : > { %4602 = vst [vmem:[%s7827_s20 + $0x18] sm:$0xff] %v4586_v30  ;;  %v5916_v40 = vadd.f32 %v5915_v19, %v5914_v56  ;;  %v4537_v43 = vadd.f32 %v4536_v8, %v4440_v12  ;;  %v5809_v19 = vadd.f32 %v7949_v45, %v7948_v39 }
 0x284   : > { %v5917_v33 = vpop.f32.mrf.mxu0  ;;  %v4555_v56 = vpop.f32.mrf.mxu1  ;;  %v4367_v12 = vadd.f32 %v5867_v3, %v4270_v20 }
 0x285   : > { %v4587_v31 = vmax.f32 %v4537_v43, 0.0  ;;  %v4443_v10 = vadd.f32 %v5916_v40, %v4346_v0  ;;  %v4273_v40 = vadd.f32 %v5806_v9, %v7950_v52  ;;  %v7951_v43 = vld [vmem:[#allocation13_spill] sm:$0xff] }
 0x286   : > { %v5918_v11 = vpop.f32.mrf.mxu0  ;;  %v5993_v22 = vpop.f32.mrf.mxu1 }
 0x287   : > { %4603 = vst [vmem:[%s7827_s20 + $0x20] sm:$0xff] %v4587_v31  ;;  %v5919_v51 = vadd.f32 %v5918_v11, %v5917_v33  ;;  %v4540_v53 = vadd.f32 %v4539_v38, %v4443_v10  ;;  %v7952_v33 = vld [vmem:[#allocation15_spill] sm:$0xff] }
 0x288   : > { %v5920_v16 = vpop.f32.mrf.mxu0  ;;  %v5870_v38 = vadd.f32 %v7952_v33, %v7951_v43 }
 0x289   : > { %v4448_v58 = vadd.f32 %v5919_v51, %v4351_v1  ;;  %v4588_v24 = vmax.f32 %v4540_v53, 0.0  ;;  %v4278_v51 = vadd.f32 %v5809_v19, %v7953_v7  ;;  %v7954_v53 = vld [vmem:[#allocation17_spill] sm:$0xff] }
 0x28a   : > { %v5921_v55 = vpop.f32.mrf.mxu0  ;;  %v4370_v4 = vadd.f32 %v5870_v38, %v4273_v40  ;;  %v5882_v40 = vadd.f32 %v7813_v35, %v7811_v42 }
 0x28b   : > { %v4545_v21 = vadd.f32 %v5985_v54, %v4448_v58  ;;  %4604 = vst [vmem:[%s7827_s20 + $0x28] sm:$0xff] %v4588_v24  ;;  %v5922_v6 = vadd.f32 %v5921_v55, %v5920_v16  ;;  %v7955_v16 = vld [vmem:[#allocation19_spill] sm:$0xff]  ;;  %v7957_v55 = vld [vmem:[#allocation20_spill] sm:$0xff] }
 0x28c   : > { %v5923_v41 = vpop.f32.mrf.mxu0  ;;  %v5873_v58 = vadd.f32 %v7955_v16, %v7954_v53 }
 0x28d   : > { %v4589_v23 = vmax.f32 %v4545_v21, 0.0  ;;  %v4451_v62 = vadd.f32 %v5922_v6, %v4354_v57  ;;  %v5812_v57 = vadd.f32 %v7957_v55, %v7956_v14 }
 0x28e   : > { %v5924_v59 = vpop.f32.mrf.mxu0 }
 0x28f   : > { %4605 = vst [vmem:[%s7827_s20 + $0x30] sm:$0xff] %v4589_v23  ;;  %v4548_v32 = vadd.f32 %v5986_v28, %v4451_v62  ;;  %v5925_v17 = vadd.f32 %v5924_v59, %v5923_v41  ;;  %v4568_v41 = vpop.f32.mrf.mxu1  ;;  %v4375_v62 = vadd.f32 %v5873_v58, %v4278_v51  ;;  %v4281_v49 = vadd.f32 %v5812_v57, %v7960_v63 }
 0x290   : > { %v5926_v54 = vpop.f32.mrf.mxu0 }
 0x291   : > { %v4590_v44 = vmax.f32 %v4548_v32, 0.0  ;;  %v4456_v8 = vadd.f32 %v5925_v17, %v4359_v37  ;;  %v7958_v37 = vld [vmem:[#allocation22_spill] sm:$0xff]  ;;  %v7961_v32 = vld [vmem:[#allocation21_spill] sm:$0xff]  ;;  %v7962_v17 = vld [vmem:[#allocation23_spill] sm:$0xff]  ;;  %v5994_v18 = vpop.f32.mrf.mxu1 }
 0x292   : > { %v5927_v13 = vpop.f32.mrf.mxu0  ;;  %v5815_v59 = vadd.f32 %v7959_v26, %v7958_v37 }
 0x293   : > { %4606 = vst [vmem:[%s7827_s20 + $0x38] sm:$0xff] %v4590_v44  ;;  %v5928_v25 = vadd.f32 %v5927_v13, %v5926_v54  ;;  %v4553_v61 = vadd.f32 %v4552_v46, %v4456_v8  ;;  %v5876_v54 = vadd.f32 %v7962_v17, %v7961_v32  ;;  %v7964_v13 = vld [vmem:[#allocation25_spill] sm:$0xff] }
 0x294   : > { %v5929_v34 = vpop.f32.mrf.mxu0  ;;  %v4286_v3 = vadd.f32 %v5815_v59, %v7963_v15 }
 0x295   : > { %v4591_v28 = vmax.f32 %v4553_v61, 0.0  ;;  %v4459_v30 = vadd.f32 %v5928_v25, %v4362_v5  ;;  %v7965_v5 = vld [vmem:[#allocation27_spill] sm:$0xff]  ;;  %v4378_v9 = vadd.f32 %v5876_v54, %v4281_v49  ;;  %v7966_v25 = vld [vmem:[#allocation26_spill] sm:$0xff]  ;;  %v7967_v61 = vld [vmem:[#allocation28_spill] sm:$0xff] }
 0x296   : > { %v5930_v0 = vpop.f32.mrf.mxu0  ;;  %v5879_v60 = vadd.f32 %v7965_v5, %v7964_v13 }
 0x297   : > { %4607 = vst [vmem:[%s7827_s20 + $0x40] sm:$0xff] %v4591_v28  ;;  %v5931_v31 = vadd.f32 %v5930_v0, %v5929_v34  ;;  %v4556_v10 = vadd.f32 %v4555_v56, %v4459_v30  ;;  %v5818_v34 = vadd.f32 %v7967_v61, %v7966_v25  ;;  %v4571_v30 = vpop.f32.mrf.mxu1  ;;  %v7968_v0 = vld [vmem:[#allocation7_spill] sm:$0xff] }
 0x298   : > { %v5932_v1 = vpop.f32.mrf.mxu0  ;;  %v4383_v45 = vadd.f32 %v5879_v60, %v4286_v3 }
 0x299   : > { %v4464_v11 = vadd.f32 %v5931_v31, %v4367_v12  ;;  %v4592_v48 = vmax.f32 %v4556_v10, 0.0  ;;  %v4289_v52 = vadd.f32 %v5818_v34, %v7968_v0 }
 0x29a   : > { %v5933_v24 = vpop.f32.mrf.mxu0 }
 0x29b   : > { %v4561_v36 = vadd.f32 %v5989_v47, %v4464_v11  ;;  %4608 = vst [vmem:[%s7827_s20 + $0x48] sm:$0xff] %v4592_v48  ;;  %v5934_v21 = vadd.f32 %v5933_v24, %v5932_v1  ;;  %v4386_v11 = vadd.f32 %v5882_v40, %v4289_v52 }
 0x29c   : > { %v5935_v6 = vpop.f32.mrf.mxu0 }
 0x29d   : > { %v4593_v46 = vmax.f32 %v4561_v36, 0.0  ;;  %v4467_v23 = vadd.f32 %v5934_v21, %v4370_v4 }
 0x29e   : > { %v5936_v2 = vpop.f32.mrf.mxu0 }
 0x29f   : > { %4609 = vst [vmem:[%s7827_s20 + $0x50] sm:$0xff] %v4593_v46  ;;  %v4564_v44 = vadd.f32 %v5990_v29, %v4467_v23  ;;  %v5937_v47 = vadd.f32 %v5936_v2, %v5935_v6 }
 0x2a0   : > { %v5938_v8 = vpop.f32.mrf.mxu0 }
 0x2a1   : > { %v4594_v20 = vmax.f32 %v4564_v44, 0.0  ;;  %v4472_v50 = vadd.f32 %v5937_v47, %v4375_v62 }
 0x2a2   : > { %v5939_v27 = vpop.f32.mrf.mxu0 }
 0x2a3   : > { %4610 = vst [vmem:[%s7827_s20 + $0x58] sm:$0xff] %v4594_v20  ;;  %v5940_v56 = vadd.f32 %v5939_v27, %v5938_v8  ;;  %v4569_v28 = vadd.f32 %v4568_v41, %v4472_v50 }
 0x2a4   : > { %v5941_v29 = vpop.f32.mrf.mxu0 }
 0x2a5   : > { %v4595_v12 = vmax.f32 %v4569_v28, 0.0  ;;  %v4475_v39 = vadd.f32 %v5940_v56, %v4378_v9 }
 0x2a6   : > { %v5942_v19 = vpop.f32.mrf.mxu0 }
 0x2a7   : > { %4611 = vst [vmem:[%s7827_s20 + $0x60] sm:$0xff] %v4595_v12  ;;  %v5943_v43 = vadd.f32 %v5942_v19, %v5941_v29  ;;  %v4572_v33 = vadd.f32 %v4571_v30, %v4475_v39 }
 0x2a8   : > { %v5944_v38 = vpop.f32.mrf.mxu0 }
 0x2a9   : > { %v4480_v31 = vadd.f32 %v5943_v43, %v4383_v45  ;;  %v4596_v10 = vmax.f32 %v4572_v33, 0.0 }
 0x2aa   : > { %v5945_v1 = vpop.f32.mrf.mxu0 }
 0x2ab   : > { %v4577_v48 = vadd.f32 %v5993_v22, %v4480_v31  ;;  %4612 = vst [vmem:[%s7827_s20 + $0x68] sm:$0xff] %v4596_v10  ;;  %v5946_v7 = vadd.f32 %v5945_v1, %v5944_v38 }
 0x2ad   : > { %v4597_v51 = vmax.f32 %v4577_v48, 0.0  ;;  %v4483_v53 = vadd.f32 %v5946_v7, %v4386_v11 }
 0x2af   : > { %4613 = vst [vmem:[%s7827_s20 + $0x70] sm:$0xff] %v4597_v51  ;;  %v4580_v16 = vadd.f32 %v5994_v18, %v4483_v53 }
 0x2b1   : > { %v4598_v58 = vmax.f32 %v4580_v16, 0.0 }
 0x2b3   : > { %4614 = vst [vmem:[%s7827_s20 + $0x78] sm:$0xff] %v4598_v58 }
 0x2b4 PF: > { %s13_s12 = sadd.s32 1, %s6546_s12  }
 0x2b5   : > { %p10_p4 = scmp.ge.s32.totalorder %s13_s12, 4  }
 0x2b7   :  { %12 = sbr.rel (!%p10_p4) target bundleno = 1 (0x1), region = 62 }

</bundles_post_ra>
